<compile_context>
chip_gen: v7x
topology: tpu7x:2x2x1
jax: 0.10.0
libtpu: 0.0.40
codegen_flags: <defaults>
</compile_context>

<pallas_src>
import functools

import jax
import jax.numpy as jnp
from jax import lax
from jax.experimental import pallas as pl
from jax.experimental.pallas import tpu as pltpu

BN_EPS = 1e-5


def _residual_block_kernel(N, H, W, C,
                           xpad_ref, w1_ref, b1_ref, gamma_ref, beta_ref,
                           w2_ref, b2_ref, out_ref, im_ref, ypad_ref):
    """conv3x3 -> BN(batch stats) -> ReLU -> conv3x3 -> +residual -> ReLU.

    xpad_ref : (N, H+2, W+2, C) bf16   spatially zero-padded input (NHWC)
    w1_ref   : (9*C, C) bf16           conv1 weights, tap-major rows (t*C + cin)
    b1_ref   : (1, C) f32
    gamma_ref, beta_ref : (1, C) f32   BN affine params
    w2_ref   : (9*C, C) bf16           conv2 weights
    b2_ref   : (1, C) f32
    out_ref  : (N*H*W, C) f32
    im_ref   : (N*H*W, 9*C) bf16       VMEM scratch: im2col staging (reused)
    ypad_ref : (N, H+2, W+2, C) bf16   VMEM scratch: padded ReLU(BN(conv1))
    """
    M = N * H * W
    Hp, Wp = H + 2, W + 2
    inv_m = 1.0 / float(M)

    # Zero only the 1-pixel border of the padded-intermediate scratch; its
    # interior is fully overwritten below before any tap reads it.
    zrow = jnp.zeros((N, 1, Wp, C), jnp.bfloat16)
    zcol = jnp.zeros((N, Hp, 1, C), jnp.bfloat16)
    ypad_ref[:, 0:1, :, :] = zrow
    ypad_ref[:, Hp - 1:Hp, :, :] = zrow
    ypad_ref[:, :, 0:1, :] = zcol
    ypad_ref[:, :, Wp - 1:Wp, :] = zcol

    # ---- conv1: build (M, 9C) im2col from static ref slices, one matmul -----
    for t in range(9):
        dy, dx = t // 3, t % 3
        im_ref[:, t * C:(t + 1) * C] = (
            xpad_ref[:, dy:dy + H, dx:dx + W, :].reshape(M, C))
    acc1 = jnp.dot(im_ref[...], w1_ref[...],
                   preferred_element_type=jnp.float32) + b1_ref[...]

    # ---- BatchNorm2d (training-mode batch stats, biased variance) -----------
    # Per-channel sums via ones-matmuls on the MXU (keeps BN off the XLU path).
    ones = jnp.ones((8, M), jnp.float32)
    s1 = jnp.dot(ones, acc1, preferred_element_type=jnp.float32)[0:1, :]
    s2 = jnp.dot(ones, acc1 * acc1, preferred_element_type=jnp.float32)[0:1, :]
    mean = s1 * inv_m
    var = jnp.maximum(s2 * inv_m - mean * mean, 0.0)
    scale = gamma_ref[...] * lax.rsqrt(var + BN_EPS)
    shift = beta_ref[...] - mean * scale
    y = jnp.maximum(acc1 * scale + shift, 0.0)          # BN affine + ReLU

    # ---- write interior of padded intermediate (bf16) -----------------------
    ypad_ref[:, 1:1 + H, 1:1 + W, :] = y.astype(jnp.bfloat16).reshape(N, H, W, C)

    # ---- conv2: rebuild im2col from the padded intermediate, one matmul -----
    for t in range(9):
        dy, dx = t // 3, t % 3
        im_ref[:, t * C:(t + 1) * C] = (
            ypad_ref[:, dy:dy + H, dx:dx + W, :].reshape(M, C))
    acc2 = jnp.dot(im_ref[...], w2_ref[...],
                   preferred_element_type=jnp.float32) + b2_ref[...]

    # ---- identity shortcut (center of padded input) + final ReLU ------------
    res = xpad_ref[:, 1:1 + H, 1:1 + W, :].reshape(M, C).astype(jnp.float32)
    out_ref[...] = jnp.maximum(acc2 + res, 0.0)


def residual_block_forward(x_nchw, params):
    """x_nchw: (N, C, H, W) float32. params: dict of conv/BN params (PyTorch layout)."""
    N, C, H, W = x_nchw.shape
    M = N * H * W

    # Layout glue (wrapper): NCHW -> NHWC, zero-pad spatially by 1, cast to bf16.
    x_nhwc = jnp.transpose(x_nchw.astype(jnp.float32), (0, 2, 3, 1))
    xpad = jnp.pad(x_nhwc, ((0, 0), (1, 1), (1, 1), (0, 0))).astype(jnp.bfloat16)

    # PyTorch conv weight (Cout, Cin, 3, 3) -> (9*Cin, Cout), tap-major rows.
    def taps(w):
        return jnp.transpose(w, (2, 3, 1, 0)).reshape(9 * C, C).astype(jnp.bfloat16)

    w1, w2 = taps(params["w1"]), taps(params["w2"])
    b1 = params["b1"].reshape(1, C).astype(jnp.float32)
    b2 = params["b2"].reshape(1, C).astype(jnp.float32)
    gamma = params["gamma"].reshape(1, C).astype(jnp.float32)
    beta = params["beta"].reshape(1, C).astype(jnp.float32)

    kernel = functools.partial(_residual_block_kernel, N, H, W, C)

    # Explicit VMEM budget: inputs + output + both scratches, with headroom.
    vmem_est = (xpad.size * 2 + (w1.size + w2.size) * 2 + M * C * 4
                + M * 9 * C * 2 + xpad.size * 2)
    vmem_limit = int(max(16 * 1024 * 1024, 2 * vmem_est + 4 * 1024 * 1024))

    flops = 2 * (2 * M * (9 * C) * C) + 2 * (2 * 8 * M * C)
    bytes_accessed = (xpad.size + w1.size + w2.size) * 2 + M * C * 4 + 5 * C * 4

    out_flat = pl.pallas_call(
        kernel,
        out_shape=jax.ShapeDtypeStruct((M, C), jnp.float32),
        in_specs=[pl.BlockSpec(memory_space=pltpu.MemorySpace.VMEM)] * 7,
        out_specs=pl.BlockSpec(memory_space=pltpu.MemorySpace.VMEM),
        scratch_shapes=[pltpu.VMEM((M, 9 * C), jnp.bfloat16),
                        pltpu.VMEM((N, H + 2, W + 2, C), jnp.bfloat16)],
        compiler_params=pltpu.CompilerParams(vmem_limit_bytes=vmem_limit),
        cost_estimate=pl.CostEstimate(flops=int(flops), transcendentals=int(C),
                                      bytes_accessed=int(bytes_accessed)),
    )(xpad, w1, b1, gamma, beta, w2, b2)

    # (M, C) -> NHWC -> NCHW to match the PyTorch output convention.
    return jnp.transpose(out_flat.reshape(N, H, W, C), (0, 3, 1, 2))


def residual_block_reference(x_nchw, params):
    """Pure-JAX f32 reference (NCHW convs) with identical semantics."""
    x = x_nchw.astype(jnp.float32)
    dn = lax.conv_dimension_numbers(x.shape, params["w1"].shape, ("NCHW", "OIHW", "NCHW"))

    def conv3x3(inp, w, b):
        y = lax.conv_general_dilated(inp, w, window_strides=(1, 1),
                                     padding=((1, 1), (1, 1)), dimension_numbers=dn,
                                     precision=lax.Precision.HIGHEST)
        return y + b.reshape(1, -1, 1, 1)

    y = conv3x3(x, params["w1"], params["b1"])
    mean = jnp.mean(y, axis=(0, 2, 3), keepdims=True)
    var = jnp.mean((y - mean) ** 2, axis=(0, 2, 3), keepdims=True)
    y = (y - mean) * lax.rsqrt(var + BN_EPS)
    y = y * params["gamma"].reshape(1, -1, 1, 1) + params["beta"].reshape(1, -1, 1, 1)
    y = jnp.maximum(y, 0.0)
    y = conv3x3(y, params["w2"], params["b2"])
    return jnp.maximum(y + x, 0.0)


def init_params(key, channels):
    """Deterministic synthetic parameters matching nn.Conv2d / nn.BatchNorm2d shapes."""
    k1, k2, k3, k4, k5, k6 = jax.random.split(key, 6)
    scale = 1.0 / (channels * 9) ** 0.5
    return {
        "w1": jax.random.uniform(k1, (channels, channels, 3, 3), jnp.float32, -scale, scale),
        "b1": jax.random.uniform(k2, (channels,), jnp.float32, -scale, scale),
        "gamma": 1.0 + 0.1 * jax.random.normal(k3, (channels,), jnp.float32),
        "beta": 0.1 * jax.random.normal(k4, (channels,), jnp.float32),
        "w2": jax.random.uniform(k5, (channels, channels, 3, 3), jnp.float32, -scale, scale),
        "b2": jax.random.uniform(k6, (channels,), jnp.float32, -scale, scale),
    }


if __name__ == "__main__":
    key = jax.random.PRNGKey(0)
    kx, kp = jax.random.split(key)

    # Lane-dense CIFAR ResNet deep-layer block shape: 128 channels at 8x8, batch 4.
    N, C, H, W = 4, 128, 8, 8
    x = jax.random.normal(kx, (N, C, H, W), jnp.float32)
    params = init_params(kp, C)

    out = jax.block_until_ready(residual_block_forward(x, params))
    ref = jax.block_until_ready(residual_block_reference(x, params))

    assert out.shape == (N, C, H, W), f"bad output shape {out.shape}"
    # bf16 conv operands with f32 accumulation -> slightly looser tolerance vs f32 reference.
    assert jnp.allclose(out, ref, rtol=2e-2, atol=2e-2), "Pallas kernel mismatch vs JAX reference"
    print("KERNEL_OK")
</pallas_src>

<mosaic_0001>
module attributes {stable_mosaic.version = 11 : i64} {
  func.func @_residual_block_kernel(%arg0: memref<4x10x10x128xbf16, #tpu.memory_space<vmem>>, %arg1: memref<1152x128xbf16, #tpu.memory_space<vmem>>, %arg2: memref<1x128xf32, #tpu.memory_space<vmem>>, %arg3: memref<1x128xf32, #tpu.memory_space<vmem>>, %arg4: memref<1x128xf32, #tpu.memory_space<vmem>>, %arg5: memref<1152x128xbf16, #tpu.memory_space<vmem>>, %arg6: memref<1x128xf32, #tpu.memory_space<vmem>>, %arg7: memref<256x128xf32, #tpu.memory_space<vmem>>, %arg8: memref<256x1152xbf16, #tpu.memory_space<vmem>>, %arg9: memref<4x10x10x128xbf16, #tpu.memory_space<vmem>>) attributes {dimension_semantics = [], scalar_prefetch = 0 : i64, scratch_operands = 2 : i64, tpu.core_type = #tpu.core_type<tc>} {
    %cst = arith.constant 0.000000e+00 : bf16
    %0 = vector.broadcast %cst : bf16 to vector<4x1x10x128xbf16>
    %cst_0 = arith.constant 0.000000e+00 : bf16
    %1 = vector.broadcast %cst_0 : bf16 to vector<4x10x1x128xbf16>
    %c0 = arith.constant 0 : index
    %c0_1 = arith.constant 0 : index
    %c0_2 = arith.constant 0 : index
    %c0_3 = arith.constant 0 : index
    %2 = vector.load %arg9[%c0, %c0_1, %c0_2, %c0_3] : memref<4x10x10x128xbf16, #tpu.memory_space<vmem>>, vector<4x1x10x128xbf16>
    tpu.vector_store %arg9[%c0, %c0_1, %c0_2, %c0_3], %0 {strides = array<i32>} : memref<4x10x10x128xbf16, #tpu.memory_space<vmem>>, vector<4x1x10x128xbf16>,
    %c0_4 = arith.constant 0 : index
    %c9 = arith.constant 9 : index
    %c0_5 = arith.constant 0 : index
    %c0_6 = arith.constant 0 : index
    %3 = vector.load %arg9[%c0_4, %c9, %c0_5, %c0_6] : memref<4x10x10x128xbf16, #tpu.memory_space<vmem>>, vector<4x1x10x128xbf16>
    tpu.vector_store %arg9[%c0_4, %c9, %c0_5, %c0_6], %0 {strides = array<i32>} : memref<4x10x10x128xbf16, #tpu.memory_space<vmem>>, vector<4x1x10x128xbf16>,
    %c0_7 = arith.constant 0 : index
    %c0_8 = arith.constant 0 : index
    %c0_9 = arith.constant 0 : index
    %c0_10 = arith.constant 0 : index
    %4 = vector.load %arg9[%c0_7, %c0_8, %c0_9, %c0_10] : memref<4x10x10x128xbf16, #tpu.memory_space<vmem>>, vector<4x10x1x128xbf16>
    tpu.vector_store %arg9[%c0_7, %c0_8, %c0_9, %c0_10], %1 {strides = array<i32>} : memref<4x10x10x128xbf16, #tpu.memory_space<vmem>>, vector<4x10x1x128xbf16>,
    %c0_11 = arith.constant 0 : index
    %c0_12 = arith.constant 0 : index
    %c9_13 = arith.constant 9 : index
    %c0_14 = arith.constant 0 : index
    %5 = vector.load %arg9[%c0_11, %c0_12, %c9_13, %c0_14] : memref<4x10x10x128xbf16, #tpu.memory_space<vmem>>, vector<4x10x1x128xbf16>
    tpu.vector_store %arg9[%c0_11, %c0_12, %c9_13, %c0_14], %1 {strides = array<i32>} : memref<4x10x10x128xbf16, #tpu.memory_space<vmem>>, vector<4x10x1x128xbf16>,
    %c0_15 = arith.constant 0 : index
    %c0_16 = arith.constant 0 : index
    %c0_17 = arith.constant 0 : index
    %c0_18 = arith.constant 0 : index
    %6 = vector.load %arg0[%c0_15, %c0_16, %c0_17, %c0_18] : memref<4x10x10x128xbf16, #tpu.memory_space<vmem>>, vector<4x8x8x128xbf16>
    %7 = vector.shape_cast %6 : vector<4x8x8x128xbf16> to vector<256x128xbf16>
    %c0_19 = arith.constant 0 : index
    %c0_20 = arith.constant 0 : index
    %8 = vector.load %arg8[%c0_19, %c0_20] : memref<256x1152xbf16, #tpu.memory_space<vmem>>, vector<256x128xbf16>
    tpu.vector_store %arg8[%c0_19, %c0_20], %7 {strides = array<i32>} : memref<256x1152xbf16, #tpu.memory_space<vmem>>, vector<256x128xbf16>,
    %c0_21 = arith.constant 0 : index
    %c0_22 = arith.constant 0 : index
    %c1 = arith.constant 1 : index
    %c0_23 = arith.constant 0 : index
    %9 = vector.load %arg0[%c0_21, %c0_22, %c1, %c0_23] : memref<4x10x10x128xbf16, #tpu.memory_space<vmem>>, vector<4x8x8x128xbf16>
    %10 = vector.shape_cast %9 : vector<4x8x8x128xbf16> to vector<256x128xbf16>
    %c0_24 = arith.constant 0 : index
    %c128 = arith.constant 128 : index
    %11 = vector.load %arg8[%c0_24, %c128] : memref<256x1152xbf16, #tpu.memory_space<vmem>>, vector<256x128xbf16>
    tpu.vector_store %arg8[%c0_24, %c128], %10 {strides = array<i32>} : memref<256x1152xbf16, #tpu.memory_space<vmem>>, vector<256x128xbf16>,
    %c0_25 = arith.constant 0 : index
    %c0_26 = arith.constant 0 : index
    %c2 = arith.constant 2 : index
    %c0_27 = arith.constant 0 : index
    %12 = vector.load %arg0[%c0_25, %c0_26, %c2, %c0_27] : memref<4x10x10x128xbf16, #tpu.memory_space<vmem>>, vector<4x8x8x128xbf16>
    %13 = vector.shape_cast %12 : vector<4x8x8x128xbf16> to vector<256x128xbf16>
    %c0_28 = arith.constant 0 : index
    %c256 = arith.constant 256 : index
    %14 = vector.load %arg8[%c0_28, %c256] : memref<256x1152xbf16, #tpu.memory_space<vmem>>, vector<256x128xbf16>
    tpu.vector_store %arg8[%c0_28, %c256], %13 {strides = array<i32>} : memref<256x1152xbf16, #tpu.memory_space<vmem>>, vector<256x128xbf16>,
    %c0_29 = arith.constant 0 : index
    %c1_30 = arith.constant 1 : index
    %c0_31 = arith.constant 0 : index
    %c0_32 = arith.constant 0 : index
    %15 = vector.load %arg0[%c0_29, %c1_30, %c0_31, %c0_32] : memref<4x10x10x128xbf16, #tpu.memory_space<vmem>>, vector<4x8x8x128xbf16>
    %16 = vector.shape_cast %15 : vector<4x8x8x128xbf16> to vector<256x128xbf16>
    %c0_33 = arith.constant 0 : index
    %c384 = arith.constant 384 : index
    %17 = vector.load %arg8[%c0_33, %c384] : memref<256x1152xbf16, #tpu.memory_space<vmem>>, vector<256x128xbf16>
    tpu.vector_store %arg8[%c0_33, %c384], %16 {strides = array<i32>} : memref<256x1152xbf16, #tpu.memory_space<vmem>>, vector<256x128xbf16>,
    %c0_34 = arith.constant 0 : index
    %c1_35 = arith.constant 1 : index
    %c1_36 = arith.constant 1 : index
    %c0_37 = arith.constant 0 : index
    %18 = vector.load %arg0[%c0_34, %c1_35, %c1_36, %c0_37] : memref<4x10x10x128xbf16, #tpu.memory_space<vmem>>, vector<4x8x8x128xbf16>
    %19 = vector.shape_cast %18 : vector<4x8x8x128xbf16> to vector<256x128xbf16>
    %c0_38 = arith.constant 0 : index
    %c512 = arith.constant 512 : index
    %20 = vector.load %arg8[%c0_38, %c512] : memref<256x1152xbf16, #tpu.memory_space<vmem>>, vector<256x128xbf16>
    tpu.vector_store %arg8[%c0_38, %c512], %19 {strides = array<i32>} : memref<256x1152xbf16, #tpu.memory_space<vmem>>, vector<256x128xbf16>,
    %c0_39 = arith.constant 0 : index
    %c1_40 = arith.constant 1 : index
    %c2_41 = arith.constant 2 : index
    %c0_42 = arith.constant 0 : index
    %21 = vector.load %arg0[%c0_39, %c1_40, %c2_41, %c0_42] : memref<4x10x10x128xbf16, #tpu.memory_space<vmem>>, vector<4x8x8x128xbf16>
    %22 = vector.shape_cast %21 : vector<4x8x8x128xbf16> to vector<256x128xbf16>
    %c0_43 = arith.constant 0 : index
    %c640 = arith.constant 640 : index
    %23 = vector.load %arg8[%c0_43, %c640] : memref<256x1152xbf16, #tpu.memory_space<vmem>>, vector<256x128xbf16>
    tpu.vector_store %arg8[%c0_43, %c640], %22 {strides = array<i32>} : memref<256x1152xbf16, #tpu.memory_space<vmem>>, vector<256x128xbf16>,
    %c0_44 = arith.constant 0 : index
    %c2_45 = arith.constant 2 : index
    %c0_46 = arith.constant 0 : index
    %c0_47 = arith.constant 0 : index
    %24 = vector.load %arg0[%c0_44, %c2_45, %c0_46, %c0_47] : memref<4x10x10x128xbf16, #tpu.memory_space<vmem>>, vector<4x8x8x128xbf16>
    %25 = vector.shape_cast %24 : vector<4x8x8x128xbf16> to vector<256x128xbf16>
    %c0_48 = arith.constant 0 : index
    %c768 = arith.constant 768 : index
    %26 = vector.load %arg8[%c0_48, %c768] : memref<256x1152xbf16, #tpu.memory_space<vmem>>, vector<256x128xbf16>
    tpu.vector_store %arg8[%c0_48, %c768], %25 {strides = array<i32>} : memref<256x1152xbf16, #tpu.memory_space<vmem>>, vector<256x128xbf16>,
    %c0_49 = arith.constant 0 : index
    %c2_50 = arith.constant 2 : index
    %c1_51 = arith.constant 1 : index
    %c0_52 = arith.constant 0 : index
    %27 = vector.load %arg0[%c0_49, %c2_50, %c1_51, %c0_52] : memref<4x10x10x128xbf16, #tpu.memory_space<vmem>>, vector<4x8x8x128xbf16>
    %28 = vector.shape_cast %27 : vector<4x8x8x128xbf16> to vector<256x128xbf16>
    %c0_53 = arith.constant 0 : index
    %c896 = arith.constant 896 : index
    %29 = vector.load %arg8[%c0_53, %c896] : memref<256x1152xbf16, #tpu.memory_space<vmem>>, vector<256x128xbf16>
    tpu.vector_store %arg8[%c0_53, %c896], %28 {strides = array<i32>} : memref<256x1152xbf16, #tpu.memory_space<vmem>>, vector<256x128xbf16>,
    %c0_54 = arith.constant 0 : index
    %c2_55 = arith.constant 2 : index
    %c2_56 = arith.constant 2 : index
    %c0_57 = arith.constant 0 : index
    %30 = vector.load %arg0[%c0_54, %c2_55, %c2_56, %c0_57] : memref<4x10x10x128xbf16, #tpu.memory_space<vmem>>, vector<4x8x8x128xbf16>
    %31 = vector.shape_cast %30 : vector<4x8x8x128xbf16> to vector<256x128xbf16>
    %c0_58 = arith.constant 0 : index
    %c1024 = arith.constant 1024 : index
    %32 = vector.load %arg8[%c0_58, %c1024] : memref<256x1152xbf16, #tpu.memory_space<vmem>>, vector<256x128xbf16>
    tpu.vector_store %arg8[%c0_58, %c1024], %31 {strides = array<i32>} : memref<256x1152xbf16, #tpu.memory_space<vmem>>, vector<256x128xbf16>,
    %c0_59 = arith.constant 0 : index
    %c0_60 = arith.constant 0 : index
    %33 = vector.load %arg8[%c0_59, %c0_60] : memref<256x1152xbf16, #tpu.memory_space<vmem>>, vector<256x1152xbf16>
    %c0_61 = arith.constant 0 : index
    %c0_62 = arith.constant 0 : index
    %34 = vector.load %arg1[%c0_61, %c0_62] : memref<1152x128xbf16, #tpu.memory_space<vmem>>, vector<1152x128xbf16>
    %cst_63 = arith.constant dense<0.000000e+00> : vector<256x128xf32>
    %35 = tpu.matmul %33, %34, %cst_63 {dimension_numbers = #tpu.dot_dimension_numbers<[1], [0], [0], [1], [0, 0, 1, 1], [], []>} : vector<256x1152xbf16>, vector<1152x128xbf16>, vector<256x128xf32> -> vector<256x128xf32>
    %c0_64 = arith.constant 0 : index
    %c0_65 = arith.constant 0 : index
    %36 = vector.load %arg2[%c0_64, %c0_65] : memref<1x128xf32, #tpu.memory_space<vmem>>, vector<1x128xf32>
    %37 = vector.broadcast %36 : vector<1x128xf32> to vector<256x128xf32>
    %38 = arith.addf %35, %37 : vector<256x128xf32>
    %cst_66 = arith.constant 1.000000e+00 : f32
    %39 = vector.broadcast %cst_66 : f32 to vector<8x256xf32>
    %cst_67 = arith.constant dense<0.000000e+00> : vector<8x128xf32>
    %40 = tpu.matmul %39, %38, %cst_67 {dimension_numbers = #tpu.dot_dimension_numbers<[1], [0], [0], [1], [0, 0, 1, 1], [], []>} : vector<8x256xf32>, vector<256x128xf32>, vector<8x128xf32> -> vector<8x128xf32>
    %41 = vector.extract_strided_slice %40 {offsets = [0, 0], sizes = [1, 128], strides = [1, 1]} : vector<8x128xf32> to vector<1x128xf32>
    %42 = arith.mulf %38, %38 : vector<256x128xf32>
    %cst_68 = arith.constant dense<0.000000e+00> : vector<8x128xf32>
    %43 = tpu.matmul %39, %42, %cst_68 {dimension_numbers = #tpu.dot_dimension_numbers<[1], [0], [0], [1], [0, 0, 1, 1], [], []>} : vector<8x256xf32>, vector<256x128xf32>, vector<8x128xf32> -> vector<8x128xf32>
    %44 = vector.extract_strided_slice %43 {offsets = [0, 0], sizes = [1, 128], strides = [1, 1]} : vector<8x128xf32> to vector<1x128xf32>
    %cst_69 = arith.constant 3.906250e-03 : f32
    %45 = vector.broadcast %cst_69 : f32 to vector<1x128xf32>
    %46 = arith.mulf %41, %45 : vector<1x128xf32>
    %cst_70 = arith.constant 3.906250e-03 : f32
    %47 = vector.broadcast %cst_70 : f32 to vector<1x128xf32>
    %48 = arith.mulf %44, %47 : vector<1x128xf32>
    %49 = arith.mulf %46, %46 : vector<1x128xf32>
    %50 = arith.subf %48, %49 : vector<1x128xf32>
    %cst_71 = arith.constant 0.000000e+00 : f32
    %51 = vector.broadcast %cst_71 : f32 to vector<1x128xf32>
    %52 = arith.maximumf %50, %51 : vector<1x128xf32>
    %c0_72 = arith.constant 0 : index
    %c0_73 = arith.constant 0 : index
    %53 = vector.load %arg3[%c0_72, %c0_73] : memref<1x128xf32, #tpu.memory_space<vmem>>, vector<1x128xf32>
    %cst_74 = arith.constant 9.99999974E-6 : f32
    %54 = vector.broadcast %cst_74 : f32 to vector<1x128xf32>
    %55 = arith.addf %52, %54 : vector<1x128xf32>
    %56 = math.rsqrt %55 : vector<1x128xf32>
    %57 = arith.mulf %53, %56 : vector<1x128xf32>
    %c0_75 = arith.constant 0 : index
    %c0_76 = arith.constant 0 : index
    %58 = vector.load %arg4[%c0_75, %c0_76] : memref<1x128xf32, #tpu.memory_space<vmem>>, vector<1x128xf32>
    %59 = arith.mulf %46, %57 : vector<1x128xf32>
    %60 = arith.subf %58, %59 : vector<1x128xf32>
    %61 = vector.broadcast %57 : vector<1x128xf32> to vector<256x128xf32>
    %62 = arith.mulf %38, %61 : vector<256x128xf32>
    %63 = vector.broadcast %60 : vector<1x128xf32> to vector<256x128xf32>
    %64 = arith.addf %62, %63 : vector<256x128xf32>
    %cst_77 = arith.constant 0.000000e+00 : f32
    %65 = vector.broadcast %cst_77 : f32 to vector<256x128xf32>
    %66 = arith.maximumf %64, %65 : vector<256x128xf32>
    %67 = arith.truncf %66 : vector<256x128xf32> to vector<256x128xbf16>
    %68 = vector.shape_cast %67 : vector<256x128xbf16> to vector<4x8x8x128xbf16>
    %c0_78 = arith.constant 0 : index
    %c1_79 = arith.constant 1 : index
    %c1_80 = arith.constant 1 : index
    %c0_81 = arith.constant 0 : index
    %69 = vector.load %arg9[%c0_78, %c1_79, %c1_80, %c0_81] : memref<4x10x10x128xbf16, #tpu.memory_space<vmem>>, vector<4x8x8x128xbf16>
    tpu.vector_store %arg9[%c0_78, %c1_79, %c1_80, %c0_81], %68 {strides = array<i32>} : memref<4x10x10x128xbf16, #tpu.memory_space<vmem>>, vector<4x8x8x128xbf16>,
    %c0_82 = arith.constant 0 : index
    %c0_83 = arith.constant 0 : index
    %c0_84 = arith.constant 0 : index
    %c0_85 = arith.constant 0 : index
    %70 = vector.load %arg9[%c0_82, %c0_83, %c0_84, %c0_85] : memref<4x10x10x128xbf16, #tpu.memory_space<vmem>>, vector<4x8x8x128xbf16>
    %71 = vector.shape_cast %70 : vector<4x8x8x128xbf16> to vector<256x128xbf16>
    %c0_86 = arith.constant 0 : index
    %c0_87 = arith.constant 0 : index
    %72 = vector.load %arg8[%c0_86, %c0_87] : memref<256x1152xbf16, #tpu.memory_space<vmem>>, vector<256x128xbf16>
    tpu.vector_store %arg8[%c0_86, %c0_87], %71 {strides = array<i32>} : memref<256x1152xbf16, #tpu.memory_space<vmem>>, vector<256x128xbf16>,
    %c0_88 = arith.constant 0 : index
    %c0_89 = arith.constant 0 : index
    %c1_90 = arith.constant 1 : index
    %c0_91 = arith.constant 0 : index
    %73 = vector.load %arg9[%c0_88, %c0_89, %c1_90, %c0_91] : memref<4x10x10x128xbf16, #tpu.memory_space<vmem>>, vector<4x8x8x128xbf16>
    %74 = vector.shape_cast %73 : vector<4x8x8x128xbf16> to vector<256x128xbf16>
    %c0_92 = arith.constant 0 : index
    %c128_93 = arith.constant 128 : index
    %75 = vector.load %arg8[%c0_92, %c128_93] : memref<256x1152xbf16, #tpu.memory_space<vmem>>, vector<256x128xbf16>
    tpu.vector_store %arg8[%c0_92, %c128_93], %74 {strides = array<i32>} : memref<256x1152xbf16, #tpu.memory_space<vmem>>, vector<256x128xbf16>,
    %c0_94 = arith.constant 0 : index
    %c0_95 = arith.constant 0 : index
    %c2_96 = arith.constant 2 : index
    %c0_97 = arith.constant 0 : index
    %76 = vector.load %arg9[%c0_94, %c0_95, %c2_96, %c0_97] : memref<4x10x10x128xbf16, #tpu.memory_space<vmem>>, vector<4x8x8x128xbf16>
    %77 = vector.shape_cast %76 : vector<4x8x8x128xbf16> to vector<256x128xbf16>
    %c0_98 = arith.constant 0 : index
    %c256_99 = arith.constant 256 : index
    %78 = vector.load %arg8[%c0_98, %c256_99] : memref<256x1152xbf16, #tpu.memory_space<vmem>>, vector<256x128xbf16>
    tpu.vector_store %arg8[%c0_98, %c256_99], %77 {strides = array<i32>} : memref<256x1152xbf16, #tpu.memory_space<vmem>>, vector<256x128xbf16>,
    %c0_100 = arith.constant 0 : index
    %c1_101 = arith.constant 1 : index
    %c0_102 = arith.constant 0 : index
    %c0_103 = arith.constant 0 : index
    %79 = vector.load %arg9[%c0_100, %c1_101, %c0_102, %c0_103] : memref<4x10x10x128xbf16, #tpu.memory_space<vmem>>, vector<4x8x8x128xbf16>
    %80 = vector.shape_cast %79 : vector<4x8x8x128xbf16> to vector<256x128xbf16>
    %c0_104 = arith.constant 0 : index
    %c384_105 = arith.constant 384 : index
    %81 = vector.load %arg8[%c0_104, %c384_105] : memref<256x1152xbf16, #tpu.memory_space<vmem>>, vector<256x128xbf16>
    tpu.vector_store %arg8[%c0_104, %c384_105], %80 {strides = array<i32>} : memref<256x1152xbf16, #tpu.memory_space<vmem>>, vector<256x128xbf16>,
    %c0_106 = arith.constant 0 : index
    %c1_107 = arith.constant 1 : index
    %c1_108 = arith.constant 1 : index
    %c0_109 = arith.constant 0 : index
    %82 = vector.load %arg9[%c0_106, %c1_107, %c1_108, %c0_109] : memref<4x10x10x128xbf16, #tpu.memory_space<vmem>>, vector<4x8x8x128xbf16>
    %83 = vector.shape_cast %82 : vector<4x8x8x128xbf16> to vector<256x128xbf16>
    %c0_110 = arith.constant 0 : index
    %c512_111 = arith.constant 512 : index
    %84 = vector.load %arg8[%c0_110, %c512_111] : memref<256x1152xbf16, #tpu.memory_space<vmem>>, vector<256x128xbf16>
    tpu.vector_store %arg8[%c0_110, %c512_111], %83 {strides = array<i32>} : memref<256x1152xbf16, #tpu.memory_space<vmem>>, vector<256x128xbf16>,
    %c0_112 = arith.constant 0 : index
    %c1_113 = arith.constant 1 : index
    %c2_114 = arith.constant 2 : index
    %c0_115 = arith.constant 0 : index
    %85 = vector.load %arg9[%c0_112, %c1_113, %c2_114, %c0_115] : memref<4x10x10x128xbf16, #tpu.memory_space<vmem>>, vector<4x8x8x128xbf16>
    %86 = vector.shape_cast %85 : vector<4x8x8x128xbf16> to vector<256x128xbf16>
    %c0_116 = arith.constant 0 : index
    %c640_117 = arith.constant 640 : index
    %87 = vector.load %arg8[%c0_116, %c640_117] : memref<256x1152xbf16, #tpu.memory_space<vmem>>, vector<256x128xbf16>
    tpu.vector_store %arg8[%c0_116, %c640_117], %86 {strides = array<i32>} : memref<256x1152xbf16, #tpu.memory_space<vmem>>, vector<256x128xbf16>,
    %c0_118 = arith.constant 0 : index
    %c2_119 = arith.constant 2 : index
    %c0_120 = arith.constant 0 : index
    %c0_121 = arith.constant 0 : index
    %88 = vector.load %arg9[%c0_118, %c2_119, %c0_120, %c0_121] : memref<4x10x10x128xbf16, #tpu.memory_space<vmem>>, vector<4x8x8x128xbf16>
    %89 = vector.shape_cast %88 : vector<4x8x8x128xbf16> to vector<256x128xbf16>
    %c0_122 = arith.constant 0 : index
    %c768_123 = arith.constant 768 : index
    %90 = vector.load %arg8[%c0_122, %c768_123] : memref<256x1152xbf16, #tpu.memory_space<vmem>>, vector<256x128xbf16>
    tpu.vector_store %arg8[%c0_122, %c768_123], %89 {strides = array<i32>} : memref<256x1152xbf16, #tpu.memory_space<vmem>>, vector<256x128xbf16>,
    %c0_124 = arith.constant 0 : index
    %c2_125 = arith.constant 2 : index
    %c1_126 = arith.constant 1 : index
    %c0_127 = arith.constant 0 : index
    %91 = vector.load %arg9[%c0_124, %c2_125, %c1_126, %c0_127] : memref<4x10x10x128xbf16, #tpu.memory_space<vmem>>, vector<4x8x8x128xbf16>
    %92 = vector.shape_cast %91 : vector<4x8x8x128xbf16> to vector<256x128xbf16>
    %c0_128 = arith.constant 0 : index
    %c896_129 = arith.constant 896 : index
    %93 = vector.load %arg8[%c0_128, %c896_129] : memref<256x1152xbf16, #tpu.memory_space<vmem>>, vector<256x128xbf16>
    tpu.vector_store %arg8[%c0_128, %c896_129], %92 {strides = array<i32>} : memref<256x1152xbf16, #tpu.memory_space<vmem>>, vector<256x128xbf16>,
    %c0_130 = arith.constant 0 : index
    %c2_131 = arith.constant 2 : index
    %c2_132 = arith.constant 2 : index
    %c0_133 = arith.constant 0 : index
    %94 = vector.load %arg9[%c0_130, %c2_131, %c2_132, %c0_133] : memref<4x10x10x128xbf16, #tpu.memory_space<vmem>>, vector<4x8x8x128xbf16>
    %95 = vector.shape_cast %94 : vector<4x8x8x128xbf16> to vector<256x128xbf16>
    %c0_134 = arith.constant 0 : index
    %c1024_135 = arith.constant 1024 : index
    %96 = vector.load %arg8[%c0_134, %c1024_135] : memref<256x1152xbf16, #tpu.memory_space<vmem>>, vector<256x128xbf16>
    tpu.vector_store %arg8[%c0_134, %c1024_135], %95 {strides = array<i32>} : memref<256x1152xbf16, #tpu.memory_space<vmem>>, vector<256x128xbf16>,
    %c0_136 = arith.constant 0 : index
    %c0_137 = arith.constant 0 : index
    %97 = vector.load %arg8[%c0_136, %c0_137] : memref<256x1152xbf16, #tpu.memory_space<vmem>>, vector<256x1152xbf16>
    %c0_138 = arith.constant 0 : index
    %c0_139 = arith.constant 0 : index
    %98 = vector.load %arg5[%c0_138, %c0_139] : memref<1152x128xbf16, #tpu.memory_space<vmem>>, vector<1152x128xbf16>
    %cst_140 = arith.constant dense<0.000000e+00> : vector<256x128xf32>
    %99 = tpu.matmul %97, %98, %cst_140 {dimension_numbers = #tpu.dot_dimension_numbers<[1], [0], [0], [1], [0, 0, 1, 1], [], []>} : vector<256x1152xbf16>, vector<1152x128xbf16>, vector<256x128xf32> -> vector<256x128xf32>
    %c0_141 = arith.constant 0 : index
    %c0_142 = arith.constant 0 : index
    %100 = vector.load %arg6[%c0_141, %c0_142] : memref<1x128xf32, #tpu.memory_space<vmem>>, vector<1x128xf32>
    %101 = vector.broadcast %100 : vector<1x128xf32> to vector<256x128xf32>
    %102 = arith.addf %99, %101 : vector<256x128xf32>
    %c0_143 = arith.constant 0 : index
    %c1_144 = arith.constant 1 : index
    %c1_145 = arith.constant 1 : index
    %c0_146 = arith.constant 0 : index
    %103 = vector.load %arg0[%c0_143, %c1_144, %c1_145, %c0_146] : memref<4x10x10x128xbf16, #tpu.memory_space<vmem>>, vector<4x8x8x128xbf16>
    %104 = vector.shape_cast %103 : vector<4x8x8x128xbf16> to vector<256x128xbf16>
    %105 = arith.extf %104 : vector<256x128xbf16> to vector<256x128xf32>
    %106 = arith.addf %102, %105 : vector<256x128xf32>
    %cst_147 = arith.constant 0.000000e+00 : f32
    %107 = vector.broadcast %cst_147 : f32 to vector<256x128xf32>
    %108 = arith.maximumf %106, %107 : vector<256x128xf32>
    %c0_148 = arith.constant 0 : index
    %c0_149 = arith.constant 0 : index
    %109 = vector.load %arg7[%c0_148, %c0_149] : memref<256x128xf32, #tpu.memory_space<vmem>>, vector<256x128xf32>
    tpu.vector_store %arg7[%c0_148, %c0_149], %108 {strides = array<i32>} : memref<256x128xf32, #tpu.memory_space<vmem>>, vector<256x128xf32>,
    return
  }
}

</mosaic_0001>

<bundles_post_ra>
// kernel: tpu_custom_call.1
= control target key start
LH: loop header
LB: loop body
LE: loop exit
PB: predicated region body
PF: predicated region fallthrough
CT: control target
= control target key end

     0   :  { %12 = vsyncpa [#allocation5], 0  ;;  %s19170_s0 = inlined_call_operand.vmem [shape: bf16[4,10,10,128], index: 0, kind: input, shape index: {}]   ;;  %s19171_s1 = inlined_call_operand.hbm [shape: bf16[1152,128], index: 1, kind: input, shape index: {}]   ;;  %s19172_s2 = inlined_call_operand.vmem [shape: f32[1,128], index: 2, kind: input, shape index: {}]   ;;  %s19173_s3 = inlined_call_operand.vmem [shape: f32[1,128], index: 3, kind: input, shape index: {}]   ;;  %s19174_s4 = inlined_call_operand.vmem [shape: f32[1,128], index: 4, kind: input, shape index: {}]   ;;  %s19175_s5 = inlined_call_operand.hbm [shape: bf16[1152,128], index: 5, kind: input, shape index: {}]   ;;  %s19176_s6 = inlined_call_operand.vmem [shape: f32[1,128], index: 6, kind: input, shape index: {}]   ;;  %s19177_s7 = inlined_call_operand.hbm [shape: f32[256,128], index: 7, kind: output, shape index: {}]  }
   0x1   :  { %13 = vsyncpa [#allocation8], 0 }
   0x2   :  { %14 = vsyncpa [#allocation6], 0  ;;  %s14004_s24 = smov [#allocation4]   ;;  %s13932_s28 = scalar_lea.hbm %s19171_s1, 9216 }
   0x3   :  { %s22_s25 = sshll.u32 %s14004_s24, 4  ;;  %p13933_p0 = scmp.ne.s32.totalorder %s19171_s1, %s13932_s28  ;;  %s23_s25 = int_to_ptr.vmem [resolvable:$true] %s22_s25 }
   0x4   :  { %p13936_p1 = scmp.lt.u32.totalorder %s13932_s28, %s19171_s1 }
   0x6   :  { %p13938_p2 = pnand %p13936_p1, %p13933_p0 }
   0x8   :  { %13941 = shalt.err (!%p13938_p2)
}
   0x9   :  { %s13942_s10 = scalar_lea.vmem %s23_s25, 9216  ;;  %p13947_p4 = scmp.lt.s32.totalorder %s23_s25, %s23_s25 }
   0xa   :  { %p13943_p3 = scmp.ne.s32.totalorder %s23_s25, %s13942_s10  ;;  %p13948_p5 = scmp.lt.s32.totalorder %s13942_s10, %s13942_s10 }
   0xc   :  { %p13949_p6 = por %p13948_p5, %p13947_p4 }
   0xe   :  { %p13950_p7 = pnand %p13949_p6, %p13943_p3 }
  0x10   :  { %13953 = shalt.err (!%p13950_p7)
}
  0x11   :  { %s14005_s11 = smov 64   ;;  %s14006_s12 = smov 4  }
  0x12   :  { %28 = dma.hbm_to_vmem [thread:$0]  %s19171_s1, 9216, %s23_s25, [#allocation5], %s14005_s11, %s14005_s11, %s14006_s12  }
  0x13   :  { %s14007_s15 = smov [#allocation7]   ;;  %s13954_s19 = scalar_lea.hbm %s19175_s5, 9216 }
  0x14   :  { %s40_s16 = sshll.u32 %s14007_s15, 4  ;;  %p13955_p8 = scmp.ne.s32.totalorder %s19175_s5, %s13954_s19  ;;  %s41_s16 = int_to_ptr.vmem [resolvable:$true] %s40_s16 }
  0x15   :  { %p13958_p9 = scmp.lt.u32.totalorder %s13954_s19, %s19175_s5 }
  0x17   :  { %p13960_p10 = pnand %p13958_p9, %p13955_p8 }
  0x19   :  { %13963 = shalt.err (!%p13960_p10)
}
  0x1a   :  { %s13964_s24 = scalar_lea.vmem %s41_s16, 9216  ;;  %p13969_p12 = scmp.lt.s32.totalorder %s41_s16, %s41_s16 }
  0x1b   :  { %p13965_p11 = scmp.ne.s32.totalorder %s41_s16, %s13964_s24  ;;  %p13970_p13 = scmp.lt.s32.totalorder %s13964_s24, %s13964_s24 }
  0x1d   :  { %p13971_p0 = por %p13970_p13, %p13969_p12 }
  0x1f   :  { %p13972_p1 = pnand %p13971_p0, %p13965_p11 }
  0x21   :  { %13975 = shalt.err (!%p13972_p1)
}
  0x22   :  { %46 = dma.hbm_to_vmem [thread:$0]  %s19175_s5, 9216, %s41_s16, [#allocation8], %s14005_s11, %s14005_s11, %s14006_s12  }
  0x23   :  { %13998 = dma.done.wait [#allocation5], 9216  }
  0x24   :  { %13999 = vsyncadd [#allocation5], 4294958080 }
  0x25   :  { %14000 = dma.done.wait [#allocation8], 9216  }
  0x26   :  { %14001 = vsyncadd [#allocation8], 4294958080  ;;  %v13689_v0 = vld [vmem:[#allocation4 + $0x40] sm:$0xff]   ;;  %v13691_v2 = vld [vmem:[#allocation4 + $0x48] sm:$0xff]   ;;  %vm526_vm0 = vsmask.f32 3328 }
  0x27   :  { %v13690_v1 = vld [vmem:[#allocation4] sm:$0xff]   ;;  %12490 = vmatprep.subr.bf16.mxu0 %v13689_v0  ;;  %13664 = vmatprep.subr.bf16.mxu1 %v13689_v0  ;;  %v13692_v3 = vld [vmem:[#allocation4 + $0x8] sm:$0xff]   ;;  %v13693_v4 = vld [vmem:[#allocation4 + $0x50] sm:$0xff]   ;;  %vm527_vm1 = vsmask.f32 7440  ;;  %v19205_v39 = vmov 0 }
  0x28   :  { %12491 = vmatpush3.bf16.msra.mxu0 %v13690_v1  ;;  %13672 = vmatpush3.bf16.msra.mxu1 %v13690_v1  ;;  %v13694_v5 = vld [vmem:[#allocation4 + $0x10] sm:$0xff]   ;;  %v13695_v6 = vld [vmem:[#allocation4 + $0x58] sm:$0xff]   ;;  %v13697_v8 = vld [vmem:[#allocation4 + $0x60] sm:$0xff]   ;;  %vm1185_vm3 = vcmask 1042432   ;;  %vm1186_vm4 = vcmask 1046532   ;;  %vm73_vm6 = vcmask 1040384  }
  0x29   :  { %12492 = vmatprep.subr.bf16.mxu0 %v13691_v2  ;;  %13665 = vmatprep.subr.bf16.mxu1 %v13691_v2  ;;  %v13696_v7 = vld [vmem:[#allocation4 + $0x18] sm:$0xff]   ;;  %v13698_v9 = vld [vmem:[#allocation4 + $0x20] sm:$0xff]   ;;  %v13699_v10 = vld [vmem:[#allocation4 + $0x68] sm:$0xff]   ;;  %vm74_vm7 = vsmask.f32 256  ;;  %vm5783_vm11 = vcmask 1043456  }
  0x2a   :  { %v462_v11 = vld [vmem:[%s19170_s0] sm:$0xf]  ;;  %v463_v12 = vld [vmem:[%s19170_s0 + $0x4] sm:$0x1]  ;;  %v464_v13 = vld [vmem:[%s19170_s0 + $0x8] sm:$0xf] }
  0x2b   :  { %v13700_v14 = vld [vmem:[#allocation4 + $0x28] sm:$0xff]   ;;  %v530_v16 = vshrl.u32 %v462_v11, 16  ;;  %v533_v17 = vshll.u32 %v462_v11, 16  ;;  %v539_v18 = vshll.u32 %v463_v12, 16  ;;  %v544_v19 = vshrl.u32 %v464_v13, 16  ;;  %v13701_v20 = vld [vmem:[#allocation4 + $0x70] sm:$0xff]   ;;  %vm14103_vm2 = vmor %vm526_vm0, %vm527_vm1 }
  0x2c   :  { %12493 = vmatpush3.bf16.msra.mxu0 %v13692_v3  ;;  %13673 = vmatpush3.bf16.msra.mxu1 %v13692_v3  ;;  %v465_v15 = vld [vmem:[%s19170_s0 + $0xc] sm:$0x1]  ;;  %v547_v21 = vshll.u32 %v464_v13, 16  ;;  %v510_v23 = vld [vmem:[%s19170_s0 + $0xf0] sm:$0xf]  ;;  %v19206_v39 = vsel %vm14103_vm2, 4294967295, %v19205_v39  ;;  %vm14264_vm5 = vmor %vm1185_vm3, %vm1186_vm4 }
  0x2d   :  { %12494 = vmatprep.subr.bf16.mxu0 %v13693_v4  ;;  %13666 = vmatprep.subr.bf16.mxu1 %v13693_v4  ;;  %v553_v22 = vshll.u32 %v465_v15, 16  ;;  %v511_v24 = vld [vmem:[%s19170_s0 + $0xf4] sm:$0x1]  ;;  %v532_v25 = vrot.slane %v530_v16, 4  ;;  %v535_v26 = vrot.slane %v533_v17, 5  ;;  %v541_v27 = vrot.slane %v539_v18, 5  ;;  %vm16056_vm8 = vmand %vm73_vm6, %vm74_vm7 }
  0x2e   :  { %v546_v28 = vrot.slane %v544_v19, 4  ;;  %v512_v29 = vld [vmem:[%s19170_s0 + $0xf8] sm:$0xf]  ;;  %v549_v30 = vrot.slane %v547_v21, 5  ;;  %v513_v32 = vld [vmem:[%s19170_s0 + $0xfc] sm:$0x1] }
  0x2f   :  { %v555_v31 = vrot.slane %v553_v22, 5  ;;  %v866_v33 = vshrl.u32 %v510_v23, 16  ;;  %v869_v34 = vshll.u32 %v510_v23, 16  ;;  %v536_v35 = vor.u32 %v535_v26, %v532_v25  ;;  %19207 = vst [vmem:[#allocation13_spill] sm:$0xff] %v19206_v39  ;;  %v13702_v44 = vld [vmem:[#allocation4 + $0x30] sm:$0xff]   ;;  %v13703_v45 = vld [vmem:[#allocation4 + $0x78] sm:$0xff]  }
  0x30   :  { %12495 = vmatpush3.bf16.msra.mxu0 %v13694_v5  ;;  %13674 = vmatpush3.bf16.msra.mxu1 %v13694_v5  ;;  %v875_v36 = vshll.u32 %v511_v24, 16  ;;  %v880_v37 = vshrl.u32 %v512_v29, 16  ;;  %v883_v38 = vshll.u32 %v512_v29, 16  ;;  %v550_v40 = vor.u32 %v549_v30, %v546_v28  ;;  %v13704_v55 = vld [vmem:[#allocation4 + $0x38] sm:$0xff]   ;;  %v13707_v60 = vld [vmem:[#allocation4 + $0xc0] sm:$0xff]   ;;  %v13709_v16 = vld [vmem:[#allocation4 + $0xc8] sm:$0xff]  }
  0x31   :  { %12496 = vmatprep.subr.bf16.mxu0 %v13695_v6  ;;  %13667 = vmatprep.subr.bf16.mxu1 %v13695_v6  ;;  %v868_v41 = vrot.slane %v866_v33, 4  ;;  %v871_v42 = vrot.slane %v869_v34, 5  ;;  %v889_v43 = vshll.u32 %v513_v32, 16  ;;  %v537_v46 = vrot.slane %v536_v35, 4  ;;  %v13705_v62 = vld [vmem:[%s19170_s0] ss:$8 sps:$4 sm:$0xff]  }
  0x32   :  { %v882_v47 = vrot.slane %v880_v37, 4  ;;  %v885_v48 = vrot.slane %v883_v38, 5  ;;  %v551_v49 = vrot.slane %v550_v40, 4  ;;  %v877_v51 = vrot.slane %v875_v36, 5  ;;  %v13706_v63 = vld [vmem:[%s19170_s0 + $0xf0] ss:$8 sps:$4 sm:$0xff]  }
  0x33   :  { %v872_v50 = vor.u32 %v871_v42, %v868_v41  ;;  %v542_v52 = vsel %vm14103_vm2, %v537_v46, %v541_v27  ;;  %v891_v54 = vrot.slane %v889_v43, 5  ;;  %v466_v0 = vld [vmem:[%s19170_s0 + $0x10] sm:$0xf]  ;;  %v467_v2 = vld [vmem:[%s19170_s0 + $0x14] sm:$0x1]  ;;  %v13708_v6 = vld [vmem:[#allocation4 + $0x80] sm:$0xff]  }
  0x34   :  { %12497 = vmatpush3.bf16.msra.mxu0 %v13696_v7  ;;  %13675 = vmatpush3.bf16.msra.mxu1 %v13696_v7  ;;  %v886_v53 = vor.u32 %v885_v48, %v882_v47  ;;  %v556_v56 = vsel %vm14103_vm2, %v551_v49, %v555_v31  ;;  %v468_v3 = vld [vmem:[%s19170_s0 + $0x18] sm:$0xf]  ;;  %v469_v4 = vld [vmem:[%s19170_s0 + $0x1c] sm:$0x1]  ;;  %v558_v7 = vshrl.u32 %v466_v0, 16  ;;  %v13710_v30 = vld [vmem:[#allocation4 + $0x88] sm:$0xff]  }
  0x35   :  { %12498 = vmatprep.subr.bf16.mxu0 %v13697_v8  ;;  %13668 = vmatprep.subr.bf16.mxu1 %v13697_v8  ;;  %v873_v57 = vrot.slane %v872_v50, 4  ;;  %v11432_v58 = vcombine.low %v542_v52, %v556_v56  ;;  %v561_v8 = vshll.u32 %v466_v0, 16  ;;  %v572_v11 = vshrl.u32 %v468_v3, 16  ;;  %v516_v19 = vld [vmem:[%s19170_s0 + $0x108] sm:$0xf]  ;;  %v13713_v38 = vld [vmem:[#allocation4 + $0xd0] sm:$0xff]  }
  0x36   :  { %v887_v59 = vrot.slane %v886_v53, 4  ;;  %v575_v12 = vshll.u32 %v468_v3, 16  ;;  %v581_v13 = vshll.u32 %v469_v4, 16  ;;  %v560_v17 = vrot.slane %v558_v7, 4  ;;  %v517_v24 = vld [vmem:[%s19170_s0 + $0x10c] sm:$0x1] }
  0x37   :  { %v878_v61 = vsel %vm14103_vm2, %v873_v57, %v877_v51  ;;  %4301 = vmatprep.mubr.bf16.mxu0 %v11432_v58  ;;  %v563_v18 = vrot.slane %v561_v8, 5  ;;  %v574_v22 = vrot.slane %v572_v11, 4  ;;  %v908_v29 = vshrl.u32 %v516_v19, 16  ;;  %v13711_v43 = vld [vmem:[%s19170_s0 + $0x10] ss:$8 sps:$4 sm:$0xff]  }
  0x38   :  { %12499 = vmatpush3.bf16.msra.mxu0 %v13698_v9  ;;  %13676 = vmatpush3.bf16.msra.mxu1 %v13698_v9  ;;  %v892_v1 = vsel %vm14103_vm2, %v887_v59, %v891_v54  ;;  %v567_v9 = vshll.u32 %v467_v2, 16  ;;  %v577_v23 = vrot.slane %v575_v12, 5  ;;  %v583_v32 = vrot.slane %v581_v13, 5  ;;  %v13714_v47 = vld [vmem:[#allocation4 + $0x90] sm:$0xff]   ;;  %v13715_v48 = vld [vmem:[#allocation4 + $0xd8] sm:$0xff]  }
  0x39   :  { %12500 = vmatprep.subr.bf16.mxu0 %v13699_v10  ;;  %13669 = vmatprep.subr.bf16.mxu1 %v13699_v10  ;;  %v11444_v5 = vcombine.low %v878_v61, %v892_v1  ;;  %v514_v10 = vld [vmem:[%s19170_s0 + $0x100] sm:$0xf]  ;;  %v564_v26 = vor.u32 %v563_v18, %v560_v17  ;;  %v911_v33 = vshll.u32 %v516_v19, 16  ;;  %v917_v34 = vshll.u32 %v517_v24, 16  ;;  %v471_v56 = vld [vmem:[%s19170_s0 + $0x24] sm:$0x1] }
  0x3a   :  { %v894_v15 = vshrl.u32 %v514_v10, 16  ;;  %v569_v21 = vrot.slane %v567_v9, 5  ;;  %v578_v31 = vor.u32 %v577_v23, %v574_v22  ;;  %v910_v37 = vrot.slane %v908_v29, 4  ;;  %v13712_v54 = vld [vmem:[%s19170_s0 + $0x100] ss:$8 sps:$4 sm:$0xff]  }
  0x3b   :  { %4397 = vmatprep.mubr.bf16.mxu1 %v11444_v5  ;;  %v565_v35 = vrot.slane %v564_v26, 4  ;;  %v913_v42 = vrot.slane %v911_v33, 5  ;;  %v919_v46 = vrot.slane %v917_v34, 5  ;;  %v472_v57 = vld [vmem:[%s19170_s0 + $0x28] sm:$0xf] }
  0x3c   :  { %12501 = vmatpush3.bf16.msra.mxu0 %v13700_v14  ;;  %13677 = vmatpush3.bf16.msra.mxu1 %v13700_v14  ;;  %v515_v14 = vld [vmem:[%s19170_s0 + $0x104] sm:$0x1]  ;;  %v896_v25 = vrot.slane %v894_v15, 4  ;;  %v579_v40 = vrot.slane %v578_v31, 4  ;;  %v473_v58 = vld [vmem:[%s19170_s0 + $0x2c] sm:$0x1] }
  0x3d   :  { %12502 = vmatprep.subr.bf16.mxu0 %v13701_v20  ;;  %13670 = vmatprep.subr.bf16.mxu1 %v13701_v20  ;;  %v897_v20 = vshll.u32 %v514_v10, 16  ;;  %v903_v28 = vshll.u32 %v515_v14, 16  ;;  %v914_v50 = vor.u32 %v913_v42, %v910_v37  ;;  %v518_v0 = vld [vmem:[%s19170_s0 + $0x110] sm:$0xf]  ;;  %v600_v2 = vshrl.u32 %v472_v57, 16  ;;  %v13721_v29 = vld [vmem:[#allocation4 + $0xe8] sm:$0xff]  }
  0x3e   :  { %v584_v49 = vsel %vm14103_vm2, %v579_v40, %v583_v32  ;;  %v603_v3 = vshll.u32 %v472_v57, 16  ;;  %v609_v4 = vshll.u32 %v473_v58, 16  ;;  %v519_v5 = vld [vmem:[%s19170_s0 + $0x114] sm:$0x1]  ;;  %v520_v10 = vld [vmem:[%s19170_s0 + $0x118] sm:$0xf] }
  0x3f   :  { %v899_v27 = vrot.slane %v897_v20, 5  ;;  %v905_v41 = vrot.slane %v903_v28, 5  ;;  %v915_v53 = vrot.slane %v914_v50, 4  ;;  %v922_v11 = vshrl.u32 %v518_v0, 16  ;;  %v521_v15 = vld [vmem:[%s19170_s0 + $0x11c] sm:$0x1] }
  0x40   :  { %12503 = vmatpush3.bf16.msra.mxu0 %v13702_v44  ;;  %13678 = vmatpush3.bf16.msra.mxu1 %v13702_v44  ;;  %v570_v44 = vsel %vm14103_vm2, %v565_v35, %v569_v21  ;;  %v602_v12 = vrot.slane %v600_v2, 4  ;;  %v605_v13 = vrot.slane %v603_v3, 5  ;;  %v611_v14 = vrot.slane %v609_v4, 5  ;;  %v13717_v33 = vld [vmem:[%s19170_s0 + $0x20] ss:$8 sps:$4 sm:$0xff]   ;;  %v13725_v37 = vld [vmem:[#allocation4 + $0xf0] sm:$0xff]  }
  0x41   :  { %12504 = vmatprep.subr.bf16.mxu0 %v13703_v45  ;;  %13671 = vmatprep.subr.bf16.mxu1 %v13703_v45  ;;  %v900_v36 = vor.u32 %v899_v27, %v896_v25  ;;  %v11433_v51 = vcombine.low %v570_v44, %v584_v49  ;;  %v920_v59 = vsel %vm14103_vm2, %v915_v53, %v919_v46  ;;  %v924_v18 = vrot.slane %v922_v11, 4  ;;  %v13720_v25 = vld [vmem:[#allocation4 + $0xa0] sm:$0xff]   ;;  %v13722_v34 = vld [vmem:[#allocation4 + $0xa8] sm:$0xff]   ;;  %v13718_v46 = vld [vmem:[%s19170_s0 + $0x110] ss:$8 sps:$4 sm:$0xff]  }
  0x42   :  { %v931_v19 = vshll.u32 %v519_v5, 16  ;;  %v936_v20 = vshrl.u32 %v520_v10, 16  ;;  %v606_v21 = vor.u32 %v605_v13, %v602_v12  ;;  %v939_v23 = vshll.u32 %v520_v10, 16  ;;  %v13739_v42 = vld [vmem:[#allocation4 + $0x140] sm:$0xff]   ;;  %v475_v49 = vld [vmem:[%s19170_s0 + $0x34] sm:$0x1] }
  0x43   :  { %v901_v45 = vrot.slane %v900_v36, 4  ;;  %v945_v24 = vshll.u32 %v521_v15, 16  ;;  %v476_v50 = vld [vmem:[%s19170_s0 + $0x38] sm:$0xf]  ;;  %v477_v53 = vld [vmem:[%s19170_s0 + $0x3c] sm:$0x1] }
  0x44   :  { %12505 = vmatpush3.bf16.msra.mxu0 %v13704_v55  ;;  %13679 = vmatpush3.bf16.msra.mxu1 %v13704_v55  ;;  %v470_v55 = vld [vmem:[%s19170_s0 + $0x20] sm:$0xf]  ;;  %v933_v27 = vrot.slane %v931_v19, 5  ;;  %v938_v28 = vrot.slane %v936_v20, 4  ;;  %v941_v32 = vrot.slane %v939_v23, 5  ;;  %v13727_v57 = vld [vmem:[#allocation4 + $0xf8] sm:$0xff]  }
  0x45   :  { %12602 = vmatprep.subr.bf16.mxu1 %v13707_v60  ;;  %v906_v52 = vsel %vm14103_vm2, %v901_v45, %v905_v41  ;;  %v13716_v60 = vld [vmem:[#allocation4 + $0x98] sm:$0xff]   ;;  %v586_v61 = vshrl.u32 %v470_v55, 16  ;;  %v947_v36 = vrot.slane %v945_v24, 5  ;;  %12714 = vmatprep.subr.bf16.mxu0 %v13739_v42  ;;  %v13741_v58 = vld [vmem:[#allocation4 + $0x148] sm:$0xff]   ;;  %v523_v4 = vld [vmem:[%s19170_s0 + $0x124] sm:$0x1] }
  0x46   :  { %v11445_v1 = vcombine.low %v906_v52, %v920_v59  ;;  %v942_v41 = vor.u32 %v941_v32, %v938_v28  ;;  %v13728_v11 = vld [vmem:[#allocation4 + $0xb8] sm:$0xff]   ;;  %v525_v13 = vld [vmem:[%s19170_s0 + $0x12c] sm:$0x1]  ;;  %v959_v15 = vshll.u32 %v523_v4, 16  ;;  %v13751_v42 = vld [vmem:[#allocation4 + $0x160] sm:$0xff]  }
  0x47   :  { %4302 = vmatmul.mubr.bf16.vlgmr.msra.gmra.mrb[0].mxu0 %v13705_v62  ;;  %4398 = vmatmul.mubr.bf16.vlgmr.msra.gmra.mrb[0].mxu1 %v13706_v63  ;;  %v589_v62 = vshll.u32 %v470_v55, 16  ;;  %v595_v63 = vshll.u32 %v471_v56, 16  ;;  %v588_v7 = vrot.slane %v586_v61, 4  ;;  %v623_v56 = vshll.u32 %v475_v49, 16  ;;  %v13723_v32 = vld [vmem:[%s19170_s0 + $0x30] ss:$8 sps:$4 sm:$0xff]  }
  0x48   :  { %12603 = vmatpush3.bf16.msra.mxu1 %v13708_v6  ;;  %4309 = vmatprep.mubr.bf16.mxu0 %v11433_v51  ;;  %v13719_v6 = vld [vmem:[#allocation4 + $0xe0] sm:$0xff]   ;;  %v943_v45 = vrot.slane %v942_v41, 4  ;;  %v13726_v51 = vld [vmem:[#allocation4 + $0xb0] sm:$0xff]   ;;  %v631_v61 = vshll.u32 %v476_v50, 16  ;;  %v961_v24 = vrot.slane %v959_v15, 5 }
  0x49   :  { %12604 = vmatprep.subr.bf16.mxu1 %v13709_v16  ;;  %v591_v8 = vrot.slane %v589_v62, 5  ;;  %v597_v9 = vrot.slane %v595_v63, 5  ;;  %4405 = vmatprep.mubr.bf16.mxu1 %v11445_v1  ;;  %v925_v16 = vshll.u32 %v518_v0, 16  ;;  %v637_v62 = vshll.u32 %v477_v53, 16  ;;  %v522_v63 = vld [vmem:[%s19170_s0 + $0x120] sm:$0xf] }
  0x4a   :  { %v948_v52 = vsel %vm14103_vm2, %v943_v45, %v947_v36  ;;  %v13742_v0 = vld [vmem:[#allocation4 + $0x108] sm:$0xff]   ;;  %v625_v3 = vrot.slane %v623_v56, 5  ;;  %v950_v5 = vshrl.u32 %v522_v63, 16  ;;  %v953_v10 = vshll.u32 %v522_v63, 16  ;;  %v13748_v36 = vld [vmem:[#allocation4 + $0x118] sm:$0xff]  }
  0x4b   :  { %v592_v17 = vor.u32 %v591_v8, %v588_v7  ;;  %v927_v22 = vrot.slane %v925_v16, 5  ;;  %v633_v7 = vrot.slane %v631_v61, 5  ;;  %v639_v8 = vrot.slane %v637_v62, 5  ;;  %v13724_v41 = vld [vmem:[%s19170_s0 + $0x120] ss:$8 sps:$4 sm:$0xff]  }
  0x4c   :  { %12605 = vmatpush3.bf16.msra.mxu1 %v13710_v30  ;;  %v607_v30 = vrot.slane %v606_v21, 4  ;;  %v955_v19 = vrot.slane %v953_v10, 5  ;;  %v973_v21 = vshll.u32 %v525_v13, 16  ;;  %v13729_v61 = vld [vmem:[%s19170_s0 + $0x8] ss:$8 sps:$4 sm:$0xff]  }
  0x4d   :  { %12606 = vmatprep.subr.bf16.mxu1 %v13713_v38  ;;  %v593_v26 = vrot.slane %v592_v17, 4  ;;  %v928_v31 = vor.u32 %v927_v22, %v924_v18  ;;  %v13745_v17 = vld [vmem:[#allocation4 + $0x150] sm:$0xff]   ;;  %v1058_v4 = vld [vmem:[%s19170_s0 + $0x4] sm:$0x1]  ;;  %vm196_vm9 = vsmask.f32 7938 }
  0x4e   :  { %v612_v38 = vsel %vm14103_vm2, %v607_v30, %v611_v14  ;;  %v952_v14 = vrot.slane %v950_v5, 4  ;;  %v13746_v22 = vld [vmem:[#allocation4 + $0x110] sm:$0xff]   ;;  %v975_v30 = vrot.slane %v973_v21, 5  ;;  %v1190_v13 = vrot.slane %v1058_v4, 5  ;;  %vm16067_vm10 = vmand %vm73_vm6, %vm196_vm9 }
  0x4f   :  { %4310 = vmatmul.mubr.bf16.gmra.mrb[4].mxu0 %v13711_v43  ;;  %4406 = vmatmul.mubr.bf16.gmra.mrb[4].mxu1 %v13712_v54  ;;  %v598_v35 = vsel %vm14103_vm2, %v593_v26, %v597_v9  ;;  %v929_v40 = vrot.slane %v928_v31, 4  ;;  %v524_v9 = vld [vmem:[%s19170_s0 + $0x128] sm:$0xf]  ;;  %v13747_v26 = vld [vmem:[#allocation4 + $0x158] sm:$0xff]   ;;  %v13757_v5 = vld [vmem:[#allocation4 + $0x170] sm:$0xff]  }
  0x50   :  { %12607 = vmatpush3.bf16.msra.mxu1 %v13714_v47  ;;  %v11434_v43 = vcombine.low %v598_v35, %v612_v38  ;;  %v13740_v47 = vld [vmem:[#allocation4 + $0x100] sm:$0xff]   ;;  %v964_v16 = vshrl.u32 %v524_v9, 16  ;;  %v967_v20 = vshll.u32 %v524_v9, 16  ;;  %v956_v28 = vor.u32 %v955_v19, %v952_v14  ;;  %v484_v19 = vld [vmem:[%s19170_s0 + $0x68] sm:$0xf]  ;;  %v13758_v21 = vld [vmem:[#allocation4 + $0x130] sm:$0xff]  }
  0x51   :  { %12608 = vmatprep.subr.bf16.mxu1 %v13715_v48  ;;  %v934_v44 = vsel %vm14103_vm2, %v929_v40, %v933_v27  ;;  %v474_v48 = vld [vmem:[%s19170_s0 + $0x30] sm:$0xf]  ;;  %12715 = vmatpush3.bf16.msra.mxu0 %v13740_v47  ;;  %v481_v47 = vld [vmem:[%s19170_s0 + $0x5c] sm:$0x1]  ;;  %v19208_v9 = vmov 0  ;;  %vm17105_vm12 = vmand %vm5783_vm11, %vm196_vm9 }
  0x52   :  { %4317 = vmatprep.mubr.bf16.mxu0 %v11434_v43  ;;  %v614_v54 = vshrl.u32 %v474_v48, 16  ;;  %v617_v55 = vshll.u32 %v474_v48, 16  ;;  %v11446_v59 = vcombine.low %v934_v44, %v948_v52  ;;  %12716 = vmatprep.subr.bf16.mxu0 %v13741_v58  ;;  %v478_v43 = vld [vmem:[%s19170_s0 + $0x50] sm:$0xf]  ;;  %v479_v44 = vld [vmem:[%s19170_s0 + $0x54] sm:$0x1] }
  0x53   :  { %v642_v48 = vshrl.u32 %v478_v43, 16  ;;  %v645_v49 = vshll.u32 %v478_v43, 16  ;;  %v13753_v58 = vld [vmem:[#allocation4 + $0x168] sm:$0xff]   ;;  %v19209_v9 = vsel %vm14264_vm5, 4294967295, %v19208_v9  ;;  %v1062_v43 = vld [vmem:[%s19170_s0 + $0x14] sm:$0x1] }
  0x54   :  { %12609 = vmatpush3.bf16.msra.mxu1 %v13716_v60  ;;  %v628_v60 = vshrl.u32 %v476_v50, 16  ;;  %v616_v1 = vrot.slane %v614_v54, 4  ;;  %v619_v2 = vrot.slane %v617_v55, 5  ;;  %4413 = vmatprep.mubr.bf16.mxu1 %v11446_v59  ;;  %v13752_v54 = vld [vmem:[#allocation4 + $0x120] sm:$0xff]   ;;  %19210 = vst [vmem:[#allocation14_spill] sm:$0xff] %v19209_v9 }
  0x55   :  { %12610 = vmatprep.subr.bf16.mxu1 %v13719_v6  ;;  %12717 = vmatpush3.bf16.msra.mxu0 %v13742_v0  ;;  %v644_v55 = vrot.slane %v642_v48, 4  ;;  %v647_v56 = vrot.slane %v645_v49, 5  ;;  %v13754_v0 = vld [vmem:[#allocation4 + $0x128] sm:$0xff]   ;;  %v1198_v48 = vrot.slane %v1062_v43, 5  ;;  %v13760_v49 = vld [vmem:[#allocation4 + $0x138] sm:$0xff]  }
  0x56   :  { %v630_v6 = vrot.slane %v628_v60, 4  ;;  %v620_v12 = vor.u32 %v619_v2, %v616_v1  ;;  %12718 = vmatprep.subr.bf16.mxu0 %v13745_v17 }
  0x57   :  { %4318 = vmatmul.mubr.bf16.gmra.mrb[8].mxu0 %v13717_v33  ;;  %4414 = vmatmul.mubr.bf16.gmra.mrb[8].mxu1 %v13718_v46  ;;  %v480_v46 = vld [vmem:[%s19170_s0 + $0x58] sm:$0xf]  ;;  %v648_v62 = vor.u32 %v647_v56, %v644_v55 }
  0x58   :  { %12611 = vmatpush3.bf16.msra.mxu1 %v13720_v25  ;;  %v634_v18 = vor.u32 %v633_v7, %v630_v6  ;;  %v621_v23 = vrot.slane %v620_v12, 4  ;;  %v966_v25 = vrot.slane %v964_v16, 4  ;;  %v656_v52 = vshrl.u32 %v480_v46, 16  ;;  %v1059_v7 = vld [vmem:[%s19170_s0 + $0x8] sm:$0xe] }
  0x59   :  { %12612 = vmatprep.subr.bf16.mxu1 %v13721_v29  ;;  %v969_v29 = vrot.slane %v967_v20, 5  ;;  %12719 = vmatpush3.bf16.msra.mxu0 %v13746_v22  ;;  %v659_v53 = vshll.u32 %v480_v46, 16  ;;  %v649_v6 = vrot.slane %v648_v62, 4  ;;  %v13730_v12 = vld [vmem:[%s19170_s0 + $0x50] ss:$8 sps:$4 sm:$0xff]   ;;  %v11449_v14 = vrot.slane %v1059_v7, 9 }
  0x5a   :  { %v635_v27 = vrot.slane %v634_v18, 4  ;;  %v626_v31 = vsel %vm14103_vm2, %v621_v23, %v625_v3  ;;  %12720 = vmatprep.subr.bf16.mxu0 %v13747_v26  ;;  %v658_v59 = vrot.slane %v656_v52, 4  ;;  %v1057_v3 = vld [vmem:[%s19170_s0] sm:$0xe]  ;;  %v483_v18 = vld [vmem:[%s19170_s0 + $0x64] sm:$0x1] }
  0x5b   :  { %v970_v35 = vor.u32 %v969_v29, %v966_v25  ;;  %v661_v60 = vrot.slane %v659_v53, 5  ;;  %v11448_v10 = vrot.slane %v1057_v3, 9  ;;  %v482_v16 = vld [vmem:[%s19170_s0 + $0x60] sm:$0xf]  ;;  %v485_v20 = vld [vmem:[%s19170_s0 + $0x6c] sm:$0x1] }
  0x5c   :  { %12613 = vmatpush3.bf16.msra.mxu1 %v13722_v34  ;;  %v640_v33 = vsel %vm14103_vm2, %v635_v27, %v639_v8  ;;  %v957_v34 = vrot.slane %v956_v28, 4  ;;  %v1060_v8 = vld [vmem:[%s19170_s0 + $0xc] sm:$0x1]  ;;  %v670_v25 = vshrl.u32 %v482_v16, 16  ;;  %v13759_v26 = vld [vmem:[#allocation4 + $0x178] sm:$0xff]   ;;  %v673_v29 = vshll.u32 %v482_v16, 16 }
  0x5d   :  { %12614 = vmatprep.subr.bf16.mxu1 %v13725_v37  ;;  %v11435_v37 = vcombine.low %v626_v31, %v640_v33  ;;  %v971_v40 = vrot.slane %v970_v35, 4  ;;  %12721 = vmatpush3.bf16.msra.mxu0 %v13748_v36  ;;  %v662_v1 = vor.u32 %v661_v60, %v658_v59  ;;  %v1194_v15 = vrot.slane %v1060_v8, 5  ;;  %v13731_v31 = vld [vmem:[%s19170_s0 + $0x18] ss:$8 sps:$4 sm:$0xff]   ;;  %v486_v53 = vld [vmem:[%s19170_s0 + $0x70] sm:$0xf] }
  0x5e   :  { %v962_v38 = vsel %vm14103_vm2, %v957_v34, %v961_v24  ;;  %12722 = vmatprep.subr.bf16.mxu0 %v13751_v42  ;;  %v1191_v23 = vsel %vm14264_vm5, %v11448_v10, %v1190_v13  ;;  %v684_v33 = vshrl.u32 %v484_v19, 16  ;;  %v687_v34 = vshll.u32 %v484_v19, 16  ;;  %v1063_v46 = vld [vmem:[%s19170_s0 + $0x18] sm:$0xe]  ;;  %v1066_v19 = vld [vmem:[%s19170_s0 + $0x24] sm:$0x1] }
  0x5f   :  { %4325 = vmatprep.mubr.bf16.mxu0 %v11435_v37  ;;  %v976_v45 = vsel %vm14103_vm2, %v971_v40, %v975_v30  ;;  %v1195_v24 = vsel %vm14264_vm5, %v11449_v14, %v1194_v15  ;;  %v679_v30 = vshll.u32 %v483_v18, 16  ;;  %v693_v35 = vshll.u32 %v485_v20, 16  ;;  %v1065_v18 = vld [vmem:[%s19170_s0 + $0x20] sm:$0xe]  ;;  %v13768_v20 = vld [vmem:[#allocation4 + $0x1c8] sm:$0xff]  }
  0x60   :  { %12615 = vmatpush3.bf16.msra.mxu1 %v13726_v51  ;;  %4326 = vmatmul.mubr.bf16.gmra.mrb[12].mxu0 %v13723_v32  ;;  %v11447_v50 = vcombine.low %v962_v38, %v976_v45  ;;  %v651_v51 = vshll.u32 %v479_v44, 16  ;;  %v11480_v28 = vcombine.low %v1191_v23, %v1195_v24  ;;  %v672_v32 = vrot.slane %v670_v25, 4  ;;  %v1061_v38 = vld [vmem:[%s19170_s0 + $0x10] sm:$0xe]  ;;  %v1068_v23 = vld [vmem:[%s19170_s0 + $0x2c] sm:$0x1] }
  0x61   :  { %12616 = vmatprep.subr.bf16.mxu1 %v13727_v57  ;;  %v665_v57 = vshll.u32 %v481_v47, 16  ;;  %12723 = vmatpush3.bf16.msra.mxu0 %v13752_v54  ;;  %v675_v36 = vrot.slane %v673_v29, 5  ;;  %v681_v37 = vrot.slane %v679_v30, 5  ;;  %v686_v40 = vrot.slane %v684_v33, 4  ;;  %v1064_v47 = vld [vmem:[%s19170_s0 + $0x1c] sm:$0x1] }
  0x62   :  { %4421 = vmatprep.mubr.bf16.mxu1 %v11447_v50  ;;  %v653_v63 = vrot.slane %v651_v51, 5  ;;  %12724 = vmatprep.subr.bf16.mxu0 %v13753_v58  ;;  %v695_v42 = vrot.slane %v693_v35, 5  ;;  %v11450_v44 = vrot.slane %v1061_v38, 9  ;;  %v11451_v51 = vrot.slane %v1063_v46, 9  ;;  %v487_v54 = vld [vmem:[%s19170_s0 + $0x74] sm:$0x1] }
  0x63   :  { %4422 = vmatmul.mubr.bf16.gmra.mrb[12].mxu1 %v13724_v41  ;;  %v667_v2 = vrot.slane %v665_v57, 5  ;;  %v689_v41 = vrot.slane %v687_v34, 5  ;;  %v676_v45 = vor.u32 %v675_v36, %v672_v32  ;;  %v1202_v52 = vrot.slane %v1064_v47, 5  ;;  %v488_v57 = vld [vmem:[%s19170_s0 + $0x78] sm:$0xf]  ;;  %v13769_v30 = vld [vmem:[#allocation4 + $0x188] sm:$0xff]  }
  0x64   :  { %12617 = vmatpush3.bf16.msra.mxu1 %v13728_v11  ;;  %4462 = vmatprep.mubr.bf16.mxu1 %v13729_v61  ;;  %v663_v11 = vrot.slane %v662_v1, 4  ;;  %v654_v17 = vsel %vm14103_vm2, %v649_v6, %v653_v63  ;;  %v1199_v56 = vsel %vm14264_vm5, %v11450_v44, %v1198_v48  ;;  %v489_v58 = vld [vmem:[%s19170_s0 + $0x7c] sm:$0x1]  ;;  %v698_v59 = vshrl.u32 %v486_v53, 16  ;;  %v13732_v61 = vld [vmem:[%s19170_s0 + $0x60] ss:$8 sps:$4 sm:$0xff]  }
  0x65   :  { %12725 = vmatpush3.bf16.msra.mxu0 %v13754_v0  ;;  %v690_v50 = vor.u32 %v689_v41, %v686_v40  ;;  %v677_v55 = vrot.slane %v676_v45, 4  ;;  %v1203_v62 = vsel %vm14264_vm5, %v11451_v51, %v1202_v52  ;;  %v701_v63 = vshll.u32 %v486_v53, 16  ;;  %v13766_v1 = vld [vmem:[#allocation4 + $0x1c0] sm:$0xff]   ;;  %v13733_v6 = vld [vmem:[%s19170_s0 + $0x28] ss:$8 sps:$4 sm:$0xff]  }
  0x66   :  { %v668_v22 = vsel %vm14103_vm2, %v663_v11, %v667_v2  ;;  %12726 = vmatprep.subr.bf16.mxu0 %v13757_v5  ;;  %v707_v0 = vshll.u32 %v487_v54, 16  ;;  %v11481_v3 = vcombine.low %v1199_v56, %v1203_v62  ;;  %v700_v4 = vrot.slane %v698_v59, 4  ;;  %12826 = vmatprep.subr.bf16.mxu1 %v13766_v1  ;;  %v13767_v11 = vld [vmem:[#allocation4 + $0x180] sm:$0xff]   ;;  %v492_v33 = vld [vmem:[%s19170_s0 + $0x88] sm:$0xf]  ;;  %v13771_v46 = vld [vmem:[#allocation4 + $0x1d0] sm:$0xff]  }
  0x67   :  { %v11436_v27 = vcombine.low %v654_v17, %v668_v22  ;;  %v691_v60 = vrot.slane %v690_v50, 4  ;;  %v682_v2 = vsel %vm14103_vm2, %v677_v55, %v681_v37  ;;  %v712_v5 = vshrl.u32 %v488_v57, 16  ;;  %v1067_v22 = vld [vmem:[%s19170_s0 + $0x28] sm:$0xe]  ;;  %v490_v29 = vld [vmem:[%s19170_s0 + $0x80] sm:$0xf] }
  0x68   :  { %v703_v8 = vrot.slane %v701_v63, 5  ;;  %v715_v10 = vshll.u32 %v488_v57, 16  ;;  %v709_v13 = vrot.slane %v707_v0, 5  ;;  %v721_v15 = vshll.u32 %v489_v58, 16  ;;  %v491_v32 = vld [vmem:[%s19170_s0 + $0x84] sm:$0x1] }
  0x69   :  { %4333 = vmatprep.mubr.bf16.mxu0 %v11436_v27  ;;  %12727 = vmatpush3.bf16.msra.mxu0 %v13758_v21  ;;  %v696_v7 = vsel %vm14103_vm2, %v691_v60, %v695_v42  ;;  %v714_v14 = vrot.slane %v712_v5, 4  ;;  %v11452_v24 = vrot.slane %v1065_v18, 9  ;;  %v1206_v27 = vrot.slane %v1066_v19, 5  ;;  %v13734_v37 = vld [vmem:[%s19170_s0 + $0x70] ss:$8 sps:$4 sm:$0xff]  }
  0x6a   :  { %4334 = vmatmul.mubr.bf16.gmra.mrb[16].mxu0 %v13730_v12  ;;  %12728 = vmatprep.subr.bf16.mxu0 %v13759_v26  ;;  %v11437_v12 = vcombine.low %v682_v2, %v696_v7  ;;  %v704_v16 = vor.u32 %v703_v8, %v700_v4  ;;  %v717_v17 = vrot.slane %v715_v10, 5  ;;  %v723_v21 = vrot.slane %v721_v15, 5  ;;  %v493_v40 = vld [vmem:[%s19170_s0 + $0x8c] sm:$0x1]  ;;  %v13735_v51 = vld [vmem:[%s19170_s0 + $0x38] ss:$8 sps:$4 sm:$0xff]  }
  0x6b   :  { %4463 = vmatmul.mubr.bf16.vlgmr.msra.gmra.mrb[16].mxu1 %v11480_v28  ;;  %v11453_v28 = vrot.slane %v1067_v22, 9  ;;  %v726_v34 = vshrl.u32 %v490_v29, 16  ;;  %v1207_v38 = vsel %vm14264_vm5, %v11452_v24, %v1206_v27  ;;  %v729_v41 = vshll.u32 %v490_v29, 16  ;;  %v13772_v55 = vld [vmem:[#allocation4 + $0x190] sm:$0xff]   ;;  %v13773_v60 = vld [vmem:[#allocation4 + $0x1d8] sm:$0xff]  }
  0x6c   :  { %4470 = vmatprep.mubr.bf16.mxu1 %v13731_v31  ;;  %12827 = vmatpush3.bf16.msra.mxu1 %v13767_v11  ;;  %v705_v25 = vrot.slane %v704_v16, 4  ;;  %v718_v26 = vor.u32 %v717_v17, %v714_v14  ;;  %v1210_v31 = vrot.slane %v1068_v23, 5  ;;  %v735_v44 = vshll.u32 %v491_v32, 16  ;;  %v1069_v59 = vld [vmem:[%s19170_s0 + $0x30] sm:$0xe]  ;;  %v13776_v11 = vld [vmem:[#allocation4 + $0x1e0] sm:$0xff]  }
  0x6d   :  { %12729 = vmatpush3.bf16.msra.mxu0 %v13760_v49  ;;  %4341 = vmatprep.mubr.bf16.mxu0 %v11437_v12  ;;  %v728_v43 = vrot.slane %v726_v34, 4  ;;  %v740_v45 = vshrl.u32 %v492_v33, 16  ;;  %v731_v49 = vrot.slane %v729_v41, 5  ;;  %v743_v50 = vshll.u32 %v492_v33, 16  ;;  %v1070_v62 = vld [vmem:[%s19170_s0 + $0x34] sm:$0x1] }
  0x6e   :  { %12828 = vmatprep.subr.bf16.mxu1 %v13768_v20  ;;  %v710_v35 = vsel %vm14103_vm2, %v705_v25, %v709_v13  ;;  %v719_v36 = vrot.slane %v718_v26, 4  ;;  %v1211_v42 = vsel %vm14264_vm5, %v11453_v28, %v1210_v31  ;;  %v749_v54 = vshll.u32 %v493_v40, 16  ;;  %v1071_v63 = vld [vmem:[%s19170_s0 + $0x38] sm:$0xe]  ;;  %v494_v8 = vld [vmem:[%s19170_s0 + $0xa0] sm:$0xf] }
  0x6f   :  { %v11482_v48 = vcombine.low %v1207_v38, %v1211_v42  ;;  %v742_v53 = vrot.slane %v740_v45, 4  ;;  %v732_v56 = vor.u32 %v731_v49, %v728_v43  ;;  %v737_v57 = vrot.slane %v735_v44, 5  ;;  %v495_v10 = vld [vmem:[%s19170_s0 + $0xa4] sm:$0x1]  ;;  %v13736_v14 = vld [vmem:[%s19170_s0 + $0x80] ss:$8 sps:$4 sm:$0xff]  }
  0x70   :  { %12829 = vmatpush3.bf16.msra.mxu1 %v13769_v30  ;;  %v724_v47 = vsel %vm14103_vm2, %v719_v36, %v723_v21  ;;  %v745_v58 = vrot.slane %v743_v50, 5  ;;  %v11454_v0 = vrot.slane %v1069_v59, 9  ;;  %v1214_v4 = vrot.slane %v1070_v62, 5  ;;  %v496_v16 = vld [vmem:[%s19170_s0 + $0xa8] sm:$0xf]  ;;  %v13777_v23 = vld [vmem:[#allocation4 + $0x1a0] sm:$0xff]  }
  0x71   :  { %v11438_v52 = vcombine.low %v710_v35, %v724_v47  ;;  %12830 = vmatprep.subr.bf16.mxu1 %v13771_v46  ;;  %v733_v1 = vrot.slane %v732_v56, 4  ;;  %v11455_v5 = vrot.slane %v1071_v63, 9  ;;  %v497_v17 = vld [vmem:[%s19170_s0 + $0xac] sm:$0x1]  ;;  %v754_v18 = vshrl.u32 %v494_v8, 16  ;;  %v13781_v50 = vld [vmem:[#allocation4 + $0x1f0] sm:$0xff]  }
  0x72   :  { %4342 = vmatmul.mubr.bf16.gmra.mrb[20].mxu0 %v13732_v61  ;;  %v751_v61 = vrot.slane %v749_v54, 5  ;;  %v746_v2 = vor.u32 %v745_v58, %v742_v53  ;;  %v1215_v15 = vsel %vm14264_vm5, %v11454_v0, %v1214_v4  ;;  %v757_v20 = vshll.u32 %v494_v8, 16  ;;  %v13737_v28 = vld [vmem:[%s19170_s0 + $0x58] ss:$8 sps:$4 sm:$0xff]   ;;  %v13778_v32 = vld [vmem:[#allocation4 + $0x1e8] sm:$0xff]   ;;  %v13782_v54 = vld [vmem:[#allocation4 + $0x1b0] sm:$0xff]  }
  0x73   :  { %4471 = vmatmul.mubr.bf16.gmra.mrb[20].mxu1 %v11481_v3  ;;  %4349 = vmatprep.mubr.bf16.mxu0 %v11438_v52  ;;  %v1072_v3 = vld [vmem:[%s19170_s0 + $0x3c] sm:$0x1]  ;;  %v738_v12 = vsel %vm14103_vm2, %v733_v1, %v737_v57  ;;  %v763_v21 = vshll.u32 %v495_v10, 16  ;;  %v768_v22 = vshrl.u32 %v496_v16, 16  ;;  %v756_v26 = vrot.slane %v754_v18, 4  ;;  %v13779_v46 = vld [vmem:[#allocation4 + $0x1a8] sm:$0xff]  }
  0x74   :  { %4478 = vmatprep.mubr.bf16.mxu1 %v13733_v6  ;;  %12831 = vmatpush3.bf16.msra.mxu1 %v13772_v55  ;;  %v13774_v6 = vld [vmem:[#allocation4 + $0x198] sm:$0xff]   ;;  %v1218_v7 = vrot.slane %v1072_v3, 5  ;;  %v747_v13 = vrot.slane %v746_v2, 4  ;;  %v771_v27 = vshll.u32 %v496_v16, 16  ;;  %v759_v30 = vrot.slane %v757_v20, 5 }
  0x75   :  { %12832 = vmatprep.subr.bf16.mxu1 %v13773_v60  ;;  %v770_v31 = vrot.slane %v768_v22, 4  ;;  %v765_v33 = vrot.slane %v763_v21, 5  ;;  %v777_v35 = vshll.u32 %v497_v17, 16  ;;  %v1074_v38 = vld [vmem:[%s19170_s0 + $0x54] sm:$0x1] }
  0x76   :  { %v1219_v19 = vsel %vm14264_vm5, %v11455_v5, %v1218_v7  ;;  %v752_v24 = vsel %vm14103_vm2, %v747_v13, %v751_v61  ;;  %v773_v34 = vrot.slane %v771_v27, 5  ;;  %v760_v36 = vor.u32 %v759_v30, %v756_v26  ;;  %v1075_v40 = vld [vmem:[%s19170_s0 + $0x58] sm:$0xe]  ;;  %v1076_v43 = vld [vmem:[%s19170_s0 + $0x5c] sm:$0x1] }
  0x77   :  { %v11483_v25 = vcombine.low %v1215_v15, %v1219_v19  ;;  %v11439_v29 = vcombine.low %v738_v12, %v752_v24  ;;  %v779_v42 = vrot.slane %v777_v35, 5  ;;  %v1222_v45 = vrot.slane %v1074_v38, 5  ;;  %v13738_v52 = vld [vmem:[%s19170_s0 + $0xa0] ss:$8 sps:$4 sm:$0xff]   ;;  %v498_v59 = vld [vmem:[%s19170_s0 + $0xb0] sm:$0xf] }
  0x78   :  { %12833 = vmatpush3.bf16.msra.mxu1 %v13774_v6  ;;  %v774_v41 = vor.u32 %v773_v34, %v770_v31  ;;  %v761_v47 = vrot.slane %v760_v36, 4  ;;  %v1226_v49 = vrot.slane %v1076_v43, 5  ;;  %v499_v61 = vld [vmem:[%s19170_s0 + $0xb4] sm:$0x1]  ;;  %v500_v62 = vld [vmem:[%s19170_s0 + $0xb8] sm:$0xf] }
  0x79   :  { %12834 = vmatprep.subr.bf16.mxu1 %v13776_v11  ;;  %v501_v63 = vld [vmem:[%s19170_s0 + $0xbc] sm:$0x1]  ;;  %v782_v0 = vshrl.u32 %v498_v59, 16  ;;  %v785_v1 = vshll.u32 %v498_v59, 16  ;;  %v791_v2 = vshll.u32 %v499_v61, 16  ;;  %v796_v3 = vshrl.u32 %v500_v62, 16 }
  0x7a   :  { %4350 = vmatmul.mubr.bf16.gmra.mrb[24].mxu0 %v13734_v37  ;;  %v1073_v37 = vld [vmem:[%s19170_s0 + $0x50] sm:$0xe]  ;;  %v766_v55 = vsel %vm14103_vm2, %v761_v47, %v765_v33  ;;  %v799_v4 = vshll.u32 %v500_v62, 16  ;;  %v805_v5 = vshll.u32 %v501_v63, 16  ;;  %v1077_v15 = vld [vmem:[%s19170_s0 + $0x60] sm:$0xe] }
  0x7b   :  { %4479 = vmatmul.mubr.bf16.gmra.mrb[24].mxu1 %v11482_v48  ;;  %4357 = vmatprep.mubr.bf16.mxu0 %v11439_v29  ;;  %v11456_v44 = vrot.slane %v1073_v37, 9  ;;  %v11457_v48 = vrot.slane %v1075_v40, 9  ;;  %v13743_v6 = vld [vmem:[%s19170_s0 + $0x68] ss:$8 sps:$4 sm:$0xff]   ;;  %v784_v7 = vrot.slane %v782_v0, 4  ;;  %v787_v8 = vrot.slane %v785_v1, 5 }
  0x7c   :  { %4486 = vmatprep.mubr.bf16.mxu1 %v13735_v51  ;;  %12835 = vmatpush3.bf16.msra.mxu1 %v13777_v23  ;;  %v775_v51 = vrot.slane %v774_v41, 4  ;;  %v798_v10 = vrot.slane %v796_v3, 4  ;;  %v793_v11 = vrot.slane %v791_v2, 5  ;;  %v801_v12 = vrot.slane %v799_v4, 5  ;;  %v1078_v16 = vld [vmem:[%s19170_s0 + $0x64] sm:$0x1] }
  0x7d   :  { %12836 = vmatprep.subr.bf16.mxu1 %v13778_v32  ;;  %v1223_v53 = vsel %vm14264_vm5, %v11456_v44, %v1222_v45  ;;  %v1227_v56 = vsel %vm14264_vm5, %v11457_v48, %v1226_v49  ;;  %v807_v13 = vrot.slane %v805_v5, 5  ;;  %v1079_v17 = vld [vmem:[%s19170_s0 + $0x68] sm:$0xe]  ;;  %v1080_v19 = vld [vmem:[%s19170_s0 + $0x6c] sm:$0x1]  ;;  %v11458_v20 = vrot.slane %v1077_v15, 9 }
  0x7e   :  { %v780_v57 = vsel %vm14103_vm2, %v775_v51, %v779_v42  ;;  %v11484_v58 = vcombine.low %v1223_v53, %v1227_v56  ;;  %v802_v18 = vor.u32 %v801_v12, %v798_v10  ;;  %v1230_v21 = vrot.slane %v1078_v16, 5  ;;  %v13783_v23 = vld [vmem:[#allocation4 + $0x1f8] sm:$0xff]   ;;  %v502_v34 = vld [vmem:[%s19170_s0 + $0xc0] sm:$0xf]  ;;  %v503_v35 = vld [vmem:[%s19170_s0 + $0xc4] sm:$0x1] }
  0x7f   :  { %v11440_v60 = vcombine.low %v766_v55, %v780_v57  ;;  %v11459_v22 = vrot.slane %v1079_v17, 9  ;;  %v13744_v27 = vld [vmem:[%s19170_s0 + $0xb0] ss:$8 sps:$4 sm:$0xff]   ;;  %v504_v37 = vld [vmem:[%s19170_s0 + $0xc8] sm:$0xf]  ;;  %v810_v40 = vshrl.u32 %v502_v34, 16 }
  0x80   :  { %12837 = vmatpush3.bf16.msra.mxu1 %v13779_v46  ;;  %v803_v26 = vrot.slane %v802_v18, 4  ;;  %v13784_v29 = vld [vmem:[#allocation4 + $0x1b8] sm:$0xff]   ;;  %v505_v38 = vld [vmem:[%s19170_s0 + $0xcc] sm:$0x1]  ;;  %v813_v41 = vshll.u32 %v502_v34, 16  ;;  %v819_v42 = vshll.u32 %v503_v35, 16 }
  0x81   :  { %12838 = vmatprep.subr.bf16.mxu1 %v13781_v50  ;;  %v824_v43 = vshrl.u32 %v504_v37, 16  ;;  %v827_v44 = vshll.u32 %v504_v37, 16  ;;  %v833_v45 = vshll.u32 %v505_v38, 16  ;;  %v812_v46 = vrot.slane %v810_v40, 4  ;;  %v13749_v48 = vld [vmem:[%s19170_s0 + $0x78] ss:$8 sps:$4 sm:$0xff]  }
  0x82   :  { %4358 = vmatmul.mubr.bf16.gmra.mrb[28].mxu0 %v13736_v14  ;;  %v788_v14 = vor.u32 %v787_v8, %v784_v7  ;;  %v808_v32 = vsel %vm14103_vm2, %v803_v26, %v807_v13  ;;  %v815_v47 = vrot.slane %v813_v41, 5  ;;  %v1082_v56 = vld [vmem:[%s19170_s0 + $0x74] sm:$0x1]  ;;  %v1083_v57 = vld [vmem:[%s19170_s0 + $0x78] sm:$0xe] }
  0x83   :  { %4487 = vmatmul.mubr.bf16.gmra.mrb[28].mxu1 %v11483_v25  ;;  %4365 = vmatprep.mubr.bf16.mxu0 %v11440_v60  ;;  %v1234_v25 = vrot.slane %v1080_v19, 5  ;;  %v826_v49 = vrot.slane %v824_v43, 4  ;;  %v829_v50 = vrot.slane %v827_v44, 5  ;;  %v835_v53 = vrot.slane %v833_v45, 5  ;;  %v13750_v0 = vld [vmem:[%s19170_s0 + $0xc0] ss:$8 sps:$4 sm:$0xff]  }
  0x84   :  { %4494 = vmatprep.mubr.bf16.mxu1 %v13737_v28  ;;  %12839 = vmatpush3.bf16.msra.mxu1 %v13782_v54  ;;  %v789_v24 = vrot.slane %v788_v14, 4  ;;  %v1231_v28 = vsel %vm14264_vm5, %v11458_v20, %v1230_v21  ;;  %v816_v51 = vor.u32 %v815_v47, %v812_v46  ;;  %v1081_v54 = vld [vmem:[%s19170_s0 + $0x70] sm:$0xe]  ;;  %v1238_v61 = vrot.slane %v1082_v56, 5  ;;  %v507_v10 = vld [vmem:[%s19170_s0 + $0xd4] sm:$0x1] }
  0x85   :  { %12840 = vmatprep.subr.bf16.mxu1 %v13783_v23  ;;  %v1235_v31 = vsel %vm14264_vm5, %v11459_v22, %v1234_v25  ;;  %v830_v55 = vor.u32 %v829_v50, %v826_v49  ;;  %v11460_v60 = vrot.slane %v1081_v54, 9  ;;  %v11461_v62 = vrot.slane %v1083_v57, 9  ;;  %v509_v12 = vld [vmem:[%s19170_s0 + $0xdc] sm:$0x1]  ;;  %v13755_v19 = vld [vmem:[%s19170_s0 + $0x88] ss:$8 sps:$4 sm:$0xff]  }
  0x86   :  { %v794_v30 = vsel %vm14103_vm2, %v789_v24, %v793_v11  ;;  %v11485_v33 = vcombine.low %v1231_v28, %v1235_v31  ;;  %v817_v59 = vrot.slane %v816_v51, 4  ;;  %v508_v11 = vld [vmem:[%s19170_s0 + $0xd8] sm:$0xf]  ;;  %v847_v15 = vshll.u32 %v507_v10, 16  ;;  %v1086_v28 = vld [vmem:[%s19170_s0 + $0x84] sm:$0x1] }
  0x87   :  { %v11441_v36 = vcombine.low %v794_v30, %v808_v32  ;;  %v831_v63 = vrot.slane %v830_v55, 4  ;;  %v1239_v3 = vsel %vm14264_vm5, %v11460_v60, %v1238_v61  ;;  %v852_v16 = vshrl.u32 %v508_v11, 16  ;;  %v1088_v31 = vld [vmem:[%s19170_s0 + $0x8c] sm:$0x1]  ;;  %v13756_v38 = vld [vmem:[%s19170_s0 + $0xd0] ss:$8 sps:$4 sm:$0xff]  }
  0x88   :  { %12841 = vmatpush3.bf16.msra.mxu1 %v13784_v29  ;;  %v855_v17 = vshll.u32 %v508_v11, 16  ;;  %v861_v18 = vshll.u32 %v509_v12, 16  ;;  %v849_v23 = vrot.slane %v847_v15, 5  ;;  %v1087_v29 = vld [vmem:[%s19170_s0 + $0x88] sm:$0xe] }
  0x89   :  { %v836_v4 = vsel %vm14103_vm2, %v831_v63, %v835_v53  ;;  %v854_v22 = vrot.slane %v852_v16, 4  ;;  %v11463_v34 = vrot.slane %v1087_v29, 9  ;;  %v13761_v46 = vld [vmem:[%s19170_s0 + $0xa8] ss:$8 sps:$4 sm:$0xff]   ;;  %v11627_v50 = vld [vmem:[%s19170_s0 + $0x14] sm:$0x1] }
  0x8a   :  { %4366 = vmatmul.mubr.bf16.gmra.mrb[32].mxu0 %v13738_v52  ;;  %v821_v52 = vrot.slane %v819_v42, 5  ;;  %v857_v24 = vrot.slane %v855_v17, 5  ;;  %v863_v25 = vrot.slane %v861_v18, 5  ;;  %v11624_v47 = vld [vmem:[%s19170_s0 + $0x8] sm:$0xe]  ;;  %v2267_v54 = vrot.slane %v11627_v50, 5 }
  0x8b   :  { %4495 = vmatmul.mubr.bf16.gmra.mrb[32].mxu1 %v11484_v58  ;;  %4373 = vmatprep.mubr.bf16.mxu0 %v11441_v36  ;;  %v1084_v58 = vld [vmem:[%s19170_s0 + $0x7c] sm:$0x1]  ;;  %v1250_v36 = vrot.slane %v1088_v31, 5  ;;  %v11626_v49 = vld [vmem:[%s19170_s0 + $0x10] sm:$0xe]  ;;  %v11688_v51 = vrot.slane %v11624_v47, 9 }
  0x8c   :  { %4502 = vmatprep.mubr.bf16.mxu1 %v13743_v6  ;;  %v1242_v1 = vrot.slane %v1084_v58, 5  ;;  %v822_v2 = vsel %vm14103_vm2, %v817_v59, %v821_v52  ;;  %v506_v6 = vld [vmem:[%s19170_s0 + $0xd0] sm:$0xf]  ;;  %v858_v30 = vor.u32 %v857_v24, %v854_v22  ;;  %v11689_v53 = vrot.slane %v11626_v49, 9  ;;  %v1089_v55 = vld [vmem:[%s19170_s0 + $0xa0] sm:$0xe] }
  0x8d   :  { %v11442_v7 = vcombine.low %v822_v2, %v836_v4  ;;  %v838_v13 = vshrl.u32 %v506_v6, 16  ;;  %v841_v14 = vshll.u32 %v506_v6, 16  ;;  %v1251_v42 = vsel %vm14264_vm5, %v11463_v34, %v1250_v36  ;;  %v1090_v56 = vld [vmem:[%s19170_s0 + $0xa4] sm:$0x1]  ;;  %v1091_v58 = vld [vmem:[%s19170_s0 + $0xa8] sm:$0xe] }
  0x8e   :  { %v1243_v5 = vsel %vm14264_vm5, %v11461_v62, %v1242_v1  ;;  %v859_v37 = vrot.slane %v858_v30, 4  ;;  %v1092_v59 = vld [vmem:[%s19170_s0 + $0xac] sm:$0x1]  ;;  %v11464_v60 = vrot.slane %v1089_v55, 9  ;;  %v1254_v61 = vrot.slane %v1090_v56, 5 }
  0x8f   :  { %v11486_v8 = vcombine.low %v1239_v3, %v1243_v5  ;;  %v840_v20 = vrot.slane %v838_v13, 4  ;;  %v843_v21 = vrot.slane %v841_v14, 5  ;;  %v2268_v62 = vsel %vm14264_vm5, %v11689_v53, %v2267_v54  ;;  %v11544_v1 = vld [vmem:[%s19170_s0 + $0x8] sm:$0xf]  ;;  %v11545_v2 = vld [vmem:[%s19170_s0 + $0xc] sm:$0x1] }
  0x90   :  { %v864_v43 = vsel %vm14103_vm2, %v859_v37, %v863_v25  ;;  %v11465_v63 = vrot.slane %v1091_v58, 9  ;;  %v1255_v4 = vsel %vm14264_vm5, %v11464_v60, %v1254_v61  ;;  %v11546_v5 = vld [vmem:[%s19170_s0 + $0x10] sm:$0xf]  ;;  %v11547_v6 = vld [vmem:[%s19170_s0 + $0x14] sm:$0x1]  ;;  %v1615_v11 = vshll.u32 %v11545_v2, 16 }
  0x91   :  { %v844_v26 = vor.u32 %v843_v21, %v840_v20  ;;  %v1620_v12 = vshrl.u32 %v11546_v5, 16  ;;  %v1623_v13 = vshll.u32 %v11546_v5, 16  ;;  %v1629_v17 = vshll.u32 %v11547_v6, 16  ;;  %v13762_v20 = vld [vmem:[%s19170_s0 + $0xb8] ss:$8 sps:$4 sm:$0xff]  }
  0x92   :  { %4374 = vmatmul.mubr.bf16.gmra.mrb[36].mxu0 %v13744_v27  ;;  %v1085_v27 = vld [vmem:[%s19170_s0 + $0x80] sm:$0xe]  ;;  %v1617_v22 = vrot.slane %v1615_v11, 5  ;;  %v11628_v24 = vld [vmem:[%s19170_s0 + $0x18] sm:$0xe] }
  0x93   :  { %4503 = vmatmul.mubr.bf16.gmra.mrb[36].mxu1 %v11485_v33  ;;  %4381 = vmatprep.mubr.bf16.mxu0 %v11442_v7  ;;  %v11462_v32 = vrot.slane %v1085_v27, 9  ;;  %v1246_v33 = vrot.slane %v1086_v28, 5  ;;  %v845_v35 = vrot.slane %v844_v26, 4  ;;  %v1606_v7 = vshrl.u32 %v11544_v1, 16  ;;  %v11629_v25 = vld [vmem:[%s19170_s0 + $0x1c] sm:$0x1] }
  0x94   :  { %4510 = vmatprep.mubr.bf16.mxu1 %v13749_v48  ;;  %v11625_v48 = vld [vmem:[%s19170_s0 + $0xc] sm:$0x1]  ;;  %v1622_v18 = vrot.slane %v1620_v12, 4  ;;  %v11630_v27 = vld [vmem:[%s19170_s0 + $0x20] sm:$0xe]  ;;  %v11690_v29 = vrot.slane %v11628_v24, 9 }
  0x95   :  { %v1247_v40 = vsel %vm14264_vm5, %v11462_v32, %v1246_v33  ;;  %v850_v41 = vsel %vm14103_vm2, %v845_v35, %v849_v23  ;;  %v2263_v52 = vrot.slane %v11625_v48, 5  ;;  %v1608_v15 = vrot.slane %v1606_v7, 4  ;;  %v11631_v28 = vld [vmem:[%s19170_s0 + $0x24] sm:$0x1]  ;;  %v1093_v34 = vld [vmem:[%s19170_s0 + $0xb0] sm:$0xe] }
  0x96   :  { %v11487_v44 = vcombine.low %v1247_v40, %v1251_v42  ;;  %v11443_v45 = vcombine.low %v850_v41, %v864_v43  ;;  %v1631_v23 = vrot.slane %v1629_v17, 5  ;;  %v2271_v30 = vrot.slane %v11629_v25, 5  ;;  %v1094_v37 = vld [vmem:[%s19170_s0 + $0xb4] sm:$0x1]  ;;  %v1096_v43 = vld [vmem:[%s19170_s0 + $0xbc] sm:$0x1] }
  0x97   :  { %v2264_v57 = vsel %vm14264_vm5, %v11688_v51, %v2263_v52  ;;  %v11691_v32 = vrot.slane %v11630_v27, 9  ;;  %v2275_v33 = vrot.slane %v11631_v28, 5  ;;  %v11466_v40 = vrot.slane %v1093_v34, 9  ;;  %v11549_v50 = vld [vmem:[%s19170_s0 + $0x1c] sm:$0x1] }
  0x98   :  { %v11720_v3 = vcombine.low %v2264_v57, %v2268_v62  ;;  %v2272_v36 = vsel %vm14264_vm5, %v11690_v29, %v2271_v30  ;;  %v1266_v49 = vrot.slane %v1096_v43, 5  ;;  %v11550_v51 = vld [vmem:[%s19170_s0 + $0x20] sm:$0xf]  ;;  %v11551_v55 = vld [vmem:[%s19170_s0 + $0x24] sm:$0x1]  ;;  %v1643_v57 = vshll.u32 %v11549_v50, 16 }
  0x99   :  { %v2276_v42 = vsel %vm14264_vm5, %v11691_v32, %v2275_v33  ;;  %v1648_v60 = vshrl.u32 %v11550_v51, 16  ;;  %v1651_v61 = vshll.u32 %v11550_v51, 16  ;;  %v13763_v2 = vld [vmem:[%s19170_s0 + $0xc8] ss:$8 sps:$4 sm:$0xff]   ;;  %v11633_v6 = vld [vmem:[%s19170_s0 + $0x2c] sm:$0x1] }
  0x9a   :  { %4382 = vmatmul.mubr.bf16.gmra.mrb[40].mxu0 %v13750_v0  ;;  %v1258_v0 = vrot.slane %v1092_v59, 5  ;;  %v11721_v48 = vcombine.low %v2272_v36, %v2276_v42  ;;  %v11632_v5 = vld [vmem:[%s19170_s0 + $0x28] sm:$0xe]  ;;  %v11635_v11 = vld [vmem:[%s19170_s0 + $0x34] sm:$0x1] }
  0x9b   :  { %4511 = vmatmul.mubr.bf16.gmra.mrb[40].mxu1 %v11486_v8  ;;  %4389 = vmatprep.mubr.bf16.mxu0 %v11443_v45  ;;  %v1609_v8 = vshll.u32 %v11544_v1, 16  ;;  %v1657_v1 = vshll.u32 %v11551_v55, 16  ;;  %v11692_v12 = vrot.slane %v11632_v5, 9  ;;  %v1097_v17 = vld [vmem:[%s19170_s0 + $0xc0] sm:$0xe]  ;;  %v13791_v51 = vld [vmem:[#allocation4 + $0x208] sm:$0xff]  }
  0x9c   :  { %4518 = vmatprep.mubr.bf16.mxu1 %v13755_v19  ;;  %v1259_v10 = vsel %vm14264_vm5, %v11465_v63, %v1258_v0  ;;  %v1625_v19 = vrot.slane %v1623_v13, 5  ;;  %v1645_v0 = vrot.slane %v1643_v57, 5  ;;  %v11552_v28 = vld [vmem:[%s19170_s0 + $0x28] sm:$0xf]  ;;  %v11553_v33 = vld [vmem:[%s19170_s0 + $0x2c] sm:$0x1] }
  0x9d   :  { %v11488_v14 = vcombine.low %v1255_v4, %v1259_v10  ;;  %v1611_v16 = vrot.slane %v1609_v8, 5  ;;  %v1653_v4 = vrot.slane %v1651_v61, 5  ;;  %v1659_v8 = vrot.slane %v1657_v1, 5  ;;  %v11634_v10 = vld [vmem:[%s19170_s0 + $0x30] sm:$0xe] }
  0x9e   :  { %v1626_v26 = vor.u32 %v1625_v19, %v1622_v18  ;;  %v13789_v18 = vld [vmem:[#allocation4 + $0x200] sm:$0xff]   ;;  %v11554_v34 = vld [vmem:[%s19170_s0 + $0x30] sm:$0xf]  ;;  %v1671_v43 = vshll.u32 %v11553_v33, 16  ;;  %v11636_v50 = vld [vmem:[%s19170_s0 + $0x38] sm:$0xe] }
  0x9f   :  { %v1612_v21 = vor.u32 %v1611_v16, %v1608_v15  ;;  %v11693_v15 = vrot.slane %v11634_v10, 9  ;;  %v2283_v16 = vrot.slane %v11635_v11, 5  ;;  %13504 = vmatprep.subr.bf16.mxu0 %v13789_v18  ;;  %v11637_v55 = vld [vmem:[%s19170_s0 + $0x3c] sm:$0x1]  ;;  %v1101_v1 = vld [vmem:[%s19170_s0 + $0xd0] sm:$0xe] }
  0xa0   :  { %v1627_v35 = vrot.slane %v1626_v26, 4  ;;  %v1100_v26 = vld [vmem:[%s19170_s0 + $0xcc] sm:$0x1]  ;;  %v2287_v61 = vrot.slane %v11637_v55, 5  ;;  %v1102_v5 = vld [vmem:[%s19170_s0 + $0xd4] sm:$0x1] }
  0xa1   :  { %v1613_v31 = vrot.slane %v1612_v21, 4  ;;  %v1099_v21 = vld [vmem:[%s19170_s0 + $0xc8] sm:$0xe]  ;;  %v2284_v25 = vsel %vm14264_vm5, %v11693_v15, %v2283_v16  ;;  %v1274_v32 = vrot.slane %v1100_v26, 5  ;;  %v1104_v10 = vld [vmem:[%s19170_s0 + $0xdc] sm:$0x1] }
  0xa2   :  { %4390 = vmatmul.mubr.bf16.gmra.mrb[44].mxu0 %v13756_v38  ;;  %v1095_v38 = vld [vmem:[%s19170_s0 + $0xb8] sm:$0xe]  ;;  %v1632_v47 = vsel %vm14103_vm2, %v1627_v35, %v1631_v23  ;;  %v1278_v11 = vrot.slane %v1102_v5, 5  ;;  %v11562_v5 = vld [vmem:[%s19170_s0 + $0x60] sm:$0xf] }
  0xa3   :  { %4519 = vmatmul.mubr.bf16.gmra.mrb[44].mxu1 %v11487_v44  ;;  %4623 = vmatprep.mubr.bf16.mxu0 %v11720_v3  ;;  %v1618_v41 = vsel %vm14103_vm2, %v1613_v31, %v1617_v22  ;;  %v1262_v44 = vrot.slane %v1094_v37, 5  ;;  %v11467_v45 = vrot.slane %v1095_v38, 9  ;;  %v1650_v3 = vrot.slane %v1648_v60, 4  ;;  %v11555_v37 = vld [vmem:[%s19170_s0 + $0x34] sm:$0x1] }
  0xa4   :  { %4526 = vmatprep.mubr.bf16.mxu1 %v13761_v46  ;;  %v11548_v46 = vld [vmem:[%s19170_s0 + $0x18] sm:$0xf]  ;;  %v11608_v53 = vcombine.low %v1618_v41, %v1632_v47  ;;  %v11468_v22 = vrot.slane %v1097_v17, 9  ;;  %v11469_v31 = vrot.slane %v1099_v21, 9  ;;  %v1662_v38 = vshrl.u32 %v11552_v28, 16 }
  0xa5   :  { %v1634_v52 = vshrl.u32 %v11548_v46, 16  ;;  %v1263_v54 = vsel %vm14264_vm5, %v11466_v40, %v1262_v44  ;;  %v1637_v56 = vshll.u32 %v11548_v46, 16  ;;  %v1267_v58 = vsel %vm14264_vm5, %v11467_v45, %v1266_v49  ;;  %v13764_v45 = vld [vmem:[%s19170_s0 + $0xd8] ss:$8 sps:$4 sm:$0xff]   ;;  %v11639_v60 = vld [vmem:[%s19170_s0 + $0x44] sm:$0x1] }
  0xa6   :  { %v11489_v62 = vcombine.low %v1263_v54, %v1267_v58  ;;  %v1654_v13 = vor.u32 %v1653_v4, %v1650_v3  ;;  %v1665_v40 = vshll.u32 %v11552_v28, 16  ;;  %v1275_v42 = vsel %vm14264_vm5, %v11469_v31, %v1274_v32  ;;  %v11559_v21 = vld [vmem:[%s19170_s0 + $0x44] sm:$0x1] }
  0xa7   :  { %v1636_v59 = vrot.slane %v1634_v52, 4  ;;  %v1639_v63 = vrot.slane %v1637_v56, 5  ;;  %v1676_v44 = vshrl.u32 %v11554_v34, 16  ;;  %v1664_v47 = vrot.slane %v1662_v38, 4 }
  0xa8   :  { %v1655_v23 = vrot.slane %v1654_v13, 4  ;;  %v1679_v49 = vshll.u32 %v11554_v34, 16  ;;  %v1673_v52 = vrot.slane %v1671_v43, 5  ;;  %v1685_v54 = vshll.u32 %v11555_v37, 16  ;;  %v11556_v13 = vld [vmem:[%s19170_s0 + $0x38] sm:$0xf] }
  0xa9   :  { %v1640_v7 = vor.u32 %v1639_v63, %v1636_v59  ;;  %v11694_v56 = vrot.slane %v11636_v50, 9  ;;  %v11638_v59 = vld [vmem:[%s19170_s0 + $0x40] sm:$0xe]  ;;  %v1282_v17 = vrot.slane %v1104_v10, 5  ;;  %v11563_v10 = vld [vmem:[%s19170_s0 + $0x64] sm:$0x1] }
  0xaa   :  { %4624 = vmatmul.mubr.bf16.vlgmr.msra.gmra.mrb[48].mxu0 %v11608_v53  ;;  %v1660_v35 = vsel %vm14103_vm2, %v1655_v23, %v1659_v8  ;;  %v1678_v53 = vrot.slane %v1676_v44, 4  ;;  %v1681_v58 = vrot.slane %v1679_v49, 5  ;;  %v11695_v63 = vrot.slane %v11638_v59, 9  ;;  %v13765_v34 = vld [vmem:[%s19170_s0 + $0xf8] ss:$8 sps:$4 sm:$0xff]  }
  0xab   :  { %4527 = vmatmul.mubr.bf16.gmra.mrb[48].mxu1 %v11488_v14  ;;  %4631 = vmatprep.mubr.bf16.mxu0 %v11721_v48  ;;  %v2279_v14 = vrot.slane %v11633_v6, 5  ;;  %v1641_v19 = vrot.slane %v1640_v7, 4  ;;  %v1667_v48 = vrot.slane %v1665_v40, 5  ;;  %v2288_v4 = vsel %vm14264_vm5, %v11694_v56, %v2287_v61  ;;  %v1103_v6 = vld [vmem:[%s19170_s0 + $0xd8] sm:$0xe] }
  0xac   :  { %4534 = vmatprep.mubr.bf16.mxu1 %v13762_v20  ;;  %v1098_v20 = vld [vmem:[%s19170_s0 + $0xc4] sm:$0x1]  ;;  %13505 = vmatpush3.bf16.msra.mxu0 %v13789_v18  ;;  %v1682_v3 = vor.u32 %v1681_v58, %v1678_v53  ;;  %v11470_v7 = vrot.slane %v1101_v1, 9  ;;  %v11557_v18 = vld [vmem:[%s19170_s0 + $0x3c] sm:$0x1]  ;;  %v1693_v23 = vshll.u32 %v11556_v13, 16 }
  0xad   :  { %v2280_v24 = vsel %vm14264_vm5, %v11692_v12, %v2279_v14  ;;  %v1270_v27 = vrot.slane %v1098_v20, 5  ;;  %v1646_v29 = vsel %vm14103_vm2, %v1641_v19, %v1645_v0  ;;  %v1668_v57 = vor.u32 %v1667_v48, %v1664_v47  ;;  %13506 = vmatprep.subr.bf16.mxu0 %v13791_v51  ;;  %v11558_v19 = vld [vmem:[%s19170_s0 + $0x40] sm:$0xf]  ;;  %v11643_v44 = vld [vmem:[%s19170_s0 + $0x64] sm:$0x1] }
  0xae   :  { %v11722_v30 = vcombine.low %v2280_v24, %v2284_v25  ;;  %v11609_v41 = vcombine.low %v1646_v29, %v1660_v35  ;;  %v2291_v0 = vrot.slane %v11639_v60, 5  ;;  %v11471_v12 = vrot.slane %v1103_v6, 9  ;;  %v13793_v25 = vld [vmem:[#allocation4 + $0x210] sm:$0xff]   ;;  %v11640_v35 = vld [vmem:[%s19170_s0 + $0x58] sm:$0xe] }
  0xaf   :  { %v1271_v36 = vsel %vm14264_vm5, %v11468_v22, %v1270_v27  ;;  %v1683_v15 = vrot.slane %v1682_v3, 4  ;;  %v1279_v20 = vsel %vm14264_vm5, %v11470_v7, %v1278_v11  ;;  %v1690_v22 = vshrl.u32 %v11556_v13, 16  ;;  %v11642_v43 = vld [vmem:[%s19170_s0 + $0x60] sm:$0xe]  ;;  %v1107_v58 = vld [vmem:[%s19170_s0 + $0xf8] sm:$0xe] }
  0xb0   :  { %v11490_v46 = vcombine.low %v1271_v36, %v1275_v42  ;;  %13507 = vmatpush3.bf16.msra.mxu0 %v13791_v51  ;;  %v2292_v8 = vsel %vm14264_vm5, %v11695_v63, %v2291_v0  ;;  %v1699_v24 = vshll.u32 %v11557_v18, 16  ;;  %v1283_v27 = vsel %vm14264_vm5, %v11471_v12, %v1282_v17  ;;  %v13794_v51 = vld [vmem:[#allocation4 + $0x218] sm:$0xff]   ;;  %v13796_v17 = vld [vmem:[#allocation4 + $0x220] sm:$0xff]  }
  0xb1   :  { %v11723_v16 = vcombine.low %v2288_v4, %v2292_v8  ;;  %v1704_v28 = vshrl.u32 %v11558_v19, 16  ;;  %v1707_v29 = vshll.u32 %v11558_v19, 16  ;;  %v11491_v31 = vcombine.low %v1279_v20, %v1283_v27  ;;  %13508 = vmatprep.subr.bf16.mxu0 %v13793_v25  ;;  %v1108_v61 = vld [vmem:[%s19170_s0 + $0xfc] sm:$0x1]  ;;  %v11560_v0 = vld [vmem:[%s19170_s0 + $0x58] sm:$0xf] }
  0xb2   :  { %4632 = vmatmul.mubr.bf16.gmra.mrb[52].mxu0 %v11609_v41  ;;  %v1692_v32 = vrot.slane %v1690_v22, 4  ;;  %v1695_v33 = vrot.slane %v1693_v23, 5  ;;  %v1701_v36 = vrot.slane %v1699_v24, 5  ;;  %v1713_v40 = vshll.u32 %v11559_v21, 16  ;;  %v11641_v41 = vld [vmem:[%s19170_s0 + $0x5c] sm:$0x1] }
  0xb3   :  { %4535 = vmatmul.mubr.bf16.gmra.mrb[52].mxu1 %v11489_v62  ;;  %4639 = vmatprep.mubr.bf16.mxu0 %v11722_v30  ;;  %v1687_v62 = vrot.slane %v1685_v54, 5  ;;  %v1706_v37 = vrot.slane %v1704_v28, 4  ;;  %v1709_v38 = vrot.slane %v1707_v29, 5  ;;  %v11697_v49 = vrot.slane %v11642_v43, 9  ;;  %v1105_v54 = vld [vmem:[%s19170_s0 + $0xf0] sm:$0xe] }
  0xb4   :  { %4542 = vmatprep.mubr.bf16.mxu1 %v13763_v2  ;;  %v1669_v2 = vrot.slane %v1668_v57, 4  ;;  %13509 = vmatpush3.bf16.msra.mxu0 %v13793_v25  ;;  %v1696_v42 = vor.u32 %v1695_v33, %v1692_v32  ;;  %v1715_v48 = vrot.slane %v1713_v40, 5  ;;  %v2299_v50 = vrot.slane %v11643_v44, 5  ;;  %v1106_v57 = vld [vmem:[%s19170_s0 + $0xf4] sm:$0x1] }
  0xb5   :  { %v1688_v26 = vsel %vm14103_vm2, %v1683_v15, %v1687_v62  ;;  %v1710_v47 = vor.u32 %v1709_v38, %v1706_v37  ;;  %v11472_v59 = vrot.slane %v1105_v54, 9  ;;  %13510 = vmatprep.subr.bf16.mxu0 %v13794_v51  ;;  %v1286_v62 = vrot.slane %v1106_v57, 5  ;;  %v11561_v4 = vld [vmem:[%s19170_s0 + $0x5c] sm:$0x1]  ;;  %v13770_v28 = vld [vmem:[%s19170_s0 + $0x108] ss:$8 sps:$4 sm:$0xff]  }
  0xb6   :  { %v1674_v14 = vsel %vm14103_vm2, %v1669_v2, %v1673_v52  ;;  %v1697_v52 = vrot.slane %v1696_v42, 4  ;;  %v2300_v56 = vsel %vm14264_vm5, %v11697_v49, %v2299_v50  ;;  %v11473_v63 = vrot.slane %v1107_v58, 9  ;;  %v11644_v29 = vld [vmem:[%s19170_s0 + $0x68] sm:$0xe]  ;;  %v11646_v32 = vld [vmem:[%s19170_s0 + $0x70] sm:$0xe] }
  0xb7   :  { %v11610_v30 = vcombine.low %v1674_v14, %v1688_v26  ;;  %v1711_v55 = vrot.slane %v1710_v47, 4  ;;  %v1290_v3 = vrot.slane %v1108_v61, 5  ;;  %v1718_v6 = vshrl.u32 %v11560_v0, 16  ;;  %v13797_v26 = vld [vmem:[#allocation4 + $0x228] sm:$0xff]   ;;  %v1110_v42 = vld [vmem:[%s19170_s0 + $0x104] sm:$0x1] }
  0xb8   :  { %v1702_v60 = vsel %vm14103_vm2, %v1697_v52, %v1701_v36  ;;  %13511 = vmatpush3.bf16.msra.mxu0 %v13794_v51  ;;  %v1287_v8 = vsel %vm14264_vm5, %v11472_v59, %v1286_v62  ;;  %v1721_v11 = vshll.u32 %v11560_v0, 16  ;;  %v1727_v12 = vshll.u32 %v11561_v4, 16  ;;  %v11565_v54 = vld [vmem:[%s19170_s0 + $0x6c] sm:$0x1]  ;;  %v11566_v57 = vld [vmem:[%s19170_s0 + $0x70] sm:$0xf] }
  0xb9   :  { %v1716_v1 = vsel %vm14103_vm2, %v1711_v55, %v1715_v48  ;;  %v1291_v13 = vsel %vm14264_vm5, %v11473_v63, %v1290_v3  ;;  %v1720_v14 = vrot.slane %v1718_v6, 4  ;;  %v1732_v15 = vshrl.u32 %v11562_v5, 16  ;;  %13512 = vmatprep.subr.bf16.mxu0 %v13796_v17  ;;  %v11567_v58 = vld [vmem:[%s19170_s0 + $0x74] sm:$0x1] }
  0xba   :  { %4640 = vmatmul.mubr.bf16.gmra.mrb[56].mxu0 %v11610_v30  ;;  %v11611_v7 = vcombine.low %v1702_v60, %v1716_v1  ;;  %v11492_v18 = vcombine.low %v1287_v8, %v1291_v13  ;;  %v1723_v19 = vrot.slane %v1721_v11, 5  ;;  %v1729_v20 = vrot.slane %v1727_v12, 5  ;;  %v13800_v12 = vld [vmem:[#allocation4 + $0x238] sm:$0xff]  }
  0xbb   :  { %4543 = vmatmul.mubr.bf16.gmra.mrb[56].mxu1 %v11490_v46  ;;  %v2295_v46 = vrot.slane %v11641_v41, 5  ;;  %4647 = vmatprep.mubr.bf16.mxu0 %v11723_v16  ;;  %v1735_v16 = vshll.u32 %v11562_v5, 16  ;;  %v1741_v21 = vshll.u32 %v11563_v10, 16  ;;  %v1734_v22 = vrot.slane %v1732_v15, 4  ;;  %v1109_v41 = vld [vmem:[%s19170_s0 + $0x100] sm:$0xe] }
  0xbc   :  { %4550 = vmatprep.mubr.bf16.mxu1 %v13764_v45  ;;  %v11696_v45 = vrot.slane %v11640_v35, 9  ;;  %v1724_v24 = vor.u32 %v1723_v19, %v1720_v14  ;;  %13513 = vmatpush3.bf16.msra.mxu0 %v13796_v17  ;;  %v11698_v33 = vrot.slane %v11644_v29, 9  ;;  %v11647_v35 = vld [vmem:[%s19170_s0 + $0x74] sm:$0x1]  ;;  %v11699_v37 = vrot.slane %v11646_v32, 9 }
  0xbd   :  { %v1737_v23 = vrot.slane %v1735_v16, 5  ;;  %v1743_v25 = vrot.slane %v1741_v21, 5  ;;  %13514 = vmatprep.subr.bf16.mxu0 %v13797_v26  ;;  %v2307_v40 = vrot.slane %v11647_v35, 5  ;;  %v11474_v47 = vrot.slane %v1109_v41, 9  ;;  %v13799_v5 = vld [vmem:[#allocation4 + $0x230] sm:$0xff]  }
  0xbe   :  { %v2296_v53 = vsel %vm14264_vm5, %v11696_v45, %v2295_v46  ;;  %v1725_v30 = vrot.slane %v1724_v24, 4  ;;  %v1111_v45 = vld [vmem:[%s19170_s0 + $0x108] sm:$0xe]  ;;  %v1112_v46 = vld [vmem:[%s19170_s0 + $0x10c] sm:$0x1]  ;;  %v1294_v48 = vrot.slane %v1110_v42, 5 }
  0xbf   :  { %v11724_v2 = vcombine.low %v2296_v53, %v2300_v56  ;;  %v1738_v27 = vor.u32 %v1737_v23, %v1734_v22  ;;  %v2308_v50 = vsel %vm14264_vm5, %v11699_v37, %v2307_v40  ;;  %v11475_v51 = vrot.slane %v1111_v45, 9  ;;  %v11564_v53 = vld [vmem:[%s19170_s0 + $0x68] sm:$0xf]  ;;  %v13775_v16 = vld [vmem:[%s19170_s0 + $0x118] ss:$8 sps:$4 sm:$0xff]  }
  0xc0   :  { %v1730_v38 = vsel %vm14103_vm2, %v1725_v30, %v1729_v20  ;;  %13515 = vmatpush3.bf16.msra.mxu0 %v13797_v26  ;;  %v1298_v52 = vrot.slane %v1112_v46, 5  ;;  %v1295_v56 = vsel %vm14264_vm5, %v11474_v47, %v1294_v48  ;;  %v1746_v59 = vshrl.u32 %v11564_v53, 16  ;;  %v11648_v17 = vld [vmem:[%s19170_s0 + $0x78] sm:$0xe]  ;;  %v11649_v19 = vld [vmem:[%s19170_s0 + $0x7c] sm:$0x1] }
  0xc1   :  { %v1749_v60 = vshll.u32 %v11564_v53, 16  ;;  %v1755_v62 = vshll.u32 %v11565_v54, 16  ;;  %v1760_v63 = vshrl.u32 %v11566_v57, 16  ;;  %v1763_v0 = vshll.u32 %v11566_v57, 16  ;;  %13516 = vmatprep.subr.bf16.mxu0 %v13799_v5  ;;  %v11650_v20 = vld [vmem:[%s19170_s0 + $0x80] sm:$0xe] }
  0xc2   :  { %4648 = vmatmul.mubr.bf16.gmra.mrb[60].mxu0 %v11611_v7  ;;  %v1299_v61 = vsel %vm14264_vm5, %v11475_v51, %v1298_v52  ;;  %v1769_v4 = vshll.u32 %v11567_v58, 16  ;;  %v11651_v21 = vld [vmem:[%s19170_s0 + $0x84] sm:$0x1]  ;;  %v11700_v23 = vrot.slane %v11648_v17, 9  ;;  %v2311_v24 = vrot.slane %v11649_v19, 5 }
  0xc3   :  { %4551 = vmatmul.mubr.bf16.gmra.mrb[60].mxu1 %v11491_v31  ;;  %4655 = vmatprep.mubr.bf16.mxu0 %v11724_v2  ;;  %v11645_v31 = vld [vmem:[%s19170_s0 + $0x6c] sm:$0x1]  ;;  %v11493_v1 = vcombine.low %v1295_v56, %v1299_v61  ;;  %v1748_v2 = vrot.slane %v1746_v59, 4  ;;  %v1751_v3 = vrot.slane %v1749_v60, 5  ;;  %v1757_v6 = vrot.slane %v1755_v62, 5 }
  0xc4   :  { %4558 = vmatprep.mubr.bf16.mxu1 %v13765_v34  ;;  %v1739_v34 = vrot.slane %v1738_v27, 4  ;;  %v2303_v36 = vrot.slane %v11645_v31, 5  ;;  %v1762_v7 = vrot.slane %v1760_v63, 4  ;;  %v1765_v8 = vrot.slane %v1763_v0, 5  ;;  %13517 = vmatpush3.bf16.msra.mxu0 %v13799_v5  ;;  %v1113_v26 = vld [vmem:[%s19170_s0 + $0x110] sm:$0xe] }
  0xc5   :  { %v1752_v10 = vor.u32 %v1751_v3, %v1748_v2  ;;  %v1771_v11 = vrot.slane %v1769_v4, 5  ;;  %13518 = vmatprep.subr.bf16.mxu0 %v13800_v12  ;;  %v1114_v29 = vld [vmem:[%s19170_s0 + $0x114] sm:$0x1]  ;;  %v1115_v30 = vld [vmem:[%s19170_s0 + $0x118] sm:$0xe]  ;;  %v11476_v31 = vrot.slane %v1113_v26, 9  ;;  %v2312_v32 = vsel %vm14264_vm5, %v11700_v23, %v2311_v24 }
  0xc6   :  { %v1744_v43 = vsel %vm14103_vm2, %v1739_v34, %v1743_v25  ;;  %v2304_v44 = vsel %vm14264_vm5, %v11698_v33, %v2303_v36  ;;  %v1766_v13 = vor.u32 %v1765_v8, %v1762_v7  ;;  %v11701_v25 = vrot.slane %v11650_v20, 9  ;;  %v1116_v33 = vld [vmem:[%s19170_s0 + $0x11c] sm:$0x1]  ;;  %v11568_v36 = vld [vmem:[%s19170_s0 + $0x78] sm:$0xf] }
  0xc7   :  { %v11612_v49 = vcombine.low %v1730_v38, %v1744_v43  ;;  %v11725_v55 = vcombine.low %v2304_v44, %v2308_v50  ;;  %v1753_v14 = vrot.slane %v1752_v10, 4  ;;  %v1302_v34 = vrot.slane %v1114_v29, 5  ;;  %v11569_v40 = vld [vmem:[%s19170_s0 + $0x7c] sm:$0x1]  ;;  %v11570_v41 = vld [vmem:[%s19170_s0 + $0x80] sm:$0xf] }
  0xc8   :  { %v1767_v15 = vrot.slane %v1766_v13, 4  ;;  %13519 = vmatpush3.bf16.msra.mxu0 %v13800_v12  ;;  %v11477_v35 = vrot.slane %v1115_v30, 9  ;;  %v1306_v38 = vrot.slane %v1116_v33, 5  ;;  %v1774_v42 = vshrl.u32 %v11568_v36, 16  ;;  %v11571_v45 = vld [vmem:[%s19170_s0 + $0x84] sm:$0x1] }
  0xc9   :  { %v1303_v44 = vsel %vm14264_vm5, %v11476_v31, %v1302_v34  ;;  %v1777_v46 = vshll.u32 %v11568_v36, 16  ;;  %v1783_v47 = vshll.u32 %v11569_v40, 16  ;;  %v1788_v50 = vshrl.u32 %v11570_v41, 16  ;;  %v13780_v62 = vld [vmem:[%s19170_s0 + $0x128] ss:$8 sps:$4 sm:$0xff]  }
  0xca   :  { %4656 = vmatmul.mubr.bf16.gmra.mrb[64].mxu0 %v11612_v49  ;;  %v1772_v22 = vsel %vm14103_vm2, %v1767_v15, %v1771_v11  ;;  %v1307_v48 = vsel %vm14264_vm5, %v11477_v35, %v1306_v38  ;;  %v1776_v49 = vrot.slane %v1774_v42, 4  ;;  %v1791_v51 = vshll.u32 %v11570_v41, 16  ;;  %v11652_v63 = vld [vmem:[%s19170_s0 + $0x88] sm:$0xe]  ;;  %v11654_v2 = vld [vmem:[%s19170_s0 + $0x90] sm:$0xe] }
  0xcb   :  { %4559 = vmatmul.mubr.bf16.gmra.mrb[64].mxu1 %v11492_v18  ;;  %4663 = vmatprep.mubr.bf16.mxu0 %v11725_v55  ;;  %v1758_v18 = vsel %vm14103_vm2, %v1753_v14, %v1757_v6  ;;  %v11494_v52 = vcombine.low %v1303_v44, %v1307_v48  ;;  %v1779_v53 = vrot.slane %v1777_v46, 5  ;;  %v1797_v54 = vshll.u32 %v11571_v45, 16  ;;  %v11655_v5 = vld [vmem:[%s19170_s0 + $0x94] sm:$0x1]  ;;  %v1117_v8 = vld [vmem:[%s19170_s0 + $0x120] sm:$0xe] }
  0xcc   :  { %4566 = vmatprep.mubr.bf16.mxu1 %v13770_v28  ;;  %v11613_v27 = vcombine.low %v1758_v18, %v1772_v22  ;;  %v2315_v28 = vrot.slane %v11651_v21, 5  ;;  %v1790_v55 = vrot.slane %v1788_v50, 4  ;;  %v1793_v56 = vrot.slane %v1791_v51, 5  ;;  %v1118_v12 = vld [vmem:[%s19170_s0 + $0x124] sm:$0x1] }
  0xcd   :  { %v1780_v57 = vor.u32 %v1779_v53, %v1776_v49  ;;  %v1785_v58 = vrot.slane %v1783_v47, 5  ;;  %v1799_v59 = vrot.slane %v1797_v54, 5  ;;  %v11702_v3 = vrot.slane %v11652_v63, 9  ;;  %v1119_v13 = vld [vmem:[%s19170_s0 + $0x128] sm:$0xe] }
  0xce   :  { %v2316_v37 = vsel %vm14264_vm5, %v11701_v25, %v2315_v28  ;;  %v1794_v60 = vor.u32 %v1793_v56, %v1790_v55  ;;  %v11703_v7 = vrot.slane %v11654_v2, 9  ;;  %v2323_v11 = vrot.slane %v11655_v5, 5  ;;  %v1120_v17 = vld [vmem:[%s19170_s0 + $0x12c] sm:$0x1]  ;;  %v11572_v20 = vld [vmem:[%s19170_s0 + $0x88] sm:$0xf] }
  0xcf   :  { %v11726_v43 = vcombine.low %v2312_v32, %v2316_v37  ;;  %v1781_v61 = vrot.slane %v1780_v57, 4  ;;  %v11478_v14 = vrot.slane %v1117_v8, 9  ;;  %v1310_v18 = vrot.slane %v1118_v12, 5  ;;  %v11573_v23 = vld [vmem:[%s19170_s0 + $0x8c] sm:$0x1] }
  0xd0   :  { %v1795_v0 = vrot.slane %v1794_v60, 4  ;;  %v11479_v19 = vrot.slane %v1119_v13, 9  ;;  %v2324_v21 = vsel %vm14264_vm5, %v11703_v7, %v2323_v11  ;;  %v1314_v22 = vrot.slane %v1120_v17, 5  ;;  %v11574_v24 = vld [vmem:[%s19170_s0 + $0x90] sm:$0xf] }
  0xd1   :  { %v1786_v4 = vsel %vm14103_vm2, %v1781_v61, %v1785_v58  ;;  %v1802_v25 = vshrl.u32 %v11572_v20, 16  ;;  %v11575_v28 = vld [vmem:[%s19170_s0 + $0x94] sm:$0x1]  ;;  %v1805_v29 = vshll.u32 %v11572_v20, 16  ;;  %v1811_v30 = vshll.u32 %v11573_v23, 16 }
  0xd2   :  { %4664 = vmatmul.mubr.bf16.gmra.mrb[68].mxu0 %v11613_v27  ;;  %v1800_v10 = vsel %vm14103_vm2, %v1795_v0, %v1799_v59  ;;  %v1311_v27 = vsel %vm14264_vm5, %v11478_v14, %v1310_v18  ;;  %v1315_v31 = vsel %vm14264_vm5, %v11479_v19, %v1314_v22  ;;  %v1816_v33 = vshrl.u32 %v11574_v24, 16  ;;  %v11656_v45 = vld [vmem:[%s19170_s0 + $0xa8] sm:$0xe]  ;;  %v11657_v46 = vld [vmem:[%s19170_s0 + $0xac] sm:$0x1] }
  0xd3   :  { %4567 = vmatmul.mubr.bf16.gmra.mrb[68].mxu1 %v11493_v1  ;;  %4671 = vmatprep.mubr.bf16.mxu0 %v11726_v43  ;;  %v11653_v1 = vld [vmem:[%s19170_s0 + $0x8c] sm:$0x1]  ;;  %v11614_v15 = vcombine.low %v1786_v4, %v1800_v10  ;;  %v1804_v32 = vrot.slane %v1802_v25, 4  ;;  %v1819_v34 = vshll.u32 %v11574_v24, 16  ;;  %v11495_v35 = vcombine.low %v1311_v27, %v1315_v31  ;;  %v11658_v48 = vld [vmem:[%s19170_s0 + $0xb0] sm:$0xe] }
  0xd4   :  { %4574 = vmatprep.mubr.bf16.mxu1 %v13775_v16  ;;  %v2319_v6 = vrot.slane %v11653_v1, 5  ;;  %v1807_v36 = vrot.slane %v1805_v29, 5  ;;  %v1825_v37 = vshll.u32 %v11575_v28, 16  ;;  %v1818_v38 = vrot.slane %v1816_v33, 4  ;;  %v11659_v49 = vld [vmem:[%s19170_s0 + $0xb4] sm:$0x1] }
  0xd5   :  { %v1821_v40 = vrot.slane %v1819_v34, 5  ;;  %v1813_v42 = vrot.slane %v1811_v30, 5  ;;  %v11704_v50 = vrot.slane %v11656_v45, 9  ;;  %v11705_v53 = vrot.slane %v11658_v48, 9  ;;  %v11784_v55 = vld [vmem:[%s19170_s0 + $0x10] sm:$0xf] }
  0xd6   :  { %v2320_v16 = vsel %vm14264_vm5, %v11702_v3, %v2319_v6  ;;  %v1808_v41 = vor.u32 %v1807_v36, %v1804_v32  ;;  %v1827_v43 = vrot.slane %v1825_v37, 5  ;;  %v2331_v54 = vrot.slane %v11659_v49, 5  ;;  %v11785_v57 = vld [vmem:[%s19170_s0 + $0x14] sm:$0x1]  ;;  %v11786_v58 = vld [vmem:[%s19170_s0 + $0x18] sm:$0xf] }
  0xd7   :  { %v11727_v26 = vcombine.low %v2320_v16, %v2324_v21  ;;  %v1822_v44 = vor.u32 %v1821_v40, %v1818_v38  ;;  %v11787_v59 = vld [vmem:[%s19170_s0 + $0x1c] sm:$0x1]  ;;  %v2679_v63 = vshrl.u32 %v11784_v55, 16  ;;  %v11576_v0 = vld [vmem:[%s19170_s0 + $0xa8] sm:$0xf]  ;;  %v2682_v4 = vshll.u32 %v11784_v55, 16 }
  0xd8   :  { %v1809_v47 = vrot.slane %v1808_v41, 4  ;;  %v11577_v1 = vld [vmem:[%s19170_s0 + $0xac] sm:$0x1]  ;;  %v2688_v5 = vshll.u32 %v11785_v57, 16  ;;  %v11578_v6 = vld [vmem:[%s19170_s0 + $0xb0] sm:$0xf] }
  0xd9   :  { %v1823_v51 = vrot.slane %v1822_v44, 4  ;;  %v11579_v7 = vld [vmem:[%s19170_s0 + $0xb4] sm:$0x1]  ;;  %v2681_v8 = vrot.slane %v2679_v63, 4  ;;  %v2693_v10 = vshrl.u32 %v11786_v58, 16  ;;  %v2696_v11 = vshll.u32 %v11786_v58, 16 }
  0xda   :  { %4672 = vmatmul.mubr.bf16.gmra.mrb[72].mxu0 %v11614_v15  ;;  %v1814_v56 = vsel %vm14103_vm2, %v1809_v47, %v1813_v42  ;;  %v2702_v12 = vshll.u32 %v11787_v59, 16  ;;  %v2684_v13 = vrot.slane %v2682_v4, 5  ;;  %v2690_v14 = vrot.slane %v2688_v5, 5  ;;  %v11660_v25 = vld [vmem:[%s19170_s0 + $0xb8] sm:$0xe] }
  0xdb   :  { %4575 = vmatmul.mubr.bf16.gmra.mrb[72].mxu1 %v11494_v52  ;;  %4679 = vmatprep.mubr.bf16.mxu0 %v11727_v26  ;;  %v2327_v52 = vrot.slane %v11657_v46, 5  ;;  %v1828_v60 = vsel %vm14103_vm2, %v1823_v51, %v1827_v43  ;;  %v1830_v15 = vshrl.u32 %v11576_v0, 16  ;;  %v1833_v16 = vshll.u32 %v11576_v0, 16  ;;  %v11661_v30 = vld [vmem:[%s19170_s0 + $0xbc] sm:$0x1] }
  0xdc   :  { %4582 = vmatprep.mubr.bf16.mxu1 %v13780_v62  ;;  %v2332_v62 = vsel %vm14264_vm5, %v11705_v53, %v2331_v54  ;;  %v11615_v2 = vcombine.low %v1814_v56, %v1828_v60  ;;  %v2695_v17 = vrot.slane %v2693_v10, 4  ;;  %v2698_v18 = vrot.slane %v2696_v11, 5  ;;  %v11662_v34 = vld [vmem:[%s19170_s0 + $0xc0] sm:$0xe]  ;;  %v11789_v46 = vld [vmem:[%s19170_s0 + $0x24] sm:$0x1] }
  0xdd   :  { %v2328_v61 = vsel %vm14264_vm5, %v11704_v50, %v2327_v52  ;;  %v2704_v19 = vrot.slane %v2702_v12, 5  ;;  %v1839_v20 = vshll.u32 %v11577_v1, 16  ;;  %v2685_v21 = vor.u32 %v2684_v13, %v2681_v8  ;;  %v11788_v41 = vld [vmem:[%s19170_s0 + $0x20] sm:$0xf]  ;;  %v13785_v49 = vld [vmem:[%s19170_s0 + $0x10] ss:$8 sps:$4 sm:$0xff]  }
  0xde   :  { %v11728_v3 = vcombine.low %v2328_v61, %v2332_v62  ;;  %v1832_v22 = vrot.slane %v1830_v15, 4  ;;  %v1835_v23 = vrot.slane %v1833_v16, 5  ;;  %v1844_v24 = vshrl.u32 %v11578_v6, 16  ;;  %v11790_v51 = vld [vmem:[%s19170_s0 + $0x28] sm:$0xf] }
  0xdf   :  { %v2699_v26 = vor.u32 %v2698_v18, %v2695_v17  ;;  %v1841_v27 = vrot.slane %v1839_v20, 5  ;;  %v1847_v28 = vshll.u32 %v11578_v6, 16  ;;  %v1853_v29 = vshll.u32 %v11579_v7, 16  ;;  %v11791_v56 = vld [vmem:[%s19170_s0 + $0x2c] sm:$0x1] }
  0xe0   :  { %v2686_v31 = vrot.slane %v2685_v21, 4  ;;  %v1836_v32 = vor.u32 %v1835_v23, %v1832_v22  ;;  %v1846_v33 = vrot.slane %v1844_v24, 4  ;;  %v11706_v40 = vrot.slane %v11660_v25, 9  ;;  %v11580_v58 = vld [vmem:[%s19170_s0 + $0xb8] sm:$0xf] }
  0xe1   :  { %v2700_v36 = vrot.slane %v2699_v26, 4  ;;  %v1849_v37 = vrot.slane %v1847_v28, 5  ;;  %v1855_v38 = vrot.slane %v1853_v29, 5  ;;  %v2335_v44 = vrot.slane %v11661_v30, 5  ;;  %v11581_v63 = vld [vmem:[%s19170_s0 + $0xbc] sm:$0x1] }
  0xe2   :  { %4680 = vmatmul.mubr.bf16.gmra.mrb[76].mxu0 %v11615_v2  ;;  %v2691_v42 = vsel %vm14103_vm2, %v2686_v31, %v2690_v14  ;;  %v1837_v43 = vrot.slane %v1836_v32, 4  ;;  %v11707_v45 = vrot.slane %v11662_v34, 9  ;;  %v2707_v52 = vshrl.u32 %v11788_v41, 16  ;;  %v11582_v5 = vld [vmem:[%s19170_s0 + $0xc0] sm:$0xf] }
  0xe3   :  { %4583 = vmatmul.mubr.bf16.gmra.mrb[76].mxu1 %v11495_v35  ;;  %4687 = vmatprep.mubr.bf16.mxu0 %v11728_v3  ;;  %v11663_v35 = vld [vmem:[%s19170_s0 + $0xc4] sm:$0x1]  ;;  %v2705_v47 = vsel %vm14103_vm2, %v2700_v36, %v2704_v19  ;;  %v1850_v48 = vor.u32 %v1849_v37, %v1846_v33  ;;  %v2336_v55 = vsel %vm14264_vm5, %v11706_v40, %v2335_v44  ;;  %v2710_v57 = vshll.u32 %v11788_v41, 16  ;;  %v11664_v22 = vld [vmem:[%s19170_s0 + $0xc8] sm:$0xe] }
  0xe4   :  { %v2339_v50 = vrot.slane %v11663_v35, 5  ;;  %v11848_v53 = vcombine.low %v2691_v42, %v2705_v47  ;;  %v1842_v54 = vsel %vm14103_vm2, %v1837_v43, %v1841_v27  ;;  %v2709_v61 = vrot.slane %v2707_v52, 4  ;;  %v11583_v17 = vld [vmem:[%s19170_s0 + $0xc4] sm:$0x1]  ;;  %v11665_v27 = vld [vmem:[%s19170_s0 + $0xcc] sm:$0x1] }
  0xe5   :  { %v1851_v59 = vrot.slane %v1850_v48, 4  ;;  %v2716_v62 = vshll.u32 %v11789_v46, 16  ;;  %v2712_v2 = vrot.slane %v2710_v57, 5  ;;  %v2721_v3 = vshrl.u32 %v11790_v51, 16  ;;  %v11666_v32 = vld [vmem:[%s19170_s0 + $0xd0] sm:$0xe] }
  0xe6   :  { %v2340_v60 = vsel %vm14264_vm5, %v11707_v45, %v2339_v50  ;;  %4784 = vmatprep.mubr.bf16.mxu1 %v11848_v53  ;;  %v2724_v4 = vshll.u32 %v11790_v51, 16  ;;  %v2730_v10 = vshll.u32 %v11791_v56, 16  ;;  %v1858_v11 = vshrl.u32 %v11580_v58, 16  ;;  %v11667_v40 = vld [vmem:[%s19170_s0 + $0xd4] sm:$0x1] }
  0xe7   :  { %v11729_v1 = vcombine.low %v2336_v55, %v2340_v60  ;;  %v1856_v7 = vsel %vm14103_vm2, %v1851_v59, %v1855_v38  ;;  %v2718_v8 = vrot.slane %v2716_v62, 5  ;;  %v2713_v14 = vor.u32 %v2712_v2, %v2709_v61  ;;  %v13786_v38 = vld [vmem:[%s19170_s0 + $0x20] ss:$8 sps:$4 sm:$0xff]   ;;  %v11792_v46 = vld [vmem:[%s19170_s0 + $0x30] sm:$0xf] }
  0xe8   :  { %v11616_v13 = vcombine.low %v1842_v54, %v1856_v7  ;;  %v2723_v15 = vrot.slane %v2721_v3, 4  ;;  %v2726_v16 = vrot.slane %v2724_v4, 5  ;;  %v2732_v18 = vrot.slane %v2730_v10, 5  ;;  %v11793_v51 = vld [vmem:[%s19170_s0 + $0x34] sm:$0x1] }
  0xe9   :  { %v1860_v19 = vrot.slane %v1858_v11, 4  ;;  %v1861_v20 = vshll.u32 %v11580_v58, 16  ;;  %v1867_v21 = vshll.u32 %v11581_v63, 16  ;;  %v2714_v23 = vrot.slane %v2713_v14, 4  ;;  %v11794_v52 = vld [vmem:[%s19170_s0 + $0x38] sm:$0xf] }
  0xea   :  { %4688 = vmatmul.mubr.bf16.gmra.mrb[80].mxu0 %v11616_v13  ;;  %v2727_v24 = vor.u32 %v2726_v16, %v2723_v15  ;;  %v1872_v25 = vshrl.u32 %v11582_v5, 16  ;;  %v1875_v26 = vshll.u32 %v11582_v5, 16  ;;  %v1881_v31 = vshll.u32 %v11583_v17, 16  ;;  %v11795_v57 = vld [vmem:[%s19170_s0 + $0x3c] sm:$0x1] }
  0xeb   :  { %4785 = vmatmul.mubr.bf16.vlgmr.msra.gmra.mrb[80].mxu1 %v13785_v49  ;;  %4695 = vmatprep.mubr.bf16.mxu0 %v11729_v1  ;;  %v1863_v29 = vrot.slane %v1861_v20, 5  ;;  %v1869_v30 = vrot.slane %v1867_v21, 5  ;;  %v11708_v33 = vrot.slane %v11664_v22, 9  ;;  %v2719_v34 = vsel %vm14103_vm2, %v2714_v23, %v2718_v8  ;;  %v11584_v63 = vld [vmem:[%s19170_s0 + $0xc8] sm:$0xf] }
  0xec   :  { %v2728_v35 = vrot.slane %v2727_v24, 4  ;;  %v1874_v36 = vrot.slane %v1872_v25, 4  ;;  %v1877_v37 = vrot.slane %v1875_v26, 5  ;;  %v1883_v43 = vrot.slane %v1881_v31, 5  ;;  %v11585_v7 = vld [vmem:[%s19170_s0 + $0xcc] sm:$0x1] }
  0xed   :  { %v1864_v42 = vor.u32 %v1863_v29, %v1860_v19  ;;  %v2343_v44 = vrot.slane %v11665_v27, 5  ;;  %v11709_v45 = vrot.slane %v11666_v32, 9  ;;  %v2347_v50 = vrot.slane %v11667_v40, 5  ;;  %v11586_v8 = vld [vmem:[%s19170_s0 + $0xd0] sm:$0xf] }
  0xee   :  { %v2733_v48 = vsel %vm14103_vm2, %v2728_v35, %v2732_v18  ;;  %v1878_v49 = vor.u32 %v1877_v37, %v1874_v36  ;;  %v2735_v53 = vshrl.u32 %v11792_v46, 16  ;;  %v2738_v58 = vshll.u32 %v11792_v46, 16  ;;  %v11587_v19 = vld [vmem:[%s19170_s0 + $0xd4] sm:$0x1]  ;;  %v11668_v25 = vld [vmem:[%s19170_s0 + $0xd8] sm:$0xe] }
  0xef   :  { %v11849_v54 = vcombine.low %v2719_v34, %v2733_v48  ;;  %v1865_v55 = vrot.slane %v1864_v42, 4  ;;  %v2344_v56 = vsel %vm14264_vm5, %v11708_v33, %v2343_v44  ;;  %v2348_v60 = vsel %vm14264_vm5, %v11709_v45, %v2347_v50  ;;  %v11669_v31 = vld [vmem:[%s19170_s0 + $0xdc] sm:$0x1]  ;;  %v11670_v36 = vld [vmem:[%s19170_s0 + $0xe0] sm:$0xe] }
  0xf0   :  { %v1879_v59 = vrot.slane %v1878_v49, 4  ;;  %v2737_v61 = vrot.slane %v2735_v53, 4  ;;  %v2744_v62 = vshll.u32 %v11793_v51, 16  ;;  %v11730_v3 = vcombine.low %v2344_v56, %v2348_v60  ;;  %v11796_v51 = vld [vmem:[%s19170_s0 + $0x40] sm:$0xf] }
  0xf1   :  { %4792 = vmatprep.mubr.bf16.mxu1 %v11849_v54  ;;  %v1870_v2 = vsel %vm14103_vm2, %v1865_v55, %v1869_v30  ;;  %v2740_v4 = vrot.slane %v2738_v58, 5  ;;  %v2749_v5 = vshrl.u32 %v11794_v52, 16  ;;  %v2752_v13 = vshll.u32 %v11794_v52, 16  ;;  %v13787_v54 = vld [vmem:[%s19170_s0 + $0x30] ss:$8 sps:$4 sm:$0xff]  }
  0xf2   :  { %v1884_v10 = vsel %vm14103_vm2, %v1879_v59, %v1883_v43  ;;  %v2746_v11 = vrot.slane %v2744_v62, 5  ;;  %v2758_v14 = vshll.u32 %v11795_v57, 16  ;;  %v1886_v20 = vshrl.u32 %v11584_v63, 16  ;;  %v11671_v43 = vld [vmem:[%s19170_s0 + $0xe4] sm:$0x1] }
  0xf3   :  { %4793 = vmatmul.mubr.bf16.gmra.mrb[84].mxu1 %v13786_v38  ;;  %v11617_v16 = vcombine.low %v1870_v2, %v1884_v10  ;;  %v2741_v17 = vor.u32 %v2740_v4, %v2737_v61  ;;  %v2751_v18 = vrot.slane %v2749_v5, 4  ;;  %v2754_v21 = vrot.slane %v2752_v13, 5  ;;  %v11797_v57 = vld [vmem:[%s19170_s0 + $0x44] sm:$0x1]  ;;  %v11798_v62 = vld [vmem:[%s19170_s0 + $0x48] sm:$0xf] }
  0xf4   :  { %v2760_v22 = vrot.slane %v2758_v14, 5  ;;  %v1889_v23 = vshll.u32 %v11584_v63, 16  ;;  %v1895_v24 = vshll.u32 %v11585_v7, 16  ;;  %v1888_v27 = vrot.slane %v1886_v20, 4  ;;  %v11799_v63 = vld [vmem:[%s19170_s0 + $0x4c] sm:$0x1] }
  0xf5   :  { %4696 = vmatmul.mubr.bf16.gmra.mrb[84].mxu0 %v11617_v16  ;;  %v2742_v26 = vrot.slane %v2741_v17, 4  ;;  %v1900_v29 = vshrl.u32 %v11586_v8, 16  ;;  %v1903_v30 = vshll.u32 %v11586_v8, 16  ;;  %v2755_v32 = vor.u32 %v2754_v21, %v2751_v18  ;;  %v11588_v5 = vld [vmem:[%s19170_s0 + $0xd8] sm:$0xf] }
  0xf6   :  { %4703 = vmatprep.mubr.bf16.mxu0 %v11730_v3  ;;  %v1891_v33 = vrot.slane %v1889_v23, 5  ;;  %v1897_v34 = vrot.slane %v1895_v24, 5  ;;  %v1909_v35 = vshll.u32 %v11587_v19, 16  ;;  %v11710_v44 = vrot.slane %v11668_v25, 9  ;;  %v11589_v7 = vld [vmem:[%s19170_s0 + $0xdc] sm:$0x1] }
  0xf7   :  { %v2747_v38 = vsel %vm14103_vm2, %v2742_v26, %v2746_v11  ;;  %v1902_v40 = vrot.slane %v1900_v29, 4  ;;  %v1905_v42 = vrot.slane %v1903_v30, 5  ;;  %v2756_v46 = vrot.slane %v2755_v32, 4  ;;  %v11590_v14 = vld [vmem:[%s19170_s0 + $0xe0] sm:$0xf] }
  0xf8   :  { %v1892_v48 = vor.u32 %v1891_v33, %v1888_v27  ;;  %v1911_v49 = vrot.slane %v1909_v35, 5  ;;  %v2351_v50 = vrot.slane %v11669_v31, 5  ;;  %v11711_v55 = vrot.slane %v11670_v36, 9  ;;  %v11591_v24 = vld [vmem:[%s19170_s0 + $0xe4] sm:$0x1] }
  0xf9   :  { %v1906_v53 = vor.u32 %v1905_v42, %v1902_v40  ;;  %v2355_v56 = vrot.slane %v11671_v43, 5  ;;  %v2761_v59 = vsel %vm14103_vm2, %v2756_v46, %v2760_v22  ;;  %v2763_v2 = vshrl.u32 %v11796_v51, 16  ;;  %v11672_v32 = vld [vmem:[%s19170_s0 + $0xf8] sm:$0xe]  ;;  %v11673_v40 = vld [vmem:[%s19170_s0 + $0xfc] sm:$0x1] }
  0xfa   :  { %v1893_v60 = vrot.slane %v1892_v48, 4  ;;  %v2352_v61 = vsel %vm14264_vm5, %v11710_v44, %v2351_v50  ;;  %v11850_v3 = vcombine.low %v2747_v38, %v2761_v59  ;;  %v2772_v13 = vshll.u32 %v11797_v57, 16  ;;  %v11674_v48 = vld [vmem:[%s19170_s0 + $0x100] sm:$0xe] }
  0xfb   :  { %v1907_v4 = vrot.slane %v1906_v53, 4  ;;  %v2765_v11 = vrot.slane %v2763_v2, 4  ;;  %v2777_v18 = vshrl.u32 %v11798_v62, 16  ;;  %v2780_v19 = vshll.u32 %v11798_v62, 16  ;;  %v11800_v62 = vld [vmem:[%s19170_s0 + $0x60] sm:$0xf] }
  0xfc   :  { %v1898_v8 = vsel %vm14103_vm2, %v1893_v60, %v1897_v34  ;;  %4800 = vmatprep.mubr.bf16.mxu1 %v11850_v3  ;;  %v2774_v22 = vrot.slane %v2772_v13, 5  ;;  %v2786_v23 = vshll.u32 %v11799_v63, 16  ;;  %v1914_v25 = vshrl.u32 %v11588_v5, 16  ;;  %v11801_v63 = vld [vmem:[%s19170_s0 + $0x64] sm:$0x1] }
  0xfd   :  { %v1912_v16 = vsel %vm14103_vm2, %v1907_v4, %v1911_v49  ;;  %4801 = vmatmul.mubr.bf16.gmra.mrb[88].mxu1 %v13787_v54  ;;  %v2779_v29 = vrot.slane %v2777_v18, 4  ;;  %v2782_v30 = vrot.slane %v2780_v19, 5  ;;  %v1917_v31 = vshll.u32 %v11588_v5, 16  ;;  %v11675_v54 = vld [vmem:[%s19170_s0 + $0x104] sm:$0x1] }
  0xfe   :  { %v11618_v21 = vcombine.low %v1898_v8, %v1912_v16  ;;  %v2788_v34 = vrot.slane %v2786_v23, 5  ;;  %v1916_v35 = vrot.slane %v1914_v25, 4  ;;  %v1923_v36 = vshll.u32 %v11589_v7, 16  ;;  %v11592_v18 = vld [vmem:[%s19170_s0 + $0xf8] sm:$0xf] }
  0xff   :  { %v1928_v38 = vshrl.u32 %v11590_v14, 16  ;;  %v2783_v43 = vor.u32 %v2782_v30, %v2779_v29  ;;  %v1919_v44 = vrot.slane %v1917_v31, 5  ;;  %v1931_v46 = vshll.u32 %v11590_v14, 16  ;;  %v11593_v25 = vld [vmem:[%s19170_s0 + $0xfc] sm:$0x1] }
 0x100   :  { %4704 = vmatmul.mubr.bf16.gmra.mrb[88].mxu0 %v11618_v21  ;;  %v1925_v50 = vrot.slane %v1923_v36, 5  ;;  %v1937_v53 = vshll.u32 %v11591_v24, 16  ;;  %v2359_v3 = vrot.slane %v11673_v40, 5  ;;  %v11713_v4 = vrot.slane %v11674_v48, 9  ;;  %v11595_v48 = vld [vmem:[%s19170_s0 + $0x104] sm:$0x1] }
 0x101   :  { %v2784_v57 = vrot.slane %v2783_v43, 4  ;;  %v1920_v59 = vor.u32 %v1919_v44, %v1916_v35  ;;  %v1933_v60 = vrot.slane %v1931_v46, 5  ;;  %v2800_v29 = vshll.u32 %v11801_v63, 16  ;;  %v11676_v63 = vld [vmem:[%s19170_s0 + $0x108] sm:$0xe] }
 0x102   :  { %v1939_v2 = vrot.slane %v1937_v53, 5  ;;  %v1942_v36 = vshrl.u32 %v11592_v18, 16 }
 0x103   :  { %v2789_v5 = vsel %vm14103_vm2, %v2784_v57, %v2788_v34  ;;  %v1921_v7 = vrot.slane %v1920_v59, 4  ;;  %v2802_v44 = vrot.slane %v2800_v29, 5  ;;  %v11805_v29 = vld [vmem:[%s19170_s0 + $0x74] sm:$0x1] }
 0x104   :  { %v1944_v53 = vrot.slane %v1942_v36, 4 }
 0x105   :  { %v1926_v21 = vsel %vm14103_vm2, %v1921_v7, %v1925_v50 }
 0x11a   :  { %v15036_v0 = vpop.f32.mrb[0].mxu0  ;;  %v15069_v41 = vpop.f32.mrb[0].mxu1 }
 0x11b   :  { %v15041_v6 = vpop.f32.mrb[1].mxu0  ;;  %v15074_v47 = vpop.f32.mrb[1].mxu1 }
 0x11c   :  { %v15045_v12 = vpop.f32.mrb[2].mxu0  ;;  %v15132_v52 = vpop.f32.mrb[2].mxu1  ;;  %v15142_v58 = vadd.f32 %v15041_v6, %v15036_v0  ;;  %v2356_v0 = vsel %vm14264_vm5, %v11711_v55, %v2355_v56  ;;  %v2766_v6 = vshll.u32 %v11796_v51, 16  ;;  %v1930_v51 = vrot.slane %v1928_v38, 4 }
 0x11d   :  { %v15056_v28 = vpop.f32.mrb[3].mxu0  ;;  %v11731_v10 = vcombine.low %v2352_v61, %v2356_v0  ;;  %v11712_v55 = vrot.slane %v11672_v32, 9  ;;  %v13788_v61 = vld [vmem:[%s19170_s0 + $0x40] ss:$8 sps:$4 sm:$0xff]   ;;  %v2363_v0 = vrot.slane %v11675_v54, 5  ;;  %v15218_v19 = vpop.f32.mrb[3].mxu1 }
 0x11e   :  { %v2768_v17 = vrot.slane %v2766_v6, 5  ;;  %v11802_v6 = vld [vmem:[%s19170_s0 + $0x68] sm:$0xf]  ;;  %v1934_v8 = vor.u32 %v1933_v60, %v1930_v51  ;;  %v11594_v32 = vld [vmem:[%s19170_s0 + $0x100] sm:$0xf]  ;;  %v1945_v38 = vshll.u32 %v11592_v18, 16 }
 0x11f   :  { %4711 = vmatprep.mubr.bf16.mxu0 %v11731_v10  ;;  %v11803_v10 = vld [vmem:[%s19170_s0 + $0x6c] sm:$0x1]  ;;  %v2360_v14 = vsel %vm14264_vm5, %v11712_v55, %v2359_v3  ;;  %v2364_v16 = vsel %vm14264_vm5, %v11713_v4, %v2363_v0  ;;  %v2805_v30 = vshrl.u32 %v11802_v6, 16  ;;  %v2808_v31 = vshll.u32 %v11802_v6, 16 }
 0x120   :  { %v2769_v27 = vor.u32 %v2768_v17, %v2765_v11  ;;  %v2791_v11 = vshrl.u32 %v11800_v62, 16  ;;  %v2794_v17 = vshll.u32 %v11800_v62, 16  ;;  %v11732_v23 = vcombine.low %v2360_v14, %v2364_v16 }
 0x121   :  { %v2814_v35 = vshll.u32 %v11803_v10, 16  ;;  %v2807_v46 = vrot.slane %v2805_v30, 4  ;;  %v2810_v50 = vrot.slane %v2808_v31, 5  ;;  %v1947_v54 = vrot.slane %v1945_v38, 5  ;;  %v11806_v30 = vld [vmem:[%s19170_s0 + $0x78] sm:$0xf] }
 0x122   :  { %v15094_v1 = vpop.f32.mrb[4].mxu0  ;;  %v2770_v42 = vrot.slane %v2769_v27, 4  ;;  %v2793_v24 = vrot.slane %v2791_v11, 4  ;;  %v2796_v27 = vrot.slane %v2794_v17, 5  ;;  %v15230_v40 = vpop.f32.mrb[4].mxu1  ;;  %v1956_v57 = vshrl.u32 %v11594_v32, 16 }
 0x123   :  { %v15106_v15 = vpop.f32.mrb[5].mxu0  ;;  %v2816_v51 = vrot.slane %v2814_v35, 5  ;;  %v1959_v59 = vshll.u32 %v11594_v32, 16  ;;  %v2811_v60 = vor.u32 %v2810_v50, %v2807_v46  ;;  %v1965_v62 = vshll.u32 %v11595_v48, 16  ;;  %v15245_v4 = vpop.f32.mrb[5].mxu1 }
 0x124   :  { %v15120_v37 = vpop.f32.mrb[6].mxu0  ;;  %v2775_v56 = vsel %vm14103_vm2, %v2770_v42, %v2774_v22  ;;  %v1935_v22 = vrot.slane %v1934_v8, 4  ;;  %v2797_v43 = vor.u32 %v2796_v27, %v2793_v24  ;;  %v15243_v3 = vadd.f32 %v15056_v28, %v15045_v12  ;;  %v11678_v8 = vld [vmem:[%s19170_s0 + $0x110] sm:$0xe]  ;;  %v15252_v10 = vpop.f32.mrb[6].mxu1 }
 0x125   :  { %v15127_v45 = vpop.f32.mrb[7].mxu0  ;;  %v11851_v13 = vcombine.low %v2775_v56, %v2789_v5  ;;  %v1951_v56 = vshll.u32 %v11593_v25, 16  ;;  %v1958_v5 = vrot.slane %v1956_v57, 4  ;;  %v1961_v7 = vrot.slane %v1959_v59, 5  ;;  %v13790_v12 = vld [vmem:[%s19170_s0 + $0x60] ss:$8 sps:$4 sm:$0xff]  }
 0x126   :  { %v1940_v34 = vsel %vm14103_vm2, %v1935_v22, %v1939_v2  ;;  %v2798_v55 = vrot.slane %v2797_v43, 4  ;;  %v11677_v2 = vld [vmem:[%s19170_s0 + $0x10c] sm:$0x1]  ;;  %v2812_v11 = vrot.slane %v2811_v60, 4  ;;  %v1967_v14 = vrot.slane %v1965_v62, 5  ;;  %v15263_v24 = vpop.f32.mrb[7].mxu1 }
 0x127   :  { %4808 = vmatprep.mubr.bf16.mxu1 %v11851_v13  ;;  %v11619_v42 = vcombine.low %v1926_v21, %v1940_v34  ;;  %v1953_v6 = vrot.slane %v1951_v56, 5  ;;  %v11679_v28 = vld [vmem:[%s19170_s0 + $0x114] sm:$0x1]  ;;  %v11714_v16 = vrot.slane %v11676_v63, 9  ;;  %v1962_v17 = vor.u32 %v1961_v7, %v1958_v5  ;;  %v11807_v31 = vld [vmem:[%s19170_s0 + $0x7c] sm:$0x1] }
 0x128   :  { %4809 = vmatmul.mubr.bf16.gmra.mrb[92].mxu1 %v13788_v61  ;;  %v1948_v61 = vor.u32 %v1947_v54, %v1944_v53  ;;  %v2803_v0 = vsel %vm14103_vm2, %v2798_v55, %v2802_v44  ;;  %v2367_v18 = vrot.slane %v11677_v2, 5  ;;  %v11715_v21 = vrot.slane %v11678_v8, 9  ;;  %v11596_v43 = vld [vmem:[%s19170_s0 + $0x108] sm:$0xf]  ;;  %v11598_v48 = vld [vmem:[%s19170_s0 + $0x110] sm:$0xf] }
 0x129   :  { %4712 = vmatmul.mubr.bf16.gmra.mrb[92].mxu0 %v11619_v42  ;;  %v2371_v22 = vrot.slane %v11679_v28, 5  ;;  %v2817_v25 = vsel %vm14103_vm2, %v2812_v11, %v2816_v51  ;;  %v15280_v32 = vadd.f32 %v15106_v15, %v15094_v1  ;;  %v15284_v34 = vadd.f32 %v15127_v45, %v15120_v37  ;;  %v11597_v1 = vld [vmem:[%s19170_s0 + $0x10c] sm:$0x1]  ;;  %v11599_v56 = vld [vmem:[%s19170_s0 + $0x114] sm:$0x1] }
 0x12a   :  { %v15169_v20 = vpop.f32.mrb[8].mxu0  ;;  %4719 = vmatprep.mubr.bf16.mxu0 %v11732_v23  ;;  %v1949_v13 = vrot.slane %v1948_v61, 4  ;;  %v11804_v23 = vld [vmem:[%s19170_s0 + $0x70] sm:$0xf]  ;;  %v11852_v35 = vcombine.low %v2803_v0, %v2817_v25  ;;  %v1963_v36 = vrot.slane %v1962_v17, 4  ;;  %v2368_v38 = vsel %vm14264_vm5, %v11714_v16, %v2367_v18  ;;  %v15301_v50 = vpop.f32.mrb[8].mxu1 }
 0x12b   :  { %v15174_v26 = vpop.f32.mrb[9].mxu0  ;;  %v2372_v42 = vsel %vm14264_vm5, %v11715_v21, %v2371_v22  ;;  %v2819_v45 = vshrl.u32 %v11804_v23, 16  ;;  %v2822_v44 = vshll.u32 %v11804_v23, 16  ;;  %v2828_v46 = vshll.u32 %v11805_v29, 16  ;;  %v15310_v63 = vpop.f32.mrb[9].mxu1 }
 0x12c   :  { %v15179_v33 = vpop.f32.mrb[10].mxu0  ;;  %v1954_v27 = vsel %vm14103_vm2, %v1949_v13, %v1953_v6  ;;  %v11733_v37 = vcombine.low %v2368_v38, %v2372_v42  ;;  %4816 = vmatprep.mubr.bf16.mxu1 %v11852_v35  ;;  %v1968_v51 = vsel %vm14103_vm2, %v1963_v36, %v1967_v14  ;;  %v2833_v53 = vshrl.u32 %v11806_v30, 16  ;;  %v15314_v18 = vpop.f32.mrb[10].mxu1 }
 0x12d   :  { %v15187_v49 = vpop.f32.mrb[11].mxu0  ;;  %v2836_v54 = vshll.u32 %v11806_v30, 16  ;;  %v2842_v55 = vshll.u32 %v11807_v31, 16  ;;  %v11620_v59 = vcombine.low %v1954_v27, %v1968_v51  ;;  %v2821_v60 = vrot.slane %v2819_v45, 4  ;;  %v13792_v31 = vld [vmem:[%s19170_s0 + $0x70] ss:$8 sps:$4 sm:$0xff]  }
 0x12e   :  { %v2824_v61 = vrot.slane %v2822_v44, 5  ;;  %v2830_v62 = vrot.slane %v2828_v46, 5  ;;  %v2835_v2 = vrot.slane %v2833_v53, 4  ;;  %v1970_v5 = vshrl.u32 %v11596_v43, 16  ;;  %v11682_v44 = vld [vmem:[%s19170_s0 + $0x120] sm:$0xe] }
 0x12f   :  { %v2838_v0 = vrot.slane %v2836_v54, 5  ;;  %v2844_v6 = vrot.slane %v2842_v55, 5  ;;  %v1973_v8 = vshll.u32 %v11596_v43, 16  ;;  %v1979_v11 = vshll.u32 %v11597_v1, 16  ;;  %v11680_v43 = vld [vmem:[%s19170_s0 + $0x118] sm:$0xe] }
 0x130   :  { %4817 = vmatmul.mubr.bf16.gmra.mrb[96].mxu1 %v13790_v12  ;;  %v2825_v7 = vor.u32 %v2824_v61, %v2821_v60  ;;  %v1984_v13 = vshrl.u32 %v11598_v48, 16  ;;  %v1972_v16 = vrot.slane %v1970_v5, 4  ;;  %v1987_v12 = vshll.u32 %v11598_v48, 16  ;;  %v11681_v1 = vld [vmem:[%s19170_s0 + $0x11c] sm:$0x1] }
 0x131   :  { %4720 = vmatmul.mubr.bf16.gmra.mrb[96].mxu0 %v11620_v59  ;;  %v2839_v28 = vor.u32 %v2838_v0, %v2835_v2  ;;  %v1993_v17 = vshll.u32 %v11599_v56, 16  ;;  %v1975_v22 = vrot.slane %v1973_v8, 5  ;;  %v1981_v23 = vrot.slane %v1979_v11, 5  ;;  %v11683_v46 = vld [vmem:[%s19170_s0 + $0x124] sm:$0x1] }
 0x132   :  { %4727 = vmatprep.mubr.bf16.mxu0 %v11733_v37  ;;  %v2826_v21 = vrot.slane %v2825_v7, 4  ;;  %v1986_v25 = vrot.slane %v1984_v13, 4  ;;  %v1989_v29 = vrot.slane %v1987_v12, 5  ;;  %v15321_v35 = vadd.f32 %v15174_v26, %v15169_v20  ;;  %v11809_v59 = vld [vmem:[%s19170_s0 + $0x84] sm:$0x1] }
 0x133   :  { %v15296_v15 = vpop.f32.mrb[12].mxu0  ;;  %v2840_v27 = vrot.slane %v2839_v28, 4  ;;  %v1995_v30 = vrot.slane %v1993_v17, 5  ;;  %v1976_v42 = vor.u32 %v1975_v22, %v1972_v16  ;;  %v15335_v37 = vadd.f32 %v15074_v47, %v15069_v41  ;;  %v11810_v60 = vld [vmem:[%s19170_s0 + $0x88] sm:$0xf] }
 0x134   :  { %v15308_v57 = vpop.f32.mrb[13].mxu0  ;;  %v2831_v38 = vsel %vm14103_vm2, %v2826_v21, %v2830_v62  ;;  %v15339_v20 = vadd.f32 %v15187_v49, %v15179_v33  ;;  %v1990_v45 = vor.u32 %v1989_v29, %v1986_v25  ;;  %v11716_v48 = vrot.slane %v11680_v43, 9  ;;  %v11808_v33 = vld [vmem:[%s19170_s0 + $0x80] sm:$0xf]  ;;  %v15352_v49 = vpop.f32.mrb[11].mxu1 }
 0x135   :  { %v15312_v14 = vpop.f32.mrb[14].mxu0  ;;  %v2845_v26 = vsel %vm14103_vm2, %v2840_v27, %v2844_v6  ;;  %v2375_v51 = vrot.slane %v11681_v1, 5  ;;  %v1977_v47 = vrot.slane %v1976_v42, 4  ;;  %v11717_v53 = vrot.slane %v11682_v44, 9  ;;  %v11811_v6 = vld [vmem:[%s19170_s0 + $0x8c] sm:$0x1] }
 0x136   :  { %v15323_v36 = vpop.f32.mrb[15].mxu0  ;;  %v11853_v41 = vcombine.low %v2831_v38, %v2845_v26  ;;  %v2379_v54 = vrot.slane %v11683_v46, 5  ;;  %v1991_v55 = vrot.slane %v1990_v45, 4  ;;  %v2847_v61 = vshrl.u32 %v11808_v33, 16  ;;  %v11600_v8 = vld [vmem:[%s19170_s0 + $0x118] sm:$0xf] }
 0x137   :  { %v2376_v56 = vsel %vm14264_vm5, %v11716_v48, %v2375_v51  ;;  %v15364_v62 = vadd.f32 %v15218_v19, %v15132_v52  ;;  %v1982_v2 = vsel %vm14103_vm2, %v1977_v47, %v1981_v23  ;;  %v2850_v5 = vshll.u32 %v11808_v33, 16  ;;  %v11601_v28 = vld [vmem:[%s19170_s0 + $0x11c] sm:$0x1]  ;;  %v11602_v16 = vld [vmem:[%s19170_s0 + $0x120] sm:$0xf]  ;;  %v15387_v25 = vpop.f32.mrb[12].mxu1 }
 0x138   :  { %4824 = vmatprep.mubr.bf16.mxu1 %v11853_v41  ;;  %v2380_v0 = vsel %vm14264_vm5, %v11717_v53, %v2379_v54  ;;  %v2856_v7 = vshll.u32 %v11809_v59, 16  ;;  %v1996_v52 = vsel %vm14103_vm2, %v1991_v55, %v1995_v30  ;;  %v2849_v11 = vrot.slane %v2847_v61, 4  ;;  %v11603_v23 = vld [vmem:[%s19170_s0 + $0x124] sm:$0x1]  ;;  %v15389_v26 = vpop.f32.mrb[13].mxu1 }
 0x139   :  { %4825 = vmatmul.mubr.bf16.gmra.mrb[100].mxu1 %v13792_v31  ;;  %v11734_v19 = vcombine.low %v2376_v56, %v2380_v0  ;;  %v2861_v13 = vshrl.u32 %v11810_v60, 16  ;;  %v11621_v12 = vcombine.low %v1982_v2, %v1996_v52  ;;  %v2852_v17 = vrot.slane %v2850_v5, 5  ;;  %v15391_v54 = vpop.f32.mrb[14].mxu1  ;;  %v13795_v2 = vld [vmem:[%s19170_s0 + $0x80] ss:$8 sps:$4 sm:$0xff]  }
 0x13a   :  { %v2858_v21 = vrot.slane %v2856_v7, 5  ;;  %v2864_v22 = vshll.u32 %v11810_v60, 16  ;;  %v2870_v29 = vshll.u32 %v11811_v6, 16  ;;  %v1998_v30 = vshrl.u32 %v11600_v8, 16  ;;  %v15402_v0 = vpop.f32.mrb[15].mxu1 }
 0x13b   :  { %v2863_v27 = vrot.slane %v2861_v13, 4  ;;  %v2001_v31 = vshll.u32 %v11600_v8, 16  ;;  %4728 = vmatmul.mubr.bf16.gmra.mrb[100].mxu0 %v11621_v12  ;;  %v2853_v38 = vor.u32 %v2852_v17, %v2849_v11  ;;  %v2007_v43 = vshll.u32 %v11601_v28, 16  ;;  %v11684_v8 = vld [vmem:[%s19170_s0 + $0x128] sm:$0xe] }
 0x13c   :  { %v2866_v42 = vrot.slane %v2864_v22, 5  ;;  %v2012_v1 = vshrl.u32 %v11602_v16, 16  ;;  %4735 = vmatprep.mubr.bf16.mxu0 %v11734_v19  ;;  %v2872_v45 = vrot.slane %v2870_v29, 5  ;;  %v2000_v44 = vrot.slane %v1998_v30, 4  ;;  %v11686_v19 = vld [vmem:[%s19170_s0 + $0x130] sm:$0xe] }
 0x13d   :  { %v2003_v46 = vrot.slane %v2001_v31, 5  ;;  %v2015_v48 = vshll.u32 %v11602_v16, 16  ;;  %v2854_v51 = vrot.slane %v2853_v38, 4  ;;  %v2009_v47 = vrot.slane %v2007_v43, 5  ;;  %v11687_v11 = vld [vmem:[%s19170_s0 + $0x134] sm:$0x1] }
 0x13e   :  { %v2867_v41 = vor.u32 %v2866_v42, %v2863_v27  ;;  %v2014_v53 = vrot.slane %v2012_v1, 4  ;;  %v2021_v56 = vshll.u32 %v11603_v23, 16  ;;  %v15395_v59 = vadd.f32 %v15245_v4, %v15230_v40  ;;  %v11685_v40 = vld [vmem:[%s19170_s0 + $0x12c] sm:$0x1]  ;;  %v11813_v22 = vld [vmem:[%s19170_s0 + $0x94] sm:$0x1] }
 0x13f   :  { %v2004_v33 = vor.u32 %v2003_v46, %v2000_v44  ;;  %v2017_v55 = vrot.slane %v2015_v48, 5  ;;  %v2859_v60 = vsel %vm14103_vm2, %v2854_v51, %v2858_v21  ;;  %v15412_v4 = vadd.f32 %v15263_v24, %v15252_v10  ;;  %v11812_v21 = vld [vmem:[%s19170_s0 + $0x90] sm:$0xf]  ;;  %v11604_v1 = vld [vmem:[%s19170_s0 + $0x128] sm:$0xf] }
 0x140   :  { %v2868_v61 = vrot.slane %v2867_v41, 4  ;;  %v2023_v7 = vrot.slane %v2021_v56, 5  ;;  %v11718_v13 = vrot.slane %v11684_v8, 9  ;;  %v2383_v28 = vrot.slane %v11685_v40, 5  ;;  %v11605_v48 = vld [vmem:[%s19170_s0 + $0x12c] sm:$0x1] }
 0x141   :  { %v2005_v6 = vrot.slane %v2004_v33, 4  ;;  %v2018_v5 = vor.u32 %v2017_v55, %v2014_v53  ;;  %v15424_v16 = vadd.f32 %v15308_v57, %v15296_v15  ;;  %v11719_v17 = vrot.slane %v11686_v19, 9  ;;  %v11814_v15 = vld [vmem:[%s19170_s0 + $0x98] sm:$0xf]  ;;  %v11815_v57 = vld [vmem:[%s19170_s0 + $0x9c] sm:$0x1] }
 0x142   :  { %v2873_v52 = vsel %vm14103_vm2, %v2868_v61, %v2872_v45  ;;  %v2384_v23 = vsel %vm14264_vm5, %v11718_v13, %v2383_v28  ;;  %v2387_v27 = vrot.slane %v11687_v11, 5  ;;  %v2875_v29 = vshrl.u32 %v11812_v21, 16  ;;  %v15451_v45 = vpop.f32.mrb[16].mxu0  ;;  %v11606_v51 = vld [vmem:[%s19170_s0 + $0x130] sm:$0xf]  ;;  %v15464_v56 = vpop.f32.mrb[16].mxu1 }
 0x143   :  { %v11854_v12 = vcombine.low %v2859_v60, %v2873_v52  ;;  %v2010_v10 = vsel %vm14103_vm2, %v2005_v6, %v2009_v47  ;;  %v2019_v24 = vrot.slane %v2018_v5, 4  ;;  %v15444_v30 = vadd.f32 %v15310_v63, %v15301_v50  ;;  %v11607_v55 = vld [vmem:[%s19170_s0 + $0x134] sm:$0x1]  ;;  %v12531_v52 = vpop.f32.mrb[17].mxu0 }
 0x144   :  { %v2878_v38 = vshll.u32 %v11812_v21, 16  ;;  %v2884_v42 = vshll.u32 %v11813_v22, 16  ;;  %v2889_v43 = vshrl.u32 %v11814_v15, 16  ;;  %v2388_v46 = vsel %vm14264_vm5, %v11719_v17, %v2387_v27 }
 0x145   :  { %4832 = vmatprep.mubr.bf16.mxu1 %v11854_v12  ;;  %v2024_v31 = vsel %vm14103_vm2, %v2019_v24, %v2023_v7  ;;  %v2877_v50 = vrot.slane %v2875_v29, 4  ;;  %v2892_v63 = vshll.u32 %v11814_v15, 16  ;;  %v11735_v41 = vcombine.low %v2384_v23, %v2388_v46  ;;  %v15466_v12 = vpop.f32.mrb[17].mxu1  ;;  %v13798_v15 = vld [vmem:[%s19170_s0 + $0x90] ss:$8 sps:$4 sm:$0xff]  }
 0x146   :  { %v11622_v44 = vcombine.low %v2010_v10, %v2024_v31  ;;  %4833 = vmatmul.mubr.bf16.gmra.mrb[104].mxu1 %v13795_v2  ;;  %v2880_v47 = vrot.slane %v2878_v38, 5  ;;  %v2886_v53 = vrot.slane %v2884_v42, 5  ;;  %v2891_v33 = vrot.slane %v2889_v43, 4  ;;  %v11816_v38 = vld [vmem:[%s19170_s0 + $0xb0] sm:$0xf] }
 0x147   :  { %v2894_v60 = vrot.slane %v2892_v63, 5  ;;  %v2898_v61 = vshll.u32 %v11815_v57, 16  ;;  %v2026_v2 = vshrl.u32 %v11604_v1, 16  ;;  %v2029_v6 = vshll.u32 %v11604_v1, 16  ;;  %v11817_v42 = vld [vmem:[%s19170_s0 + $0xb4] sm:$0x1] }
 0x148   :  { %4736 = vmatmul.mubr.bf16.gmra.mrb[104].mxu0 %v11622_v44  ;;  %v2881_v5 = vor.u32 %v2880_v47, %v2877_v50  ;;  %v2035_v7 = vshll.u32 %v11605_v48, 16  ;;  %v2040_v8 = vshrl.u32 %v11606_v51, 16  ;;  %v2043_v40 = vshll.u32 %v11606_v51, 16  ;;  %v11818_v46 = vld [vmem:[%s19170_s0 + $0xb8] sm:$0xf]  ;;  %v12533_v51 = vpop.f32.mrb[18].mxu0 }
 0x149   :  { %4743 = vmatprep.mubr.bf16.mxu0 %v11735_v41  ;;  %v2895_v19 = vor.u32 %v2894_v60, %v2891_v33  ;;  %v2900_v11 = vrot.slane %v2898_v61, 5  ;;  %v2028_v13 = vrot.slane %v2026_v2, 4  ;;  %v2031_v28 = vrot.slane %v2029_v6, 5  ;;  %v11819_v50 = vld [vmem:[%s19170_s0 + $0xbc] sm:$0x1] }
 0x14a   :  { %v2882_v10 = vrot.slane %v2881_v5, 4  ;;  %v2037_v24 = vrot.slane %v2035_v7, 5  ;;  %v2042_v17 = vrot.slane %v2040_v8, 4  ;;  %v2045_v21 = vrot.slane %v2043_v40, 5  ;;  %v11864_v48 = vld [vmem:[%s19170_s0 + $0x10] sm:$0xe] }
 0x14b   :  { %v2896_v22 = vrot.slane %v2895_v19, 4  ;;  %v2032_v23 = vor.u32 %v2031_v28, %v2028_v13  ;;  %v2049_v27 = vshll.u32 %v11607_v55, 16  ;;  %v15473_v57 = vadd.f32 %v15323_v36, %v15312_v14  ;;  %v11866_v6 = vld [vmem:[%s19170_s0 + $0x18] sm:$0xe]  ;;  %v12534_v5 = vpop.f32.mrb[19].mxu0 }
 0x14c   :  { %v2887_v29 = vsel %vm14103_vm2, %v2882_v10, %v2886_v53  ;;  %v2046_v31 = vor.u32 %v2045_v21, %v2042_v17  ;;  %v15485_v43 = vadd.f32 %v15352_v49, %v15314_v18  ;;  %v15489_v14 = vadd.f32 %v15389_v26, %v15387_v25  ;;  %v15519_v21 = vpop.f32.mrb[20].mxu0 }
 0x14d   :  { %v2901_v36 = vsel %vm14103_vm2, %v2896_v22, %v2900_v11  ;;  %v2033_v1 = vrot.slane %v2032_v23, 4  ;;  %v2051_v44 = vrot.slane %v2049_v27, 5  ;;  %v15501_v18 = vadd.f32 %v15402_v0, %v15391_v54  ;;  %v11865_v54 = vld [vmem:[%s19170_s0 + $0x14] sm:$0x1]  ;;  %v12621_v0 = vpop.f32.mrb[18].mxu1 }
 0x14e   :  { %v11855_v49 = vcombine.low %v2887_v29, %v2901_v36  ;;  %v2047_v25 = vrot.slane %v2046_v31, 4  ;;  %v2903_v26 = vshrl.u32 %v11816_v38, 16  ;;  %v2906_v63 = vshll.u32 %v11816_v38, 16  ;;  %v11867_v11 = vld [vmem:[%s19170_s0 + $0x1c] sm:$0x1]  ;;  %v12622_v13 = vpop.f32.mrb[19].mxu1 }
 0x14f   :  { %v2038_v41 = vsel %vm14103_vm2, %v2033_v1, %v2037_v24  ;;  %v2912_v47 = vshll.u32 %v11817_v42, 16  ;;  %v2917_v53 = vshrl.u32 %v11818_v46, 16  ;;  %v2920_v33 = vshll.u32 %v11818_v46, 16  ;;  %v15527_v29 = vld [vmem:[%s19172_s2] ss:$0 sm:$0xff]  ;;  %v12624_v1 = vpop.f32.mrb[20].mxu1 }
 0x150   :  { %4840 = vmatprep.mubr.bf16.mxu1 %v11855_v49  ;;  %v2052_v55 = vsel %vm14103_vm2, %v2047_v25, %v2051_v44  ;;  %v2905_v60 = vrot.slane %v2903_v26, 4  ;;  %v2908_v61 = vrot.slane %v2906_v63, 5  ;;  %v2926_v2 = vshll.u32 %v11819_v50, 16  ;;  %v11868_v42 = vld [vmem:[%s19170_s0 + $0x20] sm:$0xe] }
 0x151   :  { %v11623_v7 = vcombine.low %v2038_v41, %v2052_v55  ;;  %4841 = vmatmul.mubr.bf16.gmra.mrb[108].mxu1 %v13798_v15  ;;  %v2914_v8 = vrot.slane %v2912_v47, 5  ;;  %v2919_v40 = vrot.slane %v2917_v53, 4  ;;  %v2922_v19 = vrot.slane %v2920_v33, 5  ;;  %v11869_v36 = vld [vmem:[%s19170_s0 + $0x24] sm:$0x1] }
 0x152   :  { %v2909_v28 = vor.u32 %v2908_v61, %v2905_v60  ;;  %v2928_v10 = vrot.slane %v2926_v2, 5  ;;  %v11928_v24 = vrot.slane %v11864_v48, 9  ;;  %v3336_v17 = vrot.slane %v11865_v54, 5  ;;  %v13801_v50 = vld [vmem:[%s19170_s0 + $0xb0] ss:$8 sps:$4 sm:$0xff]  }
 0x153   :  { %4744 = vmatmul.mubr.bf16.gmra.mrb[108].mxu0 %v11623_v7  ;;  %v2923_v22 = vor.u32 %v2922_v19, %v2919_v40  ;;  %v11929_v23 = vrot.slane %v11866_v6, 9  ;;  %v3340_v27 = vrot.slane %v11867_v11, 5  ;;  %v15522_v15 = vadd.f32 %v12531_v52, %v15451_v45  ;;  %v11870_v49 = vld [vmem:[%s19170_s0 + $0x28] sm:$0xe]  ;;  %v11820_v41 = vld [vmem:[%s19170_s0 + $0xc0] sm:$0xf] }
 0x154   :  { %v2910_v31 = vrot.slane %v2909_v28, 4  ;;  %v3337_v38 = vsel %vm14264_vm5, %v11928_v24, %v3336_v17  ;;  %v15539_v45 = vadd.f32 %v15466_v12, %v15464_v56  ;;  %v15541_v52 = vadd.f32 %v12534_v5, %v12533_v51  ;;  %v11871_v56 = vld [vmem:[%s19170_s0 + $0x2c] sm:$0x1]  ;;  %v11821_v47 = vld [vmem:[%s19170_s0 + $0xc4] sm:$0x1]  ;;  %v12537_v28 = vpop.f32.mrb[21].mxu0 }
 0x155   :  { %v2924_v44 = vrot.slane %v2923_v22, 4  ;;  %v3341_v46 = vsel %vm14264_vm5, %v11929_v23, %v3340_v27  ;;  %v11930_v12 = vrot.slane %v11868_v42, 9  ;;  %v15554_v25 = vadd.f32 %v12622_v13, %v12621_v0  ;;  %v11822_v54 = vld [vmem:[%s19170_s0 + $0xc8] sm:$0xf]  ;;  %v11823_v0 = vld [vmem:[%s19170_s0 + $0xcc] sm:$0x1] }
 0x156   :  { %v2915_v26 = vsel %vm14103_vm2, %v2910_v31, %v2914_v8  ;;  %v11960_v63 = vcombine.low %v3337_v38, %v3341_v46  ;;  %v3344_v48 = vrot.slane %v11869_v36, 5  ;;  %v11931_v51 = vrot.slane %v11870_v49, 9  ;;  %v11872_v7 = vld [vmem:[%s19170_s0 + $0x30] sm:$0xe]  ;;  %v11873_v8 = vld [vmem:[%s19170_s0 + $0x34] sm:$0x1] }
 0x157   :  { %v2929_v53 = vsel %vm14103_vm2, %v2924_v44, %v2928_v10  ;;  %v3348_v33 = vrot.slane %v11871_v56, 5  ;;  %v2931_v55 = vshrl.u32 %v11820_v41, 16  ;;  %v4312_v60 = vadd.f32 %v15280_v32, %v15527_v29  ;;  %v11874_v13 = vld [vmem:[%s19170_s0 + $0x38] sm:$0xe]  ;;  %v11875_v23 = vld [vmem:[%s19170_s0 + $0x3c] sm:$0x1] }
 0x158   :  { %v11856_v61 = vcombine.low %v2915_v26, %v2929_v53  ;;  %13520 = vmatprep.mubr.bf16.mxu0 %v11960_v63  ;;  %v3345_v2 = vsel %vm14264_vm5, %v11930_v12, %v3344_v48  ;;  %v2934_v6 = vshll.u32 %v11820_v41, 16  ;;  %v2940_v5 = vshll.u32 %v11821_v47, 16  ;;  %v12625_v27 = vpop.f32.mrb[21].mxu1  ;;  %v12539_v12 = vpop.f32.mrb[22].mxu0  ;;  %v11876_v48 = vld [vmem:[%s19170_s0 + $0x40] sm:$0xe] }
 0x159   :  { %v3349_v40 = vsel %vm14264_vm5, %v11931_v51, %v3348_v33  ;;  %v2933_v19 = vrot.slane %v2931_v55, 4  ;;  %v2945_v32 = vshrl.u32 %v11822_v54, 16  ;;  %v2948_v11 = vshll.u32 %v11822_v54, 16  ;;  %v11878_v33 = vld [vmem:[%s19170_s0 + $0x48] sm:$0xe] }
 0x15a   :  { %4848 = vmatprep.mubr.bf16.mxu1 %v11856_v61  ;;  %v11961_v10 = vcombine.low %v3345_v2, %v3349_v40  ;;  %v2936_v24 = vrot.slane %v2934_v6, 5  ;;  %v2942_v17 = vrot.slane %v2940_v5, 5  ;;  %v2954_v22 = vshll.u32 %v11823_v0, 16  ;;  %v11879_v54 = vld [vmem:[%s19170_s0 + $0x4c] sm:$0x1] }
 0x15b   :  { %4849 = vmatmul.mubr.bf16.gmra.mrb[112].mxu1 %v13801_v50  ;;  %v2947_v31 = vrot.slane %v2945_v32, 4  ;;  %v2950_v38 = vrot.slane %v2948_v11, 5  ;;  %v11932_v42 = vrot.slane %v11872_v7, 9  ;;  %v3352_v36 = vrot.slane %v11873_v8, 5  ;;  %v11877_v50 = vld [vmem:[%s19170_s0 + $0x44] sm:$0x1] }
 0x15c   :  { %13521 = vmatmul.mubr.bf16.vlgmr.msra.gmra.mrb[112].mxu0 %v11961_v10  ;;  %v2937_v44 = vor.u32 %v2936_v24, %v2933_v19  ;;  %v2956_v46 = vrot.slane %v2954_v22, 5  ;;  %v11933_v49 = vrot.slane %v11874_v13, 9  ;;  %v3356_v56 = vrot.slane %v11875_v23, 5  ;;  %v11824_v5 = vld [vmem:[%s19170_s0 + $0xd0] sm:$0xf]  ;;  %v12627_v7 = vpop.f32.mrb[22].mxu1 }
 0x15d   :  { %v2951_v26 = vor.u32 %v2950_v38, %v2947_v31  ;;  %v3353_v63 = vsel %vm14264_vm5, %v11932_v42, %v3352_v36  ;;  %v15599_v51 = vadd.f32 %v12537_v28, %v15519_v21  ;;  %v12626_v41 = vadd.f32 %v12625_v27, %v12624_v1  ;;  %v13802_v1 = vld [vmem:[%s19170_s0 + $0xc0] ss:$8 sps:$4 sm:$0xff]   ;;  %v11826_v19 = vld [vmem:[%s19170_s0 + $0xd8] sm:$0xf]  ;;  %v11827_v10 = vld [vmem:[%s19170_s0 + $0xdc] sm:$0x1] }
 0x15e   :  { %v2938_v47 = vrot.slane %v2937_v44, 4  ;;  %v3357_v53 = vsel %vm14264_vm5, %v11933_v49, %v3356_v56  ;;  %v11934_v0 = vrot.slane %v11876_v48, 9  ;;  %v4315_v55 = vadd.f32 %v15284_v34, %v15527_v29  ;;  %v11825_v34 = vld [vmem:[%s19170_s0 + $0xd4] sm:$0x1]  ;;  %v11880_v22 = vld [vmem:[%s19170_s0 + $0x60] sm:$0xe] }
 0x15f   :  { %v2952_v61 = vrot.slane %v2951_v26, 4  ;;  %v11962_v21 = vcombine.low %v3353_v63, %v3357_v53  ;;  %v3360_v2 = vrot.slane %v11877_v50, 5  ;;  %v11935_v6 = vrot.slane %v11878_v33, 9  ;;  %v11881_v38 = vld [vmem:[%s19170_s0 + $0x64] sm:$0x1]  ;;  %v12540_v26 = vpop.f32.mrb[23].mxu0 }
 0x160   :  { %v2943_v8 = vsel %vm14103_vm2, %v2938_v47, %v2942_v17  ;;  %v3364_v40 = vrot.slane %v11879_v54, 5  ;;  %v2959_v32 = vshrl.u32 %v11824_v5, 16  ;;  %v15625_v11 = vadd.f32 %v12626_v41, %v4312_v60  ;;  %v11882_v42 = vld [vmem:[%s19170_s0 + $0x68] sm:$0xe]  ;;  %v11883_v56 = vld [vmem:[%s19170_s0 + $0x6c] sm:$0x1] }
 0x161   :  { %v2957_v13 = vsel %vm14103_vm2, %v2952_v61, %v2956_v46  ;;  %13524 = vmatprep.mubr.bf16.mxu0 %v11962_v21  ;;  %v3361_v28 = vsel %vm14264_vm5, %v11934_v0, %v3360_v2  ;;  %v2962_v24 = vshll.u32 %v11824_v5, 16  ;;  %v2968_v17 = vshll.u32 %v11825_v34, 16  ;;  %v12628_v0 = vpop.f32.mrb[23].mxu1  ;;  %v11884_v2 = vld [vmem:[%s19170_s0 + $0x70] sm:$0xe] }
 0x162   :  { %v11857_v23 = vcombine.low %v2943_v8, %v2957_v13  ;;  %v3365_v60 = vsel %vm14264_vm5, %v11935_v6, %v3364_v40  ;;  %v2961_v27 = vrot.slane %v2959_v32, 4  ;;  %v2973_v31 = vshrl.u32 %v11826_v19, 16  ;;  %v12542_v8 = vpop.f32.mrb[24].mxu0  ;;  %v11886_v32 = vld [vmem:[%s19170_s0 + $0x78] sm:$0xe] }
 0x163   :  { %v11963_v36 = vcombine.low %v3361_v28, %v3365_v60  ;;  %v2964_v44 = vrot.slane %v2962_v24, 5  ;;  %v2970_v46 = vrot.slane %v2968_v17, 5  ;;  %v2976_v49 = vshll.u32 %v11826_v19, 16  ;;  %v11885_v19 = vld [vmem:[%s19170_s0 + $0x74] sm:$0x1] }
 0x164   :  { %4856 = vmatprep.mubr.bf16.mxu1 %v11857_v23  ;;  %v2975_v63 = vrot.slane %v2973_v31, 4  ;;  %v2982_v48 = vshll.u32 %v11827_v10, 16  ;;  %v11936_v50 = vrot.slane %v11880_v22, 9  ;;  %v3368_v41 = vrot.slane %v11881_v38, 5  ;;  %v11828_v24 = vld [vmem:[%s19170_s0 + $0xe0] sm:$0xf] }
 0x165   :  { %4857 = vmatmul.mubr.bf16.gmra.mrb[116].mxu1 %v13802_v1  ;;  %13525 = vmatmul.mubr.bf16.gmra.mrb[116].mxu0 %v11963_v36  ;;  %v2965_v47 = vor.u32 %v2964_v44, %v2961_v27  ;;  %v2978_v53 = vrot.slane %v2976_v49, 5  ;;  %v11937_v33 = vrot.slane %v11882_v42, 9  ;;  %v3372_v54 = vrot.slane %v11883_v56, 5  ;;  %v13803_v60 = vld [vmem:[%s19170_s0 + $0xd0] ss:$8 sps:$4 sm:$0xff]   ;;  %v12630_v49 = vpop.f32.mrb[24].mxu1 }
 0x166   :  { %v2984_v61 = vrot.slane %v2982_v48, 5  ;;  %v3369_v21 = vsel %vm14264_vm5, %v11936_v50, %v3368_v41  ;;  %v15653_v6 = vadd.f32 %v12540_v26, %v12539_v12  ;;  %v12629_v5 = vadd.f32 %v12628_v0, %v12627_v7  ;;  %v11887_v12 = vld [vmem:[%s19170_s0 + $0x7c] sm:$0x1]  ;;  %v11829_v31 = vld [vmem:[%s19170_s0 + $0xe4] sm:$0x1] }
 0x167   :  { %v2966_v40 = vrot.slane %v2965_v47, 4  ;;  %v2979_v1 = vor.u32 %v2978_v53, %v2975_v63  ;;  %v3373_v34 = vsel %vm14264_vm5, %v11937_v33, %v3372_v54  ;;  %v11938_v13 = vrot.slane %v11884_v2, 9  ;;  %v11830_v38 = vld [vmem:[%s19170_s0 + $0xe8] sm:$0xf]  ;;  %v11831_v42 = vld [vmem:[%s19170_s0 + $0xec] sm:$0x1] }
 0x168   :  { %v11964_v28 = vcombine.low %v3369_v21, %v3373_v34  ;;  %v3376_v7 = vrot.slane %v11885_v19, 5  ;;  %v11939_v10 = vrot.slane %v11886_v32, 9  ;;  %v15669_v17 = vadd.f32 %v12629_v5, %v4315_v55  ;;  %v11888_v50 = vld [vmem:[%s19170_s0 + $0x80] sm:$0xe]  ;;  %v11889_v41 = vld [vmem:[%s19170_s0 + $0x84] sm:$0x1] }
 0x169   :  { %v2971_v22 = vsel %vm14103_vm2, %v2966_v40, %v2970_v46  ;;  %v2980_v23 = vrot.slane %v2979_v1, 4  ;;  %v3380_v27 = vrot.slane %v11887_v12, 5  ;;  %v2987_v36 = vshrl.u32 %v11828_v24, 16  ;;  %v11890_v0 = vld [vmem:[%s19170_s0 + $0x88] sm:$0xe] }
 0x16a   :  { %13528 = vmatprep.mubr.bf16.mxu0 %v11964_v28  ;;  %v3377_v55 = vsel %vm14264_vm5, %v11938_v13, %v3376_v7  ;;  %v2990_v44 = vshll.u32 %v11828_v24, 16  ;;  %v2996_v46 = vshll.u32 %v11829_v31, 16  ;;  %v3001_v63 = vshrl.u32 %v11830_v38, 16  ;;  %v12543_v13 = vpop.f32.mrb[25].mxu0 }
 0x16b   :  { %v2985_v56 = vsel %vm14103_vm2, %v2980_v23, %v2984_v61  ;;  %v3381_v26 = vsel %vm14264_vm5, %v11939_v10, %v3380_v27  ;;  %v3004_v48 = vshll.u32 %v11830_v38, 16  ;;  %v2989_v33 = vrot.slane %v2987_v36, 4  ;;  %v11891_v61 = vld [vmem:[%s19170_s0 + $0x8c] sm:$0x1]  ;;  %v11892_v10 = vld [vmem:[%s19170_s0 + $0x90] sm:$0xe] }
 0x16c   :  { %v11858_v47 = vcombine.low %v2971_v22, %v2985_v56  ;;  %v11965_v53 = vcombine.low %v3377_v55, %v3381_v26  ;;  %v2992_v54 = vrot.slane %v2990_v44, 5  ;;  %v2998_v21 = vrot.slane %v2996_v46, 5  ;;  %v11893_v27 = vld [vmem:[%s19170_s0 + $0x94] sm:$0x1]  ;;  %v11895_v36 = vld [vmem:[%s19170_s0 + $0x9c] sm:$0x1] }
 0x16d   :  { %v3003_v2 = vrot.slane %v3001_v63, 4  ;;  %v3006_v5 = vrot.slane %v3004_v48, 5  ;;  %v3010_v40 = vshll.u32 %v11831_v42, 16  ;;  %v11940_v34 = vrot.slane %v11888_v50, 9  ;;  %v13804_v42 = vld [vmem:[%s19170_s0 + $0xe0] ss:$8 sps:$4 sm:$0xff]  }
 0x16e   :  { %4864 = vmatprep.mubr.bf16.mxu1 %v11858_v47  ;;  %13529 = vmatmul.mubr.bf16.gmra.mrb[120].mxu0 %v11965_v53  ;;  %v2993_v1 = vor.u32 %v2992_v54, %v2989_v33  ;;  %v3384_v19 = vrot.slane %v11889_v41, 5  ;;  %v11941_v32 = vrot.slane %v11890_v0, 9  ;;  %v3388_v7 = vrot.slane %v11891_v61, 5  ;;  %v12631_v56 = vpop.f32.mrb[25].mxu1  ;;  %v11832_v48 = vld [vmem:[%s19170_s0 + $0x100] sm:$0xf] }
 0x16f   :  { %4865 = vmatmul.mubr.bf16.gmra.mrb[120].mxu1 %v13803_v60  ;;  %v3007_v28 = vor.u32 %v3006_v5, %v3003_v2  ;;  %v3012_v12 = vrot.slane %v3010_v40, 5  ;;  %v15706_v24 = vadd.f32 %v12543_v13, %v12542_v8  ;;  %v11894_v60 = vld [vmem:[%s19170_s0 + $0x98] sm:$0xe]  ;;  %v11942_v31 = vrot.slane %v11892_v10, 9  ;;  %v11833_v50 = vld [vmem:[%s19170_s0 + $0x104] sm:$0x1] }
 0x170   :  { %v2994_v22 = vrot.slane %v2993_v1, 4  ;;  %v3385_v23 = vsel %vm14264_vm5, %v11940_v34, %v3384_v19  ;;  %v4320_v38 = vadd.f32 %v15321_v35, %v15527_v29  ;;  %v3389_v8 = vsel %vm14264_vm5, %v11941_v32, %v3388_v7  ;;  %v12545_v47 = vpop.f32.mrb[26].mxu0  ;;  %v11834_v54 = vld [vmem:[%s19170_s0 + $0x108] sm:$0xf]  ;;  %v11835_v0 = vld [vmem:[%s19170_s0 + $0x10c] sm:$0x1] }
 0x171   :  { %v3008_v55 = vrot.slane %v3007_v28, 4  ;;  %v3392_v44 = vrot.slane %v11893_v27, 5  ;;  %v11943_v46 = vrot.slane %v11894_v60, 9  ;;  %v11966_v63 = vcombine.low %v3385_v23, %v3389_v8  ;;  %v11896_v1 = vld [vmem:[%s19170_s0 + $0xb0] sm:$0xe]  ;;  %v12633_v7 = vpop.f32.mrb[26].mxu1 }
 0x172   :  { %v2999_v26 = vsel %vm14103_vm2, %v2994_v22, %v2998_v21  ;;  %v3396_v35 = vrot.slane %v11895_v36, 5  ;;  %v12632_v41 = vadd.f32 %v12631_v56, %v12630_v49  ;;  %v3015_v61 = vshrl.u32 %v11832_v48, 16  ;;  %v11897_v34 = vld [vmem:[%s19170_s0 + $0xb4] sm:$0x1]  ;;  %v11899_v27 = vld [vmem:[%s19170_s0 + $0xbc] sm:$0x1] }
 0x173   :  { %v3013_v53 = vsel %vm14103_vm2, %v3008_v55, %v3012_v12  ;;  %v3393_v33 = vsel %vm14264_vm5, %v11942_v31, %v3392_v44  ;;  %v3018_v21 = vshll.u32 %v11832_v48, 16  ;;  %13532 = vmatprep.mubr.bf16.mxu0 %v11966_v63  ;;  %v3024_v5 = vshll.u32 %v11833_v50, 16  ;;  %v11898_v12 = vld [vmem:[%s19170_s0 + $0xb8] sm:$0xe]  ;;  %v12546_v44 = vpop.f32.mrb[27].mxu0 }
 0x174   :  { %v11859_v2 = vcombine.low %v2999_v26, %v3013_v53  ;;  %v3397_v49 = vsel %vm14264_vm5, %v11943_v46, %v3396_v35  ;;  %v3029_v40 = vshrl.u32 %v11834_v54, 16  ;;  %v3017_v32 = vrot.slane %v3015_v61, 4  ;;  %v11901_v53 = vld [vmem:[%s19170_s0 + $0xc4] sm:$0x1] }
 0x175   :  { %v11967_v19 = vcombine.low %v3393_v33, %v3397_v49  ;;  %v3020_v13 = vrot.slane %v3018_v21, 5  ;;  %v3032_v28 = vshll.u32 %v11834_v54, 16  ;;  %v3026_v10 = vrot.slane %v3024_v5, 5  ;;  %v11903_v54 = vld [vmem:[%s19170_s0 + $0xcc] sm:$0x1] }
 0x176   :  { %4872 = vmatprep.mubr.bf16.mxu1 %v11859_v2  ;;  %v3031_v22 = vrot.slane %v3029_v40, 4  ;;  %v3038_v23 = vshll.u32 %v11835_v0, 16  ;;  %v11944_v60 = vrot.slane %v11896_v1, 9  ;;  %v3400_v8 = vrot.slane %v11897_v34, 5  ;;  %v13805_v5 = vld [vmem:[%s19170_s0 + $0x100] ss:$8 sps:$4 sm:$0xff]  }
 0x177   :  { %4873 = vmatmul.mubr.bf16.gmra.mrb[124].mxu1 %v13804_v42  ;;  %13533 = vmatmul.mubr.bf16.gmra.mrb[124].mxu0 %v11967_v19  ;;  %v3021_v31 = vor.u32 %v3020_v13, %v3017_v32  ;;  %v3034_v55 = vrot.slane %v3032_v28, 5  ;;  %v11945_v36 = vrot.slane %v11898_v12, 9  ;;  %v3404_v56 = vrot.slane %v11899_v27, 5  ;;  %v11900_v42 = vld [vmem:[%s19170_s0 + $0xc0] sm:$0xe] }
 0x178   :  { %v3040_v46 = vrot.slane %v3038_v23, 5  ;;  %v15758_v26 = vadd.f32 %v12632_v41, %v4320_v38  ;;  %v15760_v63 = vadd.f32 %v12546_v44, %v12545_v47  ;;  %v3401_v50 = vsel %vm14264_vm5, %v11944_v60, %v3400_v8  ;;  %v12634_v38 = vpop.f32.mrb[27].mxu1  ;;  %v11902_v47 = vld [vmem:[%s19170_s0 + $0xc8] sm:$0xe]  ;;  %v11836_v1 = vld [vmem:[%s19170_s0 + $0x110] sm:$0xf] }
 0x179   :  { %v3022_v35 = vrot.slane %v3021_v31, 4  ;;  %v3035_v48 = vor.u32 %v3034_v55, %v3031_v22  ;;  %v4323_v33 = vadd.f32 %v15339_v20, %v15527_v29  ;;  %v3405_v41 = vsel %vm14264_vm5, %v11945_v36, %v3404_v56  ;;  %v11837_v34 = vld [vmem:[%s19170_s0 + $0x114] sm:$0x1]  ;;  %v11838_v28 = vld [vmem:[%s19170_s0 + $0x118] sm:$0xf]  ;;  %v12548_v31 = vpop.f32.mrb[28].mxu0 }
 0x17a   :  { %v11946_v0 = vrot.slane %v11900_v42, 9  ;;  %v3408_v61 = vrot.slane %v11901_v53, 5  ;;  %v12635_v21 = vadd.f32 %v12634_v38, %v12633_v7  ;;  %v11968_v20 = vcombine.low %v3401_v50, %v3405_v41  ;;  %v11839_v12 = vld [vmem:[%s19170_s0 + $0x11c] sm:$0x1]  ;;  %v11904_v60 = vld [vmem:[%s19170_s0 + $0xd0] sm:$0xe] }
 0x17b   :  { %v3027_v2 = vsel %vm14103_vm2, %v3022_v35, %v3026_v10  ;;  %v3036_v49 = vrot.slane %v3035_v48, 4  ;;  %v11947_v40 = vrot.slane %v11902_v47, 9  ;;  %v3412_v32 = vrot.slane %v11903_v54, 5  ;;  %v11905_v56 = vld [vmem:[%s19170_s0 + $0xd4] sm:$0x1]  ;;  %v12636_v53 = vpop.f32.mrb[28].mxu1 }
 0x17c   :  { %v3409_v19 = vsel %vm14264_vm5, %v11946_v0, %v3408_v61  ;;  %v15793_v13 = vadd.f32 %v12635_v21, %v4323_v33  ;;  %v3043_v7 = vshrl.u32 %v11836_v1, 16  ;;  %13536 = vmatprep.mubr.bf16.mxu0 %v11968_v20  ;;  %v3046_v22 = vshll.u32 %v11836_v1, 16  ;;  %v11907_v42 = vld [vmem:[%s19170_s0 + $0xdc] sm:$0x1]  ;;  %v11909_v1 = vld [vmem:[%s19170_s0 + $0xe4] sm:$0x1] }
 0x17d   :  { %v3041_v10 = vsel %vm14103_vm2, %v3036_v49, %v3040_v46  ;;  %v3052_v23 = vshll.u32 %v11837_v34, 16  ;;  %v3057_v27 = vshrl.u32 %v11838_v28, 16  ;;  %v3413_v8 = vsel %vm14264_vm5, %v11947_v40, %v3412_v32  ;;  %v11906_v46 = vld [vmem:[%s19170_s0 + $0xd8] sm:$0xe]  ;;  %v11908_v40 = vld [vmem:[%s19170_s0 + $0xe0] sm:$0xe] }
 0x17e   :  { %v11860_v55 = vcombine.low %v3027_v2, %v3041_v10  ;;  %v3045_v36 = vrot.slane %v3043_v7, 4  ;;  %v3060_v44 = vshll.u32 %v11838_v28, 16  ;;  %v11969_v35 = vcombine.low %v3409_v19, %v3413_v8  ;;  %v12549_v34 = vpop.f32.mrb[29].mxu0  ;;  %v11910_v28 = vld [vmem:[%s19170_s0 + $0xe8] sm:$0xe] }
 0x17f   :  { %v3048_v48 = vrot.slane %v3046_v22, 5  ;;  %v3059_v50 = vrot.slane %v3057_v27, 4  ;;  %v3066_v38 = vshll.u32 %v11839_v12, 16  ;;  %v11948_v41 = vrot.slane %v11904_v60, 9  ;;  %v11911_v12 = vld [vmem:[%s19170_s0 + $0xec] sm:$0x1] }
 0x180   :  { %4880 = vmatprep.mubr.bf16.mxu1 %v11860_v55  ;;  %v3062_v33 = vrot.slane %v3060_v44, 5  ;;  %v3416_v47 = vrot.slane %v11905_v56, 5  ;;  %13537 = vmatmul.mubr.bf16.gmra.mrb[128].mxu0 %v11969_v35  ;;  %v3054_v0 = vrot.slane %v3052_v23, 5  ;;  %v11949_v61 = vrot.slane %v11906_v46, 9  ;;  %v12637_v55 = vpop.f32.mrb[29].mxu1  ;;  %v12551_v8 = vpop.f32.mrb[30].mxu0 }
 0x181   :  { %4881 = vmatmul.mubr.bf16.gmra.mrb[128].mxu1 %v13805_v5  ;;  %v3049_v54 = vor.u32 %v3048_v48, %v3045_v36  ;;  %v3420_v21 = vrot.slane %v11907_v42, 5  ;;  %v3068_v49 = vrot.slane %v3066_v38, 5  ;;  %v4328_v5 = vadd.f32 %v15424_v16, %v15527_v29  ;;  %v13806_v16 = vld [vmem:[%s19170_s0 + $0x110] ss:$8 sps:$4 sm:$0xff]   ;;  %v12639_v46 = vpop.f32.mrb[30].mxu1  ;;  %v12552_v35 = vpop.f32.mrb[31].mxu0 }
 0x182   :  { %v3063_v2 = vor.u32 %v3062_v33, %v3059_v50  ;;  %v3417_v20 = vsel %vm14264_vm5, %v11948_v41, %v3416_v47  ;;  %v11950_v7 = vrot.slane %v11908_v40, 9  ;;  %v15835_v10 = vadd.f32 %v12549_v34, %v12548_v31  ;;  %v11840_v48 = vld [vmem:[%s19170_s0 + $0x120] sm:$0xf]  ;;  %v12640_v38 = vpop.f32.mrb[31].mxu1 }
 0x183   :  { %v3050_v19 = vrot.slane %v3049_v54, 4  ;;  %v3421_v32 = vsel %vm14264_vm5, %v11949_v61, %v3420_v21  ;;  %v3424_v27 = vrot.slane %v11909_v1, 5  ;;  %v11951_v60 = vrot.slane %v11910_v28, 9  ;;  %v11843_v21 = vld [vmem:[%s19170_s0 + $0x12c] sm:$0x1] }
 0x184   :  { %v3064_v22 = vrot.slane %v3063_v2, 4  ;;  %v11970_v23 = vcombine.low %v3417_v20, %v3421_v32  ;;  %v3428_v44 = vrot.slane %v11911_v12, 5  ;;  %v12638_v56 = vadd.f32 %v12637_v55, %v12636_v53  ;;  %v11841_v53 = vld [vmem:[%s19170_s0 + $0x124] sm:$0x1]  ;;  %v11912_v2 = vld [vmem:[%s19170_s0 + $0x100] sm:$0xe] }
 0x185   :  { %v3055_v36 = vsel %vm14103_vm2, %v3050_v19, %v3054_v0  ;;  %v4331_v31 = vadd.f32 %v15473_v57, %v15527_v29  ;;  %v3425_v42 = vsel %vm14264_vm5, %v11950_v7, %v3424_v27  ;;  %v15851_v33 = vadd.f32 %v12552_v35, %v12551_v8  ;;  %v11842_v57 = vld [vmem:[%s19170_s0 + $0x128] sm:$0xf]  ;;  %v12554_v19 = vpop.f32.mrb[32].mxu0 }
 0x186   :  { %v3069_v50 = vsel %vm14103_vm2, %v3064_v22, %v3068_v49  ;;  %13540 = vmatprep.mubr.bf16.mxu0 %v11970_v23  ;;  %v3071_v41 = vshrl.u32 %v11840_v48, 16  ;;  %v3429_v54 = vsel %vm14264_vm5, %v11951_v60, %v3428_v44  ;;  %v15861_v0 = vadd.f32 %v12638_v56, %v4328_v5  ;;  %v11913_v49 = vld [vmem:[%s19170_s0 + $0x104] sm:$0x1]  ;;  %v11914_v5 = vld [vmem:[%s19170_s0 + $0x108] sm:$0xe]  ;;  %v12642_v23 = vpop.f32.mrb[32].mxu1 }
 0x187   :  { %v11861_v47 = vcombine.low %v3055_v36, %v3069_v50  ;;  %v12641_v61 = vadd.f32 %v12640_v38, %v12639_v46  ;;  %v11971_v20 = vcombine.low %v3425_v42, %v3429_v54  ;;  %v3074_v1 = vshll.u32 %v11840_v48, 16  ;;  %v11915_v22 = vld [vmem:[%s19170_s0 + $0x10c] sm:$0x1]  ;;  %v12555_v42 = vpop.f32.mrb[33].mxu0  ;;  %v11917_v38 = vld [vmem:[%s19170_s0 + $0x114] sm:$0x1] }
 0x188   :  { %v3073_v40 = vrot.slane %v3071_v41, 4  ;;  %v3080_v34 = vshll.u32 %v11841_v53, 16  ;;  %v3085_v28 = vshrl.u32 %v11842_v57, 16  ;;  %v3088_v12 = vshll.u32 %v11842_v57, 16  ;;  %v11918_v53 = vld [vmem:[%s19170_s0 + $0x118] sm:$0xe] }
 0x189   :  { %4888 = vmatprep.mubr.bf16.mxu1 %v11861_v47  ;;  %v15875_v32 = vadd.f32 %v12641_v61, %v4331_v31  ;;  %v3094_v7 = vshll.u32 %v11843_v21, 16  ;;  %v15882_v27 = vadd.f32 %v15142_v58, %v15527_v29  ;;  %13541 = vmatmul.mubr.bf16.gmra.mrb[132].mxu0 %v11971_v20  ;;  %v3076_v60 = vrot.slane %v3074_v1, 5  ;;  %v11916_v58 = vld [vmem:[%s19170_s0 + $0x110] sm:$0xe]  ;;  %v11919_v57 = vld [vmem:[%s19170_s0 + $0x11c] sm:$0x1] }
 0x18a   :  { %4889 = vmatmul.mubr.bf16.gmra.mrb[132].mxu1 %v13806_v16  ;;  %v11952_v55 = vrot.slane %v11912_v2, 9  ;;  %v3432_v8 = vrot.slane %v11913_v49, 5  ;;  %v3082_v36 = vrot.slane %v3080_v34, 5  ;;  %v3087_v44 = vrot.slane %v3085_v28, 4  ;;  %v12643_v20 = vpop.f32.mrb[33].mxu1 }
 0x18b   :  { %v3090_v56 = vrot.slane %v3088_v12, 5  ;;  %v11953_v46 = vrot.slane %v11914_v5, 9  ;;  %v3077_v35 = vor.u32 %v3076_v60, %v3073_v40  ;;  %v3096_v31 = vrot.slane %v3094_v7, 5  ;;  %v12557_v40 = vpop.f32.mrb[34].mxu0  ;;  %v13807_v5 = vld [vmem:[%s19170_s0 + $0x120] ss:$8 sps:$4 sm:$0xff]  }
 0x18c   :  { %v3433_v48 = vsel %vm14264_vm5, %v11952_v55, %v3432_v8  ;;  %v3436_v50 = vrot.slane %v11915_v22, 5  ;;  %v15898_v41 = vadd.f32 %v12555_v42, %v12554_v19  ;;  %v4336_v47 = vadd.f32 %v15522_v15, %v15527_v29  ;;  %v12645_v15 = vpop.f32.mrb[34].mxu1  ;;  %v12558_v12 = vpop.f32.mrb[35].mxu0  ;;  %v11844_v8 = vld [vmem:[%s19170_s0 + $0x130] sm:$0xf] }
 0x18d   :  { %v3091_v16 = vor.u32 %v3090_v56, %v3087_v44  ;;  %v4339_v54 = vadd.f32 %v15541_v52, %v15527_v29  ;;  %v3078_v61 = vrot.slane %v3077_v35, 4  ;;  %v11954_v2 = vrot.slane %v11916_v58, 9  ;;  %v12646_v55 = vpop.f32.mrb[35].mxu1  ;;  %v11845_v44 = vld [vmem:[%s19170_s0 + $0x134] sm:$0x1]  ;;  %v12560_v56 = vpop.f32.mrb[36].mxu0 }
 0x18e   :  { %v3437_v21 = vsel %vm14264_vm5, %v11953_v46, %v3436_v50  ;;  %v3440_v49 = vrot.slane %v11917_v38, 5  ;;  %v11955_v19 = vrot.slane %v11918_v53, 9  ;;  %v3444_v28 = vrot.slane %v11919_v57, 5  ;;  %v11846_v35 = vld [vmem:[%s19170_s0 + $0x138] sm:$0xf]  ;;  %v12648_v58 = vpop.f32.mrb[36].mxu1 }
 0x18f   :  { %v3092_v1 = vrot.slane %v3091_v16, 4  ;;  %v11972_v34 = vcombine.low %v3433_v48, %v3437_v21  ;;  %v3083_v52 = vsel %vm14103_vm2, %v3078_v61, %v3082_v36  ;;  %v12644_v22 = vadd.f32 %v12643_v20, %v12642_v23  ;;  %v11847_v48 = vld [vmem:[%s19170_s0 + $0x13c] sm:$0x1]  ;;  %v11920_v53 = vld [vmem:[%s19170_s0 + $0x120] sm:$0xe]  ;;  %v12561_v61 = vpop.f32.mrb[37].mxu0 }
 0x190   :  { %v3441_v7 = vsel %vm14264_vm5, %v11954_v2, %v3440_v49  ;;  %v15913_v60 = vadd.f32 %v12558_v12, %v12557_v40  ;;  %v3445_v36 = vsel %vm14264_vm5, %v11955_v19, %v3444_v28  ;;  %v12647_v23 = vadd.f32 %v12646_v55, %v12645_v15  ;;  %v11921_v57 = vld [vmem:[%s19170_s0 + $0x124] sm:$0x1]  ;;  %v12649_v40 = vpop.f32.mrb[37].mxu1  ;;  %v11923_v28 = vld [vmem:[%s19170_s0 + $0x12c] sm:$0x1] }
 0x191   :  { %v3097_v46 = vsel %vm14103_vm2, %v3092_v1, %v3096_v31  ;;  %13544 = vmatprep.mubr.bf16.mxu0 %v11972_v34  ;;  %v3099_v50 = vshrl.u32 %v11844_v8, 16  ;;  %v11973_v16 = vcombine.low %v3441_v7, %v3445_v36  ;;  %v15931_v38 = vadd.f32 %v12644_v22, %v4336_v47  ;;  %v11922_v47 = vld [vmem:[%s19170_s0 + $0x128] sm:$0xe] }
 0x192   :  { %v11862_v42 = vcombine.low %v3083_v52, %v3097_v46  ;;  %v3102_v31 = vshll.u32 %v11844_v8, 16  ;;  %v15939_v21 = vadd.f32 %v12647_v23, %v4339_v54  ;;  %v3108_v49 = vshll.u32 %v11845_v44, 16  ;;  %v12563_v46 = vpop.f32.mrb[38].mxu0 }
 0x193   :  { %v3101_v2 = vrot.slane %v3099_v50, 4  ;;  %v3113_v20 = vshrl.u32 %v11846_v35, 16  ;;  %13545 = vmatmul.mubr.bf16.gmra.mrb[136].mxu0 %v11973_v16  ;;  %v3116_v34 = vshll.u32 %v11846_v35, 16  ;;  %v3122_v19 = vshll.u32 %v11847_v48, 16  ;;  %v11924_v35 = vld [vmem:[%s19170_s0 + $0x130] sm:$0xe] }
 0x194   :  { %4896 = vmatprep.mubr.bf16.mxu1 %v11862_v42  ;;  %v3104_v1 = vrot.slane %v3102_v31, 5  ;;  %v11956_v15 = vrot.slane %v11920_v53, 9  ;;  %v3448_v12 = vrot.slane %v11921_v57, 5  ;;  %v11957_v52 = vrot.slane %v11922_v47, 9  ;;  %v11926_v31 = vld [vmem:[%s19170_s0 + $0x138] sm:$0xe] }
 0x195   :  { %4897 = vmatmul.mubr.bf16.gmra.mrb[136].mxu1 %v13807_v5  ;;  %v3115_v54 = vrot.slane %v3113_v20, 4  ;;  %v4344_v7 = vadd.f32 %v15599_v51, %v15527_v29  ;;  %v3110_v55 = vrot.slane %v3108_v49, 5  ;;  %v3118_v8 = vrot.slane %v3116_v34, 5  ;;  %v11925_v5 = vld [vmem:[%s19170_s0 + $0x134] sm:$0x1] }
 0x196   :  { %v3105_v22 = vor.u32 %v3104_v1, %v3101_v2  ;;  %v3452_v44 = vrot.slane %v11923_v28, 5  ;;  %v3124_v36 = vrot.slane %v3122_v19, 5  ;;  %v3449_v23 = vsel %vm14264_vm5, %v11956_v15, %v3448_v12  ;;  %v11927_v53 = vld [vmem:[%s19170_s0 + $0x13c] sm:$0x1]  ;;  %v13808_v1 = vld [vmem:[%s19170_s0 + $0x130] ss:$8 sps:$4 sm:$0xff]  }
 0x197   :  { %v15957_v48 = vadd.f32 %v12561_v61, %v12560_v56  ;;  %v12650_v51 = vadd.f32 %v12649_v40, %v12648_v58  ;;  %v3119_v42 = vor.u32 %v3118_v8, %v3115_v54  ;;  %v11958_v57 = vrot.slane %v11924_v35, 9  ;;  %v12651_v61 = vpop.f32.mrb[38].mxu1  ;;  %v12564_v58 = vpop.f32.mrb[39].mxu0 }
 0x198   :  { %v3106_v50 = vrot.slane %v3105_v22, 4  ;;  %v3453_v16 = vsel %vm14264_vm5, %v11957_v52, %v3452_v44  ;;  %v3456_v49 = vrot.slane %v11925_v5, 5  ;;  %v11959_v20 = vrot.slane %v11926_v31, 9  ;;  %v12652_v28 = vpop.f32.mrb[39].mxu1  ;;  %v12566_v15 = vpop.f32.mrb[40].mxu0 }
 0x199   :  { %v11974_v2 = vcombine.low %v3449_v23, %v3453_v16  ;;  %v3460_v56 = vrot.slane %v11927_v53, 5  ;;  %v3120_v40 = vrot.slane %v3119_v42, 4  ;;  %v15972_v34 = vadd.f32 %v12650_v51, %v4344_v7  ;;  %v12567_v8 = vpop.f32.mrb[41].mxu0 }
 0x19a   :  { %v3111_v47 = vsel %vm14103_vm2, %v3106_v50, %v3110_v55  ;;  %v15974_v19 = vadd.f32 %v12564_v58, %v12563_v46  ;;  %v3457_v54 = vsel %vm14264_vm5, %v11958_v57, %v3456_v49  ;;  %v4347_v52 = vadd.f32 %v15653_v6, %v15527_v29  ;;  %v12654_v55 = vpop.f32.mrb[40].mxu1  ;;  %v12569_v5 = vpop.f32.mrb[42].mxu0 }
 0x19b   :  { %13548 = vmatprep.mubr.bf16.mxu0 %v11974_v2  ;;  %v3461_v12 = vsel %vm14264_vm5, %v11959_v20, %v3460_v56  ;;  %v12653_v22 = vadd.f32 %v12652_v28, %v12651_v61  ;;  %v4307_v7 = vadd.f32 %v15243_v3, %v15527_v29  ;;  %v3125_v44 = vsel %vm14103_vm2, %v3120_v40, %v3124_v36  ;;  %v12655_v35 = vpop.f32.mrb[41].mxu1  ;;  %v12570_v31 = vpop.f32.mrb[43].mxu0 }
 0x19c   :  { %v11975_v46 = vcombine.low %v3457_v54, %v3461_v12  ;;  %v15986_v23 = vadd.f32 %v12567_v8, %v12566_v15  ;;  %v11863_v51 = vcombine.low %v3111_v47, %v3125_v44  ;;  %v4352_v6 = vadd.f32 %v15706_v24, %v15527_v29  ;;  %v12657_v16 = vpop.f32.mrb[42].mxu1  ;;  %v12572_v57 = vpop.f32.mrb[44].mxu0 }
 0x19d   :  { %v15988_v50 = vadd.f32 %v12653_v22, %v4347_v52  ;;  %v12656_v42 = vadd.f32 %v12655_v35, %v12654_v55  ;;  %v15992_v53 = vadd.f32 %v12570_v31, %v12569_v5  ;;  %v12658_v3 = vpop.f32.mrb[43].mxu1  ;;  %v4465_v36 = vadd.f32 %v15539_v45, %v15882_v27  ;;  %v12573_v61 = vpop.f32.mrb[45].mxu0 }
 0x19e   :  { %13549 = vmatmul.mubr.bf16.gmra.mrb[140].mxu0 %v11975_v46  ;;  %v4468_v2 = vadd.f32 %v15554_v25, %v4307_v7  ;;  %4904 = vmatprep.mubr.bf16.mxu1 %v11863_v51  ;;  %v4355_v20 = vadd.f32 %v15760_v63, %v15527_v29  ;;  %v12659_v24 = vadd.f32 %v12658_v3, %v12657_v16  ;;  %v12660_v56 = vpop.f32.mrb[44].mxu1  ;;  %v12575_v40 = vpop.f32.mrb[46].mxu0 }
 0x19f   :  { %v15997_v49 = vadd.f32 %v12656_v42, %v4352_v6  ;;  %4905 = vmatmul.mubr.bf16.gmra.mrb[140].mxu1 %v13808_v1  ;;  %v16001_v58 = vadd.f32 %v12573_v61, %v12572_v57  ;;  %v12661_v47 = vpop.f32.mrb[45].mxu1  ;;  %v4360_v45 = vadd.f32 %v15835_v10, %v15527_v29  ;;  %v12576_v15 = vpop.f32.mrb[47].mxu0  ;;  %v16014_v1 = vld [vmem:[%s19172_s2] ss:$0 sm:$0xff] }
 0x1a0   :  { %v16003_v28 = vadd.f32 %v12659_v24, %v4355_v20  ;;  %v12662_v25 = vadd.f32 %v12661_v47, %v12660_v56  ;;  %v12663_v27 = vpop.f32.mrb[46].mxu1  ;;  %v16007_v54 = vadd.f32 %v12576_v15, %v12575_v40  ;;  %v12730_v63 = vpop.f32.mrb[48].mxu0  ;;  %v4363_v22 = vadd.f32 %v16014_v1, %v15851_v33 }
 0x1a1   :  { %v12664_v12 = vpop.f32.mrb[47].mxu1  ;;  %v12731_v29 = vpop.f32.mrb[49].mxu0  ;;  %v4368_v35 = vadd.f32 %v16014_v1, %v15898_v41  ;;  %v4371_v57 = vadd.f32 %v16014_v1, %v15913_v60 }
 0x1a2   :  { %v16009_v52 = vadd.f32 %v12662_v25, %v4360_v45  ;;  %v12665_v55 = vadd.f32 %v12664_v12, %v12663_v27  ;;  %v12666_v8 = vpop.f32.mrb[48].mxu1  ;;  %v12732_v7 = vadd.f32 %v12731_v29, %v12730_v63  ;;  %v12733_v44 = vpop.f32.mrb[50].mxu0 }
 0x1a3   :  { %v12667_v10 = vpop.f32.mrb[49].mxu1  ;;  %v12734_v6 = vpop.f32.mrb[51].mxu0 }
 0x1a4   :  { %v16018_v46 = vadd.f32 %v12665_v55, %v4363_v22  ;;  %v12668_v5 = vadd.f32 %v12667_v10, %v12666_v8  ;;  %v12669_v51 = vpop.f32.mrb[50].mxu1  ;;  %v16022_v42 = vadd.f32 %v12732_v7, %v4465_v36  ;;  %v12735_v31 = vadd.f32 %v12734_v6, %v12733_v44  ;;  %v12736_v3 = vpop.f32.mrb[52].mxu0 }
 0x1a5   :  { %v12670_v16 = vpop.f32.mrb[51].mxu1  ;;  %v12737_v56 = vpop.f32.mrb[53].mxu0  ;;  %v4376_v36 = vadd.f32 %v16014_v1, %v15957_v48 }
 0x1a6   :  { %v16024_v33 = vadd.f32 %v12668_v5, %v4368_v35  ;;  %v12671_v20 = vadd.f32 %v12670_v16, %v12669_v51  ;;  %v12672_v24 = vpop.f32.mrb[52].mxu1  ;;  %v16028_v61 = vadd.f32 %v12735_v31, %v4468_v2  ;;  %v12738_v41 = vadd.f32 %v12737_v56, %v12736_v3  ;;  %v12739_v40 = vpop.f32.mrb[54].mxu0 }
 0x1a7   :  { %v12673_v47 = vpop.f32.mrb[53].mxu1  ;;  %v12740_v15 = vpop.f32.mrb[55].mxu0  ;;  %v4379_v2 = vadd.f32 %v16014_v1, %v15974_v19 }
 0x1a8   :  { %v16030_v45 = vadd.f32 %v12671_v20, %v4371_v57  ;;  %v12674_v25 = vadd.f32 %v12673_v47, %v12672_v24  ;;  %v12675_v27 = vpop.f32.mrb[54].mxu1  ;;  %v16035_v12 = vadd.f32 %v12738_v41, %v15625_v11  ;;  %v12741_v63 = vadd.f32 %v12740_v15, %v12739_v40  ;;  %v12742_v22 = vpop.f32.mrb[56].mxu0  ;;  %v207_v15 = vld [vmem:[#allocation3 + $0x1c] sm:$0x1] }
 0x1a9   :  { %v12676_v60 = vpop.f32.mrb[55].mxu1  ;;  %v12743_v10 = vpop.f32.mrb[57].mxu0  ;;  %v4384_v11 = vadd.f32 %v16014_v1, %v15986_v23  ;;  %v4387_v20 = vadd.f32 %v16014_v1, %v15992_v53  ;;  %v19213_v53 = vmov 0 }
 0x1aa   :  { %v16037_v55 = vadd.f32 %v12674_v25, %v4376_v36  ;;  %v12677_v8 = vadd.f32 %v12676_v60, %v12675_v27  ;;  %v12678_v29 = vpop.f32.mrb[56].mxu1  ;;  %v16042_v7 = vadd.f32 %v12741_v63, %v15669_v17  ;;  %v12744_v44 = vadd.f32 %v12743_v10, %v12742_v22  ;;  %v12745_v35 = vpop.f32.mrb[58].mxu0 }
 0x1ab   :  { %v12679_v48 = vpop.f32.mrb[57].mxu1  ;;  %v12746_v16 = vpop.f32.mrb[59].mxu0  ;;  %v19214_v53 = vsel %vm16067_vm10, 4294967295, %v19213_v53  ;;  %v4392_v63 = vadd.f32 %v16014_v1, %v16001_v58  ;;  %v4395_v58 = vadd.f32 %v16014_v1, %v16007_v54  ;;  %v4400_v54 = vadd.f32 %v16014_v1, %v15335_v37 }
 0x1ac   :  { %v16044_v5 = vadd.f32 %v12677_v8, %v4379_v2  ;;  %v12680_v51 = vadd.f32 %v12679_v48, %v12678_v29  ;;  %v12681_v6 = vpop.f32.mrb[58].mxu1  ;;  %v16049_v31 = vadd.f32 %v12744_v44, %v15758_v26  ;;  %v12747_v3 = vadd.f32 %v12746_v16, %v12745_v35  ;;  %v12748_v57 = vpop.f32.mrb[60].mxu0  ;;  %v85_v26 = vld [vmem:[#allocation3 + $0x18] sm:$0x1]  ;;  %19215 = vst [vmem:[#allocation15_spill] sm:$0xff] %v19214_v53 }
 0x1ad   :  { %v12682_v19 = vpop.f32.mrb[59].mxu1  ;;  %v12749_v47 = vpop.f32.mrb[61].mxu0  ;;  %v86_v27 = vsel %vm16056_vm8, 0, %v85_v26  ;;  %v208_v8 = vsel %vm16067_vm10, 0, %v207_v15  ;;  %v79_v35 = vld [vmem:[#allocation3 + $0x8] sm:$0x1] }
 0x1ae   :  { %v16051_v17 = vadd.f32 %v12680_v51, %v4384_v11  ;;  %v12683_v24 = vadd.f32 %v12682_v19, %v12681_v6  ;;  %v12684_v56 = vpop.f32.mrb[60].mxu1  ;;  %v16061_v41 = vadd.f32 %v12747_v3, %v15793_v13  ;;  %v12750_v36 = vadd.f32 %v12749_v47, %v12748_v57  ;;  %v12751_v25 = vpop.f32.mrb[62].mxu0  ;;  %87 = vst [vmem:[#allocation3 + $0x18] sm:$0x1] %v86_v27  ;;  %v201_v3 = vld [vmem:[#allocation3 + $0xc] sm:$0x1] }
 0x1af   :  { %v12685_v40 = vpop.f32.mrb[61].mxu1  ;;  %v12752_v2 = vpop.f32.mrb[63].mxu0  ;;  %209 = vst [vmem:[#allocation3 + $0x1c] sm:$0x1] %v208_v8  ;;  %v80_v19 = vsel %vm16056_vm8, 0, %v79_v35 }
 0x1b0   :  { %v16071_v60 = vadd.f32 %v12683_v24, %v4387_v20  ;;  %v12686_v13 = vadd.f32 %v12685_v40, %v12684_v56  ;;  %v12687_v22 = vpop.f32.mrb[62].mxu1  ;;  %v16078_v29 = vadd.f32 %v12750_v36, %v15861_v0  ;;  %v12753_v48 = vadd.f32 %v12752_v2, %v12751_v25  ;;  %v12754_v44 = vpop.f32.mrb[64].mxu0  ;;  %81 = vst [vmem:[#allocation3 + $0x8] sm:$0x1] %v80_v19  ;;  %v88_v47 = vld [vmem:[#allocation3 + $0x20] sm:$0x1] }
 0x1b1   :  { %v12688_v10 = vpop.f32.mrb[63].mxu1  ;;  %v12755_v16 = vpop.f32.mrb[65].mxu0  ;;  %v202_v56 = vsel %vm16067_vm10, 0, %v201_v3  ;;  %v210_v27 = vld [vmem:[#allocation3 + $0x24] sm:$0x1] }
 0x1b2   :  { %v16080_v11 = vadd.f32 %v12686_v13, %v4392_v63  ;;  %v12689_v51 = vadd.f32 %v12688_v10, %v12687_v22  ;;  %v12690_v6 = vpop.f32.mrb[64].mxu1  ;;  %v16087_v0 = vadd.f32 %v12753_v48, %v15875_v32  ;;  %v12756_v20 = vadd.f32 %v12755_v16, %v12754_v44  ;;  %v12757_v24 = vpop.f32.mrb[66].mxu0  ;;  %203 = vst [vmem:[#allocation3 + $0xc] sm:$0x1] %v202_v56  ;;  %v82_v8 = vld [vmem:[#allocation3 + $0x10] sm:$0x1] }
 0x1b3   :  { %v12691_v57 = vpop.f32.mrb[65].mxu1  ;;  %v12758_v25 = vpop.f32.mrb[67].mxu0  ;;  %v89_v32 = vsel %vm16056_vm8, 0, %v88_v47  ;;  %v211_v2 = vsel %vm16067_vm10, 0, %v210_v27  ;;  %v4403_v10 = vadd.f32 %v16014_v1, %v15364_v62  ;;  %v4408_v62 = vadd.f32 %v16014_v1, %v15395_v59  ;;  %v97_v47 = vld [vmem:[#allocation3 + $0x38] sm:$0x1] }
 0x1b4   :  { %v16091_v26 = vadd.f32 %v12689_v51, %v4395_v58  ;;  %v12692_v40 = vadd.f32 %v12691_v57, %v12690_v6  ;;  %v12693_v36 = vpop.f32.mrb[66].mxu1  ;;  %v16098_v15 = vadd.f32 %v12756_v20, %v15931_v38  ;;  %v12759_v13 = vadd.f32 %v12758_v25, %v12757_v24  ;;  %v12760_v22 = vpop.f32.mrb[68].mxu0  ;;  %90 = vst [vmem:[#allocation3 + $0x20] sm:$0x1] %v89_v32  ;;  %v204_v58 = vld [vmem:[#allocation3 + $0x14] sm:$0x1] }
 0x1b5   :  { %v12694_v63 = vpop.f32.mrb[67].mxu1  ;;  %v12761_v35 = vpop.f32.mrb[69].mxu0  ;;  %212 = vst [vmem:[#allocation3 + $0x24] sm:$0x1] %v211_v2  ;;  %v83_v38 = vsel %vm16056_vm8, 0, %v82_v8  ;;  %v205_v3 = vsel %vm16067_vm10, 0, %v204_v58  ;;  %v4411_v27 = vadd.f32 %v16014_v1, %v15412_v4  ;;  %v4416_v2 = vadd.f32 %v16014_v1, %v15444_v30 }
 0x1b6   :  { %v16102_v37 = vadd.f32 %v12692_v40, %v4400_v54  ;;  %v12695_v48 = vadd.f32 %v12694_v63, %v12693_v36  ;;  %v12696_v44 = vpop.f32.mrb[68].mxu1  ;;  %v16109_v51 = vadd.f32 %v12759_v13, %v15939_v21  ;;  %v12762_v16 = vadd.f32 %v12761_v35, %v12760_v22  ;;  %v12763_v19 = vpop.f32.mrb[70].mxu0  ;;  %84 = vst [vmem:[#allocation3 + $0x10] sm:$0x1] %v83_v38  ;;  %v219_v25 = vld [vmem:[#allocation3 + $0x3c] sm:$0x1] }
 0x1b7   :  { %v12697_v6 = vpop.f32.mrb[69].mxu1  ;;  %v12764_v56 = vpop.f32.mrb[71].mxu0  ;;  %206 = vst [vmem:[#allocation3 + $0x14] sm:$0x1] %v205_v3  ;;  %v98_v36 = vsel %vm16056_vm8, 0, %v97_v47  ;;  %v220_v22 = vsel %vm16067_vm10, 0, %v219_v25 }
 0x1b8   :  { %v16113_v57 = vadd.f32 %v12695_v48, %v4403_v10  ;;  %v12698_v20 = vadd.f32 %v12697_v6, %v12696_v44  ;;  %v12699_v24 = vpop.f32.mrb[70].mxu1  ;;  %v16118_v21 = vadd.f32 %v12762_v16, %v15972_v34  ;;  %v12765_v40 = vadd.f32 %v12764_v56, %v12763_v19  ;;  %v12766_v13 = vpop.f32.mrb[72].mxu0  ;;  %99 = vst [vmem:[#allocation3 + $0x38] sm:$0x1] %v98_v36  ;;  %v91_v48 = vld [vmem:[#allocation3 + $0x28] sm:$0x1] }
 0x1b9   :  { %v12700_v54 = vpop.f32.mrb[71].mxu1  ;;  %v12767_v10 = vpop.f32.mrb[73].mxu0  ;;  %221 = vst [vmem:[#allocation3 + $0x3c] sm:$0x1] %v220_v22  ;;  %v92_v6 = vsel %vm16056_vm8, 0, %v91_v48 }
 0x1ba   :  { %v16122_v32 = vadd.f32 %v12698_v20, %v4408_v62  ;;  %v12701_v59 = vadd.f32 %v12700_v54, %v12699_v24  ;;  %v12702_v63 = vpop.f32.mrb[72].mxu1  ;;  %v16129_v34 = vadd.f32 %v12765_v40, %v15988_v50  ;;  %v12768_v35 = vadd.f32 %v12767_v10, %v12766_v13  ;;  %v12769_v58 = vpop.f32.mrb[74].mxu0  ;;  %93 = vst [vmem:[#allocation3 + $0x28] sm:$0x1] %v92_v6  ;;  %v213_v30 = vld [vmem:[#allocation3 + $0x2c] sm:$0x1] }
 0x1bb   :  { %v12703_v8 = vpop.f32.mrb[73].mxu1  ;;  %v4419_v50 = vadd.f32 %v16014_v1, %v15485_v43  ;;  %v12770_v19 = vpop.f32.mrb[75].mxu0  ;;  %v100_v47 = vld [vmem:[#allocation3 + $0x40] sm:$0x1]  ;;  %v214_v40 = vsel %vm16067_vm10, 0, %v213_v30 }
 0x1bc   :  { %v16133_v44 = vadd.f32 %v12701_v59, %v4411_v27  ;;  %v12704_v4 = vadd.f32 %v12703_v8, %v12702_v63  ;;  %v12705_v38 = vpop.f32.mrb[74].mxu1  ;;  %v16142_v62 = vadd.f32 %v12768_v35, %v15997_v49  ;;  %v12771_v24 = vadd.f32 %v12770_v19, %v12769_v58  ;;  %215 = vst [vmem:[#allocation3 + $0x2c] sm:$0x1] %v214_v40  ;;  %v222_v63 = vld [vmem:[#allocation3 + $0x44] sm:$0x1] }
 0x1bd   :  { %v12706_v16 = vpop.f32.mrb[75].mxu1  ;;  %v101_v43 = vsel %vm16056_vm8, 0, %v100_v47  ;;  %v4424_v49 = vadd.f32 %v16014_v1, %v15489_v14  ;;  %v94_v13 = vld [vmem:[#allocation3 + $0x30] sm:$0x1]  ;;  %v216_v14 = vld [vmem:[#allocation3 + $0x34] sm:$0x1] }
 0x1be   :  { %v16139_v3 = vadd.f32 %v12704_v4, %v4416_v2  ;;  %v12707_v20 = vadd.f32 %v12706_v16, %v12705_v38  ;;  %v12708_v56 = vpop.f32.mrb[76].mxu1  ;;  %v16151_v25 = vadd.f32 %v12771_v24, %v16003_v28  ;;  %102 = vst [vmem:[#allocation3 + $0x40] sm:$0x1] %v101_v43  ;;  %v223_v2 = vsel %vm16067_vm10, 0, %v222_v63  ;;  %v115_v4 = vld [vmem:[#allocation3 + $0x68] sm:$0x1] }
 0x1bf   :  { %v12709_v54 = vpop.f32.mrb[77].mxu1  ;;  %v95_v8 = vsel %vm16056_vm8, 0, %v94_v13  ;;  %v4427_v28 = vadd.f32 %v16014_v1, %v15501_v18  ;;  %224 = vst [vmem:[#allocation3 + $0x44] sm:$0x1] %v223_v2  ;;  %v217_v35 = vsel %vm16067_vm10, 0, %v216_v14  ;;  %v116_v38 = vsel %vm16056_vm8, 0, %v115_v4 }
 0x1c0   :  { %v16148_v36 = vadd.f32 %v12707_v20, %v4419_v50  ;;  %v12710_v27 = vadd.f32 %v12709_v54, %v12708_v56  ;;  %v12711_v59 = vpop.f32.mrb[78].mxu1  ;;  %96 = vst [vmem:[#allocation3 + $0x30] sm:$0x1] %v95_v8  ;;  %v237_v58 = vld [vmem:[#allocation3 + $0x6c] sm:$0x1]  ;;  %v12772_v24 = vpop.f32.mrb[76].mxu0 }
 0x1c1   :  { %v12712_v22 = vpop.f32.mrb[79].mxu1  ;;  %v109_v6 = vld [vmem:[#allocation3 + $0x58] sm:$0x1]  ;;  %218 = vst [vmem:[#allocation3 + $0x34] sm:$0x1] %v217_v35  ;;  %v238_v18 = vsel %vm16067_vm10, 0, %v237_v58 }
 0x1c2   :  { %v16159_v10 = vadd.f32 %v12710_v27, %v4424_v49  ;;  %v12713_v48 = vadd.f32 %v12712_v22, %v12711_v59  ;;  %117 = vst [vmem:[#allocation3 + $0x68] sm:$0x1] %v116_v38  ;;  %v110_v1 = vsel %vm16056_vm8, 0, %v109_v6  ;;  %v231_v16 = vld [vmem:[#allocation3 + $0x5c] sm:$0x1]  ;;  %v12773_v54 = vpop.f32.mrb[77].mxu0 }
 0x1c3   :  { %239 = vst [vmem:[#allocation3 + $0x6c] sm:$0x1] %v238_v18  ;;  %111 = vst [vmem:[#allocation3 + $0x58] sm:$0x1] %v110_v1  ;;  %v232_v19 = vsel %vm16067_vm10, 0, %v231_v16  ;;  %v12774_v40 = vadd.f32 %v12773_v54, %v12772_v24  ;;  %v12775_v43 = vpop.f32.mrb[78].mxu0 }
 0x1c4   :  { %v16167_v50 = vadd.f32 %v12713_v48, %v4427_v28  ;;  %v118_v30 = vld [vmem:[#allocation3 + $0x70] sm:$0x1]  ;;  %v240_v20 = vld [vmem:[#allocation3 + $0x74] sm:$0x1]  ;;  %233 = vst [vmem:[#allocation3 + $0x5c] sm:$0x1] %v232_v19 }
 0x1c5   :  { %v119_v56 = vsel %vm16056_vm8, 0, %v118_v30  ;;  %v241_v47 = vsel %vm16067_vm10, 0, %v240_v20  ;;  %v112_v49 = vld [vmem:[#allocation3 + $0x60] sm:$0x1]  ;;  %v234_v27 = vld [vmem:[#allocation3 + $0x64] sm:$0x1]  ;;  %v16182_v13 = vadd.f32 %v12774_v40, %v16009_v52 }
 0x1c6   :  { %120 = vst [vmem:[#allocation3 + $0x70] sm:$0x1] %v119_v56  ;;  %242 = vst [vmem:[#allocation3 + $0x74] sm:$0x1] %v241_v47  ;;  %v12776_v59 = vpop.f32.mrb[79].mxu0  ;;  %v113_v63 = vsel %vm16056_vm8, 0, %v112_v49 }
 0x1c7   :  { %v12777_v22 = vadd.f32 %v12776_v59, %v12775_v43  ;;  %114 = vst [vmem:[#allocation3 + $0x60] sm:$0x1] %v113_v63  ;;  %v235_v2 = vsel %vm16067_vm10, 0, %v234_v27  ;;  %v127_v8 = vld [vmem:[#allocation3 + $0x88] sm:$0x1]  ;;  %v12842_v30 = vpop.f32.mrb[80].mxu1 }
 0x1c8   :  { %v249_v28 = vld [vmem:[#allocation3 + $0x8c] sm:$0x1]  ;;  %236 = vst [vmem:[#allocation3 + $0x64] sm:$0x1] %v235_v2  ;;  %v128_v48 = vsel %vm16056_vm8, 0, %v127_v8  ;;  %v12843_v56 = vpop.f32.mrb[81].mxu1 }
 0x1c9   :  { %v250_v14 = vsel %vm16067_vm10, 0, %v249_v28  ;;  %v16191_v4 = vadd.f32 %v12777_v22, %v16018_v46  ;;  %129 = vst [vmem:[#allocation3 + $0x88] sm:$0x1] %v128_v48  ;;  %v121_v52 = vld [vmem:[#allocation3 + $0x78] sm:$0x1]  ;;  %v12844_v47 = vadd.f32 %v12843_v56, %v12842_v30  ;;  %v12845_v54 = vpop.f32.mrb[82].mxu1 }
 0x1ca   :  { %251 = vst [vmem:[#allocation3 + $0x8c] sm:$0x1] %v250_v14  ;;  %v122_v35 = vsel %vm16056_vm8, 0, %v121_v52  ;;  %v243_v38 = vld [vmem:[#allocation3 + $0x7c] sm:$0x1]  ;;  %v12778_v40 = vpop.f32.mrb[80].mxu0 }
 0x1cb   :  { %123 = vst [vmem:[#allocation3 + $0x78] sm:$0x1] %v122_v35  ;;  %v244_v58 = vsel %vm16067_vm10, 0, %v243_v38  ;;  %v130_v6 = vld [vmem:[#allocation3 + $0x90] sm:$0x1]  ;;  %v12846_v43 = vpop.f32.mrb[83].mxu1  ;;  %v16206_v22 = vadd.f32 %v12844_v47, %v16022_v42 }
 0x1cc   :  { %245 = vst [vmem:[#allocation3 + $0x7c] sm:$0x1] %v244_v58  ;;  %v252_v18 = vld [vmem:[#allocation3 + $0x94] sm:$0x1]  ;;  %v131_v1 = vsel %vm16056_vm8, 0, %v130_v6  ;;  %v12779_v59 = vpop.f32.mrb[81].mxu0  ;;  %v12847_v63 = vadd.f32 %v12846_v43, %v12845_v54 }
 0x1cd   :  { %v253_v46 = vsel %vm16067_vm10, 0, %v252_v18  ;;  %v124_v16 = vld [vmem:[#allocation3 + $0x80] sm:$0x1]  ;;  %v246_v19 = vld [vmem:[#allocation3 + $0x84] sm:$0x1]  ;;  %v12780_v28 = vadd.f32 %v12779_v59, %v12778_v40  ;;  %v12781_v48 = vpop.f32.mrb[82].mxu0 }
 0x1ce   :  { %132 = vst [vmem:[#allocation3 + $0x90] sm:$0x1] %v131_v1  ;;  %254 = vst [vmem:[#allocation3 + $0x94] sm:$0x1] %v253_v46  ;;  %v125_v20 = vsel %vm16056_vm8, 0, %v124_v16  ;;  %v247_v24 = vsel %vm16067_vm10, 0, %v246_v19  ;;  %v16213_v35 = vadd.f32 %v12847_v63, %v16028_v61 }
 0x1cf   :  { %126 = vst [vmem:[#allocation3 + $0x80] sm:$0x1] %v125_v20  ;;  %248 = vst [vmem:[#allocation3 + $0x84] sm:$0x1] %v247_v24  ;;  %v145_v49 = vld [vmem:[#allocation3 + $0xb8] sm:$0x1]  ;;  %v16218_v6 = vadd.f32 %v12780_v28, %v16024_v33 }
 0x1d0   :  { %v267_v27 = vld [vmem:[#allocation3 + $0xbc] sm:$0x1]  ;;  %v146_v2 = vsel %vm16056_vm8, 0, %v145_v49  ;;  %v139_v14 = vld [vmem:[#allocation3 + $0xa8] sm:$0x1]  ;;  %v12782_v52 = vpop.f32.mrb[83].mxu0 }
 0x1d1   :  { %v268_v8 = vsel %vm16067_vm10, 0, %v267_v27  ;;  %147 = vst [vmem:[#allocation3 + $0xb8] sm:$0x1] %v146_v2  ;;  %v140_v38 = vsel %vm16056_vm8, 0, %v139_v14  ;;  %v261_v42 = vld [vmem:[#allocation3 + $0xac] sm:$0x1]  ;;  %v12783_v18 = vadd.f32 %v12782_v52, %v12781_v48 }
 0x1d2   :  { %269 = vst [vmem:[#allocation3 + $0xbc] sm:$0x1] %v268_v8  ;;  %v148_v58 = vld [vmem:[#allocation3 + $0xc0] sm:$0x1]  ;;  %141 = vst [vmem:[#allocation3 + $0xa8] sm:$0x1] %v140_v38 }
 0x1d3   :  { %v262_v1 = vsel %vm16067_vm10, 0, %v261_v42  ;;  %v149_v46 = vsel %vm16056_vm8, 0, %v148_v58  ;;  %v270_v61 = vld [vmem:[#allocation3 + $0xc4] sm:$0x1]  ;;  %v16225_v16 = vadd.f32 %v12783_v18, %v16030_v45  ;;  %v142_v30 = vld [vmem:[#allocation3 + $0xb0] sm:$0x1] }
 0x1d4   :  { %263 = vst [vmem:[#allocation3 + $0xac] sm:$0x1] %v262_v1  ;;  %150 = vst [vmem:[#allocation3 + $0xc0] sm:$0x1] %v149_v46  ;;  %v271_v19 = vsel %vm16067_vm10, 0, %v270_v61  ;;  %v143_v20 = vsel %vm16056_vm8, 0, %v142_v30 }
 0x1d5   :  { %v264_v33 = vld [vmem:[#allocation3 + $0xb4] sm:$0x1]  ;;  %272 = vst [vmem:[#allocation3 + $0xc4] sm:$0x1] %v271_v19  ;;  %v12848_v56 = vpop.f32.mrb[84].mxu1  ;;  %v12784_v59 = vpop.f32.mrb[84].mxu0 }
 0x1d6   :  { %v265_v24 = vsel %vm16067_vm10, 0, %v264_v33  ;;  %144 = vst [vmem:[#allocation3 + $0xb0] sm:$0x1] %v143_v20  ;;  %v157_v47 = vld [vmem:[#allocation3 + $0xd8] sm:$0x1]  ;;  %v12849_v40 = vpop.f32.mrb[85].mxu1 }
 0x1d7   :  { %266 = vst [vmem:[#allocation3 + $0xb4] sm:$0x1] %v265_v24  ;;  %v279_v54 = vld [vmem:[#allocation3 + $0xdc] sm:$0x1]  ;;  %v158_v45 = vsel %vm16056_vm8, 0, %v157_v47  ;;  %v12850_v43 = vadd.f32 %v12849_v40, %v12848_v56  ;;  %v12851_v49 = vpop.f32.mrb[86].mxu1 }
 0x1d8   :  { %159 = vst [vmem:[#allocation3 + $0xd8] sm:$0x1] %v158_v45  ;;  %v280_v27 = vsel %vm16067_vm10, 0, %v279_v54  ;;  %v12852_v63 = vpop.f32.mrb[87].mxu1  ;;  %v151_v2 = vld [vmem:[#allocation3 + $0xc8] sm:$0x1] }
 0x1d9   :  { %281 = vst [vmem:[#allocation3 + $0xdc] sm:$0x1] %v280_v27  ;;  %v12785_v8 = vpop.f32.mrb[85].mxu0  ;;  %v12853_v28 = vadd.f32 %v12852_v63, %v12851_v49  ;;  %v16238_v48 = vadd.f32 %v12850_v43, %v16035_v12  ;;  %v152_v14 = vsel %vm16056_vm8, 0, %v151_v2  ;;  %v273_v42 = vld [vmem:[#allocation3 + $0xcc] sm:$0x1] }
 0x1da   :  { %v12786_v52 = vadd.f32 %v12785_v8, %v12784_v59  ;;  %v12787_v38 = vpop.f32.mrb[86].mxu0  ;;  %153 = vst [vmem:[#allocation3 + $0xc8] sm:$0x1] %v152_v14  ;;  %v160_v58 = vld [vmem:[#allocation3 + $0xe0] sm:$0x1]  ;;  %v274_v46 = vsel %vm16067_vm10, 0, %v273_v42 }
 0x1db   :  { %v12788_v18 = vpop.f32.mrb[87].mxu0  ;;  %v16243_v1 = vadd.f32 %v12853_v28, %v16042_v7  ;;  %v161_v61 = vsel %vm16056_vm8, 0, %v160_v58  ;;  %275 = vst [vmem:[#allocation3 + $0xcc] sm:$0x1] %v274_v46  ;;  %v282_v30 = vld [vmem:[#allocation3 + $0xe4] sm:$0x1] }
 0x1dc   :  { %v16250_v12 = vadd.f32 %v12786_v52, %v16037_v55  ;;  %v12789_v19 = vadd.f32 %v12788_v18, %v12787_v38  ;;  %162 = vst [vmem:[#allocation3 + $0xe0] sm:$0x1] %v161_v61  ;;  %v283_v33 = vsel %vm16067_vm10, 0, %v282_v30  ;;  %v154_v20 = vld [vmem:[#allocation3 + $0xd0] sm:$0x1]  ;;  %v12854_v40 = vpop.f32.mrb[88].mxu1 }
 0x1dd   :  { %v276_v24 = vld [vmem:[#allocation3 + $0xd4] sm:$0x1]  ;;  %284 = vst [vmem:[#allocation3 + $0xe4] sm:$0x1] %v283_v33  ;;  %v155_v56 = vsel %vm16056_vm8, 0, %v154_v20  ;;  %v12790_v59 = vpop.f32.mrb[88].mxu0 }
 0x1de   :  { %v16255_v7 = vadd.f32 %v12789_v19, %v16044_v5  ;;  %v277_v55 = vsel %vm16067_vm10, 0, %v276_v24  ;;  %156 = vst [vmem:[#allocation3 + $0xd0] sm:$0x1] %v155_v56  ;;  %v175_v47 = vld [vmem:[#allocation3 + $0x108] sm:$0x1]  ;;  %v12855_v5 = vpop.f32.mrb[89].mxu1 }
 0x1df   :  { %278 = vst [vmem:[#allocation3 + $0xd4] sm:$0x1] %v277_v55  ;;  %v297_v54 = vld [vmem:[#allocation3 + $0x10c] sm:$0x1]  ;;  %v176_v45 = vsel %vm16056_vm8, 0, %v175_v47  ;;  %v12856_v63 = vadd.f32 %v12855_v5, %v12854_v40  ;;  %v12857_v2 = vpop.f32.mrb[90].mxu1 }
 0x1e0   :  { %v298_v43 = vsel %vm16067_vm10, 0, %v297_v54  ;;  %177 = vst [vmem:[#allocation3 + $0x108] sm:$0x1] %v176_v45  ;;  %v169_v49 = vld [vmem:[#allocation3 + $0xf8] sm:$0x1]  ;;  %v12791_v8 = vpop.f32.mrb[89].mxu0 }
 0x1e1   :  { %299 = vst [vmem:[#allocation3 + $0x10c] sm:$0x1] %v298_v43  ;;  %v291_v27 = vld [vmem:[#allocation3 + $0xfc] sm:$0x1]  ;;  %v12858_v28 = vpop.f32.mrb[91].mxu1  ;;  %v170_v14 = vsel %vm16056_vm8, 0, %v169_v49  ;;  %v12792_v42 = vadd.f32 %v12791_v8, %v12790_v59  ;;  %v16270_v46 = vadd.f32 %v12856_v63, %v16049_v31 }
 0x1e2   :  { %v292_v52 = vsel %vm16067_vm10, 0, %v291_v27  ;;  %v178_v38 = vld [vmem:[#allocation3 + $0x110] sm:$0x1]  ;;  %v12793_v58 = vpop.f32.mrb[90].mxu0  ;;  %v12859_v18 = vadd.f32 %v12858_v28, %v12857_v2  ;;  %171 = vst [vmem:[#allocation3 + $0xf8] sm:$0x1] %v170_v14 }
 0x1e3   :  { %293 = vst [vmem:[#allocation3 + $0xfc] sm:$0x1] %v292_v52  ;;  %v179_v61 = vsel %vm16056_vm8, 0, %v178_v38  ;;  %v300_v19 = vld [vmem:[#allocation3 + $0x114] sm:$0x1]  ;;  %v12794_v30 = vpop.f32.mrb[91].mxu0  ;;  %v16277_v20 = vadd.f32 %v12792_v42, %v16051_v17 }
 0x1e4   :  { %180 = vst [vmem:[#allocation3 + $0x110] sm:$0x1] %v179_v61  ;;  %v301_v33 = vsel %vm16067_vm10, 0, %v300_v19  ;;  %v12795_v24 = vadd.f32 %v12794_v30, %v12793_v58  ;;  %v16280_v56 = vadd.f32 %v12859_v18, %v16061_v41  ;;  %v172_v31 = vld [vmem:[#allocation3 + $0x100] sm:$0x1] }
 0x1e5   :  { %302 = vst [vmem:[#allocation3 + $0x114] sm:$0x1] %v301_v33  ;;  %v294_v55 = vld [vmem:[#allocation3 + $0x104] sm:$0x1]  ;;  %v173_v47 = vsel %vm16056_vm8, 0, %v172_v31 }
 0x1e6   :  { %v295_v54 = vsel %vm16067_vm10, 0, %v294_v55  ;;  %v16287_v40 = vadd.f32 %v12795_v24, %v16071_v60  ;;  %174 = vst [vmem:[#allocation3 + $0x100] sm:$0x1] %v173_v47  ;;  %v187_v17 = vld [vmem:[#allocation3 + $0x128] sm:$0x1] }
 0x1e7   :  { %296 = vst [vmem:[#allocation3 + $0x104] sm:$0x1] %v295_v54  ;;  %v309_v45 = vld [vmem:[#allocation3 + $0x12c] sm:$0x1]  ;;  %v188_v41 = vsel %vm16056_vm8, 0, %v187_v17 }
 0x1e8   :  { %189 = vst [vmem:[#allocation3 + $0x128] sm:$0x1] %v188_v41  ;;  %v310_v49 = vsel %vm16067_vm10, 0, %v309_v45  ;;  %v181_v38 = vld [vmem:[#allocation3 + $0x118] sm:$0x1] }
 0x1e9   :  { %311 = vst [vmem:[#allocation3 + $0x12c] sm:$0x1] %v310_v49  ;;  %v303_v42 = vld [vmem:[#allocation3 + $0x11c] sm:$0x1]  ;;  %v182_v61 = vsel %vm16056_vm8, 0, %v181_v38 }
 0x1ea   :  { %v304_v19 = vsel %vm16067_vm10, 0, %v303_v42  ;;  %v190_v30 = vld [vmem:[#allocation3 + $0x130] sm:$0x1]  ;;  %183 = vst [vmem:[#allocation3 + $0x118] sm:$0x1] %v182_v61 }
 0x1eb   :  { %305 = vst [vmem:[#allocation3 + $0x11c] sm:$0x1] %v304_v19  ;;  %v191_v24 = vsel %vm16056_vm8, 0, %v190_v30  ;;  %v312_v31 = vld [vmem:[#allocation3 + $0x134] sm:$0x1] }
 0x1ec   :  { %v184_v55 = vld [vmem:[#allocation3 + $0x120] sm:$0x1]  ;;  %192 = vst [vmem:[#allocation3 + $0x130] sm:$0x1] %v191_v24  ;;  %v306_v54 = vld [vmem:[#allocation3 + $0x124] sm:$0x1] }
 0x1ed   :  { %v185_v47 = vsel %vm16056_vm8, 0, %v184_v55 }
 0x1ee   :  { %186 = vst [vmem:[#allocation3 + $0x120] sm:$0x1] %v185_v47 }
 0x1fb   :  { %v12860_v43 = vpop.f32.mrb[92].mxu1 }
 0x1fc   :  { %v12861_v5 = vpop.f32.mrb[93].mxu1  ;;  %v12796_v63 = vpop.f32.mrb[92].mxu0 }
 0x1fd   :  { %v12862_v27 = vadd.f32 %v12861_v5, %v12860_v43  ;;  %v12863_v59 = vpop.f32.mrb[94].mxu1  ;;  %v12797_v60 = vpop.f32.mrb[93].mxu0 }
 0x1fe   :  { %v12864_v2 = vpop.f32.mrb[95].mxu1  ;;  %v12798_v14 = vadd.f32 %v12797_v60, %v12796_v63  ;;  %v12799_v52 = vpop.f32.mrb[94].mxu0 }
 0x1ff   :  { %v12865_v8 = vadd.f32 %v12864_v2, %v12863_v59  ;;  %v16294_v28 = vadd.f32 %v12862_v27, %v16078_v29  ;;  %v12800_v58 = vpop.f32.mrb[95].mxu0  ;;  %v14008_v27 = vmov 1.0  }
 0x200   :  { %v16304_v33 = vadd.f32 %v12798_v14, %v16080_v11  ;;  %v12801_v29 = vadd.f32 %v12800_v58, %v12799_v52  ;;  %v307_v11 = vsel %vm16067_vm10, 0, %v306_v54  ;;  %5138 = vmatprep.mubr.f32.mxu1 %v14008_v27 }
 0x201   :  { %v16297_v18 = vadd.f32 %v12865_v8, %v16087_v0  ;;  %v313_v0 = vsel %vm16067_vm10, 0, %v312_v31  ;;  %308 = vst [vmem:[#allocation3 + $0x124] sm:$0x1] %v307_v11 }
 0x202   :  { %v16313_v17 = vadd.f32 %v12801_v29, %v16091_v26  ;;  %314 = vst [vmem:[#allocation3 + $0x134] sm:$0x1] %v313_v0 }
 0x203   :  { %v12866_v45 = vpop.f32.mrb[96].mxu1 }
 0x204   :  { %v12867_v43 = vpop.f32.mrb[97].mxu1  ;;  %v12802_v41 = vpop.f32.mrb[96].mxu0 }
 0x205   :  { %v12868_v5 = vadd.f32 %v12867_v43, %v12866_v45  ;;  %v12869_v49 = vpop.f32.mrb[98].mxu1  ;;  %v12803_v59 = vpop.f32.mrb[97].mxu0 }
 0x206   :  { %v12870_v63 = vpop.f32.mrb[99].mxu1  ;;  %v12804_v2 = vadd.f32 %v12803_v59, %v12802_v41  ;;  %v12805_v60 = vpop.f32.mrb[98].mxu0 }
 0x207   :  { %v12871_v26 = vadd.f32 %v12870_v63, %v12869_v49  ;;  %v16319_v8 = vadd.f32 %v12868_v5, %v16098_v15  ;;  %v12806_v14 = vpop.f32.mrb[99].mxu0 }
 0x208   :  { %v16322_v52 = vadd.f32 %v12804_v2, %v16102_v37  ;;  %v12807_v38 = vadd.f32 %v12806_v14, %v12805_v60 }
 0x209   :  { %v16325_v42 = vadd.f32 %v12871_v26, %v16109_v51 }
 0x20a   :  { %v16328_v58 = vadd.f32 %v12807_v38, %v16113_v57 }
 0x20c   :  { %v12872_v61 = vpop.f32.mrb[100].mxu1 }
 0x20d   :  { %v12873_v19 = vpop.f32.mrb[101].mxu1 }
 0x20e   :  { %v12874_v30 = vadd.f32 %v12873_v19, %v12872_v61  ;;  %v12875_v29 = vpop.f32.mrb[102].mxu1  ;;  %v12808_v24 = vpop.f32.mrb[100].mxu0 }
 0x20f   :  { %v12876_v31 = vpop.f32.mrb[103].mxu1  ;;  %v12809_v55 = vpop.f32.mrb[101].mxu0 }
 0x210   :  { %v12877_v15 = vadd.f32 %v12876_v31, %v12875_v29  ;;  %v16331_v0 = vadd.f32 %v12874_v30, %v16118_v21  ;;  %v12810_v37 = vadd.f32 %v12809_v55, %v12808_v24  ;;  %v12811_v47 = vpop.f32.mrb[102].mxu0 }
 0x211   :  { %v12812_v54 = vpop.f32.mrb[103].mxu0 }
 0x212   :  { %v16334_v51 = vadd.f32 %v12877_v15, %v16129_v34  ;;  %v16337_v57 = vadd.f32 %v12810_v37, %v16122_v32  ;;  %v12813_v11 = vadd.f32 %v12812_v54, %v12811_v47 }
 0x214   :  { %v16340_v45 = vadd.f32 %v12813_v11, %v16133_v44 }
 0x219   :  { %v12878_v43 = vpop.f32.mrb[104].mxu1 }
 0x21a   :  { %v12879_v41 = vpop.f32.mrb[105].mxu1 }
 0x21b   :  { %v12814_v5 = vpop.f32.mrb[104].mxu0  ;;  %v12880_v49 = vadd.f32 %v12879_v41, %v12878_v43  ;;  %v12881_v59 = vpop.f32.mrb[106].mxu1 }
 0x21c   :  { %v12815_v21 = vpop.f32.mrb[105].mxu0  ;;  %v12882_v63 = vpop.f32.mrb[107].mxu1 }
 0x21d   :  { %v12816_v2 = vadd.f32 %v12815_v21, %v12814_v5  ;;  %v12817_v60 = vpop.f32.mrb[106].mxu0  ;;  %v12883_v26 = vadd.f32 %v12882_v63, %v12881_v59  ;;  %v16343_v34 = vadd.f32 %v12880_v49, %v16142_v62 }
 0x21e   :  { %v12818_v14 = vpop.f32.mrb[107].mxu0 }
 0x21f   :  { %v16346_v32 = vadd.f32 %v12816_v2, %v16139_v3  ;;  %v12819_v38 = vadd.f32 %v12818_v14, %v12817_v60  ;;  %v16349_v44 = vadd.f32 %v12883_v26, %v16151_v25 }
 0x221   :  { %v16352_v61 = vadd.f32 %v12819_v38, %v16148_v36 }
 0x224   :  { %v12884_v19 = vpop.f32.mrb[108].mxu1 }
 0x225   :  { %v12885_v30 = vpop.f32.mrb[109].mxu1 }
 0x226   :  { %v12820_v29 = vpop.f32.mrb[108].mxu0  ;;  %v12886_v24 = vadd.f32 %v12885_v30, %v12884_v19  ;;  %v12887_v31 = vpop.f32.mrb[110].mxu1 }
 0x227   :  { %v12821_v55 = vpop.f32.mrb[109].mxu0  ;;  %v12888_v15 = vpop.f32.mrb[111].mxu1 }
 0x228   :  { %v12822_v62 = vadd.f32 %v12821_v55, %v12820_v29  ;;  %v12823_v37 = vpop.f32.mrb[110].mxu0  ;;  %v12889_v47 = vadd.f32 %v12888_v15, %v12887_v31  ;;  %v4843_v3 = vadd.f32 %v12886_v24, %v16182_v13 }
 0x229   :  { %v12824_v54 = vpop.f32.mrb[111].mxu0 }
 0x22a   :  { %v16356_v11 = vadd.f32 %v12822_v62, %v16159_v10  ;;  %v12825_v25 = vadd.f32 %v12824_v54, %v12823_v37  ;;  %v4846_v36 = vadd.f32 %v12889_v47, %v16191_v4 }
 0x22c   :  { %v16360_v43 = vadd.f32 %v12825_v25, %v16167_v50 }
 0x22e   :  { %v12890_v41 = vpop.f32.mrb[112].mxu1 }
 0x22f   :  { %v13522_v5 = vpop.f32.mrb[112].mxu0  ;;  %v12891_v49 = vpop.f32.mrb[113].mxu1 }
 0x230   :  { %v16363_v59 = vadd.f32 %v13522_v5, %v16238_v48  ;;  %v12892_v21 = vadd.f32 %v12891_v49, %v12890_v41  ;;  %v4947_v63 = vpop.f32.mrb[113].mxu0  ;;  %v12893_v2 = vpop.f32.mrb[114].mxu1 }
 0x231   :  { %v16366_v13 = vadd.f32 %v4947_v63, %v16206_v22  ;;  %v13523_v10 = vpop.f32.mrb[114].mxu0  ;;  %v12894_v60 = vpop.f32.mrb[115].mxu1 }
 0x232   :  { %v16369_v26 = vadd.f32 %v13523_v10, %v16243_v1  ;;  %v12895_v4 = vadd.f32 %v12894_v60, %v12893_v2  ;;  %v4950_v50 = vpop.f32.mrb[115].mxu0  ;;  %v4851_v14 = vadd.f32 %v12892_v21, %v16218_v6 }
 0x233   :  { %v16373_v38 = vadd.f32 %v4950_v50, %v16213_v35 }
 0x234   :  { %v4854_v48 = vadd.f32 %v12895_v4, %v16225_v16 }
 0x238   :  { %v12896_v19 = vpop.f32.mrb[116].mxu1  ;;  %v13526_v30 = vpop.f32.mrb[116].mxu0 }
 0x239   :  { %v16377_v29 = vadd.f32 %v13526_v30, %v16294_v28  ;;  %v12897_v22 = vpop.f32.mrb[117].mxu1  ;;  %v4963_v24 = vpop.f32.mrb[117].mxu0 }
 0x23a   :  { %v12898_v31 = vadd.f32 %v12897_v22, %v12896_v19  ;;  %v16380_v1 = vadd.f32 %v4963_v24, %v16270_v46  ;;  %v12899_v55 = vpop.f32.mrb[118].mxu1  ;;  %v13527_v15 = vpop.f32.mrb[118].mxu0 }
 0x23b   :  { %v16383_v6 = vadd.f32 %v13527_v15, %v16297_v18  ;;  %v12900_v35 = vpop.f32.mrb[119].mxu1  ;;  %v4966_v62 = vpop.f32.mrb[119].mxu0 }
 0x23c   :  { %v12901_v37 = vadd.f32 %v12900_v35, %v12899_v55  ;;  %v16386_v16 = vadd.f32 %v4966_v62, %v16280_v56  ;;  %v4859_v28 = vadd.f32 %v12898_v31, %v16250_v12 }
 0x23e   :  { %v4862_v47 = vadd.f32 %v12901_v37, %v16255_v7 }
 0x241   :  { %v13530_v54 = vpop.f32.mrb[120].mxu0 }
 0x242   :  { %v12902_v25 = vpop.f32.mrb[120].mxu1  ;;  %v16391_v46 = vadd.f32 %v13530_v54, %v16331_v0  ;;  %v4979_v41 = vpop.f32.mrb[121].mxu0 }
 0x243   :  { %v12903_v5 = vpop.f32.mrb[121].mxu1  ;;  %v16394_v18 = vadd.f32 %v4979_v41, %v16319_v8  ;;  %v13531_v49 = vpop.f32.mrb[122].mxu0 }
 0x244   :  { %v12904_v21 = vadd.f32 %v12903_v5, %v12902_v25  ;;  %v12905_v63 = vpop.f32.mrb[122].mxu1  ;;  %v16397_v56 = vadd.f32 %v13531_v49, %v16334_v51  ;;  %v4982_v2 = vpop.f32.mrb[123].mxu0 }
 0x245   :  { %v12906_v12 = vpop.f32.mrb[123].mxu1  ;;  %v16400_v7 = vadd.f32 %v4982_v2, %v16325_v42 }
 0x246   :  { %v12907_v10 = vadd.f32 %v12906_v12, %v12905_v63  ;;  %v4867_v0 = vadd.f32 %v12904_v21, %v16277_v20 }
 0x248   :  { %v4870_v60 = vadd.f32 %v12907_v10, %v16287_v40 }
 0x24a   :  { %v12908_v4 = vpop.f32.mrb[124].mxu1  ;;  %v13534_v50 = vpop.f32.mrb[124].mxu0 }
 0x24b   :  { %v16404_v8 = vadd.f32 %v13534_v50, %v4843_v3  ;;  %v12909_v19 = vpop.f32.mrb[125].mxu1  ;;  %v4995_v30 = vpop.f32.mrb[125].mxu0 }
 0x24c   :  { %v12910_v22 = vadd.f32 %v12909_v19, %v12908_v4  ;;  %v16407_v51 = vadd.f32 %v4995_v30, %v16343_v34  ;;  %v12911_v24 = vpop.f32.mrb[126].mxu1  ;;  %v13535_v31 = vpop.f32.mrb[126].mxu0 }
 0x24d   :  { %v16409_v55 = vadd.f32 %v13535_v31, %v4846_v36  ;;  %v12912_v42 = vpop.f32.mrb[127].mxu1  ;;  %v4998_v15 = vpop.f32.mrb[127].mxu0 }
 0x24e   :  { %v12913_v35 = vadd.f32 %v12912_v42, %v12911_v24  ;;  %v16412_v20 = vadd.f32 %v4998_v15, %v16349_v44  ;;  %v4875_v40 = vadd.f32 %v12910_v22, %v16304_v33 }
 0x250   :  { %v4878_v3 = vadd.f32 %v12913_v35, %v16313_v17 }
 0x253   :  { %v13538_v37 = vpop.f32.mrb[128].mxu0 }
 0x254   :  { %v12914_v62 = vpop.f32.mrb[128].mxu1  ;;  %v16416_v54 = vadd.f32 %v13538_v37, %v4859_v28  ;;  %v5011_v25 = vpop.f32.mrb[129].mxu0 }
 0x255   :  { %v12915_v34 = vpop.f32.mrb[129].mxu1  ;;  %v16418_v5 = vadd.f32 %v5011_v25, %v4851_v14  ;;  %v13539_v49 = vpop.f32.mrb[130].mxu0  ;;  %v13602_v14 = vpack.c.bf16 %v16373_v38, %v16366_v13 }
 0x256   :  { %v12916_v41 = vadd.f32 %v12915_v34, %v12914_v62  ;;  %v12917_v36 = vpop.f32.mrb[130].mxu1  ;;  %v16420_v21 = vadd.f32 %v13539_v49, %v4862_v47  ;;  %v5014_v44 = vpop.f32.mrb[131].mxu0 }
 0x257   :  { %v12918_v63 = vpop.f32.mrb[131].mxu1  ;;  %v16422_v12 = vadd.f32 %v5014_v44, %v4854_v48 }
 0x258   :  { %v12919_v2 = vadd.f32 %v12918_v63, %v12917_v36  ;;  %v4883_v33 = vadd.f32 %v12916_v41, %v16322_v52  ;;  %v13604_v47 = vpack.c.bf16 %v16420_v21, %v16416_v54  ;;  %v13606_v52 = vpack.c.bf16 %v16369_v26, %v16363_v59 }
 0x259   :  { %v13600_v17 = vpack.c.bf16 %v16422_v12, %v16418_v5 }
 0x25a   :  { %v4886_v28 = vadd.f32 %v12919_v2, %v16328_v58 }
 0x25b   :  { %13601 = vmatprep.subr.bf16.mxu1 %v13600_v17 }
 0x25c   :  { %v13542_v4 = vpop.f32.mrb[132].mxu0  ;;  %13603 = vmatpush3.bf16.msra.mxu1 %v13602_v14 }
 0x25d   :  { %v12920_v10 = vpop.f32.mrb[132].mxu1  ;;  %v16432_v50 = vadd.f32 %v13542_v4, %v4875_v40  ;;  %v5027_v19 = vpop.f32.mrb[133].mxu0  ;;  %13605 = vmatprep.subr.bf16.mxu1 %v13604_v47 }
 0x25e   :  { %v12921_v48 = vpop.f32.mrb[133].mxu1  ;;  %v16436_v58 = vadd.f32 %v5027_v19, %v4867_v0  ;;  %v13543_v24 = vpop.f32.mrb[134].mxu0  ;;  %v13610_v0 = vpack.c.bf16 %v16386_v16, %v16380_v1 }
 0x25f   :  { %v12922_v30 = vadd.f32 %v12921_v48, %v12920_v10  ;;  %v12923_v22 = vpop.f32.mrb[134].mxu1  ;;  %v16438_v31 = vadd.f32 %v13543_v24, %v4878_v3  ;;  %v5030_v15 = vpop.f32.mrb[135].mxu0 }
 0x260   :  { %v12924_v42 = vpop.f32.mrb[135].mxu1  ;;  %v16440_v62 = vadd.f32 %v5030_v15, %v4870_v60  ;;  %13607 = vmatpush3.bf16.msra.mxu1 %v13606_v52  ;;  %v13614_v60 = vpack.c.bf16 %v16383_v6, %v16377_v29 }
 0x261   :  { %v12925_v35 = vadd.f32 %v12924_v42, %v12923_v22  ;;  %v4891_v40 = vadd.f32 %v12922_v30, %v16337_v57  ;;  %v13612_v3 = vpack.c.bf16 %v16438_v31, %v16432_v50 }
 0x262   :  { %v13608_v37 = vpack.c.bf16 %v16440_v62, %v16436_v58 }
 0x263   :  { %v4894_v34 = vadd.f32 %v12925_v35, %v16340_v45 }
 0x264   :  { %13609 = vmatprep.subr.bf16.mxu1 %v13608_v37 }
 0x265   :  { %13611 = vmatpush3.bf16.msra.mxu1 %v13610_v0 }
 0x266   :  { %v13546_v25 = vpop.f32.mrb[136].mxu0  ;;  %13613 = vmatprep.subr.bf16.mxu1 %v13612_v3 }
 0x267   :  { %v16452_v57 = vadd.f32 %v13546_v25, %v4891_v40  ;;  %v5043_v36 = vpop.f32.mrb[137].mxu0 }
 0x268   :  { %v12926_v41 = vpop.f32.mrb[136].mxu1  ;;  %v16454_v63 = vadd.f32 %v5043_v36, %v4883_v33  ;;  %v13547_v45 = vpop.f32.mrb[138].mxu0  ;;  %v13618_v33 = vpack.c.bf16 %v16400_v7, %v16394_v18 }
 0x269   :  { %v12927_v49 = vpop.f32.mrb[137].mxu1  ;;  %v16456_v17 = vadd.f32 %v13547_v45, %v4894_v34  ;;  %v5046_v14 = vpop.f32.mrb[139].mxu0  ;;  %13615 = vmatpush3.bf16.msra.mxu1 %v13614_v60  ;;  %v5161_v45 = vmul.f32 %v16422_v12, %v16422_v12 }
 0x26a   :  { %v12928_v44 = vadd.f32 %v12927_v49, %v12926_v41  ;;  %v12929_v2 = vpop.f32.mrb[138].mxu1  ;;  %v16458_v10 = vadd.f32 %v5046_v14, %v4886_v28  ;;  %v13622_v28 = vpack.c.bf16 %v16397_v56, %v16391_v46  ;;  %v13626_v41 = vpack.c.bf16 %v16412_v20, %v16407_v51 }
 0x26b   :  { %v12930_v47 = vpop.f32.mrb[139].mxu1  ;;  %v13620_v30 = vpack.c.bf16 %v16456_v17, %v16452_v57  ;;  %v5145_v14 = vmul.f32 %v16373_v38, %v16373_v38 }
 0x26c   :  { %v12931_v4 = vadd.f32 %v12930_v47, %v12929_v2  ;;  %v4899_v48 = vadd.f32 %v12928_v44, %v16346_v32  ;;  %v13616_v19 = vpack.c.bf16 %v16458_v10, %v16454_v63  ;;  %v13630_v47 = vpack.c.bf16 %v16409_v55, %v16404_v8 }
 0x26e   :  { %v4902_v52 = vadd.f32 %v12931_v4, %v16352_v61  ;;  %13617 = vmatprep.subr.bf16.mxu1 %v13616_v19  ;;  %v5162_v19 = vmul.f32 %v16416_v54, %v16416_v54 }
 0x26f   :  { %13619 = vmatpush3.bf16.msra.mxu1 %v13618_v33  ;;  %v5147_v33 = vmul.f32 %v16369_v26, %v16369_v26 }
 0x270   :  { %13621 = vmatprep.subr.bf16.mxu1 %v13620_v30  ;;  %v5165_v30 = vmul.f32 %v16440_v62, %v16440_v62 }
 0x271   :  { %v13550_v22 = vpop.f32.mrb[140].mxu0 }
 0x272   :  { %v5059_v24 = vpop.f32.mrb[141].mxu0  ;;  %v12932_v32 = vpop.f32.mrb[140].mxu1 }
 0x273   :  { %v16470_v42 = vadd.f32 %v5059_v24, %v4899_v48  ;;  %v13551_v15 = vpop.f32.mrb[142].mxu0  ;;  %v12933_v35 = vpop.f32.mrb[141].mxu1  ;;  %13623 = vmatpush3.bf16.msra.mxu1 %v13622_v28  ;;  %v5144_v48 = vmul.f32 %v16366_v13, %v16366_v13  ;;  %v5146_v28 = vmul.f32 %v16363_v59, %v16363_v59  ;;  %v5164_v24 = vmul.f32 %v16436_v58, %v16436_v58 }
 0x274   :  { %v5062_v40 = vpop.f32.mrb[143].mxu0  ;;  %v12934_v37 = vadd.f32 %v12933_v35, %v12932_v32  ;;  %v12935_v61 = vpop.f32.mrb[142].mxu1  ;;  %v5167_v35 = vmul.f32 %v16438_v31, %v16438_v31 }
 0x275   :  { %v16472_v34 = vadd.f32 %v5062_v40, %v4902_v52  ;;  %v12936_v0 = vpop.f32.mrb[143].mxu1  ;;  %v13634_v52 = vpack.c.bf16 %v5145_v14, %v5144_v48  ;;  %v13638_v32 = vpack.c.bf16 %v5147_v33, %v5146_v28  ;;  %v13640_v40 = vpack.c.bf16 %v5165_v30, %v5164_v24 }
 0x276   :  { %v4907_v3 = vadd.f32 %v12934_v37, %v16356_v11  ;;  %v12937_v25 = vadd.f32 %v12936_v0, %v12935_v61  ;;  %v5160_v11 = vmul.f32 %v16418_v5, %v16418_v5  ;;  %v5148_v37 = vmul.f32 %v16380_v1, %v16380_v1 }
 0x277   :  { %v13624_v60 = vpack.c.bf16 %v16472_v34, %v16470_v42  ;;  %v5166_v61 = vmul.f32 %v16432_v50, %v16432_v50  ;;  %v5151_v0 = vmul.f32 %v16383_v6, %v16383_v6  ;;  %v5172_v30 = vmul.f32 %v16470_v42, %v16470_v42 }
 0x278   :  { %v16479_v36 = vadd.f32 %v13550_v22, %v4907_v3  ;;  %v4910_v49 = vadd.f32 %v12937_v25, %v16360_v43  ;;  %v5163_v43 = vmul.f32 %v16420_v21, %v16420_v21  ;;  %v13632_v4 = vpack.c.bf16 %v5161_v45, %v5160_v11 }
 0x279   :  { %13625 = vmatprep.subr.bf16.mxu1 %v13624_v60  ;;  %v5169_v25 = vmul.f32 %v16458_v10, %v16458_v10  ;;  %v13644_v60 = vpack.c.bf16 %v5167_v35, %v5166_v61  ;;  %v5153_v11 = vmul.f32 %v16400_v7, %v16400_v7  ;;  %v5157_v28 = vmul.f32 %v16412_v20, %v16412_v20 }
 0x27a   :  { %13627 = vmatpush3.bf16.msra.mxu1 %v13626_v41  ;;  %v16484_v44 = vadd.f32 %v13551_v15, %v4910_v49  ;;  %v13636_v22 = vpack.c.bf16 %v5163_v43, %v5162_v19  ;;  %v5149_v15 = vmul.f32 %v16386_v16, %v16386_v16  ;;  %v5150_v41 = vmul.f32 %v16377_v29, %v16377_v29 }
 0x27b   :  { %v5168_v49 = vmul.f32 %v16454_v63, %v16454_v63  ;;  %v5170_v43 = vmul.f32 %v16452_v57, %v16452_v57  ;;  %v5173_v19 = vmul.f32 %v16472_v34, %v16472_v34  ;;  %v5174_v35 = vmul.f32 %v16479_v36, %v16479_v36 }
 0x27c   :  { %v13628_v2 = vpack.c.bf16 %v16484_v44, %v16479_v36  ;;  %v13642_v3 = vpack.c.bf16 %v5149_v15, %v5148_v37  ;;  %v13646_v45 = vpack.c.bf16 %v5151_v0, %v5150_v41  ;;  %v5156_v15 = vmul.f32 %v16407_v51, %v16407_v51  ;;  %v13811_v41 = vld [vmem:[#allocation7 + $0xc8] sm:$0xff]  }
 0x27d   :  { %v13648_v14 = vpack.c.bf16 %v5169_v25, %v5168_v49  ;;  %v13656_v24 = vpack.c.bf16 %v5173_v19, %v5172_v30  ;;  %v5158_v0 = vmul.f32 %v16404_v8, %v16404_v8  ;;  %v13809_v25 = vld [vmem:[#allocation7 + $0xc0] sm:$0xff]   ;;  %v13812_v49 = vld [vmem:[#allocation7 + $0x88] sm:$0xff]   ;;  %v13819_v19 = vld [vmem:[#allocation7 + $0xd8] sm:$0xff]  }
 0x27e   :  { %13629 = vmatprep.subr.bf16.mxu1 %v13628_v2  ;;  %v5171_v2 = vmul.f32 %v16456_v17, %v16456_v17  ;;  %v13658_v37 = vpack.c.bf16 %v5157_v28, %v5156_v15  ;;  %v13821_v30 = vld [vmem:[#allocation7 + $0x50] sm:$0xff]   ;;  %v13823_v28 = vld [vmem:[#allocation7 + $0xe0] sm:$0xff]  }
 0x27f   :  { %13631 = vmatpush3.bf16.msra.mxu1 %v13630_v47  ;;  %v5152_v47 = vmul.f32 %v16394_v18, %v16394_v18 }
 0x280   :  { %13633 = vmatprep.subr.bf16.mxu1 %v13632_v4  ;;  %v5155_v4 = vmul.f32 %v16397_v56, %v16397_v56  ;;  %v13652_v33 = vpack.c.bf16 %v5171_v2, %v5170_v43  ;;  %v13815_v43 = vld [vmem:[#allocation7 + $0xd0] sm:$0xff]  }
 0x281   :  { %v13650_v48 = vpack.c.bf16 %v5153_v11, %v5152_v47  ;;  %v13814_v47 = vld [vmem:[#allocation7] sm:$0xff]  }
 0x282   :  { %5139 = vmatmul.mubr.f32.vlgmr.msra.gmra.mrb[144].mxu1 %v14008_v27 }
 0x283   :  { %13635 = vmatpush3.bf16.msra.mxu1 %v13634_v52  ;;  %5240 = vmatprep.mubr.f32.mxu1 %v14008_v27  ;;  %v5154_v52 = vmul.f32 %v16391_v46, %v16391_v46 }
 0x284   :  { %13637 = vmatprep.subr.bf16.mxu1 %v13636_v22 }
 0x285   :  { %v13654_v22 = vpack.c.bf16 %v5155_v4, %v5154_v52  ;;  %v13816_v4 = vld [vmem:[#allocation7 + $0x90] sm:$0xff]   ;;  %v13820_v52 = vld [vmem:[#allocation7 + $0x98] sm:$0xff]  }
 0x287   :  { %13639 = vmatpush3.bf16.msra.mxu1 %v13638_v32  ;;  %v5175_v32 = vmul.f32 %v16484_v44, %v16484_v44 }
 0x288   :  { %13641 = vmatprep.subr.bf16.mxu1 %v13640_v40  ;;  %v5159_v40 = vmul.f32 %v16409_v55, %v16409_v55 }
 0x289   :  { %v13660_v61 = vpack.c.bf16 %v5175_v32, %v5174_v35  ;;  %v13825_v32 = vld [vmem:[#allocation7 + $0x58] sm:$0xff]  }
 0x28b   :  { %13643 = vmatpush3.bf16.msra.mxu1 %v13642_v3  ;;  %v13662_v3 = vpack.c.bf16 %v5159_v40, %v5158_v0  ;;  %v13826_v40 = vld [vmem:[#allocation7 + $0x18] sm:$0xff]  }
 0x28c   :  { %13645 = vmatprep.subr.bf16.mxu1 %v13644_v60  ;;  %v13810_v60 = vld [vmem:[#allocation7 + $0x80] sm:$0xff]  }
 0x28f   :  { %13647 = vmatpush3.bf16.msra.mxu1 %v13646_v45 }
 0x290   :  { %13649 = vmatprep.subr.bf16.mxu1 %v13648_v14  ;;  %v13813_v14 = vld [vmem:[#allocation7 + $0x40] sm:$0xff]  }
 0x291   :  { %13032 = vmatprep.subr.bf16.mxu0 %v13813_v14  ;;  %v13834_v14 = vld [vmem:[#allocation7 + $0x28] sm:$0xff]  }
 0x292   :  { %13033 = vmatpush3.bf16.msra.mxu0 %v13814_v47  ;;  %v13836_v47 = vld [vmem:[#allocation7 + $0xb8] sm:$0xff]  }
 0x293   :  { %13651 = vmatpush3.bf16.msra.mxu1 %v13650_v48  ;;  %v13818_v48 = vld [vmem:[#allocation7 + $0x8] sm:$0xff]  }
 0x294   :  { %13653 = vmatprep.subr.bf16.mxu1 %v13652_v33  ;;  %v14009_v33 = vmov 0  }
 0x295   :  { %56 = vst [vmem:[#allocation3] sm:$0xf] %v14009_v33  ;;  %57 = vst [vmem:[#allocation3 + $0x4] sm:$0x1] %v14009_v33 }
 0x296   :  { %58 = vst [vmem:[#allocation3 + $0x50] sm:$0xf] %v14009_v33  ;;  %59 = vst [vmem:[#allocation3 + $0x54] sm:$0x1] %v14009_v33 }
 0x297   :  { %13655 = vmatpush3.bf16.msra.mxu1 %v13654_v22  ;;  %60 = vst [vmem:[#allocation3 + $0xa0] sm:$0xf] %v14009_v33  ;;  %61 = vst [vmem:[#allocation3 + $0xa4] sm:$0x1] %v14009_v33  ;;  %v13822_v22 = vld [vmem:[#allocation7 + $0x10] sm:$0xff]  }
 0x298   :  { %13657 = vmatprep.subr.bf16.mxu1 %v13656_v24  ;;  %62 = vst [vmem:[#allocation3 + $0xf0] sm:$0xf] %v14009_v33  ;;  %63 = vst [vmem:[#allocation3 + $0xf4] sm:$0x1] %v14009_v33  ;;  %v13824_v24 = vld [vmem:[#allocation7 + $0xa0] sm:$0xff]  }
 0x299   :  { %65 = vst [vmem:[#allocation3 + $0x48] sm:$0xf] %v14009_v33  ;;  %66 = vst [vmem:[#allocation3 + $0x4c] sm:$0x1] %v14009_v33 }
 0x29a   :  { %67 = vst [vmem:[#allocation3 + $0x98] sm:$0xf] %v14009_v33  ;;  %68 = vst [vmem:[#allocation3 + $0x9c] sm:$0x1] %v14009_v33 }
 0x29b   :  { %13659 = vmatpush3.bf16.msra.mxu1 %v13658_v37  ;;  %69 = vst [vmem:[#allocation3 + $0xe8] sm:$0xf] %v14009_v33  ;;  %70 = vst [vmem:[#allocation3 + $0xec] sm:$0x1] %v14009_v33  ;;  %v13827_v37 = vld [vmem:[#allocation7 + $0xe8] sm:$0xff]  }
 0x29c   :  { %13661 = vmatprep.subr.bf16.mxu1 %v13660_v61  ;;  %71 = vst [vmem:[#allocation3 + $0x138] sm:$0xf] %v14009_v33  ;;  %72 = vst [vmem:[#allocation3 + $0x13c] sm:$0x1] %v14009_v33  ;;  %v198_v15 = vld [vmem:[#allocation3 + $0x4] sm:$0x1] }
 0x29d   :  { %v76_v35 = vld [vmem:[#allocation3] sm:$0x1]  ;;  %v199_v61 = vsel %vm16067_vm10, 0, %v198_v15  ;;  %v228_v33 = vld [vmem:[#allocation3 + $0x54] sm:$0x1] }
 0x29e   :  { %v77_v0 = vsel %vm16056_vm8, 0, %v76_v35  ;;  %200 = vst [vmem:[#allocation3 + $0x4] sm:$0x1] %v199_v61 }
 0x29f   :  { %13663 = vmatpush3.bf16.msra.mxu1 %v13662_v3  ;;  %v13828_v3 = vld [vmem:[#allocation7 + $0xa8] sm:$0xff]   ;;  %78 = vst [vmem:[#allocation3] sm:$0x1] %v77_v0 }
 0x2a0   :  { %13144 = vmatprep.subr.bf16.mxu1 %v13809_v25  ;;  %v13829_v25 = vld [vmem:[#allocation7 + $0x60] sm:$0xff]  }
 0x2a2   :  { %5241 = vmatmul.mubr.f32.vlgmr.msra.gmra.mrb[146].mxu1 %v14008_v27  ;;  %v13817_v27 = vld [vmem:[#allocation7 + $0x48] sm:$0xff]  }
 0x2a3   :  { %13145 = vmatpush3.bf16.msra.mxu1 %v13810_v60  ;;  %13034 = vmatprep.subr.bf16.mxu0 %v13817_v27  ;;  %v13830_v60 = vld [vmem:[#allocation7 + $0x20] sm:$0xff]   ;;  %v13841_v27 = vld [vmem:[#allocation7 + $0x78] sm:$0xff]  }
 0x2a4   :  { %13146 = vmatprep.subr.bf16.mxu1 %v13811_v41  ;;  %13035 = vmatpush3.bf16.msra.mxu0 %v13818_v48  ;;  %v13831_v41 = vld [vmem:[#allocation7 + $0xf0] sm:$0xff]  }
 0x2a5   :  { %13036 = vmatprep.subr.bf16.mxu0 %v13821_v30  ;;  %v106_v48 = vld [vmem:[#allocation3 + $0x50] sm:$0x1] }
 0x2a7   :  { %13147 = vmatpush3.bf16.msra.mxu1 %v13812_v49  ;;  %v13832_v49 = vld [vmem:[#allocation7 + $0xb0] sm:$0xff]  }
 0x2a8   :  { %13148 = vmatprep.subr.bf16.mxu1 %v13815_v43  ;;  %13037 = vmatpush3.bf16.msra.mxu0 %v13822_v22  ;;  %v13838_v43 = vld [vmem:[#allocation7 + $0x70] sm:$0xff]   ;;  %v229_v22 = vsel %vm16067_vm10, 0, %v228_v33 }
 0x2a9   :  { %13038 = vmatprep.subr.bf16.mxu0 %v13825_v32  ;;  %230 = vst [vmem:[#allocation3 + $0x54] sm:$0x1] %v229_v22 }
 0x2ab   :  { %13149 = vmatpush3.bf16.msra.mxu1 %v13816_v4  ;;  %v13839_v4 = vld [vmem:[#allocation7 + $0x30] sm:$0xff]  }
 0x2ac   :  { %13150 = vmatprep.subr.bf16.mxu1 %v13819_v19  ;;  %13039 = vmatpush3.bf16.msra.mxu0 %v13826_v40  ;;  %v107_v19 = vsel %vm16056_vm8, 0, %v106_v48  ;;  %v6714_v48 = vld [vmem:[#allocation3 + $0x4] sm:$0x1] }
 0x2ad   :  { %13040 = vmatprep.subr.bf16.mxu0 %v13829_v25  ;;  %108 = vst [vmem:[#allocation3 + $0x50] sm:$0x1] %v107_v19 }
 0x2af   :  { %13151 = vmatpush3.bf16.msra.mxu1 %v13820_v52 }
 0x2b0   :  { %13152 = vmatprep.subr.bf16.mxu1 %v13823_v28  ;;  %13041 = vmatpush3.bf16.msra.mxu0 %v13830_v60  ;;  %v5259_v60 = vlaneseq }
 0x2b3   :  { %13153 = vmatpush3.bf16.msra.mxu1 %v13824_v24  ;;  %v13842_v24 = vld [vmem:[#allocation7 + $0x38] sm:$0xff]  }
 0x2b4   :  { %13154 = vmatprep.subr.bf16.mxu1 %v13827_v37  ;;  %v6121_v37 = vld [vmem:[#allocation3] sm:$0xf]  ;;  %v6137_v25 = vld [vmem:[#allocation3 + $0x50] sm:$0xf] }
 0x2b5   :  { %v6186_v0 = vshrl.u32 %v6121_v37, 16 }
 0x2b7   :  { %13155 = vmatpush3.bf16.msra.mxu1 %v13828_v3  ;;  %v6189_v3 = vshll.u32 %v6121_v37, 16 }
 0x2b8   :  { %13156 = vmatprep.subr.bf16.mxu1 %v13831_v41  ;;  %v6188_v41 = vrot.slane %v6186_v0, 4  ;;  %v16575_v0 = vld [vmem:[#allocation3 + $0x50] sm:$0xe] }
 0x2b9   :  { %19219 = vst [vmem:[#allocation19_spill] sm:$0xff] %v16575_v0 }
 0x2bb   :  { %13157 = vmatpush3.bf16.msra.mxu1 %v13832_v49  ;;  %v6191_v49 = vrot.slane %v6189_v3, 5  ;;  %v16577_v3 = vld [vmem:[#allocation3 + $0x54] sm:$0x1] }
 0x2bc   :  { %19220 = vst [vmem:[#allocation20_spill] sm:$0xff] %v16577_v3 }
 0x355   :  { %v12994_v45 = vpop.f32.mrb[144].mxu1 }
 0x356   :  { %v12995_v11 = vpop.f32.mrb[145].mxu1 }
 0x357   :  { %v16555_v2 = vadd.f32 %v12995_v11, %v12994_v45  ;;  %v13833_v45 = vld [vmem:[#allocation7 + $0x68] sm:$0xff]   ;;  %v13835_v11 = vld [vmem:[#allocation7 + $0xf8] sm:$0xff]  }
 0x358   :  { %13042 = vmatprep.subr.bf16.mxu0 %v13833_v45  ;;  %13158 = vmatprep.subr.bf16.mxu1 %v13835_v11  ;;  %v6122_v45 = vld [vmem:[#allocation3 + $0x4] sm:$0x1]  ;;  %v6298_v11 = vshrl.u32 %v6137_v25, 16 }
 0x359   :  { %13043 = vmatpush3.bf16.msra.mxu0 %v13834_v14  ;;  %13159 = vmatpush3.bf16.msra.mxu1 %v13836_v47  ;;  %v5246_v52 = vmul.f32 0.00390625, %v16555_v2  ;;  %v6301_v14 = vshll.u32 %v6137_v25, 16  ;;  %v5260_v47 = vshrl.u32 %v5259_v60, 7 }
 0x35a   :  { %13044 = vmatprep.subr.bf16.mxu0 %v13838_v43  ;;  %v6192_v43 = vor.u32 %v6191_v49, %v6188_v41  ;;  %v6300_v19 = vrot.slane %v6298_v11, 4 }
 0x35b   :  { %v5248_v15 = vmul.f32 %v5246_v52, %v5246_v52  ;;  %v6303_v33 = vrot.slane %v6301_v14, 5  ;;  %v5261_v22 = vsub.s32 0, %v5260_v47 }
 0x35d   :  { %13045 = vmatpush3.bf16.msra.mxu0 %v13839_v4  ;;  %v6195_v4 = vshll.u32 %v6122_v45, 16 }
 0x35e   :  { %13046 = vmatprep.subr.bf16.mxu0 %v13841_v27  ;;  %v6713_v27 = vld [vmem:[#allocation3] sm:$0xe] }
 0x361   :  { %13047 = vmatpush3.bf16.msra.mxu0 %v13842_v24  ;;  %v6843_v24 = vrot.slane %v6714_v48, 5 }
 0x375   :  { %v13029_v30 = vpop.f32.mrb[146].mxu1 }
 0x376   :  { %v13030_v28 = vpop.f32.mrb[147].mxu1 }
 0x377   :  { %v13031_v32 = vadd.f32 %v13030_v28, %v13029_v30  ;;  %v5251_v30 = vld [vmem:[%s19173_s3] sm:$0x1]  ;;  %v12113_v28 = vrot.slane %v6713_v27, 9 }
 0x379   :  { %v5247_v35 = vmul.f32 0.00390625, %v13031_v32  ;;  %v16569_v32 = vrot.slane %v6192_v43, 4  ;;  %v16584_v41 = vsel %vm14264_vm5, %v12113_v28, %v6843_v24 }
 0x37a   :  { %19221 = vst [vmem:[#allocation21_spill] sm:$0xff] %v16584_v41 }
 0x37b   :  { %v5249_v40 = vsub.f32 %v5247_v35, %v5248_v15  ;;  %19216 = vst [vmem:[#allocation16_spill] sm:$0xff] %v16569_v32  ;;  %v16571_v15 = vrot.slane %v6195_v4, 5 }
 0x37d   :  { %v5250_v61 = vmax.f32 %v5249_v40, 0.0  ;;  %19217 = vst [vmem:[#allocation17_spill] sm:$0xff] %v16571_v15  ;;  %v6304_v40 = vor.u32 %v6303_v33, %v6300_v19 }
 0x37f   :  { %v5252_v2 = vadd.f32 1e-05, %v5250_v61  ;;  %v16573_v61 = vld [vmem:[#allocation3 + $0x54] sm:$0x1]  ;;  %v16590_v45 = vrot.slane %v6304_v40, 4 }
 0x380   :  { %19218 = vst [vmem:[#allocation18_spill] sm:$0xff] %v16573_v61 }
 0x381   :  { %13929 = vrsqrt.f32 %v5252_v2  ;;  %v5255_v2 = vld [vmem:[%s19174_s4] sm:$0x1]  ;;  %19222 = vst [vmem:[#allocation22_spill] sm:$0xff] %v16590_v45 }
 0x38b   :  { %v13930_v35 = vpop.eup %13929 }
 0x38c   :  { %v5254_v37 = vmul.f32 %v13930_v35, %v5251_v30 }
 0x38e   :  { %v5256_v25 = vmul.f32 %v5254_v37, %v5246_v52  ;;  %v5262_v60 = vrot.slane %v5254_v37, %v5261_v22 }
 0x390   :  { %v5257_v43 = vsub.f32 %v5255_v2, %v5256_v25  ;;  %v5264_v52 = vmul.f32 %v5262_v60, %v16366_v13  ;;  %v5265_v4 = vmul.f32 %v5262_v60, %v16373_v38  ;;  %v5266_v27 = vmul.f32 %v5262_v60, %v16363_v59 }
 0x391   :  { %v5267_v48 = vmul.f32 %v5262_v60, %v16369_v26  ;;  %v5268_v19 = vmul.f32 %v5262_v60, %v16380_v1  ;;  %v5269_v33 = vmul.f32 %v5262_v60, %v16386_v16  ;;  %v5270_v30 = vmul.f32 %v5262_v60, %v16377_v29 }
 0x392   :  { %v5300_v28 = vrot.slane %v5257_v43, %v5261_v22  ;;  %v5271_v24 = vmul.f32 %v5262_v60, %v16383_v6  ;;  %v5272_v35 = vmul.f32 %v5262_v60, %v16394_v18  ;;  %v5273_v40 = vmul.f32 %v5262_v60, %v16400_v7 }
 0x393   :  { %v5274_v13 = vmul.f32 %v5262_v60, %v16391_v46  ;;  %v5275_v38 = vmul.f32 %v5262_v60, %v16397_v56  ;;  %v5276_v59 = vmul.f32 %v5262_v60, %v16407_v51  ;;  %v5277_v26 = vmul.f32 %v5262_v60, %v16412_v20 }
 0x394   :  { %v5278_v1 = vmul.f32 %v5262_v60, %v16404_v8  ;;  %v5279_v16 = vmul.f32 %v5262_v60, %v16409_v55  ;;  %v5280_v29 = vmul.f32 %v5262_v60, %v16418_v5  ;;  %v5281_v6 = vmul.f32 %v5262_v60, %v16422_v12 }
 0x395   :  { %v5282_v18 = vmul.f32 %v5262_v60, %v16416_v54  ;;  %v5283_v7 = vmul.f32 %v5262_v60, %v16420_v21  ;;  %v5284_v46 = vmul.f32 %v5262_v60, %v16436_v58  ;;  %v5285_v56 = vmul.f32 %v5262_v60, %v16440_v62 }
 0x396   :  { %v5286_v51 = vmul.f32 %v5262_v60, %v16432_v50  ;;  %v5287_v20 = vmul.f32 %v5262_v60, %v16438_v31  ;;  %v5288_v8 = vmul.f32 %v5262_v60, %v16454_v63  ;;  %v5289_v55 = vmul.f32 %v5262_v60, %v16458_v10 }
 0x397   :  { %v5290_v5 = vmul.f32 %v5262_v60, %v16452_v57  ;;  %v5291_v12 = vmul.f32 %v5262_v60, %v16456_v17  ;;  %v5292_v54 = vmul.f32 %v5262_v60, %v16470_v42  ;;  %v5293_v21 = vmul.f32 %v5262_v60, %v16472_v34 }
 0x398   :  { %v5294_v58 = vmul.f32 %v5262_v60, %v16479_v36  ;;  %v5295_v62 = vmul.f32 %v5262_v60, %v16484_v44  ;;  %v16627_v22 = vadd.f32 %v5300_v28, %v5264_v52  ;;  %v16629_v50 = vadd.f32 %v5300_v28, %v5265_v4 }
 0x399   :  { %v16631_v31 = vadd.f32 %v5300_v28, %v5266_v27  ;;  %v16633_v63 = vadd.f32 %v5300_v28, %v5267_v48  ;;  %v16635_v10 = vadd.f32 %v5300_v28, %v5268_v19  ;;  %v16637_v57 = vadd.f32 %v5300_v28, %v5269_v33 }
 0x39a   :  { %v16639_v17 = vadd.f32 %v5300_v28, %v5270_v30  ;;  %v16641_v42 = vadd.f32 %v5300_v28, %v5271_v24  ;;  %v16643_v34 = vadd.f32 %v5300_v28, %v5272_v35  ;;  %v16645_v36 = vadd.f32 %v5300_v28, %v5273_v40 }
 0x39b   :  { %v16647_v44 = vadd.f32 %v5300_v28, %v5274_v13  ;;  %v16649_v37 = vadd.f32 %v5300_v28, %v5275_v38  ;;  %v16651_v2 = vadd.f32 %v5300_v28, %v5276_v59  ;;  %v16653_v25 = vadd.f32 %v5300_v28, %v5277_v26 }
 0x39c   :  { %v16655_v60 = vadd.f32 %v5300_v28, %v5278_v1  ;;  %v16657_v43 = vadd.f32 %v5300_v28, %v5279_v16  ;;  %v16659_v52 = vadd.f32 %v5300_v28, %v5280_v29  ;;  %v16661_v4 = vadd.f32 %v5300_v28, %v5281_v6 }
 0x39d   :  { %v16663_v27 = vadd.f32 %v5300_v28, %v5282_v18  ;;  %v16665_v48 = vadd.f32 %v5300_v28, %v5283_v7  ;;  %v16667_v19 = vadd.f32 %v5300_v28, %v5284_v46  ;;  %v16669_v33 = vadd.f32 %v5300_v28, %v5285_v56 }
 0x39e   :  { %v16671_v30 = vadd.f32 %v5300_v28, %v5286_v51  ;;  %v16673_v24 = vadd.f32 %v5300_v28, %v5287_v20  ;;  %v16675_v35 = vadd.f32 %v5300_v28, %v5288_v8  ;;  %v16677_v40 = vadd.f32 %v5300_v28, %v5289_v55 }
 0x39f   :  { %v16679_v13 = vadd.f32 %v5300_v28, %v5290_v5  ;;  %v16681_v38 = vadd.f32 %v5300_v28, %v5291_v12  ;;  %v16683_v59 = vadd.f32 %v5300_v28, %v5292_v54  ;;  %v16685_v26 = vadd.f32 %v5300_v28, %v5293_v21 }
 0x3a0   :  { %v16687_v1 = vadd.f32 %v5300_v28, %v5294_v58  ;;  %v16689_v16 = vadd.f32 %v5300_v28, %v5295_v62  ;;  %v5334_v29 = vmax.f32 %v16627_v22, 0.0  ;;  %v5335_v6 = vmax.f32 %v16629_v50, 0.0 }
 0x3a1   :  { %v5336_v18 = vmax.f32 %v16631_v31, 0.0  ;;  %v5337_v7 = vmax.f32 %v16633_v63, 0.0  ;;  %v5338_v46 = vmax.f32 %v16635_v10, 0.0  ;;  %v5339_v56 = vmax.f32 %v16637_v57, 0.0 }
 0x3a2   :  { %v5340_v51 = vmax.f32 %v16639_v17, 0.0  ;;  %v5341_v20 = vmax.f32 %v16641_v42, 0.0  ;;  %v5342_v8 = vmax.f32 %v16643_v34, 0.0  ;;  %v5343_v28 = vmax.f32 %v16645_v36, 0.0 }
 0x3a3   :  { %v5344_v55 = vmax.f32 %v16647_v44, 0.0  ;;  %v5345_v5 = vmax.f32 %v16649_v37, 0.0  ;;  %v5346_v12 = vmax.f32 %v16651_v2, 0.0  ;;  %v5347_v54 = vmax.f32 %v16653_v25, 0.0 }
 0x3a4   :  { %v5348_v21 = vmax.f32 %v16655_v60, 0.0  ;;  %v5349_v58 = vmax.f32 %v16657_v43, 0.0  ;;  %v5350_v62 = vmax.f32 %v16659_v52, 0.0  ;;  %v5351_v22 = vmax.f32 %v16661_v4, 0.0 }
 0x3a5   :  { %v5352_v50 = vmax.f32 %v16663_v27, 0.0  ;;  %v5353_v31 = vmax.f32 %v16665_v48, 0.0  ;;  %v5354_v63 = vmax.f32 %v16667_v19, 0.0  ;;  %v5355_v10 = vmax.f32 %v16669_v33, 0.0 }
 0x3a6   :  { %v5356_v57 = vmax.f32 %v16671_v30, 0.0  ;;  %v5357_v17 = vmax.f32 %v16673_v24, 0.0  ;;  %v5358_v42 = vmax.f32 %v16675_v35, 0.0  ;;  %v5359_v34 = vmax.f32 %v16677_v40, 0.0 }
 0x3a7   :  { %v5360_v36 = vmax.f32 %v16679_v13, 0.0  ;;  %v5361_v44 = vmax.f32 %v16681_v38, 0.0  ;;  %v5362_v37 = vmax.f32 %v16683_v59, 0.0  ;;  %v5363_v2 = vmax.f32 %v16685_v26, 0.0 }
 0x3a8   :  { %v5364_v25 = vmax.f32 %v16687_v1, 0.0  ;;  %v5365_v60 = vmax.f32 %v16689_v16, 0.0  ;;  %v16723_v43 = vpack.c.bf16 %v5334_v29, %v5334_v29  ;;  %v16725_v52 = vpack.c.bf16 %v5335_v6, %v5335_v6 }
 0x3a9   :  { %v16727_v4 = vpack.c.bf16 %v5336_v18, %v5336_v18  ;;  %v16729_v27 = vpack.c.bf16 %v5337_v7, %v5337_v7  ;;  %v16731_v48 = vpack.c.bf16 %v5338_v46, %v5338_v46  ;;  %v16733_v19 = vpack.c.bf16 %v5339_v56, %v5339_v56 }
 0x3aa   :  { %v16735_v33 = vpack.c.bf16 %v5340_v51, %v5340_v51  ;;  %v16737_v30 = vpack.c.bf16 %v5341_v20, %v5341_v20  ;;  %v16739_v24 = vpack.c.bf16 %v5342_v8, %v5342_v8  ;;  %v16741_v35 = vpack.c.bf16 %v5343_v28, %v5343_v28 }
 0x3ab   :  { %v16743_v40 = vpack.c.bf16 %v5344_v55, %v5344_v55  ;;  %v16745_v13 = vpack.c.bf16 %v5345_v5, %v5345_v5  ;;  %v16747_v38 = vpack.c.bf16 %v5346_v12, %v5346_v12  ;;  %v16749_v59 = vpack.c.bf16 %v5347_v54, %v5347_v54 }
 0x3ac   :  { %v16751_v26 = vpack.c.bf16 %v5348_v21, %v5348_v21  ;;  %v16753_v1 = vpack.c.bf16 %v5349_v58, %v5349_v58  ;;  %v16755_v16 = vpack.c.bf16 %v5350_v62, %v5350_v62  ;;  %v16757_v29 = vpack.c.bf16 %v5351_v22, %v5351_v22 }
 0x3ad   :  { %v16759_v6 = vpack.c.bf16 %v5352_v50, %v5352_v50  ;;  %v16761_v18 = vpack.c.bf16 %v5353_v31, %v5353_v31  ;;  %v16763_v7 = vpack.c.bf16 %v5354_v63, %v5354_v63  ;;  %v16765_v46 = vpack.c.bf16 %v5355_v10, %v5355_v10 }
 0x3ae   :  { %v16767_v56 = vpack.c.bf16 %v5356_v57, %v5356_v57  ;;  %v16769_v51 = vpack.c.bf16 %v5357_v17, %v5357_v17  ;;  %v16771_v20 = vpack.c.bf16 %v5358_v42, %v5358_v42  ;;  %v16773_v8 = vpack.c.bf16 %v5359_v34, %v5359_v34 }
 0x3af   :  { %v16775_v28 = vpack.c.bf16 %v5360_v36, %v5360_v36  ;;  %v16777_v55 = vpack.c.bf16 %v5361_v44, %v5361_v44  ;;  %v16779_v5 = vpack.c.bf16 %v5362_v37, %v5362_v37  ;;  %v16781_v12 = vpack.c.bf16 %v5363_v2, %v5363_v2 }
 0x3b0   :  { %v16783_v54 = vpack.c.bf16 %v5364_v25, %v5364_v25  ;;  %v16785_v21 = vpack.c.bf16 %v5365_v60, %v5365_v60  ;;  %v5463_v58 = vshrl.u32 %v16723_v43, 16  ;;  %v5466_v62 = vshll.u32 %v16723_v43, 16 }
 0x3b1   :  { %v5471_v22 = vshrl.u32 %v16725_v52, 16  ;;  %v5474_v50 = vshll.u32 %v16725_v52, 16  ;;  %v5479_v31 = vshrl.u32 %v16727_v4, 16  ;;  %v5482_v63 = vshll.u32 %v16727_v4, 16 }
 0x3b2   :  { %v5487_v10 = vshrl.u32 %v16729_v27, 16  ;;  %v5490_v57 = vshll.u32 %v16729_v27, 16  ;;  %v5495_v17 = vshrl.u32 %v16731_v48, 16  ;;  %v5503_v34 = vshrl.u32 %v16733_v19, 16 }
 0x3b3   :  { %v5567_v60 = vshrl.u32 %v16749_v59, 16  ;;  %v16853_v2 = vrot.slane %v5463_v58, 7  ;;  %v16855_v25 = vrot.slane %v5471_v22, 7  ;;  %v16857_v42 = vrot.slane %v5479_v31, 7 }
 0x3b4   :  { %v16859_v14 = vrot.slane %v5487_v10, 7  ;;  %v16861_v47 = vrot.slane %v5495_v17, 7  ;;  %v16863_v11 = vrot.slane %v5503_v34, 7  ;;  %v19223_v52 = vshll.u32 %v16731_v48, 16 }
 0x3b5   :  { %v16868_v36 = vor.u32 %v5466_v62, %v16853_v2  ;;  %v16874_v58 = vor.u32 %v5474_v50, %v16855_v25  ;;  %v16880_v31 = vor.u32 %v5482_v63, %v16857_v42  ;;  %v19224_v4 = vshll.u32 %v16733_v19, 16 }
 0x3b6   :  { %v16886_v43 = vor.u32 %v5490_v57, %v16859_v14  ;;  %v16892_v50 = vor.u32 %v19223_v52, %v16861_v47  ;;  %v19225_v27 = vshrl.u32 %v16735_v33, 16  ;;  %v19226_v62 = vshrl.u32 %v16737_v30, 16 }
 0x3b7   :  { %v16898_v63 = vor.u32 %v19224_v4, %v16863_v11  ;;  %v19227_v48 = vshrl.u32 %v16739_v24, 16  ;;  %v19228_v17 = vshrl.u32 %v16741_v35, 16  ;;  %v19229_v19 = vshrl.u32 %v16743_v40, 16 }
 0x3b8   :  { %v16903_v57 = vrot.slane %v19225_v27, 7  ;;  %v16907_v10 = vrot.slane %v19226_v62, 7  ;;  %v19230_v34 = vshrl.u32 %v16745_v13, 16  ;;  %v19231_v37 = vshrl.u32 %v16747_v38, 16 }
 0x3b9   :  { %v16911_v52 = vrot.slane %v19227_v48, 7  ;;  %v16915_v22 = vrot.slane %v19228_v17, 7  ;;  %v16919_v4 = vrot.slane %v19229_v19, 7  ;;  %v16929_v44 = vrot.slane %v5567_v60, 7 }
 0x3ba   :  { %v16923_v27 = vrot.slane %v19230_v34, 7  ;;  %v16927_v62 = vrot.slane %v19231_v37, 7  ;;  %v19232_v48 = vshll.u32 %v16735_v33, 16  ;;  %v19233_v19 = vshll.u32 %v16737_v30, 16 }
 0x3bb   :  { %v19234_v37 = vshll.u32 %v16739_v24, 16  ;;  %v19235_v33 = vshll.u32 %v16741_v35, 16  ;;  %v19236_v30 = vshll.u32 %v16743_v40, 16  ;;  %v19237_v24 = vshll.u32 %v16745_v13, 16 }
 0x3bc   :  { %v16934_v49 = vor.u32 %v19232_v48, %v16903_v57  ;;  %v16940_v53 = vor.u32 %v19233_v19, %v16907_v10  ;;  %v19238_v35 = vshll.u32 %v16747_v38, 16  ;;  %v19239_v40 = vshll.u32 %v16749_v59, 16 }
 0x3bd   :  { %v16946_v45 = vor.u32 %v19234_v37, %v16911_v52  ;;  %v16952_v48 = vor.u32 %v19235_v33, %v16915_v22  ;;  %v16958_v19 = vor.u32 %v19236_v30, %v16919_v4  ;;  %v16964_v37 = vor.u32 %v19237_v24, %v16923_v27 }
 0x3be   :  { %v16970_v33 = vor.u32 %v19238_v35, %v16927_v62  ;;  %v16976_v30 = vor.u32 %v19239_v40, %v16929_v44  ;;  %v19240_v13 = vshrl.u32 %v16751_v26, 16  ;;  %v19242_v60 = vshrl.u32 %v16753_v1, 16 }
 0x3bf   :  { %v19243_v38 = vshrl.u32 %v16755_v16, 16  ;;  %v19245_v17 = vshrl.u32 %v16757_v29, 16  ;;  %v19247_v59 = vshrl.u32 %v16759_v6, 16  ;;  %v19249_v34 = vshrl.u32 %v16761_v18, 16 }
 0x3c0   :  { %v16981_v24 = vrot.slane %v19240_v13, 7  ;;  %v16985_v0 = vrot.slane %v19242_v60, 7  ;;  %v19251_v61 = vshrl.u32 %v16763_v7, 16  ;;  %v19253_v15 = vshrl.u32 %v16765_v46, 16 }
 0x3c1   :  { %v16989_v35 = vrot.slane %v19243_v38, 7  ;;  %v16993_v3 = vrot.slane %v19245_v17, 7  ;;  %v16997_v40 = vrot.slane %v19247_v59, 7  ;;  %v17001_v13 = vrot.slane %v19249_v34, 7 }
 0x3c2   :  { %19241 = vst [vmem:[#allocation23_spill] sm:$0xff] %v16981_v24  ;;  %v17005_v60 = vrot.slane %v19251_v61, 7  ;;  %v17009_v38 = vrot.slane %v19253_v15, 7  ;;  %v19255_v17 = vshll.u32 %v16751_v26, 16  ;;  %v19256_v39 = vshll.u32 %v16753_v1, 16 }
 0x3c3   :  { %19244 = vst [vmem:[#allocation24_spill] sm:$0xff] %v16989_v35  ;;  %19246 = vst [vmem:[#allocation25_spill] sm:$0xff] %v16993_v3  ;;  %v19257_v61 = vshll.u32 %v16755_v16, 16  ;;  %v19258_v26 = vshll.u32 %v16757_v29, 16  ;;  %v19262_v16 = vshll.u32 %v16761_v18, 16  ;;  %v13871_v29 = vld [vmem:[#allocation7 + $0x140] sm:$0xff]  }
 0x3c4   :  { %19248 = vst [vmem:[#allocation26_spill] sm:$0xff] %v16997_v40  ;;  %19250 = vst [vmem:[#allocation27_spill] sm:$0xff] %v17001_v13  ;;  %v17014_v32 = vor.u32 %v19255_v17, %v16981_v24  ;;  %v17020_v34 = vor.u32 %v19256_v39, %v16985_v0  ;;  %v13866_v24 = vld [vmem:[#allocation7 + $0x1c0] sm:$0xff]   ;;  %v19260_v39 = vshll.u32 %v16759_v6, 16  ;;  %v19266_v6 = vshll.u32 %v16765_v46, 16  ;;  %13256 = vmatprep.subr.bf16.mxu0 %v13871_v29 }
 0x3c5   :  { %19252 = vst [vmem:[#allocation28_spill] sm:$0xff] %v17005_v60  ;;  %19254 = vst [vmem:[#allocation29_spill] sm:$0xff] %v17009_v38  ;;  %v17026_v9 = vor.u32 %v19257_v61, %v16989_v35  ;;  %v17032_v17 = vor.u32 %v19258_v26, %v16993_v3  ;;  %v17044_v61 = vor.u32 %v19262_v16, %v17001_v13  ;;  %v19264_v26 = vshll.u32 %v16763_v7, 16 }
 0x3c6   :  { %v17038_v1 = vor.u32 %v19260_v39, %v16997_v40  ;;  %v17056_v39 = vor.u32 %v19266_v6, %v17009_v38  ;;  %13368 = vmatprep.subr.bf16.mxu1 %v13866_v24  ;;  %v19268_v18 = vshrl.u32 %v16767_v56, 16  ;;  %v19270_v15 = vshrl.u32 %v16769_v51, 16  ;;  %v5785_v40 = vld [vmem:[#allocation3 + $0x8] sm:$0xf] }
 0x3c7   :  { %19259 = vst [vmem:[#allocation30_spill] sm:$0xff] %v17032_v17  ;;  %19263 = vst [vmem:[#allocation32_spill] sm:$0xff] %v17044_v61  ;;  %v17050_v59 = vor.u32 %v19264_v26, %v17005_v60  ;;  %v19272_v7 = vshrl.u32 %v16771_v20, 16  ;;  %v19274_v3 = vshrl.u32 %v16773_v8, 16  ;;  %v19276_v6 = vshrl.u32 %v16775_v28, 16 }
 0x3c8   :  { %19261 = vst [vmem:[#allocation31_spill] sm:$0xff] %v17038_v1  ;;  %19267 = vst [vmem:[#allocation34_spill] sm:$0xff] %v17056_v39  ;;  %v17061_v16 = vrot.slane %v19268_v18, 7  ;;  %v17065_v13 = vrot.slane %v19270_v15, 7  ;;  %v19278_v18 = vshrl.u32 %v16777_v55, 16  ;;  %v19280_v15 = vshrl.u32 %v16779_v5, 16 }
 0x3c9   :  { %19265 = vst [vmem:[#allocation33_spill] sm:$0xff] %v17050_v59  ;;  %v17069_v26 = vrot.slane %v19272_v7, 7  ;;  %v17073_v46 = vrot.slane %v19274_v3, 7  ;;  %v17077_v24 = vrot.slane %v19276_v6, 7  ;;  %v19282_v7 = vshrl.u32 %v16781_v12, 16 }
 0x3ca   :  { %19269 = vst [vmem:[#allocation35_spill] sm:$0xff] %v17061_v16  ;;  %19271 = vst [vmem:[#allocation36_spill] sm:$0xff] %v17065_v13  ;;  %v17081_v41 = vrot.slane %v19278_v18, 7  ;;  %v17085_v38 = vrot.slane %v19280_v15, 7  ;;  %v5797_v60 = vld [vmem:[#allocation3 + $0x18] sm:$0xf] }
 0x3cb   :  { %19273 = vst [vmem:[#allocation37_spill] sm:$0xff] %v17069_v26  ;;  %19275 = vst [vmem:[#allocation38_spill] sm:$0xff] %v17073_v46  ;;  %v17089_v39 = vrot.slane %v19282_v7, 7  ;;  %v5800_v3 = vld [vmem:[#allocation3 + $0x1c] sm:$0x1]  ;;  %v19284_v29 = vshll.u32 %v16767_v56, 16 }
 0x3cc   :  { %19277 = vst [vmem:[#allocation39_spill] sm:$0xff] %v17077_v24  ;;  %19279 = vst [vmem:[#allocation40_spill] sm:$0xff] %v17081_v41  ;;  %v19286_v18 = vshll.u32 %v16769_v51, 16  ;;  %v5788_v1 = vld [vmem:[#allocation3 + $0xc] sm:$0x1]  ;;  %v19290_v56 = vshll.u32 %v16771_v20, 16 }
 0x3cd   :  { %19281 = vst [vmem:[#allocation41_spill] sm:$0xff] %v17085_v38  ;;  %19283 = vst [vmem:[#allocation42_spill] sm:$0xff] %v17089_v39  ;;  %v17094_v59 = vor.u32 %v19284_v29, %v17061_v16  ;;  %v19292_v51 = vshll.u32 %v16773_v8, 16  ;;  %v5791_v16 = vld [vmem:[#allocation3 + $0x10] sm:$0xf]  ;;  %v19294_v17 = vshll.u32 %v16775_v28, 16 }
 0x3ce   :  { %v17100_v61 = vor.u32 %v19286_v18, %v17065_v13  ;;  %v17112_v29 = vor.u32 %v19290_v56, %v17069_v26  ;;  %v5803_v13 = vld [vmem:[#allocation3 + $0x20] sm:$0xf]  ;;  %v19296_v56 = vshll.u32 %v16777_v55, 16  ;;  %v5824_v15 = vld [vmem:[#allocation3 + $0x3c] sm:$0x1]  ;;  %v19298_v26 = vshll.u32 %v16779_v5, 16 }
 0x3cf   :  { %19285 = vst [vmem:[#allocation43_spill] sm:$0xff] %v17094_v59  ;;  %v17118_v18 = vor.u32 %v19292_v51, %v17073_v46  ;;  %v5794_v59 = vld [vmem:[#allocation3 + $0x14] sm:$0x1]  ;;  %v17124_v35 = vor.u32 %v19294_v17, %v17077_v24  ;;  %v17133_v51 = vld [vmem:[#allocation3 + $0x38] sm:$0xf]  ;;  %v19299_v20 = vshll.u32 %v16781_v12, 16  ;;  %v5786_v12 = vsel %vm17105_vm12, %v16868_v36, %v5785_v40 }
 0x3d0   :  { %19287 = vst [vmem:[#allocation44_spill] sm:$0xff] %v17100_v61  ;;  %19291 = vst [vmem:[#allocation45_spill] sm:$0xff] %v17112_v29  ;;  %v5806_v61 = vld [vmem:[#allocation3 + $0x24] sm:$0x1]  ;;  %v17130_v6 = vor.u32 %v19296_v56, %v17081_v41  ;;  %v5809_v46 = vld [vmem:[#allocation3 + $0x28] sm:$0xf]  ;;  %v17138_v28 = vor.u32 %v19298_v26, %v17085_v38 }
 0x3d1   :  { %19293 = vst [vmem:[#allocation46_spill] sm:$0xff] %v17118_v18  ;;  %19295 = vst [vmem:[#allocation47_spill] sm:$0xff] %v17124_v35  ;;  %v5812_v18 = vld [vmem:[#allocation3 + $0x2c] sm:$0x1]  ;;  %v17144_v55 = vor.u32 %v19299_v20, %v17089_v39  ;;  %v17147_v8 = vld [vmem:[#allocation3 + $0x40] sm:$0xf] }
 0x3d2   :  { %19297 = vst [vmem:[#allocation48_spill] sm:$0xff] %v17130_v6  ;;  %v5830_v41 = vld [vmem:[#allocation3 + $0x44] sm:$0x1]  ;;  %v5815_v6 = vld [vmem:[#allocation3 + $0x30] sm:$0xf]  ;;  %v19301_v35 = vshrl.u32 %v16783_v54, 16 }
 0x3d3   :  { %19300 = vst [vmem:[#allocation49_spill] sm:$0xff] %v17144_v55  ;;  %v5818_v24 = vld [vmem:[#allocation3 + $0x34] sm:$0x1]  ;;  %v19302_v5 = vshrl.u32 %v16785_v21, 16  ;;  %v19303_v20 = vrot.slane %v16853_v2, 4  ;;  %v19304_v38 = vrot.slane %v16855_v25, 4  ;;  %v5798_v2 = vsel %vm17105_vm12, %v16880_v31, %v5797_v60 }
 0x3d4   :  { %v17151_v29 = vrot.slane %v19301_v35, 7  ;;  %v17164_v17 = vld [vmem:[#allocation3 + $0x68] sm:$0xf]  ;;  %v17166_v39 = vld [vmem:[#allocation3 + $0x6c] sm:$0x1]  ;;  %v19305_v40 = vrot.slane %v16857_v42, 4 }
 0x3d5   :  { %v17155_v26 = vrot.slane %v19302_v5, 7  ;;  %v5789_v56 = vsel %vm16056_vm8, %v19303_v20, %v5788_v1  ;;  %v5833_v55 = vld [vmem:[#allocation3 + $0x58] sm:$0xf]  ;;  %v5836_v35 = vld [vmem:[#allocation3 + $0x5c] sm:$0x1]  ;;  %v5792_v5 = vsel %vm17105_vm12, %v16874_v58, %v5791_v16  ;;  %v5795_v36 = vsel %vm16056_vm8, %v19304_v38, %v5794_v59 }
 0x3d6   :  { %5787 = vst [vmem:[#allocation3 + $0x8] sm:$0xf] %v5786_v12  ;;  %5790 = vst [vmem:[#allocation3 + $0xc] sm:$0x1] %v5789_v56  ;;  %v5801_v1 = vsel %vm16056_vm8, %v19305_v40, %v5800_v3  ;;  %v17182_v12 = vld [vmem:[#allocation3 + $0x70] sm:$0xf] }
 0x3d7   :  { %v17184_v56 = vld [vmem:[#allocation3 + $0x74] sm:$0x1]  ;;  %v5839_v20 = vld [vmem:[#allocation3 + $0x60] sm:$0xf]  ;;  %v5842_v58 = vld [vmem:[#allocation3 + $0x64] sm:$0x1] }
 0x3d8   :  { %v19306_v25 = vshll.u32 %v16783_v54, 16  ;;  %v19307_v31 = vshll.u32 %v16785_v21, 16  ;;  %5793 = vst [vmem:[#allocation3 + $0x10] sm:$0xf] %v5792_v5  ;;  %5796 = vst [vmem:[#allocation3 + $0x14] sm:$0x1] %v5795_v36  ;;  %v5810_v5 = vsel %vm17105_vm12, %v16892_v50, %v5809_v46 }
 0x3d9   :  { %5799 = vst [vmem:[#allocation3 + $0x18] sm:$0xf] %v5798_v2  ;;  %5802 = vst [vmem:[#allocation3 + $0x1c] sm:$0x1] %v5801_v1  ;;  %v17198_v59 = vld [vmem:[#allocation3 + $0x88] sm:$0xf] }
 0x3da   :  { %v17189_v16 = vor.u32 %v19306_v25, %v17151_v29  ;;  %v17195_v42 = vor.u32 %v19307_v31, %v17155_v26  ;;  %v17200_v3 = vld [vmem:[#allocation3 + $0x8c] sm:$0x1]  ;;  %v5857_v54 = vld [vmem:[#allocation3 + $0x78] sm:$0xf]  ;;  %v5860_v40 = vld [vmem:[#allocation3 + $0x7c] sm:$0x1]  ;;  %v5804_v25 = vsel %vm17105_vm12, %v16886_v43, %v5803_v13  ;;  %v5822_v13 = vsel %vm17105_vm12, %v16934_v49, %v17133_v51 }
 0x3db   :  { %v19308_v21 = vrot.slane %v16859_v14, 4  ;;  %v19309_v36 = vrot.slane %v16861_v47, 4  ;;  %v17216_v1 = vld [vmem:[#allocation3 + $0x90] sm:$0xf]  ;;  %v17218_v60 = vld [vmem:[#allocation3 + $0x94] sm:$0x1]  ;;  %v5816_v14 = vsel %vm17105_vm12, %v16898_v63, %v5815_v6  ;;  %v5828_v49 = vsel %vm17105_vm12, %v16940_v53, %v17147_v8 }
 0x3dc   :  { %v5863_v38 = vld [vmem:[#allocation3 + $0x80] sm:$0xf]  ;;  %v5866_v43 = vld [vmem:[#allocation3 + $0x84] sm:$0x1]  ;;  %5805 = vst [vmem:[#allocation3 + $0x20] sm:$0xf] %v5804_v25  ;;  %v5834_v6 = vsel %vm17105_vm12, %v16946_v45, %v5833_v55  ;;  %v5846_v8 = vsel %vm17105_vm12, %v16958_v19, %v17164_v17  ;;  %v5858_v17 = vsel %vm17105_vm12, %v16970_v33, %v5857_v54 }
 0x3dd   :  { %v5807_v31 = vsel %vm16056_vm8, %v19308_v21, %v5806_v61  ;;  %v5813_v2 = vsel %vm16056_vm8, %v19309_v36, %v5812_v18  ;;  %5811 = vst [vmem:[#allocation3 + $0x28] sm:$0xf] %v5810_v5  ;;  %v19310_v50 = vrot.slane %v16863_v11, 4  ;;  %v19311_v61 = vrot.slane %v16903_v57, 4  ;;  %v17235_v18 = vld [vmem:[#allocation3 + $0xb8] sm:$0xf] }
 0x3de   :  { %5808 = vst [vmem:[#allocation3 + $0x24] sm:$0x1] %v5807_v31  ;;  %5814 = vst [vmem:[#allocation3 + $0x2c] sm:$0x1] %v5813_v2  ;;  %v17237_v25 = vld [vmem:[#allocation3 + $0xbc] sm:$0x1] }
 0x3df   :  { %v5819_v47 = vsel %vm16056_vm8, %v19310_v50, %v5818_v24  ;;  %v5825_v46 = vsel %vm16056_vm8, %v19311_v61, %v5824_v15  ;;  %v17239_v63 = vld [vmem:[#allocation3 + $0xa8] sm:$0xf]  ;;  %v5884_v11 = vld [vmem:[#allocation3 + $0xac] sm:$0x1]  ;;  %5817 = vst [vmem:[#allocation3 + $0x30] sm:$0xf] %v5816_v14 }
 0x3e0   :  { %5820 = vst [vmem:[#allocation3 + $0x34] sm:$0x1] %v5819_v47  ;;  %5823 = vst [vmem:[#allocation3 + $0x38] sm:$0xf] %v5822_v13  ;;  %v19312_v57 = vrot.slane %v16907_v10, 4  ;;  %v19313_v15 = vrot.slane %v16911_v52, 4 }
 0x3e1   :  { %5826 = vst [vmem:[#allocation3 + $0x3c] sm:$0x1] %v5825_v46  ;;  %v17256_v21 = vld [vmem:[#allocation3 + $0xc0] sm:$0xf]  ;;  %v17258_v31 = vld [vmem:[#allocation3 + $0xc4] sm:$0x1] }
 0x3e2   :  { %v5831_v24 = vsel %vm16056_vm8, %v19312_v57, %v5830_v41  ;;  %v5837_v51 = vsel %vm16056_vm8, %v19313_v15, %v5836_v35  ;;  %v17260_v5 = vld [vmem:[#allocation3 + $0xb0] sm:$0xf]  ;;  %v5890_v53 = vld [vmem:[#allocation3 + $0xb4] sm:$0x1]  ;;  %v17262_v10 = vld [vmem:[#allocation3 + $0xc8] sm:$0xf]  ;;  %v5840_v41 = vsel %vm17105_vm12, %v16952_v48, %v5839_v20 }
 0x3e3   :  { %5829 = vst [vmem:[#allocation3 + $0x40] sm:$0xf] %v5828_v49  ;;  %5832 = vst [vmem:[#allocation3 + $0x44] sm:$0x1] %v5831_v24  ;;  %v19314_v45 = vrot.slane %v16915_v22, 4  ;;  %v19315_v55 = vrot.slane %v16919_v4, 4  ;;  %v5852_v4 = vsel %vm17105_vm12, %v16964_v37, %v17182_v12 }
 0x3e4   :  { %5835 = vst [vmem:[#allocation3 + $0x58] sm:$0xf] %v5834_v6  ;;  %5838 = vst [vmem:[#allocation3 + $0x5c] sm:$0x1] %v5837_v51  ;;  %v17280_v36 = vld [vmem:[#allocation3 + $0xd8] sm:$0xf] }
 0x3e5   :  { %v5843_v52 = vsel %vm16056_vm8, %v19314_v45, %v5842_v58  ;;  %v5849_v35 = vsel %vm16056_vm8, %v19315_v55, %v17166_v39  ;;  %v17282_v2 = vld [vmem:[#allocation3 + $0xdc] sm:$0x1]  ;;  %v5908_v48 = vld [vmem:[#allocation3 + $0xcc] sm:$0x1]  ;;  %v17284_v22 = vld [vmem:[#allocation3 + $0xd0] sm:$0xf] }
 0x3e6   :  { %v17286_v20 = vld [vmem:[#allocation3 + $0xd4] sm:$0x1]  ;;  %5841 = vst [vmem:[#allocation3 + $0x60] sm:$0xf] %v5840_v41  ;;  %5844 = vst [vmem:[#allocation3 + $0x64] sm:$0x1] %v5843_v52 }
 0x3e7   :  { %5847 = vst [vmem:[#allocation3 + $0x68] sm:$0xf] %v5846_v8  ;;  %5850 = vst [vmem:[#allocation3 + $0x6c] sm:$0x1] %v5849_v35  ;;  %v19316_v19 = vrot.slane %v16923_v27, 4  ;;  %v19317_v58 = vrot.slane %v16927_v62, 4  ;;  %v5864_v27 = vsel %vm17105_vm12, %v16976_v30, %v5863_v38  ;;  %v5882_v38 = vsel %vm17105_vm12, %v17026_v9, %v17239_v63 }
 0x3e8   :  { %v17304_v50 = vld [vmem:[#allocation3 + $0xe0] sm:$0xf]  ;;  %v17306_v47 = vld [vmem:[#allocation3 + $0xe4] sm:$0x1]  ;;  %v17308_v37 = vld [vmem:[#allocation3 + $0xf8] sm:$0xf] }
 0x3e9   :  { %v5855_v39 = vsel %vm16056_vm8, %v19316_v19, %v17184_v56  ;;  %v5861_v14 = vsel %vm16056_vm8, %v19317_v58, %v5860_v40  ;;  %v17310_v12 = vld [vmem:[#allocation3 + $0xfc] sm:$0x1]  ;;  %5853 = vst [vmem:[#allocation3 + $0x70] sm:$0xf] %v5852_v4  ;;  %5859 = vst [vmem:[#allocation3 + $0x78] sm:$0xf] %v5858_v17  ;;  %v5870_v56 = vsel %vm17105_vm12, %v17014_v32, %v17198_v59 }
 0x3ea   :  { %5856 = vst [vmem:[#allocation3 + $0x74] sm:$0x1] %v5855_v39  ;;  %5862 = vst [vmem:[#allocation3 + $0x7c] sm:$0x1] %v5861_v14  ;;  %v19318_v62 = vrot.slane %v16929_v44, 4  ;;  %v19319_v54 = vld [vmem:[#allocation23_spill] sm:$0xff]  ;;  %v5876_v44 = vsel %vm17105_vm12, %v17020_v34, %v17216_v1 }
 0x3eb   :  { %v19320_v40 = vrot.slane %v19319_v54, 4  ;;  %v17328_v61 = vld [vmem:[#allocation3 + $0x108] sm:$0xf]  ;;  %v17330_v46 = vld [vmem:[#allocation3 + $0x10c] sm:$0x1]  ;;  %v19321_v32 = vrot.slane %v16985_v0, 4 }
 0x3ec   :  { %v5867_v33 = vsel %vm16056_vm8, %v19318_v62, %v5866_v43  ;;  %5865 = vst [vmem:[#allocation3 + $0x80] sm:$0xf] %v5864_v27  ;;  %5871 = vst [vmem:[#allocation3 + $0x88] sm:$0xf] %v5870_v56  ;;  %v19322_v59 = vld [vmem:[#allocation24_spill] sm:$0xff]  ;;  %v19324_v0 = vld [vmem:[#allocation30_spill] sm:$0xff] }
 0x3ed   :  { %v5873_v13 = vsel %vm16056_vm8, %v19320_v40, %v17200_v3  ;;  %5868 = vst [vmem:[#allocation3 + $0x84] sm:$0x1] %v5867_v33  ;;  %v5879_v30 = vsel %vm16056_vm8, %v19321_v32, %v17218_v60  ;;  %v19323_v3 = vrot.slane %v19322_v59, 4  ;;  %v13837_v49 = vld [vmem:[#allocation3 + $0x8] ss:$8 sps:$4 sm:$0xff]   ;;  %v5888_v9 = vsel %vm17105_vm12, %v19324_v0, %v17260_v5  ;;  %v19325_v60 = vld [vmem:[#allocation25_spill] sm:$0xff] }
 0x3ee   :  { %5874 = vst [vmem:[#allocation3 + $0x8c] sm:$0x1] %v5873_v13  ;;  %v17349_v57 = vld [vmem:[#allocation3 + $0x110] sm:$0xf]  ;;  %v5950_v34 = vld [vmem:[#allocation3 + $0x114] sm:$0x1]  ;;  %10114 = vmatprep.mubr.bf16.mxu1 %v13837_v49 }
 0x3ef   :  { %v5885_v43 = vsel %vm16056_vm8, %v19323_v3, %v5884_v11  ;;  %v5935_v1 = vld [vmem:[#allocation3 + $0x100] sm:$0xf]  ;;  %v5938_v24 = vld [vmem:[#allocation3 + $0x104] sm:$0x1]  ;;  %5877 = vst [vmem:[#allocation3 + $0x90] sm:$0xf] %v5876_v44 }
 0x3f0   :  { %5880 = vst [vmem:[#allocation3 + $0x94] sm:$0x1] %v5879_v30  ;;  %5883 = vst [vmem:[#allocation3 + $0xa8] sm:$0xf] %v5882_v38  ;;  %v19326_v63 = vrot.slane %v19325_v60, 4  ;;  %v19327_v6 = vld [vmem:[#allocation31_spill] sm:$0xff] }
 0x3f1   :  { %5886 = vst [vmem:[#allocation3 + $0xac] sm:$0x1] %v5885_v43  ;;  %v5894_v15 = vsel %vm17105_vm12, %v19327_v6, %v17235_v18  ;;  %v19328_v51 = vld [vmem:[#allocation26_spill] sm:$0xff]  ;;  %v5953_v5 = vld [vmem:[#allocation3 + $0x118] sm:$0xf]  ;;  %v19331_v35 = vld [vmem:[#allocation27_spill] sm:$0xff] }
 0x3f2   :  { %v5891_v11 = vsel %vm16056_vm8, %v19326_v63, %v5890_v53  ;;  %v19329_v41 = vrot.slane %v19328_v51, 4  ;;  %v17368_v52 = vld [vmem:[#allocation3 + $0x128] sm:$0xf]  ;;  %v5968_v8 = vld [vmem:[#allocation3 + $0x12c] sm:$0x1]  ;;  %v19330_v53 = vld [vmem:[#allocation32_spill] sm:$0xff] }
 0x3f3   :  { %v5956_v55 = vld [vmem:[#allocation3 + $0x11c] sm:$0x1]  ;;  %5889 = vst [vmem:[#allocation3 + $0xb0] sm:$0xf] %v5888_v9  ;;  %5892 = vst [vmem:[#allocation3 + $0xb4] sm:$0x1] %v5891_v11  ;;  %v5900_v18 = vsel %vm17105_vm12, %v19330_v53, %v17256_v21 }
 0x3f4   :  { %v5897_v45 = vsel %vm16056_vm8, %v19329_v41, %v17237_v25  ;;  %5895 = vst [vmem:[#allocation3 + $0xb8] sm:$0xf] %v5894_v15  ;;  %v19332_v4 = vrot.slane %v19331_v35, 4  ;;  %v19333_v19 = vld [vmem:[#allocation33_spill] sm:$0xff]  ;;  %v19334_v17 = vld [vmem:[#allocation28_spill] sm:$0xff]  ;;  %v19340_v13 = vld [vmem:[#allocation35_spill] sm:$0xff] }
 0x3f5   :  { %5898 = vst [vmem:[#allocation3 + $0xbc] sm:$0x1] %v5897_v45  ;;  %v5906_v39 = vsel %vm17105_vm12, %v19333_v19, %v17262_v10  ;;  %v19335_v58 = vrot.slane %v19334_v17, 4  ;;  %v5971_v27 = vld [vmem:[#allocation3 + $0x130] sm:$0xf]  ;;  %v19337_v10 = vld [vmem:[#allocation29_spill] sm:$0xff] }
 0x3f6   :  { %v5903_v25 = vsel %vm16056_vm8, %v19332_v4, %v17258_v31  ;;  %v5974_v62 = vld [vmem:[#allocation3 + $0x134] sm:$0x1]  ;;  %v5959_v21 = vld [vmem:[#allocation3 + $0x120] sm:$0xf]  ;;  %5901 = vst [vmem:[#allocation3 + $0xc0] sm:$0xf] %v5900_v18 }
 0x3f7   :  { %v5909_v14 = vsel %vm16056_vm8, %v19335_v58, %v5908_v48  ;;  %5904 = vst [vmem:[#allocation3 + $0xc4] sm:$0x1] %v5903_v25  ;;  %5907 = vst [vmem:[#allocation3 + $0xc8] sm:$0xf] %v5906_v39  ;;  %v19336_v31 = vld [vmem:[#allocation34_spill] sm:$0xff]  ;;  %v19338_v56 = vrot.slane %v19337_v10, 4 }
 0x3f8   :  { %5910 = vst [vmem:[#allocation3 + $0xcc] sm:$0x1] %v5909_v14  ;;  %v5912_v33 = vsel %vm17105_vm12, %v19336_v31, %v17284_v22  ;;  %v19339_v48 = vld [vmem:[#allocation43_spill] sm:$0xff]  ;;  %v19341_v44 = vrot.slane %v19340_v13, 4  ;;  %v5962_v30 = vld [vmem:[#allocation3 + $0x124] sm:$0x1] }
 0x3f9   :  { %v5915_v54 = vsel %vm16056_vm8, %v19338_v56, %v17286_v20  ;;  %v5918_v40 = vsel %vm17105_vm12, %v19339_v48, %v17280_v36  ;;  %5913 = vst [vmem:[#allocation3 + $0xd0] sm:$0xf] %v5912_v33  ;;  %v19342_v22 = vld [vmem:[#allocation44_spill] sm:$0xff]  ;;  %v19345_v3 = vld [vmem:[#allocation45_spill] sm:$0xff]  ;;  %v6715_v9 = vld [vmem:[#allocation3 + $0x8] sm:$0xe] }
 0x3fa   :  { %v5921_v32 = vsel %vm16056_vm8, %v19341_v44, %v17282_v2  ;;  %5916 = vst [vmem:[#allocation3 + $0xd4] sm:$0x1] %v5915_v54  ;;  %5919 = vst [vmem:[#allocation3 + $0xd8] sm:$0xf] %v5918_v40  ;;  %v5924_v20 = vsel %vm17105_vm12, %v19342_v22, %v17304_v50  ;;  %v19343_v38 = vld [vmem:[#allocation36_spill] sm:$0xff]  ;;  %v5930_v2 = vsel %vm17105_vm12, %v19345_v3, %v17308_v37  ;;  %v19346_v43 = vld [vmem:[#allocation37_spill] sm:$0xff] }
 0x3fb   :  { %5922 = vst [vmem:[#allocation3 + $0xdc] sm:$0x1] %v5921_v32  ;;  %v19344_v59 = vrot.slane %v19343_v38, 4  ;;  %v19347_v49 = vrot.slane %v19346_v43, 4  ;;  %v6716_v60 = vld [vmem:[#allocation3 + $0xc] sm:$0x1] }
 0x3fc   :  { %5925 = vst [vmem:[#allocation3 + $0xe0] sm:$0xf] %v5924_v20  ;;  %5931 = vst [vmem:[#allocation3 + $0xf8] sm:$0xf] %v5930_v2  ;;  %v19348_v50 = vld [vmem:[#allocation46_spill] sm:$0xff]  ;;  %v19351_v6 = vld [vmem:[#allocation47_spill] sm:$0xff] }
 0x3fd   :  { %v5927_v36 = vsel %vm16056_vm8, %v19344_v59, %v17306_v47  ;;  %v5933_v0 = vsel %vm16056_vm8, %v19347_v49, %v17310_v12  ;;  %v5936_v47 = vsel %vm17105_vm12, %v19348_v50, %v5935_v1  ;;  %v19349_v63 = vld [vmem:[#allocation38_spill] sm:$0xff]  ;;  %v5942_v12 = vsel %vm17105_vm12, %v19351_v6, %v17328_v61  ;;  %v19352_v15 = vld [vmem:[#allocation39_spill] sm:$0xff]  ;;  %v19354_v1 = vld [vmem:[#allocation48_spill] sm:$0xff] }
 0x3fe   :  { %5928 = vst [vmem:[#allocation3 + $0xe4] sm:$0x1] %v5927_v36  ;;  %5934 = vst [vmem:[#allocation3 + $0xfc] sm:$0x1] %v5933_v0  ;;  %v19350_v11 = vrot.slane %v19349_v63, 4  ;;  %v19353_v51 = vrot.slane %v19352_v15, 4 }
 0x3ff   :  { %v6123_v45 = vld [vmem:[#allocation3 + $0x8] sm:$0xf]  ;;  %v6124_v53 = vld [vmem:[#allocation3 + $0xc] sm:$0x1]  ;;  %5937 = vst [vmem:[#allocation3 + $0x100] sm:$0xf] %v5936_v47 }
 0x400   :  { %v5939_v37 = vsel %vm16056_vm8, %v19350_v11, %v5938_v24  ;;  %v5945_v41 = vsel %vm16056_vm8, %v19353_v51, %v17330_v46  ;;  %5943 = vst [vmem:[#allocation3 + $0x108] sm:$0xf] %v5942_v12  ;;  %v5948_v24 = vsel %vm17105_vm12, %v19354_v1, %v17349_v57  ;;  %v19355_v18 = vld [vmem:[#allocation40_spill] sm:$0xff]  ;;  %v5954_v46 = vsel %vm17105_vm12, %v17138_v28, %v5953_v5  ;;  %v19357_v4 = vld [vmem:[#allocation41_spill] sm:$0xff]  ;;  %v6125_v39 = vld [vmem:[#allocation3 + $0x10] sm:$0xf] }
 0x401   :  { %5940 = vst [vmem:[#allocation3 + $0x104] sm:$0x1] %v5939_v37  ;;  %5946 = vst [vmem:[#allocation3 + $0x10c] sm:$0x1] %v5945_v41  ;;  %v19356_v35 = vrot.slane %v19355_v18, 4  ;;  %v19358_v25 = vrot.slane %v19357_v4, 4  ;;  %v5966_v28 = vsel %vm17105_vm12, %v17189_v16, %v17368_v52 }
 0x402   :  { %5949 = vst [vmem:[#allocation3 + $0x110] sm:$0xf] %v5948_v24  ;;  %5955 = vst [vmem:[#allocation3 + $0x118] sm:$0xf] %v5954_v46  ;;  %v19359_v57 = vld [vmem:[#allocation49_spill] sm:$0xff]  ;;  %v19360_v58 = vld [vmem:[#allocation42_spill] sm:$0xff] }
 0x403   :  { %v5951_v61 = vsel %vm16056_vm8, %v19356_v35, %v5950_v34  ;;  %v5957_v19 = vsel %vm16056_vm8, %v19358_v25, %v5956_v55  ;;  %v5960_v17 = vsel %vm17105_vm12, %v19359_v57, %v5959_v21  ;;  %v19361_v34 = vrot.slane %v19360_v58, 4  ;;  %v6126_v31 = vld [vmem:[#allocation3 + $0x14] sm:$0x1]  ;;  %v6127_v33 = vld [vmem:[#allocation3 + $0x18] sm:$0xf]  ;;  %v19365_v20 = vld [vmem:[#allocation21_spill] sm:$0xff] }
 0x404   :  { %5952 = vst [vmem:[#allocation3 + $0x114] sm:$0x1] %v5951_v61  ;;  %5958 = vst [vmem:[#allocation3 + $0x11c] sm:$0x1] %v5957_v19  ;;  %v19362_v5 = vrot.slane %v17151_v29, 4  ;;  %v5972_v21 = vsel %vm17105_vm12, %v17195_v42, %v5971_v27  ;;  %v19363_v10 = vrot.slane %v17155_v26, 4 }
 0x405   :  { %v5963_v14 = vsel %vm16056_vm8, %v19361_v34, %v5962_v30  ;;  %5961 = vst [vmem:[#allocation3 + $0x120] sm:$0xf] %v5960_v17  ;;  %5967 = vst [vmem:[#allocation3 + $0x128] sm:$0xf] %v5966_v28  ;;  %v12114_v52 = vrot.slane %v6715_v9, 9  ;;  %v6847_v29 = vrot.slane %v6716_v60, 5 }
 0x406   :  { %v5969_v55 = vsel %vm16056_vm8, %v19362_v5, %v5968_v8  ;;  %5964 = vst [vmem:[#allocation3 + $0x124] sm:$0x1] %v5963_v14  ;;  %v5975_v16 = vsel %vm16056_vm8, %v19363_v10, %v5974_v62  ;;  %v6128_v56 = vld [vmem:[#allocation3 + $0x1c] sm:$0x1]  ;;  %v6717_v54 = vld [vmem:[#allocation3 + $0x10] sm:$0xe] }
 0x407   :  { %5970 = vst [vmem:[#allocation3 + $0x12c] sm:$0x1] %v5969_v55  ;;  %5973 = vst [vmem:[#allocation3 + $0x130] sm:$0xf] %v5972_v21  ;;  %v6200_v8 = vshrl.u32 %v6123_v45, 16  ;;  %v6203_v48 = vshll.u32 %v6123_v45, 16  ;;  %v6848_v7 = vsel %vm14264_vm5, %v12114_v52, %v6847_v29 }
 0x408   :  { %5976 = vst [vmem:[#allocation3 + $0x134] sm:$0x1] %v5975_v16  ;;  %v6209_v40 = vshll.u32 %v6124_v53, 16  ;;  %v6214_v13 = vshrl.u32 %v6125_v39, 16  ;;  %v6718_v44 = vld [vmem:[#allocation3 + $0x14] sm:$0x1]  ;;  %v12145_v38 = vcombine.low %v19365_v20, %v6848_v7 }
 0x409   :  { %v13840_v42 = vld [vmem:[#allocation3 + $0x18] ss:$8 sps:$4 sm:$0xff]   ;;  %v6217_v27 = vshll.u32 %v6125_v39, 16  ;;  %v6223_v26 = vshll.u32 %v6126_v31, 16  ;;  %v6228_v30 = vshrl.u32 %v6127_v33, 16  ;;  %v6202_v59 = vrot.slane %v6200_v8, 4 }
 0x40a   :  { %v6719_v22 = vld [vmem:[#allocation3 + $0x18] sm:$0xe]  ;;  %v13868_v62 = vld [vmem:[#allocation7 + $0x180] sm:$0xff]   ;;  %v6205_v36 = vrot.slane %v6203_v48, 5  ;;  %v6211_v3 = vrot.slane %v6209_v40, 5  ;;  %v13869_v43 = vld [vmem:[#allocation7 + $0x1c8] sm:$0xff]   ;;  %10115 = vmatmul.mubr.bf16.vlgmr.msra.gmra.mrb[148].mxu1 %v12145_v38 }
 0x40b   :  { %v6720_v2 = vld [vmem:[#allocation3 + $0x1c] sm:$0x1]  ;;  %v6216_v49 = vrot.slane %v6214_v13, 4  ;;  %v6219_v0 = vrot.slane %v6217_v27, 5  ;;  %v17479_v9 = vrot.slane %v6223_v26, 5  ;;  %v6230_v60 = vrot.slane %v6228_v30, 4  ;;  %10122 = vmatprep.mubr.bf16.mxu1 %v13840_v42  ;;  %13369 = vmatpush3.bf16.msra.mxu1 %v13868_v62 }
 0x40c   :  { %v6129_v50 = vld [vmem:[#allocation3 + $0x20] sm:$0xf]  ;;  %v6206_v47 = vor.u32 %v6205_v36, %v6202_v59  ;;  %v6231_v63 = vshll.u32 %v6127_v33, 16  ;;  %v6237_v11 = vshll.u32 %v6128_v56, 16  ;;  %v12115_v37 = vrot.slane %v6717_v54, 9  ;;  %v13870_v12 = vld [vmem:[#allocation7 + $0x188] sm:$0xff]   ;;  %13370 = vmatprep.subr.bf16.mxu1 %v13869_v43 }
 0x40d   :  { %v6130_v6 = vld [vmem:[#allocation3 + $0x24] sm:$0x1]  ;;  %v6220_v15 = vor.u32 %v6219_v0, %v6216_v49  ;;  %v6851_v51 = vrot.slane %v6718_v44, 5  ;;  %v12116_v41 = vrot.slane %v6719_v22, 9  ;;  %v6855_v45 = vrot.slane %v6720_v2, 5  ;;  %v13874_v24 = vld [vmem:[#allocation7 + $0x1d0] sm:$0xff]  }
 0x40e   :  { %v6131_v53 = vld [vmem:[#allocation3 + $0x28] sm:$0xf]  ;;  %v6132_v1 = vld [vmem:[#allocation3 + $0x2c] sm:$0x1]  ;;  %v6207_v18 = vrot.slane %v6206_v47, 4  ;;  %v6233_v35 = vrot.slane %v6231_v63, 5 }
 0x40f   :  { %v6239_v61 = vrot.slane %v6237_v11, 5  ;;  %v6242_v46 = vshrl.u32 %v6129_v50, 16  ;;  %v6221_v4 = vrot.slane %v6220_v15, 4  ;;  %v6852_v25 = vsel %vm14264_vm5, %v12115_v37, %v6851_v51  ;;  %v6721_v57 = vld [vmem:[#allocation3 + $0x20] sm:$0xe]  ;;  %v13876_v33 = vld [vmem:[#allocation7 + $0x190] sm:$0xff]   ;;  %13371 = vmatpush3.bf16.msra.mxu1 %v13870_v12 }
 0x410   :  { %v6856_v19 = vsel %vm14264_vm5, %v12116_v41, %v6855_v45  ;;  %v6245_v39 = vshll.u32 %v6129_v50, 16  ;;  %v13873_v17 = vld [vmem:[#allocation7 + $0x100] sm:$0xff]   ;;  %v6212_v34 = vsel %vm14103_vm2, %v6207_v18, %v6211_v3  ;;  %v6234_v28 = vor.u32 %v6233_v35, %v6230_v60  ;;  %v13877_v21 = vld [vmem:[#allocation7 + $0x148] sm:$0xff]   ;;  %v19367_v10 = vld [vmem:[#allocation16_spill] sm:$0xff]  ;;  %13372 = vmatprep.subr.bf16.mxu1 %v13874_v24 }
 0x411   :  { %v13843_v14 = vld [vmem:[#allocation3] ss:$8 sps:$4 sm:$0xff]   ;;  %v12146_v5 = vcombine.low %v6852_v25, %v6856_v19  ;;  %v6244_v55 = vrot.slane %v6242_v46, 4  ;;  %v6722_v31 = vld [vmem:[#allocation3 + $0x24] sm:$0x1]  ;;  %v6226_v56 = vsel %vm14103_vm2, %v6221_v4, %v17479_v9  ;;  %v6251_v48 = vshll.u32 %v6130_v6, 16 }
 0x412   :  { %v19368_v16 = vld [vmem:[#allocation17_spill] sm:$0xff]  ;;  %v13844_v54 = vld [vmem:[#allocation3 + $0x28] ss:$8 sps:$4 sm:$0xff]   ;;  %v6247_v8 = vrot.slane %v6245_v39, 5  ;;  %v6235_v13 = vrot.slane %v6234_v28, 4  ;;  %v6256_v44 = vshrl.u32 %v6131_v53, 16 }
 0x413   :  { %v19369_v52 = vsel %vm14103_vm2, %v19367_v10, %v19368_v16  ;;  %v6723_v40 = vld [vmem:[#allocation3 + $0x28] sm:$0xe]  ;;  %v6259_v7 = vshll.u32 %v6131_v53, 16  ;;  %v6265_v42 = vshll.u32 %v6132_v1, 16  ;;  %v6724_v27 = vld [vmem:[#allocation3 + $0x2c] sm:$0x1]  ;;  %10123 = vmatmul.mubr.bf16.gmra.mrb[152].mxu1 %v12146_v5 }
 0x414   :  { %v12097_v29 = vcombine.low %v19369_v52, %v6212_v34  ;;  %v6248_v26 = vor.u32 %v6247_v8, %v6244_v55  ;;  %v6253_v30 = vrot.slane %v6251_v48, 5  ;;  %v12117_v22 = vrot.slane %v6721_v57, 9  ;;  %v6133_v20 = vld [vmem:[#allocation3 + $0x30] sm:$0xf]  ;;  %v13878_v38 = vld [vmem:[#allocation7 + $0x108] sm:$0xff]   ;;  %v13879_v59 = vld [vmem:[#allocation7 + $0x1d8] sm:$0xff]   ;;  %10130 = vmatprep.mubr.bf16.mxu1 %v13844_v54  ;;  %13373 = vmatpush3.bf16.msra.mxu1 %v13876_v33 }
 0x415   :  { %v6859_v62 = vrot.slane %v6722_v31, 5  ;;  %v6240_v36 = vsel %vm14103_vm2, %v6235_v13, %v6239_v61  ;;  %v6258_v3 = vrot.slane %v6256_v44, 4  ;;  %v6261_v2 = vrot.slane %v6259_v7, 5  ;;  %v17497_v49 = vld [vmem:[#allocation3 + $0x34] sm:$0x1]  ;;  %v13880_v9 = vld [vmem:[#allocation7 + $0x198] sm:$0xff]   ;;  %13374 = vmatprep.subr.bf16.mxu1 %v13879_v59 }
 0x416   :  { %9953 = vmatprep.mubr.bf16.mxu0 %v12097_v29  ;;  %v6267_v43 = vrot.slane %v6265_v42, 5  ;;  %v6135_v0 = vld [vmem:[#allocation3 + $0x38] sm:$0xf]  ;;  %v13882_v60 = vld [vmem:[#allocation7 + $0x150] sm:$0xff]   ;;  %v12098_v50 = vcombine.low %v6226_v56, %v6240_v36  ;;  %v6249_v47 = vrot.slane %v6248_v26, 4  ;;  %v12118_v11 = vrot.slane %v6723_v40, 9 }
 0x417   :  { %9954 = vmatmul.mubr.bf16.vlgmr.msra.gmra.mrb[144].mxu0 %v13843_v14  ;;  %v6860_v63 = vsel %vm14264_vm5, %v12117_v22, %v6859_v62  ;;  %v6136_v37 = vld [vmem:[#allocation3 + $0x3c] sm:$0x1]  ;;  %v17501_v6 = vld [vmem:[#allocation3 + $0x30] sm:$0xe]  ;;  %v6262_v12 = vor.u32 %v6261_v2, %v6258_v3  ;;  %v6863_v15 = vrot.slane %v6724_v27, 5  ;;  %v6270_v51 = vshrl.u32 %v6133_v20, 16 }
 0x418   :  { %13257 = vmatpush3.bf16.msra.mxu0 %v13873_v17  ;;  %v6273_v41 = vshll.u32 %v6133_v20, 16  ;;  %v6726_v45 = vld [vmem:[#allocation3 + $0x34] sm:$0x1]  ;;  %v13884_v53 = vld [vmem:[#allocation7 + $0x1e0] sm:$0xff]   ;;  %9961 = vmatprep.mubr.bf16.mxu0 %v12098_v50  ;;  %v6254_v1 = vsel %vm14103_vm2, %v6249_v47, %v6253_v30  ;;  %v6284_v24 = vshrl.u32 %v6135_v0, 16  ;;  %v6287_v18 = vshll.u32 %v6135_v0, 16 }
 0x419   :  { %13258 = vmatprep.subr.bf16.mxu0 %v13877_v21  ;;  %v6727_v35 = vld [vmem:[#allocation3 + $0x38] sm:$0xe]  ;;  %v6263_v46 = vrot.slane %v6262_v12, 4  ;;  %v6864_v4 = vsel %vm14264_vm5, %v12118_v11, %v6863_v15  ;;  %v6272_v25 = vrot.slane %v6270_v51, 4  ;;  %v13883_v39 = vld [vmem:[#allocation7 + $0x110] sm:$0xff]   ;;  %v13886_v57 = vld [vmem:[#allocation7 + $0x1a0] sm:$0xff]   ;;  %13375 = vmatpush3.bf16.msra.mxu1 %v13880_v9 }
 0x41a   :  { %v13845_v61 = vld [vmem:[#allocation3 + $0x10] ss:$8 sps:$4 sm:$0xff]   ;;  %v6275_v19 = vrot.slane %v6273_v41, 5  ;;  %v12147_v17 = vcombine.low %v6860_v63, %v6864_v4  ;;  %v6279_v34 = vshll.u32 %v17497_v49, 16  ;;  %v6286_v14 = vrot.slane %v6284_v24, 4  ;;  %v13889_v31 = vld [vmem:[#allocation7 + $0x1e8] sm:$0xff]   ;;  %13376 = vmatprep.subr.bf16.mxu1 %v13884_v53 }
 0x41b   :  { %v6289_v28 = vrot.slane %v6287_v18, 5  ;;  %v6728_v5 = vld [vmem:[#allocation3 + $0x3c] sm:$0x1]  ;;  %v6268_v33 = vsel %vm14103_vm2, %v6263_v46, %v6267_v43  ;;  %v6293_v10 = vshll.u32 %v6136_v37, 16  ;;  %v12119_v16 = vrot.slane %v17501_v6, 9  ;;  %v19370_v7 = vld [vmem:[#allocation18_spill] sm:$0xff] }
 0x41c   :  { %13259 = vmatpush3.bf16.msra.mxu0 %v13878_v38  ;;  %v13887_v55 = vld [vmem:[#allocation7 + $0x158] sm:$0xff]   ;;  %v6276_v21 = vor.u32 %v6275_v19, %v6272_v25  ;;  %v12099_v52 = vcombine.low %v6254_v1, %v6268_v33  ;;  %v6867_v54 = vrot.slane %v6726_v45, 5  ;;  %v12120_v8 = vrot.slane %v6727_v35, 9  ;;  %v136_v40 = vld [vmem:[#allocation3 + $0xa0] sm:$0x1]  ;;  %10131 = vmatmul.mubr.bf16.gmra.mrb[156].mxu1 %v12147_v17  ;;  %v13890_v22 = vld [vmem:[#allocation7 + $0x1a8] sm:$0xff]  }
 0x41d   :  { %13260 = vmatprep.subr.bf16.mxu0 %v13882_v60  ;;  %v13846_v29 = vld [vmem:[#allocation3 + $0x38] ss:$8 sps:$4 sm:$0xff]   ;;  %v6290_v56 = vor.u32 %v6289_v28, %v6286_v14  ;;  %v6871_v44 = vrot.slane %v6728_v5, 5  ;;  %v19371_v42 = vshll.u32 %v19370_v7, 16  ;;  %v6281_v62 = vrot.slane %v6279_v34, 5  ;;  %13377 = vmatpush3.bf16.msra.mxu1 %v13886_v57  ;;  %v13894_v50 = vld [vmem:[#allocation7 + $0x1f0] sm:$0xff]  }
 0x41e   :  { %v6139_v48 = vld [vmem:[#allocation3 + $0x58] sm:$0xf]  ;;  %v6277_v13 = vrot.slane %v6276_v21, 4  ;;  %10138 = vmatprep.mubr.bf16.mxu1 %v13846_v29  ;;  %v6140_v38 = vld [vmem:[#allocation3 + $0x5c] sm:$0x1]  ;;  %v13892_v36 = vld [vmem:[#allocation7 + $0x160] sm:$0xff]   ;;  %v6868_v49 = vsel %vm14264_vm5, %v12119_v16, %v6867_v54  ;;  %13378 = vmatprep.subr.bf16.mxu1 %v13889_v31 }
 0x41f   :  { %9962 = vmatmul.mubr.bf16.gmra.mrb[148].mxu0 %v13845_v61  ;;  %v17513_v27 = vrot.slane %v19371_v42, 5  ;;  %v6312_v26 = vshrl.u32 %v6139_v48, 16  ;;  %v13888_v30 = vld [vmem:[#allocation7 + $0x118] sm:$0xff]   ;;  %v6291_v20 = vrot.slane %v6290_v56, 4  ;;  %v6315_v59 = vshll.u32 %v6139_v48, 16  ;;  %v13893_v12 = vld [vmem:[#allocation7 + $0x120] sm:$0xff]  }
 0x420   :  { %9969 = vmatprep.mubr.bf16.mxu0 %v12099_v52  ;;  %v6295_v3 = vrot.slane %v6293_v10, 5  ;;  %v6731_v43 = vld [vmem:[#allocation3 + $0x58] sm:$0xe]  ;;  %13261 = vmatpush3.bf16.msra.mxu0 %v13883_v39  ;;  %v6872_v0 = vsel %vm14264_vm5, %v12120_v8, %v6871_v44  ;;  %v6732_v60 = vld [vmem:[#allocation3 + $0x5c] sm:$0x1]  ;;  %v6282_v63 = vsel %vm14103_vm2, %v6277_v13, %v6281_v62  ;;  %v6321_v37 = vshll.u32 %v6140_v38, 16 }
 0x421   :  { %v6314_v2 = vrot.slane %v6312_v26, 4  ;;  %v6317_v9 = vrot.slane %v6315_v59, 5  ;;  %13262 = vmatprep.subr.bf16.mxu0 %v13887_v55  ;;  %v13847_v47 = vld [vmem:[#allocation3 + $0x20] ss:$8 sps:$4 sm:$0xff]   ;;  %v137_v6 = vsel %vm16056_vm8, 0, %v136_v40  ;;  %v12122_v51 = vrot.slane %v6731_v43, 9  ;;  %13379 = vmatpush3.bf16.msra.mxu1 %v13890_v22 }
 0x422   :  { %v6296_v11 = vsel %vm14103_vm2, %v6291_v20, %v6295_v3  ;;  %v6141_v41 = vld [vmem:[#allocation3 + $0x60] sm:$0xf]  ;;  %v6143_v45 = vld [vmem:[#allocation3 + $0x68] sm:$0xf]  ;;  %138 = vst [vmem:[#allocation3 + $0xa0] sm:$0x1] %v137_v6  ;;  %v12148_v1 = vcombine.low %v6868_v49, %v6872_v0  ;;  %13380 = vmatprep.subr.bf16.mxu1 %v13894_v50 }
 0x423   :  { %v6318_v15 = vor.u32 %v6317_v9, %v6314_v2  ;;  %v13895_v53 = vld [vmem:[#allocation7 + $0x1b0] sm:$0xff]   ;;  %v6879_v24 = vrot.slane %v6732_v60, 5  ;;  %v6142_v18 = vld [vmem:[#allocation3 + $0x64] sm:$0x1]  ;;  %v6326_v35 = vshrl.u32 %v6141_v41, 16  ;;  %v6329_v61 = vshll.u32 %v6141_v41, 16 }
 0x424   :  { %13263 = vmatpush3.bf16.msra.mxu0 %v13888_v30  ;;  %v13896_v46 = vld [vmem:[#allocation7 + $0x168] sm:$0xff]   ;;  %v12100_v4 = vcombine.low %v6282_v63, %v6296_v11  ;;  %v13848_v25 = vld [vmem:[#allocation3 + $0x58] ss:$8 sps:$4 sm:$0xff]   ;;  %v6340_v39 = vshrl.u32 %v6143_v45, 16  ;;  %v6343_v57 = vshll.u32 %v6143_v45, 16  ;;  %10139 = vmatmul.mubr.bf16.gmra.mrb[160].mxu1 %v12148_v1  ;;  %v6323_v14 = vrot.slane %v6321_v37, 5 }
 0x425   :  { %v6319_v19 = vrot.slane %v6318_v15, 4  ;;  %v258_v17 = vld [vmem:[#allocation3 + $0xa4] sm:$0x1]  ;;  %13264 = vmatprep.subr.bf16.mxu0 %v13892_v36  ;;  %v13898_v34 = vld [vmem:[#allocation7 + $0x1f8] sm:$0xff]   ;;  %v6328_v28 = vrot.slane %v6326_v35, 4  ;;  %v6331_v5 = vrot.slane %v6329_v61, 5  ;;  %10146 = vmatprep.mubr.bf16.mxu1 %v13848_v25  ;;  %v6880_v7 = vsel %vm14264_vm5, %v12122_v51, %v6879_v24 }
 0x426   :  { %v13897_v55 = vld [vmem:[#allocation7 + $0x128] sm:$0xff]   ;;  %v13899_v31 = vld [vmem:[#allocation7 + $0x1b8] sm:$0xff]   ;;  %v19374_v10 = vld [vmem:[#allocation19_spill] sm:$0xff]  ;;  %v6335_v56 = vshll.u32 %v6142_v18, 16  ;;  %v6342_v54 = vrot.slane %v6340_v39, 4  ;;  %v6345_v8 = vrot.slane %v6343_v57, 5  ;;  %13381 = vmatpush3.bf16.msra.mxu1 %v13895_v53 }
 0x427   :  { %9970 = vmatmul.mubr.bf16.gmra.mrb[152].mxu0 %v13847_v47  ;;  %v19372_v33 = vld [vmem:[#allocation20_spill] sm:$0xff]  ;;  %v19375_v16 = vrot.slane %v19374_v10, 9  ;;  %v6144_v29 = vld [vmem:[#allocation3 + $0x6c] sm:$0x1]  ;;  %v13901_v48 = vld [vmem:[#allocation7 + $0x170] sm:$0xff]   ;;  %v6324_v44 = vsel %vm14103_vm2, %v6319_v19, %v6323_v14  ;;  %v6332_v26 = vor.u32 %v6331_v5, %v6328_v28  ;;  %13382 = vmatprep.subr.bf16.mxu1 %v13898_v34 }
 0x428   :  { %9977 = vmatprep.mubr.bf16.mxu0 %v12100_v4  ;;  %v19373_v21 = vrot.slane %v19372_v33, 5  ;;  %v19376_v40 = vld [vmem:[#allocation22_spill] sm:$0xff]  ;;  %v6733_v42 = vld [vmem:[#allocation3 + $0x60] sm:$0xe]  ;;  %13265 = vmatpush3.bf16.msra.mxu0 %v13893_v12  ;;  %v6346_v30 = vor.u32 %v6345_v8, %v6342_v54  ;;  %v6734_v22 = vld [vmem:[#allocation3 + $0x64] sm:$0x1] }
 0x429   :  { %v6310_v13 = vsel %vm14103_vm2, %v19376_v40, %v17513_v27  ;;  %v6735_v62 = vld [vmem:[#allocation3 + $0x68] sm:$0xe]  ;;  %v6736_v20 = vld [vmem:[#allocation3 + $0x6c] sm:$0x1]  ;;  %13266 = vmatprep.subr.bf16.mxu0 %v13896_v46  ;;  %v13849_v38 = vld [vmem:[#allocation3 + $0x30] ss:$8 sps:$4 sm:$0xff]  }
 0x42a   :  { %v6876_v52 = vsel %vm14264_vm5, %v19375_v16, %v19373_v21  ;;  %v259_v27 = vsel %vm16067_vm10, 0, %v258_v17  ;;  %v12101_v36 = vcombine.low %v6310_v13, %v6324_v44  ;;  %v13850_v2 = vld [vmem:[#allocation3 + $0x68] ss:$8 sps:$4 sm:$0xff]   ;;  %v6337_v43 = vrot.slane %v6335_v56, 5  ;;  %v6147_v11 = vld [vmem:[#allocation3 + $0x78] sm:$0xf]  ;;  %13383 = vmatpush3.bf16.msra.mxu1 %v13899_v31 }
 0x42b   :  { %v12149_v3 = vcombine.low %v6876_v52, %v6880_v7  ;;  %v6349_v49 = vshll.u32 %v6144_v29, 16  ;;  %v6145_v0 = vld [vmem:[#allocation3 + $0x70] sm:$0xf]  ;;  %260 = vst [vmem:[#allocation3 + $0xa4] sm:$0x1] %v259_v27  ;;  %v12123_v60 = vrot.slane %v6733_v42, 9 }
 0x42c   :  { %v13902_v9 = vld [vmem:[#allocation7 + $0x130] sm:$0xff]   ;;  %v6883_v50 = vrot.slane %v6734_v22, 5  ;;  %v12124_v47 = vrot.slane %v6735_v62, 9  ;;  %v6887_v63 = vrot.slane %v6736_v20, 5  ;;  %13267 = vmatpush3.bf16.msra.mxu0 %v13897_v55  ;;  %v6333_v37 = vrot.slane %v6332_v26, 4  ;;  %v13904_v51 = vld [vmem:[#allocation7 + $0x178] sm:$0xff]  }
 0x42d   :  { %v6347_v6 = vrot.slane %v6346_v30, 4  ;;  %v6354_v12 = vshrl.u32 %v6145_v0, 16  ;;  %v6357_v15 = vshll.u32 %v6145_v0, 16  ;;  %13268 = vmatprep.subr.bf16.mxu0 %v13901_v48  ;;  %10147 = vmatmul.mubr.bf16.gmra.mrb[164].mxu1 %v12149_v3  ;;  %v6146_v41 = vld [vmem:[#allocation3 + $0x74] sm:$0x1]  ;;  %v6368_v53 = vshrl.u32 %v6147_v11, 16 }
 0x42e   :  { %v6148_v45 = vld [vmem:[#allocation3 + $0x7c] sm:$0x1]  ;;  %v6371_v1 = vshll.u32 %v6147_v11, 16  ;;  %v166_v24 = vld [vmem:[#allocation3 + $0xf0] sm:$0x1]  ;;  %10154 = vmatprep.mubr.bf16.mxu1 %v13850_v2  ;;  %v6351_v18 = vrot.slane %v6349_v49, 5  ;;  %v6884_v25 = vsel %vm14264_vm5, %v12123_v60, %v6883_v50  ;;  %v6888_v19 = vsel %vm14264_vm5, %v12124_v47, %v6887_v63 }
 0x42f   :  { %9978 = vmatmul.mubr.bf16.gmra.mrb[156].mxu0 %v13849_v38  ;;  %v6356_v35 = vrot.slane %v6354_v12, 4  ;;  %v6359_v61 = vrot.slane %v6357_v15, 5  ;;  %v6737_v46 = vld [vmem:[#allocation3 + $0x70] sm:$0xe]  ;;  %v13905_v4 = vld [vmem:[#allocation7 + $0x138] sm:$0xff]   ;;  %v6370_v39 = vrot.slane %v6368_v53, 4  ;;  %v6338_v55 = vsel %vm14103_vm2, %v6333_v37, %v6337_v43 }
 0x430   :  { %9985 = vmatprep.mubr.bf16.mxu0 %v12101_v36  ;;  %v6373_v57 = vrot.slane %v6371_v1, 5  ;;  %v6738_v17 = vld [vmem:[#allocation3 + $0x74] sm:$0x1]  ;;  %v6739_v34 = vld [vmem:[#allocation3 + $0x78] sm:$0xe]  ;;  %13269 = vmatpush3.bf16.msra.mxu0 %v13902_v9  ;;  %v6352_v31 = vsel %vm14103_vm2, %v6347_v6, %v6351_v18  ;;  %v6363_v33 = vshll.u32 %v6146_v41, 16  ;;  %v12150_v10 = vcombine.low %v6884_v25, %v6888_v19 }
 0x431   :  { %v6360_v14 = vor.u32 %v6359_v61, %v6356_v35  ;;  %v6740_v28 = vld [vmem:[#allocation3 + $0x7c] sm:$0x1]  ;;  %13270 = vmatprep.subr.bf16.mxu0 %v13904_v51  ;;  %v13851_v5 = vld [vmem:[#allocation3 + $0x50] ss:$8 sps:$4 sm:$0xff]   ;;  %v6377_v16 = vshll.u32 %v6148_v45, 16  ;;  %v12125_v52 = vrot.slane %v6737_v46, 9  ;;  %v12102_v44 = vcombine.low %v6338_v55, %v6352_v31 }
 0x432   :  { %v6374_v21 = vor.u32 %v6373_v57, %v6370_v39  ;;  %v6149_v29 = vld [vmem:[#allocation3 + $0x80] sm:$0xf]  ;;  %v167_v56 = vsel %vm16056_vm8, 0, %v166_v24  ;;  %v6891_v54 = vrot.slane %v6738_v17, 5  ;;  %v12126_v8 = vrot.slane %v6739_v34, 9 }
 0x433   :  { %v6895_v48 = vrot.slane %v6740_v28, 5  ;;  %v6151_v40 = vld [vmem:[#allocation3 + $0x88] sm:$0xf]  ;;  %v6382_v13 = vshrl.u32 %v6149_v29, 16  ;;  %168 = vst [vmem:[#allocation3 + $0xf0] sm:$0x1] %v167_v56 }
 0x434   :  { %13271 = vmatpush3.bf16.msra.mxu0 %v13905_v4  ;;  %v13852_v7 = vld [vmem:[#allocation3 + $0x78] ss:$8 sps:$4 sm:$0xff]   ;;  %v6361_v42 = vrot.slane %v6360_v14, 4  ;;  %v6385_v26 = vshll.u32 %v6149_v29, 16  ;;  %v6396_v30 = vshrl.u32 %v6151_v40, 16  ;;  %v6365_v22 = vrot.slane %v6363_v33, 5 }
 0x435   :  { %10155 = vmatmul.mubr.bf16.gmra.mrb[168].mxu1 %v12150_v10  ;;  %v6375_v62 = vrot.slane %v6374_v21, 4  ;;  %v6384_v20 = vrot.slane %v6382_v13, 4  ;;  %v6399_v38 = vshll.u32 %v6151_v40, 16  ;;  %v288_v27 = vld [vmem:[#allocation3 + $0xf4] sm:$0x1]  ;;  %v6379_v49 = vrot.slane %v6377_v16, 5 }
 0x436   :  { %10162 = vmatprep.mubr.bf16.mxu1 %v13852_v7  ;;  %v6150_v36 = vld [vmem:[#allocation3 + $0x84] sm:$0x1]  ;;  %v6152_v3 = vld [vmem:[#allocation3 + $0x8c] sm:$0x1]  ;;  %v6387_v2 = vrot.slane %v6385_v26, 5  ;;  %v6398_v43 = vrot.slane %v6396_v30, 4  ;;  %v6892_v0 = vsel %vm14264_vm5, %v12125_v52, %v6891_v54  ;;  %v6896_v9 = vsel %vm14264_vm5, %v12126_v8, %v6895_v48 }
 0x437   :  { %9986 = vmatmul.mubr.bf16.gmra.mrb[160].mxu0 %v13851_v5  ;;  %v6401_v60 = vrot.slane %v6399_v38, 5  ;;  %v6741_v50 = vld [vmem:[#allocation3 + $0x80] sm:$0xe]  ;;  %v6742_v47 = vld [vmem:[#allocation3 + $0x84] sm:$0x1]  ;;  %v6366_v63 = vsel %vm14103_vm2, %v6361_v42, %v6365_v22  ;;  %v6380_v15 = vsel %vm14103_vm2, %v6375_v62, %v6379_v49  ;;  %v6391_v51 = vshll.u32 %v6150_v36, 16 }
 0x438   :  { %9993 = vmatprep.mubr.bf16.mxu0 %v12102_v44  ;;  %v6388_v11 = vor.u32 %v6387_v2, %v6384_v20  ;;  %v6743_v37 = vld [vmem:[#allocation3 + $0x88] sm:$0xe]  ;;  %v6744_v6 = vld [vmem:[#allocation3 + $0x8c] sm:$0x1]  ;;  %v289_v45 = vsel %vm16067_vm10, 0, %v288_v27  ;;  %v12151_v53 = vcombine.low %v6892_v0, %v6896_v9  ;;  %v6405_v24 = vshll.u32 %v6152_v3, 16 }
 0x439   :  { %v13853_v12 = vld [vmem:[#allocation3 + $0x60] ss:$8 sps:$4 sm:$0xff]   ;;  %v6402_v41 = vor.u32 %v6401_v60, %v6398_v43  ;;  %290 = vst [vmem:[#allocation3 + $0xf4] sm:$0x1] %v289_v45  ;;  %v12127_v18 = vrot.slane %v6741_v50, 9  ;;  %v6899_v35 = vrot.slane %v6742_v47, 5  ;;  %v12103_v25 = vcombine.low %v6366_v63, %v6380_v15 }
 0x43a   :  { %v13854_v1 = vld [vmem:[#allocation3 + $0x88] ss:$8 sps:$4 sm:$0xff]   ;;  %v12128_v61 = vrot.slane %v6743_v37, 9  ;;  %v6903_v46 = vrot.slane %v6744_v6, 5  ;;  %v6153_v4 = vld [vmem:[#allocation3 + $0xa0] sm:$0xf] }
 0x43b   :  { %v6389_v19 = vrot.slane %v6388_v11, 4  ;;  %v6403_v39 = vrot.slane %v6402_v41, 4  ;;  %v6154_v57 = vld [vmem:[#allocation3 + $0xa4] sm:$0x1]  ;;  %v6155_v17 = vld [vmem:[#allocation3 + $0xa8] sm:$0xf]  ;;  %v6900_v16 = vsel %vm14264_vm5, %v12127_v18, %v6899_v35 }
 0x43c   :  { %v6393_v34 = vrot.slane %v6391_v51, 5  ;;  %v6410_v14 = vshrl.u32 %v6153_v4, 16  ;;  %v6413_v28 = vshll.u32 %v6153_v4, 16  ;;  %v6745_v5 = vld [vmem:[#allocation3 + $0xa0] sm:$0xe]  ;;  %v6407_v55 = vrot.slane %v6405_v24, 5 }
 0x43d   :  { %10163 = vmatmul.mubr.bf16.gmra.mrb[172].mxu1 %v12151_v53  ;;  %v6156_v31 = vld [vmem:[#allocation3 + $0xac] sm:$0x1]  ;;  %v6419_v33 = vshll.u32 %v6154_v57, 16  ;;  %v6424_v21 = vshrl.u32 %v6155_v17, 16  ;;  %v6427_v10 = vshll.u32 %v6155_v17, 16  ;;  %v6904_v52 = vsel %vm14264_vm5, %v12128_v61, %v6903_v46 }
 0x43e   :  { %10170 = vmatprep.mubr.bf16.mxu1 %v13854_v1  ;;  %v6412_v29 = vrot.slane %v6410_v14, 4  ;;  %v6415_v56 = vrot.slane %v6413_v28, 5  ;;  %v6746_v54 = vld [vmem:[#allocation3 + $0xa4] sm:$0x1]  ;;  %v6747_v8 = vld [vmem:[#allocation3 + $0xa8] sm:$0xe]  ;;  %v6394_v48 = vsel %vm14103_vm2, %v6389_v19, %v6393_v34  ;;  %v6408_v40 = vsel %vm14103_vm2, %v6403_v39, %v6407_v55 }
 0x43f   :  { %9994 = vmatmul.mubr.bf16.gmra.mrb[164].mxu0 %v13853_v12  ;;  %v6426_v13 = vrot.slane %v6424_v21, 4  ;;  %v6429_v44 = vrot.slane %v6427_v10, 5  ;;  %v6748_v7 = vld [vmem:[#allocation3 + $0xac] sm:$0x1]  ;;  %v13855_v42 = vld [vmem:[#allocation3 + $0x70] ss:$8 sps:$4 sm:$0xff]   ;;  %v12152_v30 = vcombine.low %v6900_v16, %v6904_v52  ;;  %v12104_v27 = vcombine.low %v6394_v48, %v6408_v40 }
 0x440   :  { %10001 = vmatprep.mubr.bf16.mxu0 %v12103_v25  ;;  %v6416_v26 = vor.u32 %v6415_v56, %v6412_v29  ;;  %v13856_v22 = vld [vmem:[#allocation3 + $0xa8] ss:$8 sps:$4 sm:$0xff]   ;;  %v6433_v20 = vshll.u32 %v6156_v31, 16  ;;  %v12129_v38 = vrot.slane %v6745_v5, 9  ;;  %v6907_v36 = vrot.slane %v6746_v54, 5 }
 0x441   :  { %v6430_v62 = vor.u32 %v6429_v44, %v6426_v13  ;;  %v12130_v3 = vrot.slane %v6747_v8, 9  ;;  %v6911_v2 = vrot.slane %v6748_v7, 5  ;;  %v6157_v43 = vld [vmem:[#allocation3 + $0xb0] sm:$0xf]  ;;  %v6421_v0 = vrot.slane %v6419_v33, 5 }
 0x442   :  { %v6417_v49 = vrot.slane %v6416_v26, 4  ;;  %v6159_v60 = vld [vmem:[#allocation3 + $0xb8] sm:$0xf]  ;;  %v6438_v50 = vshrl.u32 %v6157_v43, 16  ;;  %v6441_v47 = vshll.u32 %v6157_v43, 16  ;;  %v6435_v11 = vrot.slane %v6433_v20, 5 }
 0x443   :  { %v6431_v9 = vrot.slane %v6430_v62, 4  ;;  %v6452_v63 = vshrl.u32 %v6159_v60, 16  ;;  %v6158_v37 = vld [vmem:[#allocation3 + $0xb4] sm:$0x1]  ;;  %v6455_v12 = vshll.u32 %v6159_v60, 16  ;;  %v6908_v15 = vsel %vm14264_vm5, %v12129_v38, %v6907_v36 }
 0x444   :  { %v6440_v6 = vrot.slane %v6438_v50, 4  ;;  %v6912_v51 = vsel %vm14264_vm5, %v12130_v3, %v6911_v2  ;;  %v6160_v41 = vld [vmem:[#allocation3 + $0xbc] sm:$0x1]  ;;  %v6443_v45 = vrot.slane %v6441_v47, 5  ;;  %v6749_v1 = vld [vmem:[#allocation3 + $0xb0] sm:$0xe]  ;;  %v6422_v24 = vsel %vm14103_vm2, %v6417_v49, %v6421_v0 }
 0x445   :  { %10171 = vmatmul.mubr.bf16.gmra.mrb[176].mxu1 %v12152_v30  ;;  %v6454_v53 = vrot.slane %v6452_v63, 4  ;;  %v6436_v18 = vsel %vm14103_vm2, %v6431_v9, %v6435_v11  ;;  %v6457_v35 = vrot.slane %v6455_v12, 5  ;;  %v6750_v61 = vld [vmem:[#allocation3 + $0xb4] sm:$0x1]  ;;  %v6751_v46 = vld [vmem:[#allocation3 + $0xb8] sm:$0xe]  ;;  %v12153_v39 = vcombine.low %v6908_v15, %v6912_v51 }
 0x446   :  { %10178 = vmatprep.mubr.bf16.mxu1 %v13856_v22  ;;  %v13857_v4 = vld [vmem:[#allocation3 + $0x80] ss:$8 sps:$4 sm:$0xff]   ;;  %v6444_v25 = vor.u32 %v6443_v45, %v6440_v6  ;;  %v6752_v19 = vld [vmem:[#allocation3 + $0xbc] sm:$0x1]  ;;  %v6447_v17 = vshll.u32 %v6158_v37, 16  ;;  %v6461_v14 = vshll.u32 %v6160_v41, 16  ;;  %v12105_v28 = vcombine.low %v6422_v24, %v6436_v18 }
 0x447   :  { %10002 = vmatmul.mubr.bf16.gmra.mrb[168].mxu0 %v13855_v42  ;;  %v13858_v57 = vld [vmem:[#allocation3 + $0xb8] ss:$8 sps:$4 sm:$0xff]   ;;  %v6458_v34 = vor.u32 %v6457_v35, %v6454_v53  ;;  %v12131_v5 = vrot.slane %v6749_v1, 9  ;;  %v6915_v55 = vrot.slane %v6750_v61, 5  ;;  %v12132_v31 = vrot.slane %v6751_v46, 9 }
 0x448   :  { %10009 = vmatprep.mubr.bf16.mxu0 %v12104_v27  ;;  %v6161_v33 = vld [vmem:[#allocation3 + $0xc0] sm:$0xf]  ;;  %v6445_v21 = vrot.slane %v6444_v25, 4  ;;  %v6919_v16 = vrot.slane %v6752_v19, 5  ;;  %v6163_v52 = vld [vmem:[#allocation3 + $0xc8] sm:$0xf] }
 0x449   :  { %v6459_v10 = vrot.slane %v6458_v34, 4  ;;  %v6466_v29 = vshrl.u32 %v6161_v33, 16  ;;  %v6469_v56 = vshll.u32 %v6161_v33, 16  ;;  %v6480_v54 = vshrl.u32 %v6163_v52, 16  ;;  %v6162_v7 = vld [vmem:[#allocation3 + $0xc4] sm:$0x1] }
 0x44a   :  { %v6449_v8 = vrot.slane %v6447_v17, 5  ;;  %v6463_v48 = vrot.slane %v6461_v14, 5  ;;  %v6483_v13 = vshll.u32 %v6163_v52, 16  ;;  %v6916_v44 = vsel %vm14264_vm5, %v12131_v5, %v6915_v55  ;;  %v6164_v42 = vld [vmem:[#allocation3 + $0xcc] sm:$0x1] }
 0x44b   :  { %v6468_v40 = vrot.slane %v6466_v29, 4  ;;  %v6471_v26 = vrot.slane %v6469_v56, 5  ;;  %v6482_v30 = vrot.slane %v6480_v54, 4  ;;  %v6920_v20 = vsel %vm14264_vm5, %v12132_v31, %v6919_v16  ;;  %v6753_v27 = vld [vmem:[#allocation3 + $0xc0] sm:$0xe] }
 0x44c   :  { %v6450_v22 = vsel %vm14103_vm2, %v6445_v21, %v6449_v8  ;;  %v6464_v62 = vsel %vm14103_vm2, %v6459_v10, %v6463_v48  ;;  %v6485_v38 = vrot.slane %v6483_v13, 5  ;;  %v6754_v36 = vld [vmem:[#allocation3 + $0xc4] sm:$0x1]  ;;  %v6755_v2 = vld [vmem:[#allocation3 + $0xc8] sm:$0xe]  ;;  %v6475_v0 = vshll.u32 %v6162_v7, 16 }
 0x44d   :  { %10179 = vmatmul.mubr.bf16.gmra.mrb[180].mxu1 %v12153_v39  ;;  %v6472_v3 = vor.u32 %v6471_v26, %v6468_v40  ;;  %v6756_v43 = vld [vmem:[#allocation3 + $0xcc] sm:$0x1]  ;;  %v13859_v49 = vld [vmem:[#allocation3 + $0xa0] ss:$8 sps:$4 sm:$0xff]   ;;  %v6489_v60 = vshll.u32 %v6164_v42, 16  ;;  %v12106_v50 = vcombine.low %v6450_v22, %v6464_v62  ;;  %v12154_v47 = vcombine.low %v6916_v44, %v6920_v20 }
 0x44e   :  { %10186 = vmatprep.mubr.bf16.mxu1 %v13858_v57  ;;  %v6486_v9 = vor.u32 %v6485_v38, %v6482_v30  ;;  %v13860_v63 = vld [vmem:[#allocation3 + $0xc8] ss:$8 sps:$4 sm:$0xff]   ;;  %v12133_v11 = vrot.slane %v6753_v27, 9  ;;  %v6923_v37 = vrot.slane %v6754_v36, 5  ;;  %v12134_v6 = vrot.slane %v6755_v2, 9 }
 0x44f   :  { %10010 = vmatmul.mubr.bf16.gmra.mrb[172].mxu0 %v13857_v4  ;;  %v6927_v12 = vrot.slane %v6756_v43, 5  ;;  %v6165_v15 = vld [vmem:[#allocation3 + $0xd0] sm:$0xf]  ;;  %v6473_v51 = vrot.slane %v6472_v3, 4  ;;  %v6167_v45 = vld [vmem:[#allocation3 + $0xd8] sm:$0xf] }
 0x450   :  { %10017 = vmatprep.mubr.bf16.mxu0 %v12105_v28  ;;  %v6487_v41 = vrot.slane %v6486_v9, 4  ;;  %v6477_v53 = vrot.slane %v6475_v0, 5  ;;  %v6491_v1 = vrot.slane %v6489_v60, 5  ;;  %v6494_v24 = vshrl.u32 %v6165_v15, 16  ;;  %v6166_v35 = vld [vmem:[#allocation3 + $0xd4] sm:$0x1] }
 0x451   :  { %v6497_v18 = vshll.u32 %v6165_v15, 16  ;;  %v6168_v61 = vld [vmem:[#allocation3 + $0xdc] sm:$0x1]  ;;  %v6508_v46 = vshrl.u32 %v6167_v45, 16  ;;  %v6511_v4 = vshll.u32 %v6167_v45, 16  ;;  %v6924_v25 = vsel %vm14264_vm5, %v12133_v11, %v6923_v37 }
 0x452   :  { %v6928_v19 = vsel %vm14264_vm5, %v12134_v6, %v6927_v12  ;;  %v6496_v39 = vrot.slane %v6494_v24, 4  ;;  %v6757_v17 = vld [vmem:[#allocation3 + $0xd0] sm:$0xe]  ;;  %v6758_v34 = vld [vmem:[#allocation3 + $0xd4] sm:$0x1]  ;;  %v6478_v28 = vsel %vm14103_vm2, %v6473_v51, %v6477_v53  ;;  %v6492_v5 = vsel %vm14103_vm2, %v6487_v41, %v6491_v1 }
 0x453   :  { %v6499_v57 = vrot.slane %v6497_v18, 5  ;;  %v13861_v14 = vld [vmem:[#allocation3 + $0xb0] ss:$8 sps:$4 sm:$0xff]   ;;  %v6510_v55 = vrot.slane %v6508_v46, 4  ;;  %v6513_v31 = vrot.slane %v6511_v4, 5  ;;  %v6503_v52 = vshll.u32 %v6166_v35, 16 }
 0x454   :  { %v6759_v33 = vld [vmem:[#allocation3 + $0xd8] sm:$0xe]  ;;  %v6760_v21 = vld [vmem:[#allocation3 + $0xdc] sm:$0x1]  ;;  %v6517_v29 = vshll.u32 %v6168_v61, 16  ;;  %v12155_v56 = vcombine.low %v6924_v25, %v6928_v19  ;;  %v12135_v8 = vrot.slane %v6757_v17, 9  ;;  %v12107_v40 = vcombine.low %v6478_v28, %v6492_v5 }
 0x455   :  { %10187 = vmatmul.mubr.bf16.gmra.mrb[184].mxu1 %v12154_v47  ;;  %v13862_v10 = vld [vmem:[#allocation3 + $0xd8] ss:$8 sps:$4 sm:$0xff]   ;;  %v6500_v16 = vor.u32 %v6499_v57, %v6496_v39  ;;  %v6514_v54 = vor.u32 %v6513_v31, %v6510_v55  ;;  %v6931_v48 = vrot.slane %v6758_v34, 5  ;;  %v12136_v44 = vrot.slane %v6759_v33, 9  ;;  %v6169_v42 = vld [vmem:[#allocation3 + $0xf0] sm:$0xf] }
 0x456   :  { %10194 = vmatprep.mubr.bf16.mxu1 %v13860_v63  ;;  %v6935_v7 = vrot.slane %v6760_v21, 5  ;;  %v6170_v30 = vld [vmem:[#allocation3 + $0xf4] sm:$0x1]  ;;  %v6171_v22 = vld [vmem:[#allocation3 + $0xf8] sm:$0xf]  ;;  %v6522_v62 = vshrl.u32 %v6169_v42, 16 }
 0x457   :  { %10018 = vmatmul.mubr.bf16.gmra.mrb[176].mxu0 %v13859_v49  ;;  %v6501_v13 = vrot.slane %v6500_v16, 4  ;;  %v6515_v26 = vrot.slane %v6514_v54, 4  ;;  %v6505_v20 = vrot.slane %v6503_v52, 5  ;;  %v6519_v38 = vrot.slane %v6517_v29, 5  ;;  %v6761_v3 = vld [vmem:[#allocation3 + $0xf0] sm:$0xe] }
 0x458   :  { %10025 = vmatprep.mubr.bf16.mxu0 %v12106_v50  ;;  %v6525_v27 = vshll.u32 %v6169_v42, 16  ;;  %v6536_v36 = vshrl.u32 %v6171_v22, 16  ;;  %v6932_v2 = vsel %vm14264_vm5, %v12135_v8, %v6931_v48  ;;  %v6172_v43 = vld [vmem:[#allocation3 + $0xfc] sm:$0x1]  ;;  %v6524_v49 = vrot.slane %v6522_v62, 4 }
 0x459   :  { %v6539_v0 = vshll.u32 %v6171_v22, 16  ;;  %v6762_v9 = vld [vmem:[#allocation3 + $0xf4] sm:$0x1]  ;;  %v6936_v60 = vsel %vm14264_vm5, %v12136_v44, %v6935_v7  ;;  %v6531_v47 = vshll.u32 %v6170_v30, 16  ;;  %v6763_v11 = vld [vmem:[#allocation3 + $0xf8] sm:$0xe]  ;;  %v6506_v6 = vsel %vm14103_vm2, %v6501_v13, %v6505_v20 }
 0x45a   :  { %v6527_v50 = vrot.slane %v6525_v27, 5  ;;  %v6538_v63 = vrot.slane %v6536_v36, 4  ;;  %v13863_v37 = vld [vmem:[#allocation3 + $0xc0] ss:$8 sps:$4 sm:$0xff]   ;;  %v6520_v12 = vsel %vm14103_vm2, %v6515_v26, %v6519_v38  ;;  %v6764_v51 = vld [vmem:[#allocation3 + $0xfc] sm:$0x1]  ;;  %v12156_v24 = vcombine.low %v6932_v2, %v6936_v60 }
 0x45b   :  { %v6541_v15 = vrot.slane %v6539_v0, 5  ;;  %v12137_v41 = vrot.slane %v6761_v3, 9  ;;  %v6545_v53 = vshll.u32 %v6172_v43, 16  ;;  %v6939_v1 = vrot.slane %v6762_v9, 5  ;;  %v13864_v4 = vld [vmem:[#allocation3 + $0xf8] ss:$8 sps:$4 sm:$0xff]  }
 0x45c   :  { %v6528_v45 = vor.u32 %v6527_v50, %v6524_v49  ;;  %v12138_v35 = vrot.slane %v6763_v11, 9  ;;  %v6943_v61 = vrot.slane %v6764_v51, 5  ;;  %v12108_v46 = vcombine.low %v6506_v6, %v6520_v12  ;;  %v6173_v39 = vld [vmem:[#allocation3 + $0x100] sm:$0xf]  ;;  %v6174_v17 = vld [vmem:[#allocation3 + $0x104] sm:$0x1] }
 0x45d   :  { %10195 = vmatmul.mubr.bf16.gmra.mrb[188].mxu1 %v12155_v56  ;;  %v6542_v18 = vor.u32 %v6541_v15, %v6538_v63  ;;  %v6533_v19 = vrot.slane %v6531_v47, 5  ;;  %v6175_v34 = vld [vmem:[#allocation3 + $0x108] sm:$0xf]  ;;  %v6547_v28 = vrot.slane %v6545_v53, 5  ;;  %v6176_v5 = vld [vmem:[#allocation3 + $0x10c] sm:$0x1]  ;;  %v6940_v33 = vsel %vm14264_vm5, %v12137_v41, %v6939_v1 }
 0x45e   :  { %10202 = vmatprep.mubr.bf16.mxu1 %v13862_v10  ;;  %v6529_v25 = vrot.slane %v6528_v45, 4  ;;  %v6553_v55 = vshll.u32 %v6173_v39, 16  ;;  %v6564_v31 = vshrl.u32 %v6175_v34, 16  ;;  %v6944_v21 = vsel %vm14264_vm5, %v12138_v35, %v6943_v61  ;;  %v6765_v52 = vld [vmem:[#allocation3 + $0x100] sm:$0xe] }
 0x45f   :  { %10026 = vmatmul.mubr.bf16.gmra.mrb[180].mxu0 %v13861_v14  ;;  %v6543_v57 = vrot.slane %v6542_v18, 4  ;;  %v6550_v14 = vshrl.u32 %v6173_v39, 16  ;;  %v6567_v16 = vshll.u32 %v6175_v34, 16  ;;  %v6559_v56 = vshll.u32 %v6174_v17, 16  ;;  %v6766_v8 = vld [vmem:[#allocation3 + $0x104] sm:$0x1] }
 0x460   :  { %10033 = vmatprep.mubr.bf16.mxu0 %v12107_v40  ;;  %v6555_v29 = vrot.slane %v6553_v55, 5  ;;  %v6566_v54 = vrot.slane %v6564_v31, 4  ;;  %v13865_v48 = vld [vmem:[#allocation3 + $0xd0] ss:$8 sps:$4 sm:$0xff]   ;;  %v6534_v40 = vsel %vm14103_vm2, %v6529_v25, %v6533_v19  ;;  %v6573_v7 = vshll.u32 %v6176_v5, 16 }
 0x461   :  { %v6552_v10 = vrot.slane %v6550_v14, 4  ;;  %v6548_v13 = vsel %vm14103_vm2, %v6543_v57, %v6547_v28  ;;  %v6569_v44 = vrot.slane %v6567_v16, 5  ;;  %v6767_v42 = vld [vmem:[#allocation3 + $0x108] sm:$0xe]  ;;  %v6768_v26 = vld [vmem:[#allocation3 + $0x10c] sm:$0x1]  ;;  %v12157_v30 = vcombine.low %v6940_v33, %v6944_v21 }
 0x462   :  { %v13867_v22 = vld [vmem:[#allocation3 + $0x108] ss:$8 sps:$4 sm:$0xff]   ;;  %v12139_v20 = vrot.slane %v6765_v52, 9  ;;  %v6947_v27 = vrot.slane %v6766_v8, 5  ;;  %v12140_v36 = vrot.slane %v6767_v42, 9  ;;  %v6951_v3 = vrot.slane %v6768_v26, 5 }
 0x463   :  { %v6556_v62 = vor.u32 %v6555_v29, %v6552_v10  ;;  %v6570_v38 = vor.u32 %v6569_v44, %v6566_v54  ;;  %v12109_v2 = vcombine.low %v6534_v40, %v6548_v13  ;;  %v6561_v49 = vrot.slane %v6559_v56, 5  ;;  %v6177_v60 = vld [vmem:[#allocation3 + $0x110] sm:$0xf]  ;;  %v6178_v50 = vld [vmem:[#allocation3 + $0x114] sm:$0x1] }
 0x464   :  { %v6575_v9 = vrot.slane %v6573_v7, 5  ;;  %v6179_v47 = vld [vmem:[#allocation3 + $0x118] sm:$0xf]  ;;  %v6180_v63 = vld [vmem:[#allocation3 + $0x11c] sm:$0x1]  ;;  %v6948_v11 = vsel %vm14264_vm5, %v12139_v20, %v6947_v27  ;;  %v6578_v6 = vshrl.u32 %v6177_v60, 16 }
 0x465   :  { %10203 = vmatmul.mubr.bf16.gmra.mrb[192].mxu1 %v12156_v24  ;;  %v6557_v43 = vrot.slane %v6556_v62, 4  ;;  %v6571_v0 = vrot.slane %v6570_v38, 4  ;;  %v6581_v12 = vshll.u32 %v6177_v60, 16  ;;  %v6769_v15 = vld [vmem:[#allocation3 + $0x110] sm:$0xe]  ;;  %v6592_v45 = vshrl.u32 %v6179_v47, 16 }
 0x466   :  { %10210 = vmatprep.mubr.bf16.mxu1 %v13864_v4  ;;  %v6595_v53 = vshll.u32 %v6179_v47, 16  ;;  %v6770_v1 = vld [vmem:[#allocation3 + $0x114] sm:$0x1]  ;;  %v13872_v24 = vld [vmem:[#allocation3 + $0xf0] ss:$8 sps:$4 sm:$0xff]   ;;  %v6580_v18 = vrot.slane %v6578_v6, 4 }
 0x467   :  { %10034 = vmatmul.mubr.bf16.gmra.mrb[184].mxu0 %v13863_v37  ;;  %v6952_v37 = vsel %vm14264_vm5, %v12140_v36, %v6951_v3  ;;  %v6562_v51 = vsel %vm14103_vm2, %v6557_v43, %v6561_v49  ;;  %v6576_v41 = vsel %vm14103_vm2, %v6571_v0, %v6575_v9  ;;  %v6583_v35 = vrot.slane %v6581_v12, 5  ;;  %v6771_v4 = vld [vmem:[#allocation3 + $0x118] sm:$0xe]  ;;  %v6772_v39 = vld [vmem:[#allocation3 + $0x11c] sm:$0x1] }
 0x468   :  { %10041 = vmatprep.mubr.bf16.mxu0 %v12108_v46  ;;  %v6587_v61 = vshll.u32 %v6178_v50, 16  ;;  %v6601_v46 = vshll.u32 %v6180_v63, 16  ;;  %v6594_v25 = vrot.slane %v6592_v45, 4  ;;  %v6597_v19 = vrot.slane %v6595_v53, 5  ;;  %v13875_v31 = vld [vmem:[#allocation3 + $0x118] ss:$8 sps:$4 sm:$0xff]  }
 0x469   :  { %v12141_v57 = vrot.slane %v6769_v15, 9  ;;  %v6955_v17 = vrot.slane %v6770_v1, 5  ;;  %v12158_v34 = vcombine.low %v6948_v11, %v6952_v37  ;;  %v6584_v14 = vor.u32 %v6583_v35, %v6580_v18  ;;  %v6181_v52 = vld [vmem:[#allocation3 + $0x120] sm:$0xf]  ;;  %v6182_v56 = vld [vmem:[#allocation3 + $0x124] sm:$0x1] }
 0x46a   :  { %v12142_v28 = vrot.slane %v6771_v4, 9  ;;  %v6959_v5 = vrot.slane %v6772_v39, 5  ;;  %v12110_v55 = vcombine.low %v6562_v51, %v6576_v41  ;;  %v6598_v33 = vor.u32 %v6597_v19, %v6594_v25  ;;  %v6183_v54 = vld [vmem:[#allocation3 + $0x128] sm:$0xf]  ;;  %v6184_v13 = vld [vmem:[#allocation3 + $0x12c] sm:$0x1] }
 0x46b   :  { %v6585_v21 = vrot.slane %v6584_v14, 4  ;;  %v6589_v10 = vrot.slane %v6587_v61, 5  ;;  %v6603_v16 = vrot.slane %v6601_v46, 5  ;;  %v6606_v8 = vshrl.u32 %v6181_v52, 16  ;;  %v13881_v62 = vld [vmem:[#allocation3 + $0x100] ss:$8 sps:$4 sm:$0xff]  }
 0x46c   :  { %v6599_v29 = vrot.slane %v6598_v33, 4  ;;  %v6960_v40 = vsel %vm14264_vm5, %v12142_v28, %v6959_v5  ;;  %v6609_v44 = vshll.u32 %v6181_v52, 16  ;;  %v6620_v7 = vshrl.u32 %v6183_v54, 16  ;;  %v6774_v3 = vld [vmem:[#allocation3 + $0x124] sm:$0x1] }
 0x46d   :  { %10211 = vmatmul.mubr.bf16.gmra.mrb[196].mxu1 %v12157_v30  ;;  %v6590_v42 = vsel %vm14103_vm2, %v6585_v21, %v6589_v10  ;;  %v6608_v26 = vrot.slane %v6606_v8, 4  ;;  %v6623_v30 = vshll.u32 %v6183_v54, 16  ;;  %v6615_v27 = vshll.u32 %v6182_v56, 16  ;;  %v13885_v43 = vld [vmem:[#allocation3 + $0x128] ss:$8 sps:$4 sm:$0xff]  }
 0x46e   :  { %10218 = vmatprep.mubr.bf16.mxu1 %v13867_v22  ;;  %v6773_v22 = vld [vmem:[#allocation3 + $0x120] sm:$0xe]  ;;  %v6604_v20 = vsel %vm14103_vm2, %v6599_v29, %v6603_v16  ;;  %v6611_v38 = vrot.slane %v6609_v44, 5  ;;  %v6622_v36 = vrot.slane %v6620_v7, 4  ;;  %v6629_v0 = vshll.u32 %v6184_v13, 16 }
 0x46f   :  { %10042 = vmatmul.mubr.bf16.gmra.mrb[188].mxu0 %v13865_v48  ;;  %v6956_v48 = vsel %vm14264_vm5, %v12141_v57, %v6955_v17  ;;  %v6625_v49 = vrot.slane %v6623_v30, 5  ;;  %v6775_v9 = vld [vmem:[#allocation3 + $0x128] sm:$0xe]  ;;  %v6776_v60 = vld [vmem:[#allocation3 + $0x12c] sm:$0x1]  ;;  %v12143_v47 = vrot.slane %v6773_v22, 9  ;;  %v12111_v6 = vcombine.low %v6590_v42, %v6604_v20 }
 0x470   :  { %10049 = vmatprep.mubr.bf16.mxu0 %v12109_v2  ;;  %v12159_v2 = vcombine.low %v6956_v48, %v6960_v40  ;;  %v6612_v50 = vor.u32 %v6611_v38, %v6608_v26  ;;  %v6963_v63 = vrot.slane %v6774_v3, 5  ;;  %v12144_v11 = vrot.slane %v6775_v9, 9  ;;  %v8266_v37 = vld [vmem:[#allocation3 + $0x10] sm:$0xf]  ;;  %v8267_v51 = vld [vmem:[#allocation3 + $0x14] sm:$0x1] }
 0x471   :  { %v6626_v12 = vor.u32 %v6625_v49, %v6622_v36  ;;  %v6967_v15 = vrot.slane %v6776_v60, 5  ;;  %v8268_v41 = vld [vmem:[#allocation3 + $0x18] sm:$0xf]  ;;  %v8331_v45 = vshrl.u32 %v8266_v37, 16  ;;  %v8269_v1 = vld [vmem:[#allocation3 + $0x1c] sm:$0x1] }
 0x472   :  { %v6613_v53 = vrot.slane %v6612_v50, 4  ;;  %v6617_v18 = vrot.slane %v6615_v27, 5  ;;  %v8345_v46 = vshrl.u32 %v8268_v41, 16  ;;  %v6631_v4 = vrot.slane %v6629_v0, 5  ;;  %v7785_v28 = vld [vmem:[#allocation3 + $0x8] sm:$0xe] }
 0x473   :  { %v6627_v35 = vrot.slane %v6626_v12, 4  ;;  %v8333_v61 = vrot.slane %v8331_v45, 4  ;;  %v6964_v25 = vsel %vm14264_vm5, %v12143_v47, %v6963_v63  ;;  %v8340_v39 = vshll.u32 %v8267_v51, 16  ;;  %v13891_v5 = vld [vmem:[#allocation3 + $0x110] ss:$8 sps:$4 sm:$0xff]  }
 0x474   :  { %v6968_v57 = vsel %vm14264_vm5, %v12144_v11, %v6967_v15  ;;  %v8347_v17 = vrot.slane %v8345_v46, 4  ;;  %v8354_v14 = vshll.u32 %v8269_v1, 16  ;;  %v7786_v21 = vld [vmem:[#allocation3 + $0xc] sm:$0x1]  ;;  %v7787_v10 = vld [vmem:[#allocation3 + $0x10] sm:$0xe] }
 0x475   :  { %10219 = vmatmul.mubr.bf16.gmra.mrb[200].mxu1 %v12158_v34  ;;  %v8348_v34 = vshll.u32 %v8268_v41, 16  ;;  %v7788_v16 = vld [vmem:[#allocation3 + $0x14] sm:$0x1]  ;;  %v12193_v29 = vrot.slane %v7785_v28, 9  ;;  %v7915_v56 = vrot.slane %v7786_v21, 5  ;;  %v12160_v54 = vcombine.low %v6964_v25, %v6968_v57 }
 0x476   :  { %10226 = vmatprep.mubr.bf16.mxu1 %v13875_v31  ;;  %v6632_v31 = vsel %vm14103_vm2, %v6627_v35, %v6631_v4  ;;  %v12194_v48 = vrot.slane %v7787_v10, 9  ;;  %v7919_v40 = vrot.slane %v7788_v16, 5  ;;  %v8342_v44 = vrot.slane %v8340_v39, 5  ;;  %v8270_v26 = vld [vmem:[#allocation3 + $0x20] sm:$0xf] }
 0x477   :  { %10050 = vmatmul.mubr.bf16.gmra.mrb[192].mxu0 %v13872_v24  ;;  %v8334_v24 = vshll.u32 %v8266_v37, 16  ;;  %v8350_v52 = vrot.slane %v8348_v34, 5  ;;  %v8356_v42 = vrot.slane %v8354_v14, 5  ;;  %v8271_v30 = vld [vmem:[#allocation3 + $0x24] sm:$0x1]  ;;  %v7916_v22 = vsel %vm14264_vm5, %v12193_v29, %v7915_v56 }
 0x478   :  { %10057 = vmatprep.mubr.bf16.mxu0 %v12110_v55  ;;  %v6618_v55 = vsel %vm14103_vm2, %v6613_v53, %v6617_v18  ;;  %v8272_v20 = vld [vmem:[#allocation3 + $0x28] sm:$0xf]  ;;  %v8273_v38 = vld [vmem:[#allocation3 + $0x2c] sm:$0x1]  ;;  %v8359_v27 = vshrl.u32 %v8270_v26, 16  ;;  %v8362_v36 = vshll.u32 %v8270_v26, 16 }
 0x479   :  { %v8336_v19 = vrot.slane %v8334_v24, 5  ;;  %v12112_v13 = vcombine.low %v6618_v55, %v6632_v31  ;;  %v8351_v7 = vor.u32 %v8350_v52, %v8347_v17  ;;  %v8373_v49 = vshrl.u32 %v8272_v20, 16  ;;  %v7193_v0 = vld [vmem:[#allocation3 + $0x8] sm:$0xf]  ;;  %v7194_v47 = vld [vmem:[#allocation3 + $0xc] sm:$0x1] }
 0x47a   :  { %v8361_v9 = vrot.slane %v8359_v27, 4  ;;  %v8364_v60 = vrot.slane %v8362_v36, 5  ;;  %v8376_v50 = vshll.u32 %v8272_v20, 16  ;;  %v7195_v12 = vld [vmem:[#allocation3 + $0x10] sm:$0xf]  ;;  %v7261_v46 = vshll.u32 %v7193_v0, 16 }
 0x47b   :  { %v8337_v33 = vor.u32 %v8336_v19, %v8333_v61  ;;  %v8375_v37 = vrot.slane %v8373_v49, 4  ;;  %v7196_v15 = vld [vmem:[#allocation3 + $0x14] sm:$0x1]  ;;  %v13900_v41 = vld [vmem:[#allocation3 + $0x120] ss:$8 sps:$4 sm:$0xff]   ;;  %v7258_v61 = vshrl.u32 %v7193_v0, 16 }
 0x47c   :  { %v13903_v45 = vld [vmem:[#allocation3 + $0x10] ss:$8 sps:$4 sm:$0xff]   ;;  %v8365_v53 = vor.u32 %v8364_v60, %v8361_v9  ;;  %v8378_v24 = vrot.slane %v8376_v50, 5  ;;  %v7790_v35 = vld [vmem:[#allocation3 + $0x1c] sm:$0x1]  ;;  %v7267_v4 = vshll.u32 %v7194_v47, 16 }
 0x47d   :  { %10227 = vmatmul.mubr.bf16.gmra.mrb[204].mxu1 %v12159_v2  ;;  %v8338_v8 = vrot.slane %v8337_v33, 4  ;;  %v8352_v2 = vrot.slane %v8351_v7, 4  ;;  %v7789_v18 = vld [vmem:[#allocation3 + $0x18] sm:$0xe]  ;;  %v7272_v25 = vshrl.u32 %v7195_v12, 16  ;;  %v7275_v17 = vshll.u32 %v7195_v12, 16 }
 0x47e   :  { %10234 = vmatprep.mubr.bf16.mxu1 %v13885_v43  ;;  %v8368_v43 = vshll.u32 %v8271_v30, 16  ;;  %v7791_v19 = vld [vmem:[#allocation3 + $0x20] sm:$0xe]  ;;  %v8366_v39 = vrot.slane %v8365_v53, 4  ;;  %v8379_v57 = vor.u32 %v8378_v24, %v8375_v37  ;;  %v7281_v34 = vshll.u32 %v7196_v15, 16 }
 0x47f   :  { %10058 = vmatmul.mubr.bf16.gmra.mrb[196].mxu0 %v13881_v62  ;;  %v7920_v62 = vsel %vm14264_vm5, %v12194_v48, %v7919_v40  ;;  %v8343_v3 = vsel %vm14103_vm2, %v8338_v8, %v8342_v44  ;;  %v8357_v63 = vsel %vm14103_vm2, %v8352_v2, %v8356_v42  ;;  %v7792_v14 = vld [vmem:[#allocation3 + $0x24] sm:$0x1]  ;;  %v7263_v55 = vrot.slane %v7261_v46, 5  ;;  %v8274_v44 = vld [vmem:[#allocation3 + $0x30] sm:$0xf] }
 0x480   :  { %10065 = vmatprep.mubr.bf16.mxu0 %v12111_v6  ;;  %v12225_v11 = vcombine.low %v7916_v22, %v7920_v62  ;;  %v8382_v6 = vshll.u32 %v8273_v38, 16  ;;  %v12257_v51 = vcombine.low %v8343_v3, %v8357_v63  ;;  %v8370_v1 = vrot.slane %v8368_v43, 5  ;;  %v8275_v7 = vld [vmem:[#allocation3 + $0x34] sm:$0x1]  ;;  %v8276_v22 = vld [vmem:[#allocation3 + $0x38] sm:$0xf] }
 0x481   :  { %v7274_v31 = vrot.slane %v7272_v25, 4  ;;  %v8380_v21 = vrot.slane %v8379_v57, 4  ;;  %v7269_v10 = vrot.slane %v7267_v4, 5  ;;  %v7277_v16 = vrot.slane %v7275_v17, 5  ;;  %v8277_v62 = vld [vmem:[#allocation3 + $0x3c] sm:$0x1] }
 0x482   :  { %v8384_v28 = vrot.slane %v8382_v6, 5  ;;  %v8371_v33 = vsel %vm14103_vm2, %v8366_v39, %v8370_v1  ;;  %v12195_v29 = vrot.slane %v7789_v18, 9  ;;  %v7923_v56 = vrot.slane %v7790_v35, 5  ;;  %v13906_v36 = vld [vmem:[#allocation3 + $0x20] ss:$8 sps:$4 sm:$0xff]  }
 0x483   :  { %v7278_v48 = vor.u32 %v7277_v16, %v7274_v31  ;;  %v7283_v40 = vrot.slane %v7281_v34, 5  ;;  %v8387_v20 = vshrl.u32 %v8274_v44, 16  ;;  %v8390_v3 = vshll.u32 %v8274_v44, 16  ;;  %v7197_v43 = vld [vmem:[#allocation3 + $0x18] sm:$0xf] }
 0x484   :  { %v8385_v8 = vsel %vm14103_vm2, %v8380_v21, %v8384_v28  ;;  %v7924_v30 = vsel %vm14264_vm5, %v12195_v29, %v7923_v56  ;;  %v8396_v2 = vshll.u32 %v8275_v7, 16  ;;  %v8401_v60 = vshrl.u32 %v8276_v22, 16  ;;  %v7198_v50 = vld [vmem:[#allocation3 + $0x1c] sm:$0x1]  ;;  %v7199_v47 = vld [vmem:[#allocation3 + $0x20] sm:$0xf] }
 0x485   :  { %10235 = vmatmul.mubr.bf16.gmra.mrb[208].mxu1 %v12160_v54  ;;  %v12196_v54 = vrot.slane %v7791_v19, 9  ;;  %v12258_v42 = vcombine.low %v8371_v33, %v8385_v8  ;;  %v7279_v38 = vrot.slane %v7278_v48, 4  ;;  %v8389_v9 = vrot.slane %v8387_v20, 4  ;;  %v7200_v12 = vld [vmem:[#allocation3 + $0x24] sm:$0x1] }
 0x486   :  { %10436 = vmatprep.mubr.bf16.mxu1 %v12257_v51  ;;  %v8398_v37 = vrot.slane %v8396_v2, 5  ;;  %v8404_v6 = vshll.u32 %v8276_v22, 16  ;;  %v8403_v51 = vrot.slane %v8401_v60, 4  ;;  %v7793_v53 = vld [vmem:[#allocation3 + $0x28] sm:$0xe]  ;;  %v7289_v18 = vshll.u32 %v7197_v43, 16 }
 0x487   :  { %10066 = vmatmul.mubr.bf16.gmra.mrb[200].mxu0 %v13891_v5  ;;  %v7260_v5 = vrot.slane %v7258_v61, 4  ;;  %v7284_v63 = vsel %vm14103_vm2, %v7279_v38, %v7283_v40  ;;  %v7295_v35 = vshll.u32 %v7198_v50, 16  ;;  %v7794_v61 = vld [vmem:[#allocation3 + $0x2c] sm:$0x1]  ;;  %v7300_v25 = vshrl.u32 %v7199_v47, 16 }
 0x488   :  { %10073 = vmatprep.mubr.bf16.mxu0 %v12112_v13  ;;  %v7927_v13 = vrot.slane %v7792_v14, 5  ;;  %v8406_v24 = vrot.slane %v8404_v6, 5  ;;  %v7303_v19 = vshll.u32 %v7199_v47, 16  ;;  %v7795_v39 = vld [vmem:[#allocation3 + $0x30] sm:$0xe]  ;;  %v7291_v34 = vrot.slane %v7289_v18, 5 }
 0x489   :  { %v7264_v52 = vor.u32 %v7263_v55, %v7260_v5  ;;  %v7297_v14 = vrot.slane %v7295_v35, 5  ;;  %v7796_v28 = vld [vmem:[#allocation3 + $0x34] sm:$0x1]  ;;  %v7302_v5 = vrot.slane %v7300_v25, 4  ;;  %v7309_v31 = vshll.u32 %v7200_v12, 16 }
 0x48a   :  { %v7928_v27 = vsel %vm14264_vm5, %v12196_v54, %v7927_v13  ;;  %v8407_v17 = vor.u32 %v8406_v24, %v8403_v51  ;;  %v7305_v55 = vrot.slane %v7303_v19, 5  ;;  %v12197_v33 = vrot.slane %v7793_v53, 9  ;;  %v103_v48 = vld [vmem:[#allocation3 + $0x48] sm:$0x1]  ;;  %v13907_v7 = vld [vmem:[#allocation3 + $0x30] ss:$8 sps:$4 sm:$0xff]  }
 0x48b   :  { %v7265_v26 = vrot.slane %v7264_v52, 4  ;;  %v12226_v0 = vcombine.low %v7924_v30, %v7928_v27  ;;  %v7931_v52 = vrot.slane %v7794_v61, 5  ;;  %v7311_v56 = vrot.slane %v7309_v31, 5  ;;  %v8278_v30 = vld [vmem:[#allocation3 + $0x40] sm:$0xf] }
 0x48c   :  { %v7306_v29 = vor.u32 %v7305_v55, %v7302_v5  ;;  %v12198_v54 = vrot.slane %v7795_v39, 9  ;;  %v7935_v8 = vrot.slane %v7796_v28, 5  ;;  %v8279_v27 = vld [vmem:[#allocation3 + $0x44] sm:$0x1]  ;;  %v8415_v2 = vshrl.u32 %v8278_v30, 16 }
 0x48d   :  { %10437 = vmatmul.mubr.bf16.vlgmr.msra.gmra.mrb[212].mxu1 %v13903_v45  ;;  %v7270_v49 = vsel %vm14103_vm2, %v7265_v26, %v7269_v10  ;;  %v7286_v45 = vshrl.u32 %v7197_v43, 16  ;;  %v8408_v10 = vrot.slane %v8407_v17, 4  ;;  %v7932_v44 = vsel %vm14264_vm5, %v12197_v33, %v7931_v52  ;;  %v225_v26 = vld [vmem:[#allocation3 + $0x4c] sm:$0x1]  ;;  %v7204_v50 = vld [vmem:[#allocation3 + $0x34] sm:$0x1] }
 0x48e   :  { %10444 = vmatprep.mubr.bf16.mxu1 %v12258_v42  ;;  %v12177_v15 = vcombine.low %v7270_v49, %v7284_v63  ;;  %v104_v42 = vsel %vm16056_vm8, 0, %v103_v48  ;;  %v7936_v20 = vsel %vm14264_vm5, %v12198_v54, %v7935_v8  ;;  %v226_v38 = vsel %vm16067_vm10, 0, %v225_v26  ;;  %v7202_v49 = vld [vmem:[#allocation3 + $0x2c] sm:$0x1]  ;;  %v13918_v51 = vld [vmem:[#allocation7 + $0x200] sm:$0xff]  }
 0x48f   :  { %10074 = vmatmul.mubr.bf16.gmra.mrb[204].mxu0 %v13900_v41  ;;  %v8410_v41 = vshll.u32 %v8277_v62, 16  ;;  %v7288_v4 = vrot.slane %v7286_v45, 4  ;;  %v7307_v62 = vrot.slane %v7306_v29, 4  ;;  %105 = vst [vmem:[#allocation3 + $0x48] sm:$0x1] %v104_v42  ;;  %v8418_v43 = vshll.u32 %v8278_v30, 16  ;;  %13552 = vmatprep.subr.bf16.mxu0 %v13918_v51 }
 0x490   :  { %10275 = vmatprep.mubr.bf16.mxu0 %v12225_v11  ;;  %v8392_v11 = vrot.slane %v8390_v3, 5  ;;  %227 = vst [vmem:[#allocation3 + $0x4c] sm:$0x1] %v226_v38  ;;  %v12227_v60 = vcombine.low %v7932_v44, %v7936_v20  ;;  %v8424_v12 = vshll.u32 %v8279_v27, 16  ;;  %v7323_v53 = vshll.u32 %v7202_v49, 16 }
 0x491   :  { %v8412_v46 = vrot.slane %v8410_v41, 5  ;;  %v7292_v16 = vor.u32 %v7291_v34, %v7288_v4  ;;  %v8420_v6 = vrot.slane %v8418_v43, 5  ;;  %v7798_v24 = vld [vmem:[#allocation3 + $0x3c] sm:$0x1]  ;;  %v7337_v61 = vshll.u32 %v7204_v50, 16 }
 0x492   :  { %v8393_v1 = vor.u32 %v8392_v11, %v8389_v9  ;;  %v7312_v9 = vsel %vm14103_vm2, %v7307_v62, %v7311_v56  ;;  %v7800_v19 = vld [vmem:[#allocation3 + $0x44] sm:$0x1]  ;;  %v8285_v38 = vld [vmem:[#allocation3 + $0x6c] sm:$0x1] }
 0x493   :  { %v8413_v40 = vsel %vm14103_vm2, %v8408_v10, %v8412_v46  ;;  %v7293_v13 = vrot.slane %v7292_v16, 4  ;;  %v7799_v46 = vld [vmem:[#allocation3 + $0x40] sm:$0xe]  ;;  %v7325_v10 = vrot.slane %v7323_v53, 5  ;;  %v7943_v56 = vrot.slane %v7800_v19, 5 }
 0x494   :  { %v8394_v57 = vrot.slane %v8393_v1, 4  ;;  %v12200_v5 = vrot.slane %v7799_v46, 9  ;;  %v8283_v30 = vld [vmem:[#allocation3 + $0x64] sm:$0x1]  ;;  %v7803_v19 = vld [vmem:[#allocation3 + $0x60] sm:$0xe] }
 0x495   :  { %10445 = vmatmul.mubr.bf16.gmra.mrb[216].mxu1 %v13906_v36  ;;  %v7201_v36 = vld [vmem:[#allocation3 + $0x28] sm:$0xf]  ;;  %v7298_v3 = vsel %vm14103_vm2, %v7293_v13, %v7297_v14  ;;  %v8426_v14 = vrot.slane %v8424_v12, 5  ;;  %v8282_v13 = vld [vmem:[#allocation3 + $0x60] sm:$0xf]  ;;  %v8452_v43 = vshll.u32 %v8283_v30, 16 }
 0x496   :  { %v8399_v21 = vsel %vm14103_vm2, %v8394_v57, %v8398_v37  ;;  %v7314_v47 = vshrl.u32 %v7201_v36, 16  ;;  %v7317_v63 = vshll.u32 %v7201_v36, 16  ;;  %v12178_v11 = vcombine.low %v7298_v3, %v7312_v9  ;;  %v8280_v17 = vld [vmem:[#allocation3 + $0x48] sm:$0xf]  ;;  %v7205_v3 = vld [vmem:[#allocation3 + $0x38] sm:$0xf] }
 0x497   :  { %10276 = vmatmul.mubr.bf16.vlgmr.msra.gmra.mrb[208].mxu0 %v12177_v15  ;;  %v12259_v22 = vcombine.low %v8399_v21, %v8413_v40  ;;  %v8417_v37 = vrot.slane %v8415_v2, 4  ;;  %v7797_v15 = vld [vmem:[#allocation3 + $0x38] sm:$0xe]  ;;  %v7939_v57 = vrot.slane %v7798_v24, 5  ;;  %v8281_v55 = vld [vmem:[#allocation3 + $0x4c] sm:$0x1]  ;;  %v7944_v26 = vsel %vm14264_vm5, %v12200_v5, %v7943_v56 }
 0x498   :  { %10283 = vmatprep.mubr.bf16.mxu0 %v12226_v0  ;;  %v7203_v0 = vld [vmem:[#allocation3 + $0x30] sm:$0xf]  ;;  %v7316_v41 = vrot.slane %v7314_v47, 4  ;;  %v7319_v45 = vrot.slane %v7317_v63, 5  ;;  %v12199_v39 = vrot.slane %v7797_v15, 9  ;;  %13553 = vmatpush3.bf16.msra.mxu0 %v13918_v51  ;;  %v8429_v31 = vshrl.u32 %v8280_v17, 16 }
 0x499   :  { %10452 = vmatprep.mubr.bf16.mxu1 %v12259_v22  ;;  %v7328_v1 = vshrl.u32 %v7203_v0, 16  ;;  %v8421_v18 = vor.u32 %v8420_v6, %v8417_v37  ;;  %v7331_v35 = vshll.u32 %v7203_v0, 16  ;;  %v8432_v33 = vshll.u32 %v8280_v17, 16  ;;  %v8284_v22 = vld [vmem:[#allocation3 + $0x68] sm:$0xf]  ;;  %v13921_v30 = vld [vmem:[#allocation7 + $0x210] sm:$0xff]  }
 0x49a   :  { %v7320_v4 = vor.u32 %v7319_v45, %v7316_v41  ;;  %v8438_v16 = vshll.u32 %v8281_v55, 16  ;;  %v7940_v29 = vsel %vm14264_vm5, %v12199_v39, %v7939_v57  ;;  %v8431_v8 = vrot.slane %v8429_v31, 4  ;;  %v7206_v9 = vld [vmem:[#allocation3 + $0x3c] sm:$0x1]  ;;  %v7208_v51 = vld [vmem:[#allocation3 + $0x44] sm:$0x1] }
 0x49b   :  { %v7330_v25 = vrot.slane %v7328_v1, 4  ;;  %v8422_v34 = vrot.slane %v8421_v18, 4  ;;  %v7333_v28 = vrot.slane %v7331_v35, 5  ;;  %v8434_v48 = vrot.slane %v8432_v33, 5  ;;  %v13908_v45 = vld [vmem:[#allocation3 + $0x40] ss:$8 sps:$4 sm:$0xff]  }
 0x49c   :  { %v7321_v21 = vrot.slane %v7320_v4, 4  ;;  %v7339_v40 = vrot.slane %v7337_v61, 5  ;;  %v8440_v44 = vrot.slane %v8438_v16, 5  ;;  %v12228_v20 = vcombine.low %v7940_v29, %v7944_v26  ;;  %v7801_v18 = vld [vmem:[#allocation3 + $0x58] sm:$0xe] }
 0x49d   :  { %10453 = vmatmul.mubr.bf16.gmra.mrb[220].mxu1 %v13907_v7  ;;  %v7334_v52 = vor.u32 %v7333_v28, %v7330_v25  ;;  %v8427_v54 = vsel %vm14103_vm2, %v8422_v34, %v8426_v14  ;;  %v8435_v62 = vor.u32 %v8434_v48, %v8431_v8  ;;  %v8443_v27 = vshrl.u32 %v8282_v13, 16  ;;  %v7802_v35 = vld [vmem:[#allocation3 + $0x5c] sm:$0x1]  ;;  %v7804_v39 = vld [vmem:[#allocation3 + $0x64] sm:$0x1] }
 0x49e   :  { %v7326_v7 = vsel %vm14103_vm2, %v7321_v21, %v7325_v10  ;;  %v8446_v36 = vshll.u32 %v8282_v13, 16  ;;  %v8457_v49 = vshrl.u32 %v8284_v22, 16  ;;  %v8460_v0 = vshll.u32 %v8284_v22, 16  ;;  %v8287_v48 = vld [vmem:[#allocation3 + $0x74] sm:$0x1] }
 0x49f   :  { %10284 = vmatmul.mubr.bf16.gmra.mrb[212].mxu0 %v12178_v11  ;;  %v7335_v42 = vrot.slane %v7334_v52, 4  ;;  %v8445_v47 = vrot.slane %v8443_v27, 4  ;;  %v7207_v11 = vld [vmem:[#allocation3 + $0x40] sm:$0xf]  ;;  %v8454_v37 = vrot.slane %v8452_v43, 5  ;;  %v8466_v15 = vshll.u32 %v8285_v38, 16 }
 0x4a0   :  { %10291 = vmatprep.mubr.bf16.mxu0 %v12227_v60  ;;  %v8436_v60 = vrot.slane %v8435_v62, 4  ;;  %v8448_v63 = vrot.slane %v8446_v36, 5  ;;  %v8459_v6 = vrot.slane %v8457_v49, 4  ;;  %v8462_v12 = vrot.slane %v8460_v0, 5  ;;  %v8286_v52 = vld [vmem:[#allocation3 + $0x70] sm:$0xf] }
 0x4a1   :  { %v7340_v2 = vsel %vm14103_vm2, %v7335_v42, %v7339_v40  ;;  %v7342_v1 = vshrl.u32 %v7205_v3, 16  ;;  %v7345_v24 = vshll.u32 %v7205_v3, 16  ;;  %v8468_v4 = vrot.slane %v8466_v15, 5  ;;  %v13920_v40 = vld [vmem:[#allocation7 + $0x208] sm:$0xff]   ;;  %v8288_v26 = vld [vmem:[#allocation3 + $0x78] sm:$0xf] }
 0x4a2   :  { %v12179_v50 = vcombine.low %v7326_v7, %v7340_v2  ;;  %v8441_v41 = vsel %vm14103_vm2, %v8436_v60, %v8440_v44  ;;  %v8449_v53 = vor.u32 %v8448_v63, %v8445_v47  ;;  %v8463_v46 = vor.u32 %v8462_v12, %v8459_v6  ;;  %13554 = vmatprep.subr.bf16.mxu0 %v13920_v40  ;;  %v13909_v2 = vld [vmem:[#allocation3 + $0x60] ss:$8 sps:$4 sm:$0xff]   ;;  %v7209_v0 = vld [vmem:[#allocation3 + $0x58] sm:$0xf] }
 0x4a3   :  { %v12260_v61 = vcombine.low %v8427_v54, %v8441_v41  ;;  %v7351_v25 = vshll.u32 %v7206_v9, 16  ;;  %v7344_v17 = vrot.slane %v7342_v1, 4  ;;  %v7347_v34 = vrot.slane %v7345_v24, 5  ;;  %v7210_v9 = vld [vmem:[#allocation3 + $0x5c] sm:$0x1]  ;;  %13555 = vmatpush3.bf16.msra.mxu0 %v13920_v40 }
 0x4a4   :  { %v8450_v57 = vrot.slane %v8449_v53, 4  ;;  %v7356_v14 = vshrl.u32 %v7207_v11, 16  ;;  %v8464_v28 = vrot.slane %v8463_v46, 4  ;;  %v7359_v55 = vshll.u32 %v7207_v11, 16  ;;  %v7211_v11 = vld [vmem:[#allocation3 + $0x60] sm:$0xf]  ;;  %13556 = vmatprep.subr.bf16.mxu0 %v13921_v30 }
 0x4a5   :  { %10460 = vmatprep.mubr.bf16.mxu1 %v12260_v61  ;;  %v7353_v5 = vrot.slane %v7351_v25, 5  ;;  %v7365_v31 = vshll.u32 %v7208_v51, 16  ;;  %v7348_v21 = vor.u32 %v7347_v34, %v7344_v17  ;;  %v12201_v16 = vrot.slane %v7801_v18, 9  ;;  %v7212_v51 = vld [vmem:[#allocation3 + $0x64] sm:$0x1] }
 0x4a6   :  { %10461 = vmatmul.mubr.bf16.gmra.mrb[224].mxu1 %v13908_v45  ;;  %v8455_v33 = vsel %vm14103_vm2, %v8450_v57, %v8454_v37  ;;  %v7358_v10 = vrot.slane %v7356_v14, 4  ;;  %v8469_v29 = vsel %vm14103_vm2, %v8464_v28, %v8468_v4  ;;  %v7361_v56 = vrot.slane %v7359_v55, 5  ;;  %v7805_v24 = vld [vmem:[#allocation3 + $0x68] sm:$0xe]  ;;  %v7806_v18 = vld [vmem:[#allocation3 + $0x6c] sm:$0x1] }
 0x4a7   :  { %10292 = vmatmul.mubr.bf16.gmra.mrb[216].mxu0 %v12179_v50  ;;  %v7367_v54 = vrot.slane %v7365_v31, 5  ;;  %v7947_v8 = vrot.slane %v7802_v35, 5  ;;  %v12261_v13 = vcombine.low %v8455_v33, %v8469_v29  ;;  %v7349_v44 = vrot.slane %v7348_v21, 4  ;;  %v7807_v25 = vld [vmem:[#allocation3 + $0x70] sm:$0xe] }
 0x4a8   :  { %10299 = vmatprep.mubr.bf16.mxu0 %v12228_v20  ;;  %v12202_v7 = vrot.slane %v7803_v19, 9  ;;  %v7951_v42 = vrot.slane %v7804_v39, 5  ;;  %v7362_v22 = vor.u32 %v7361_v56, %v7358_v10  ;;  %v8289_v20 = vld [vmem:[#allocation3 + $0x7c] sm:$0x1]  ;;  %v8471_v38 = vshrl.u32 %v8286_v52, 16  ;;  %13557 = vmatpush3.bf16.msra.mxu0 %v13921_v30 }
 0x4a9   :  { %v7948_v62 = vsel %vm14264_vm5, %v12201_v16, %v7947_v8  ;;  %v8474_v27 = vshll.u32 %v8286_v52, 16  ;;  %10468 = vmatprep.mubr.bf16.mxu1 %v12261_v13  ;;  %v7354_v36 = vsel %vm14103_vm2, %v7349_v44, %v7353_v5  ;;  %v8480_v43 = vshll.u32 %v8287_v48, 16  ;;  %v7808_v19 = vld [vmem:[#allocation3 + $0x74] sm:$0x1]  ;;  %v8290_v16 = vld [vmem:[#allocation3 + $0x80] sm:$0xf] }
 0x4aa   :  { %v7952_v3 = vsel %vm14264_vm5, %v12202_v7, %v7951_v42  ;;  %v8485_v49 = vshrl.u32 %v8288_v26, 16  ;;  %v7363_v60 = vrot.slane %v7362_v22, 4  ;;  %v8473_v47 = vrot.slane %v8471_v38, 4  ;;  %v8291_v8 = vld [vmem:[#allocation3 + $0x84] sm:$0x1]  ;;  %v13923_v38 = vld [vmem:[#allocation7 + $0x218] sm:$0xff]  }
 0x4ab   :  { %v12229_v50 = vcombine.low %v7948_v62, %v7952_v3  ;;  %v8476_v63 = vrot.slane %v8474_v27, 5  ;;  %v8482_v37 = vrot.slane %v8480_v43, 5  ;;  %v8488_v12 = vshll.u32 %v8288_v26, 16  ;;  %v8292_v44 = vld [vmem:[#allocation3 + $0x88] sm:$0xf]  ;;  %13558 = vmatprep.subr.bf16.mxu0 %v13923_v38 }
 0x4ac   :  { %v8487_v6 = vrot.slane %v8485_v49, 4  ;;  %v8494_v15 = vshll.u32 %v8289_v20, 16  ;;  %v7368_v41 = vsel %vm14103_vm2, %v7363_v60, %v7367_v54  ;;  %v7370_v53 = vshrl.u32 %v7209_v0, 16  ;;  %v8293_v22 = vld [vmem:[#allocation3 + $0x8c] sm:$0x1]  ;;  %v13924_v49 = vld [vmem:[#allocation7 + $0x220] sm:$0xff]   ;;  %13559 = vmatpush3.bf16.msra.mxu0 %v13923_v38 }
 0x4ad   :  { %v8477_v45 = vor.u32 %v8476_v63, %v8473_v47  ;;  %v7373_v1 = vshll.u32 %v7209_v0, 16  ;;  %v12180_v35 = vcombine.low %v7354_v36, %v7368_v41  ;;  %v8490_v61 = vrot.slane %v8488_v12, 5  ;;  %v7213_v20 = vld [vmem:[#allocation3 + $0x68] sm:$0xf]  ;;  %v7214_v47 = vld [vmem:[#allocation3 + $0x6c] sm:$0x1]  ;;  %13560 = vmatprep.subr.bf16.mxu0 %v13924_v49 }
 0x4ae   :  { %10469 = vmatmul.mubr.bf16.gmra.mrb[228].mxu1 %v13909_v2  ;;  %v8496_v46 = vrot.slane %v8494_v15, 5  ;;  %v7379_v4 = vshll.u32 %v7210_v9, 16  ;;  %v7372_v57 = vrot.slane %v7370_v53, 4  ;;  %v7384_v34 = vshrl.u32 %v7211_v11, 16  ;;  %v13910_v2 = vld [vmem:[#allocation3 + $0x70] ss:$8 sps:$4 sm:$0xff]  }
 0x4af   :  { %v8478_v39 = vrot.slane %v8477_v45, 4  ;;  %v7375_v17 = vrot.slane %v7373_v1, 5  ;;  %10300 = vmatmul.mubr.bf16.gmra.mrb[220].mxu0 %v12180_v35  ;;  %v8491_v14 = vor.u32 %v8490_v61, %v8487_v6  ;;  %v7387_v5 = vshll.u32 %v7211_v11, 16  ;;  %v7215_v6 = vld [vmem:[#allocation3 + $0x70] sm:$0xf] }
 0x4b0   :  { %v7381_v28 = vrot.slane %v7379_v4, 5  ;;  %v7393_v55 = vshll.u32 %v7212_v51, 16  ;;  %10307 = vmatprep.mubr.bf16.mxu0 %v12229_v50  ;;  %v7386_v21 = vrot.slane %v7384_v34, 4  ;;  %v12203_v10 = vrot.slane %v7805_v24, 9  ;;  %v7216_v45 = vld [vmem:[#allocation3 + $0x74] sm:$0x1]  ;;  %13561 = vmatpush3.bf16.msra.mxu0 %v13924_v49 }
 0x4b1   :  { %v8483_v31 = vsel %vm14103_vm2, %v8478_v39, %v8482_v37  ;;  %v7376_v33 = vor.u32 %v7375_v17, %v7372_v57  ;;  %v8492_v52 = vrot.slane %v8491_v14, 4  ;;  %v7389_v29 = vrot.slane %v7387_v5, 5  ;;  %v7809_v1 = vld [vmem:[#allocation3 + $0x78] sm:$0xe]  ;;  %v7811_v4 = vld [vmem:[#allocation3 + $0x80] sm:$0xe] }
 0x4b2   :  { %v7395_v56 = vrot.slane %v7393_v55, 5  ;;  %v7955_v54 = vrot.slane %v7806_v18, 5  ;;  %v12204_v40 = vrot.slane %v7807_v25, 9  ;;  %v7959_v13 = vrot.slane %v7808_v19, 5  ;;  %v7812_v25 = vld [vmem:[#allocation3 + $0x84] sm:$0x1] }
 0x4b3   :  { %v7377_v48 = vrot.slane %v7376_v33, 4  ;;  %v8499_v7 = vshrl.u32 %v8290_v16, 16  ;;  %v8497_v42 = vsel %vm14103_vm2, %v8492_v52, %v8496_v46  ;;  %v7390_v26 = vor.u32 %v7389_v29, %v7386_v21  ;;  %v7810_v46 = vld [vmem:[#allocation3 + $0x7c] sm:$0x1]  ;;  %v13926_v19 = vld [vmem:[#allocation7 + $0x228] sm:$0xff]  }
 0x4b4   :  { %v7956_v30 = vsel %vm14264_vm5, %v12203_v10, %v7955_v54  ;;  %v8502_v62 = vshll.u32 %v8290_v16, 16  ;;  %v12262_v27 = vcombine.low %v8483_v31, %v8497_v42  ;;  %v7960_v3 = vsel %vm14264_vm5, %v12204_v40, %v7959_v13  ;;  %v133_v16 = vld [vmem:[#allocation3 + $0x98] sm:$0x1]  ;;  %13562 = vmatprep.subr.bf16.mxu0 %v13926_v19  ;;  %v7219_v49 = vld [vmem:[#allocation3 + $0x80] sm:$0xf] }
 0x4b5   :  { %v7382_v36 = vsel %vm14103_vm2, %v7377_v48, %v7381_v28  ;;  %v8501_v43 = vrot.slane %v8499_v7, 4  ;;  %v7391_v0 = vrot.slane %v7390_v26, 4  ;;  %v12230_v9 = vcombine.low %v7956_v30, %v7960_v3  ;;  %v8294_v7 = vld [vmem:[#allocation3 + $0x90] sm:$0xf]  ;;  %13563 = vmatpush3.bf16.msra.mxu0 %v13926_v19 }
 0x4b6   :  { %v8504_v60 = vrot.slane %v8502_v62, 5  ;;  %v8508_v50 = vshll.u32 %v8291_v8, 16  ;;  %10476 = vmatprep.mubr.bf16.mxu1 %v12262_v27  ;;  %v8513_v63 = vshrl.u32 %v8292_v44, 16  ;;  %v8516_v11 = vshll.u32 %v8292_v44, 16  ;;  %v255_v8 = vld [vmem:[#allocation3 + $0x9c] sm:$0x1] }
 0x4b7   :  { %v8522_v37 = vshll.u32 %v8293_v22, 16  ;;  %v7398_v12 = vshrl.u32 %v7213_v20, 16  ;;  %v7396_v15 = vsel %vm14103_vm2, %v7391_v0, %v7395_v56  ;;  %10477 = vmatmul.mubr.bf16.gmra.mrb[232].mxu1 %v13910_v2  ;;  %v7401_v53 = vshll.u32 %v7213_v20, 16  ;;  %v8295_v62 = vld [vmem:[#allocation3 + $0x94] sm:$0x1] }
 0x4b8   :  { %v8505_v51 = vor.u32 %v8504_v60, %v8501_v43  ;;  %v8510_v41 = vrot.slane %v8508_v50, 5  ;;  %v12181_v24 = vcombine.low %v7382_v36, %v7396_v15  ;;  %v8515_v18 = vrot.slane %v8513_v63, 4  ;;  %v7217_v20 = vld [vmem:[#allocation3 + $0x78] sm:$0xf]  ;;  %v13911_v2 = vld [vmem:[#allocation3 + $0x80] ss:$8 sps:$4 sm:$0xff]  }
 0x4b9   :  { %v8518_v35 = vrot.slane %v8516_v11, 5  ;;  %v8524_v61 = vrot.slane %v8522_v37, 5  ;;  %v7400_v57 = vrot.slane %v7398_v12, 4  ;;  %v7403_v17 = vrot.slane %v7401_v53, 5  ;;  %v7218_v43 = vld [vmem:[#allocation3 + $0x7c] sm:$0x1] }
 0x4ba   :  { %v8506_v39 = vrot.slane %v8505_v51, 4  ;;  %v7407_v34 = vshll.u32 %v7214_v47, 16  ;;  %10308 = vmatmul.mubr.bf16.gmra.mrb[224].mxu0 %v12181_v24  ;;  %v7412_v28 = vshrl.u32 %v7215_v6, 16  ;;  %v7415_v5 = vshll.u32 %v7215_v6, 16  ;;  %v7220_v47 = vld [vmem:[#allocation3 + $0x84] sm:$0x1] }
 0x4bb   :  { %v8519_v14 = vor.u32 %v8518_v35, %v8515_v18  ;;  %v7421_v55 = vshll.u32 %v7216_v45, 16  ;;  %10315 = vmatprep.mubr.bf16.mxu0 %v12230_v9  ;;  %v7404_v33 = vor.u32 %v7403_v17, %v7400_v57  ;;  %v12205_v10 = vrot.slane %v7809_v1, 9  ;;  %v13927_v63 = vld [vmem:[#allocation7 + $0x230] sm:$0xff]   ;;  %v7813_v15 = vld [vmem:[#allocation3 + $0x88] sm:$0xe]  ;;  %v13928_v24 = vld [vmem:[#allocation7 + $0x238] sm:$0xff]  }
 0x4bc   :  { %v8511_v31 = vsel %vm14103_vm2, %v8506_v39, %v8510_v41  ;;  %v7409_v21 = vrot.slane %v7407_v34, 5  ;;  %v7414_v29 = vrot.slane %v7412_v28, 4  ;;  %v7417_v56 = vrot.slane %v7415_v5, 5  ;;  %v7814_v1 = vld [vmem:[#allocation3 + $0x8c] sm:$0x1]  ;;  %13564 = vmatprep.subr.bf16.mxu0 %v13927_v63 }
 0x4bd   :  { %v8520_v52 = vrot.slane %v8519_v14, 4  ;;  %v7423_v54 = vrot.slane %v7421_v55, 5  ;;  %v7405_v48 = vrot.slane %v7404_v33, 4  ;;  %v7963_v40 = vrot.slane %v7810_v46, 5  ;;  %13565 = vmatpush3.bf16.msra.mxu0 %v13927_v63  ;;  %v7815_v34 = vld [vmem:[#allocation3 + $0x90] sm:$0xe] }
 0x4be   :  { %v12206_v13 = vrot.slane %v7811_v4, 9  ;;  %v7967_v44 = vrot.slane %v7812_v25, 5  ;;  %v7418_v26 = vor.u32 %v7417_v56, %v7414_v29  ;;  %v134_v30 = vsel %vm16056_vm8, 0, %v133_v16  ;;  %13566 = vmatprep.subr.bf16.mxu0 %v13928_v24  ;;  %v7816_v14 = vld [vmem:[#allocation3 + $0x94] sm:$0x1] }
 0x4bf   :  { %v8525_v42 = vsel %vm14103_vm2, %v8520_v52, %v8524_v61  ;;  %v256_v22 = vsel %vm16067_vm10, 0, %v255_v8  ;;  %v7410_v27 = vsel %vm14103_vm2, %v7405_v48, %v7409_v21  ;;  %v7964_v36 = vsel %vm14264_vm5, %v12205_v10, %v7963_v40  ;;  %135 = vst [vmem:[#allocation3 + $0x98] sm:$0x1] %v134_v30  ;;  %v8298_v55 = vld [vmem:[#allocation3 + $0xb0] sm:$0xf] }
 0x4c0   :  { %v12263_v38 = vcombine.low %v8511_v31, %v8525_v42  ;;  %v7968_v3 = vsel %vm14264_vm5, %v12206_v13, %v7967_v44  ;;  %257 = vst [vmem:[#allocation3 + $0x9c] sm:$0x1] %v256_v22  ;;  %v7419_v0 = vrot.slane %v7418_v26, 4  ;;  %v8527_v60 = vshrl.u32 %v8294_v7, 16  ;;  %v8299_v13 = vld [vmem:[#allocation3 + $0xb4] sm:$0x1] }
 0x4c1   :  { %v12231_v9 = vcombine.low %v7964_v36, %v7968_v3  ;;  %v8530_v50 = vshll.u32 %v8294_v7, 16  ;;  %v8536_v11 = vshll.u32 %v8295_v62, 16  ;;  %v7426_v37 = vshrl.u32 %v7217_v20, 16  ;;  %13567 = vmatpush3.bf16.msra.mxu0 %v13928_v24  ;;  %v8300_v30 = vld [vmem:[#allocation3 + $0xb8] sm:$0xf] }
 0x4c2   :  { %10484 = vmatprep.mubr.bf16.mxu1 %v12263_v38  ;;  %v7429_v6 = vshll.u32 %v7217_v20, 16  ;;  %v7435_v12 = vshll.u32 %v7218_v43, 16  ;;  %v7424_v51 = vsel %vm14103_vm2, %v7419_v0, %v7423_v54  ;;  %v8529_v41 = vrot.slane %v8527_v60, 4  ;;  %v8301_v36 = vld [vmem:[#allocation3 + $0xbc] sm:$0x1] }
 0x4c3   :  { %10485 = vmatmul.mubr.bf16.gmra.mrb[236].mxu1 %v13911_v2  ;;  %v8532_v45 = vrot.slane %v8530_v50, 5  ;;  %v7440_v53 = vshrl.u32 %v7219_v49, 16  ;;  %v12182_v18 = vcombine.low %v7410_v27, %v7424_v51  ;;  %v17721_v35 = vrot.slane %v8536_v11, 5  ;;  %v7221_v50 = vld [vmem:[#allocation3 + $0x88] sm:$0xf] }
 0x4c4   :  { %v7428_v61 = vrot.slane %v7426_v37, 4  ;;  %v7431_v46 = vrot.slane %v7429_v6, 5  ;;  %v7437_v25 = vrot.slane %v7435_v12, 5  ;;  %v7443_v39 = vshll.u32 %v7219_v49, 16  ;;  %v7222_v6 = vld [vmem:[#allocation3 + $0x8c] sm:$0x1] }
 0x4c5   :  { %v8533_v4 = vor.u32 %v8532_v45, %v8529_v41  ;;  %v7442_v19 = vrot.slane %v7440_v53, 4  ;;  %10316 = vmatmul.mubr.bf16.gmra.mrb[228].mxu0 %v12182_v18  ;;  %v7449_v17 = vshll.u32 %v7220_v47, 16  ;;  %v12207_v28 = vrot.slane %v7813_v15, 9  ;;  %v7223_v12 = vld [vmem:[#allocation3 + $0x90] sm:$0xf] }
 0x4c6   :  { %v7432_v57 = vor.u32 %v7431_v46, %v7428_v61  ;;  %v7971_v5 = vrot.slane %v7814_v1, 5  ;;  %10323 = vmatprep.mubr.bf16.mxu0 %v12231_v9  ;;  %v8296_v31 = vld [vmem:[#allocation3 + $0x98] sm:$0xf]  ;;  %v7445_v10 = vrot.slane %v7443_v39, 5  ;;  %v12208_v62 = vrot.slane %v7815_v34, 9 }
 0x4c7   :  { %v8297_v33 = vld [vmem:[#allocation3 + $0x9c] sm:$0x1]  ;;  %v8534_v21 = vrot.slane %v8533_v4, 4  ;;  %v8541_v16 = vshrl.u32 %v8296_v31, 16  ;;  %v8544_v52 = vshll.u32 %v8296_v31, 16  ;;  %v7451_v48 = vrot.slane %v7449_v17, 5 }
 0x4c8   :  { %v8550_v29 = vshll.u32 %v8297_v33, 16  ;;  %v7433_v56 = vrot.slane %v7432_v57, 4  ;;  %v7446_v8 = vor.u32 %v7445_v10, %v7442_v19  ;;  %v7972_v40 = vsel %vm14264_vm5, %v12207_v28, %v7971_v5  ;;  %v7224_v53 = vld [vmem:[#allocation3 + $0x94] sm:$0x1]  ;;  %v13912_v24 = vld [vmem:[#allocation3 + $0x90] ss:$8 sps:$4 sm:$0xff]  }
 0x4c9   :  { %v8539_v54 = vsel %vm14103_vm2, %v8534_v21, %v17721_v35  ;;  %v8543_v44 = vrot.slane %v8541_v16, 4  ;;  %v8546_v7 = vrot.slane %v8544_v52, 5  ;;  %v7975_v20 = vrot.slane %v7816_v14, 5  ;;  %v7817_v46 = vld [vmem:[#allocation3 + $0xa8] sm:$0xe] }
 0x4ca   :  { %v8552_v42 = vrot.slane %v8550_v29, 5  ;;  %v7438_v26 = vsel %vm14103_vm2, %v7433_v56, %v7437_v25  ;;  %v7447_v22 = vrot.slane %v7446_v8, 4  ;;  %v8555_v38 = vshrl.u32 %v8298_v55, 16  ;;  %v7818_v4 = vld [vmem:[#allocation3 + $0xac] sm:$0x1] }
 0x4cb   :  { %v8547_v27 = vor.u32 %v8546_v7, %v8543_v44  ;;  %v8558_v3 = vshll.u32 %v8298_v55, 16  ;;  %v8564_v2 = vshll.u32 %v8299_v13, 16  ;;  %v8569_v43 = vshrl.u32 %v8300_v30, 16  ;;  %v7819_v5 = vld [vmem:[#allocation3 + $0xb0] sm:$0xe] }
 0x4cc   :  { %v7452_v49 = vsel %vm14103_vm2, %v7447_v22, %v7451_v48  ;;  %v7976_v0 = vsel %vm14264_vm5, %v12208_v62, %v7975_v20  ;;  %v8557_v9 = vrot.slane %v8555_v38, 4  ;;  %v8572_v60 = vshll.u32 %v8300_v30, 16  ;;  %v7820_v10 = vld [vmem:[#allocation3 + $0xb4] sm:$0x1]  ;;  %v8303_v8 = vld [vmem:[#allocation3 + $0xc4] sm:$0x1] }
 0x4cd   :  { %v8548_v47 = vrot.slane %v8547_v27, 4  ;;  %v12183_v63 = vcombine.low %v7438_v26, %v7452_v49  ;;  %v12232_v11 = vcombine.low %v7972_v40, %v7976_v0  ;;  %v8560_v37 = vrot.slane %v8558_v3, 5  ;;  %v8304_v7 = vld [vmem:[#allocation3 + $0xc8] sm:$0xf]  ;;  %v8305_v27 = vld [vmem:[#allocation3 + $0xcc] sm:$0x1] }
 0x4ce   :  { %v8566_v15 = vrot.slane %v8564_v2, 5  ;;  %v8571_v51 = vrot.slane %v8569_v43, 4  ;;  %v8574_v41 = vrot.slane %v8572_v60, 5  ;;  %v8578_v45 = vshll.u32 %v8301_v36, 16  ;;  %v7225_v2 = vld [vmem:[#allocation3 + $0xa8] sm:$0xf] }
 0x4cf   :  { %v8553_v1 = vsel %vm14103_vm2, %v8548_v47, %v8552_v42  ;;  %10324 = vmatmul.mubr.bf16.gmra.mrb[232].mxu0 %v12183_v63  ;;  %v8561_v18 = vor.u32 %v8560_v37, %v8557_v9  ;;  %v7454_v35 = vshrl.u32 %v7221_v50, 16  ;;  %v7457_v61 = vshll.u32 %v7221_v50, 16  ;;  %v13913_v0 = vld [vmem:[#allocation3 + $0xb0] ss:$8 sps:$4 sm:$0xff]   ;;  %v7226_v50 = vld [vmem:[#allocation3 + $0xac] sm:$0x1] }
 0x4d0   :  { %v12264_v25 = vcombine.low %v8539_v54, %v8553_v1  ;;  %10331 = vmatprep.mubr.bf16.mxu0 %v12232_v11  ;;  %v8575_v19 = vor.u32 %v8574_v41, %v8571_v51  ;;  %v8580_v39 = vrot.slane %v8578_v45, 5  ;;  %v7463_v57 = vshll.u32 %v7222_v6, 16  ;;  %v8302_v54 = vld [vmem:[#allocation3 + $0xc0] sm:$0xf]  ;;  %v7227_v47 = vld [vmem:[#allocation3 + $0xb0] sm:$0xf] }
 0x4d1   :  { %v8562_v17 = vrot.slane %v8561_v18, 4  ;;  %v7456_v34 = vrot.slane %v7454_v35, 4  ;;  %v7459_v14 = vrot.slane %v7457_v61, 5  ;;  %v7468_v28 = vshrl.u32 %v7223_v12, 16  ;;  %v7821_v1 = vld [vmem:[#allocation3 + $0xb8] sm:$0xe] }
 0x4d2   :  { %10492 = vmatprep.mubr.bf16.mxu1 %v12264_v25  ;;  %v8576_v55 = vrot.slane %v8575_v19, 4  ;;  %v7465_v31 = vrot.slane %v7463_v57, 5  ;;  %v7471_v33 = vshll.u32 %v7223_v12, 16  ;;  %v7477_v21 = vshll.u32 %v7224_v53, 16  ;;  %v7228_v12 = vld [vmem:[#allocation3 + $0xb4] sm:$0x1] }
 0x4d3   :  { %10493 = vmatmul.mubr.bf16.gmra.mrb[240].mxu1 %v13912_v24  ;;  %v8567_v16 = vsel %vm14103_vm2, %v8562_v17, %v8566_v15  ;;  %v7460_v52 = vor.u32 %v7459_v14, %v7456_v34  ;;  %v7470_v29 = vrot.slane %v7468_v28, 4  ;;  %v12209_v56 = vrot.slane %v7817_v46, 9  ;;  %v7822_v46 = vld [vmem:[#allocation3 + $0xbc] sm:$0x1]  ;;  %v7823_v57 = vld [vmem:[#allocation3 + $0xc0] sm:$0xe] }
 0x4d4   :  { %v8581_v48 = vsel %vm14103_vm2, %v8576_v55, %v8580_v39  ;;  %v7473_v40 = vrot.slane %v7471_v33, 5  ;;  %v7479_v13 = vrot.slane %v7477_v21, 5  ;;  %v7979_v44 = vrot.slane %v7818_v4, 5  ;;  %v7824_v55 = vld [vmem:[#allocation3 + $0xc4] sm:$0x1] }
 0x4d5   :  { %v12265_v42 = vcombine.low %v8567_v16, %v8581_v48  ;;  %v7461_v26 = vrot.slane %v7460_v52, 4  ;;  %v12210_v30 = vrot.slane %v7819_v5, 9  ;;  %v7983_v22 = vrot.slane %v7820_v10, 5  ;;  %v8306_v16 = vld [vmem:[#allocation3 + $0xd0] sm:$0xf] }
 0x4d6   :  { %v7474_v20 = vor.u32 %v7473_v40, %v7470_v29  ;;  %v7980_v38 = vsel %vm14264_vm5, %v12209_v56, %v7979_v44  ;;  %v8583_v36 = vshrl.u32 %v8302_v54, 16  ;;  %v8586_v3 = vshll.u32 %v8302_v54, 16 }
 0x4d7   :  { %10500 = vmatprep.mubr.bf16.mxu1 %v12265_v42  ;;  %v7466_v43 = vsel %vm14103_vm2, %v7461_v26, %v7465_v31  ;;  %v7984_v49 = vsel %vm14264_vm5, %v12210_v30, %v7983_v22  ;;  %v8592_v9 = vshll.u32 %v8303_v8, 16  ;;  %v8597_v60 = vshrl.u32 %v8304_v7, 16  ;;  %v8308_v22 = vld [vmem:[#allocation3 + $0xd8] sm:$0xf] }
 0x4d8   :  { %v7475_v63 = vrot.slane %v7474_v20, 4  ;;  %v12233_v11 = vcombine.low %v7980_v38, %v7984_v49  ;;  %v8585_v37 = vrot.slane %v8583_v36, 4  ;;  %v8588_v6 = vrot.slane %v8586_v3, 5  ;;  %v8309_v36 = vld [vmem:[#allocation3 + $0xdc] sm:$0x1] }
 0x4d9   :  { %v8594_v51 = vrot.slane %v8592_v9, 5  ;;  %v8599_v41 = vrot.slane %v8597_v60, 4  ;;  %v8600_v45 = vshll.u32 %v8304_v7, 16  ;;  %v8606_v53 = vshll.u32 %v8305_v27, 16  ;;  %v8307_v7 = vld [vmem:[#allocation3 + $0xd4] sm:$0x1] }
 0x4da   :  { %v7480_v24 = vsel %vm14103_vm2, %v7475_v63, %v7479_v13  ;;  %v8589_v18 = vor.u32 %v8588_v6, %v8585_v37  ;;  %v7482_v35 = vshrl.u32 %v7225_v2, 16  ;;  %v7485_v61 = vshll.u32 %v7225_v2, 16  ;;  %v7229_v2 = vld [vmem:[#allocation3 + $0xb8] sm:$0xf]  ;;  %v13914_v60 = vld [vmem:[#allocation3 + $0xc0] ss:$8 sps:$4 sm:$0xff]  }
 0x4db   :  { %v12184_v4 = vcombine.low %v7466_v43, %v7480_v24  ;;  %10501 = vmatmul.mubr.bf16.gmra.mrb[244].mxu1 %v13913_v0  ;;  %v8602_v25 = vrot.slane %v8600_v45, 5  ;;  %v8608_v19 = vrot.slane %v8606_v53, 5  ;;  %v7491_v39 = vshll.u32 %v7226_v50, 16  ;;  %v7232_v24 = vld [vmem:[#allocation3 + $0xc4] sm:$0x1] }
 0x4dc   :  { %v8590_v34 = vrot.slane %v8589_v18, 4  ;;  %v7484_v14 = vrot.slane %v7482_v35, 4  ;;  %v7487_v28 = vrot.slane %v7485_v61, 5  ;;  %v7496_v5 = vshrl.u32 %v7227_v47, 16 }
 0x4dd   :  { %v17740_v62 = vpop.f32.mrb[148].mxu1  ;;  %10332 = vmatmul.mubr.bf16.gmra.mrb[236].mxu0 %v12184_v4  ;;  %v8603_v31 = vor.u32 %v8602_v25, %v8599_v41  ;;  %v7493_v33 = vrot.slane %v7491_v39, 5  ;;  %v7499_v21 = vshll.u32 %v7227_v47, 16  ;;  %v7505_v10 = vshll.u32 %v7228_v12, 16  ;;  %v7230_v47 = vld [vmem:[#allocation3 + $0xbc] sm:$0x1] }
 0x4de   :  { %v17748_v15 = vpop.f32.mrb[149].mxu1  ;;  %10339 = vmatprep.mubr.bf16.mxu0 %v12233_v11  ;;  %v8595_v29 = vsel %vm14103_vm2, %v8590_v34, %v8594_v51  ;;  %v7488_v56 = vor.u32 %v7487_v28, %v7484_v14  ;;  %v7498_v54 = vrot.slane %v7496_v5, 4  ;;  %v12211_v8 = vrot.slane %v7821_v1, 9  ;;  %v7231_v51 = vld [vmem:[#allocation3 + $0xc0] sm:$0xf] }
 0x4df   :  { %v17752_v17 = vpop.f32.mrb[150].mxu1  ;;  %v8604_v48 = vrot.slane %v8603_v31, 4  ;;  %v7501_v40 = vrot.slane %v7499_v21, 5  ;;  %v7507_v13 = vrot.slane %v7505_v10, 5  ;;  %v7987_v44 = vrot.slane %v7822_v46, 5 }
 0x4e0   :  { %v17754_v52 = vpop.f32.mrb[151].mxu1  ;;  %v7489_v42 = vrot.slane %v7488_v56, 4  ;;  %v12212_v26 = vrot.slane %v7823_v57, 9  ;;  %v7991_v30 = vrot.slane %v7824_v55, 5  ;;  %v8611_v20 = vshrl.u32 %v8306_v16, 16 }
 0x4e1   :  { %v8609_v38 = vsel %vm14103_vm2, %v8604_v48, %v8608_v19  ;;  %v7502_v27 = vor.u32 %v7501_v40, %v7498_v54  ;;  %v8614_v3 = vshll.u32 %v8306_v16, 16  ;;  %v7988_v0 = vsel %vm14264_vm5, %v12211_v8, %v7987_v44  ;;  %v7825_v25 = vld [vmem:[#allocation3 + $0xc8] sm:$0xe]  ;;  %v7826_v14 = vld [vmem:[#allocation3 + $0xcc] sm:$0x1] }
 0x4e2   :  { %v12266_v49 = vcombine.low %v8595_v29, %v8609_v38  ;;  %v7992_v9 = vsel %vm14264_vm5, %v12212_v26, %v7991_v30  ;;  %v8613_v50 = vrot.slane %v8611_v20, 4  ;;  %v7494_v11 = vsel %vm14103_vm2, %v7489_v42, %v7493_v33  ;;  %v7827_v21 = vld [vmem:[#allocation3 + $0xd0] sm:$0xe]  ;;  %v7828_v54 = vld [vmem:[#allocation3 + $0xd4] sm:$0x1] }
 0x4e3   :  { %v7503_v37 = vrot.slane %v7502_v27, 4  ;;  %v8616_v6 = vrot.slane %v8614_v3, 5  ;;  %v8620_v12 = vshll.u32 %v8307_v7, 16  ;;  %v8625_v45 = vshrl.u32 %v8308_v22, 16  ;;  %v163_v7 = vld [vmem:[#allocation3 + $0xe8] sm:$0x1] }
 0x4e4   :  { %10508 = vmatprep.mubr.bf16.mxu1 %v12266_v49  ;;  %v8628_v53 = vshll.u32 %v8308_v22, 16  ;;  %v8634_v1 = vshll.u32 %v8309_v36, 16  ;;  %v7510_v18 = vshrl.u32 %v7229_v2, 16  ;;  %v12234_v61 = vcombine.low %v7988_v0, %v7992_v9  ;;  %v285_v42 = vld [vmem:[#allocation3 + $0xec] sm:$0x1] }
 0x4e5   :  { %v7508_v35 = vsel %vm14103_vm2, %v7503_v37, %v7507_v13  ;;  %10509 = vmatmul.mubr.bf16.gmra.mrb[248].mxu1 %v13914_v60  ;;  %v8617_v46 = vor.u32 %v8616_v6, %v8613_v50  ;;  %v7513_v4 = vshll.u32 %v7229_v2, 16  ;;  %v8622_v39 = vrot.slane %v8620_v12, 5  ;;  %v8310_v2 = vld [vmem:[#allocation3 + $0xe0] sm:$0xf]  ;;  %v13915_v9 = vld [vmem:[#allocation3 + $0xd0] ss:$8 sps:$4 sm:$0xff]  }
 0x4e6   :  { %v17770_v41 = vpop.f32.mrb[152].mxu1  ;;  %v12185_v19 = vcombine.low %v7494_v11, %v7508_v35  ;;  %v8627_v57 = vrot.slane %v8625_v45, 4  ;;  %v8630_v34 = vrot.slane %v8628_v53, 5  ;;  %v7512_v55 = vrot.slane %v7510_v18, 4  ;;  %v7233_v11 = vld [vmem:[#allocation3 + $0xc8] sm:$0xf] }
 0x4e7   :  { %v8618_v5 = vrot.slane %v8617_v46, 4  ;;  %v7515_v31 = vrot.slane %v7513_v4, 5  ;;  %v7519_v33 = vshll.u32 %v7230_v47, 16  ;;  %v8636_v16 = vrot.slane %v8634_v1, 5  ;;  %v17776_v8 = vpop.f32.mrb[153].mxu1 }
 0x4e8   :  { %10340 = vmatmul.mubr.bf16.gmra.mrb[240].mxu0 %v12185_v19  ;;  %v8631_v10 = vor.u32 %v8630_v34, %v8627_v57  ;;  %v7524_v29 = vshrl.u32 %v7231_v51, 16  ;;  %v7527_v56 = vshll.u32 %v7231_v51, 16  ;;  %v7533_v13 = vshll.u32 %v7232_v24, 16  ;;  %v8311_v47 = vld [vmem:[#allocation3 + $0xe4] sm:$0x1] }
 0x4e9   :  { %10347 = vmatprep.mubr.bf16.mxu0 %v12234_v61  ;;  %v8623_v48 = vsel %vm14103_vm2, %v8618_v5, %v8622_v39  ;;  %v7516_v40 = vor.u32 %v7515_v31, %v7512_v55  ;;  %v12213_v44 = vrot.slane %v7825_v25, 9  ;;  %v7521_v30 = vrot.slane %v7519_v33, 5  ;;  %v7234_v45 = vld [vmem:[#allocation3 + $0xcc] sm:$0x1]  ;;  %v7235_v53 = vld [vmem:[#allocation3 + $0xd0] sm:$0xf] }
 0x4ea   :  { %v17760_v43 = vpop.f32.mrb[144].mxu0  ;;  %v8632_v26 = vrot.slane %v8631_v10, 4  ;;  %v7526_v22 = vrot.slane %v7524_v29, 4  ;;  %v7529_v20 = vrot.slane %v7527_v56, 5  ;;  %v7995_v27 = vrot.slane %v7826_v14, 5  ;;  %v17804_v33 = vpop.f32.mrb[154].mxu1 }
 0x4eb   :  { %v17766_v63 = vpop.f32.mrb[145].mxu0  ;;  %v7517_v38 = vrot.slane %v7516_v40, 4  ;;  %v12214_v36 = vrot.slane %v7827_v21, 9  ;;  %v7999_v3 = vrot.slane %v7828_v54, 5  ;;  %v164_v60 = vsel %vm16056_vm8, 0, %v163_v7 }
 0x4ec   :  { %v17774_v28 = vpop.f32.mrb[146].mxu0  ;;  %v8637_v49 = vsel %vm14103_vm2, %v8632_v26, %v8636_v16  ;;  %v7530_v0 = vor.u32 %v7529_v20, %v7526_v22  ;;  %v286_v50 = vsel %vm16067_vm10, 0, %v285_v42  ;;  %v7535_v12 = vrot.slane %v7533_v13, 5  ;;  %165 = vst [vmem:[#allocation3 + $0xe8] sm:$0x1] %v164_v60  ;;  %v17806_v16 = vpop.f32.mrb[155].mxu1 }
 0x4ed   :  { %v12267_v37 = vcombine.low %v8623_v48, %v8637_v49  ;;  %v7522_v6 = vsel %vm14103_vm2, %v7517_v38, %v7521_v30  ;;  %v7996_v51 = vsel %vm14264_vm5, %v12213_v44, %v7995_v27  ;;  %287 = vst [vmem:[#allocation3 + $0xec] sm:$0x1] %v286_v50  ;;  %v8000_v24 = vsel %vm14264_vm5, %v12214_v36, %v7999_v3  ;;  %v7236_v61 = vld [vmem:[#allocation3 + $0xd4] sm:$0x1]  ;;  %v17792_v46 = vpop.f32.mrb[147].mxu0 }
 0x4ee   :  { %v7531_v1 = vrot.slane %v7530_v0, 4  ;;  %v8639_v18 = vshrl.u32 %v8310_v2, 16  ;;  %v8642_v35 = vshll.u32 %v8310_v2, 16  ;;  %v8648_v4 = vshll.u32 %v8311_v47, 16  ;;  %v7829_v57 = vld [vmem:[#allocation3 + $0xd8] sm:$0xe] }
 0x4ef   :  { %10516 = vmatprep.mubr.bf16.mxu1 %v12267_v37  ;;  %v17796_v25 = vadd.f32 %v17748_v15, %v17740_v62  ;;  %v17800_v19 = vadd.f32 %v17754_v52, %v17752_v17  ;;  %v7538_v39 = vshrl.u32 %v7233_v11, 16  ;;  %v7541_v55 = vshll.u32 %v7233_v11, 16  ;;  %v7830_v31 = vld [vmem:[#allocation3 + $0xdc] sm:$0x1]  ;;  %v7831_v13 = vld [vmem:[#allocation3 + $0xe0] sm:$0xe] }
 0x4f0   :  { %v7536_v34 = vsel %vm14103_vm2, %v7531_v1, %v7535_v12  ;;  %10517 = vmatmul.mubr.bf16.gmra.mrb[252].mxu1 %v13915_v9  ;;  %v8641_v14 = vrot.slane %v8639_v18, 4  ;;  %v8644_v5 = vrot.slane %v8642_v35, 5  ;;  %v12235_v10 = vcombine.low %v7996_v51, %v8000_v24  ;;  %v7832_v44 = vld [vmem:[#allocation3 + $0xe4] sm:$0x1]  ;;  %v8314_v26 = vld [vmem:[#allocation3 + $0x100] sm:$0xf] }
 0x4f1   :  { %v12186_v21 = vcombine.low %v7522_v6, %v7536_v34  ;;  %v7540_v62 = vrot.slane %v7538_v39, 4  ;;  %v7547_v15 = vshll.u32 %v7234_v45, 16  ;;  %v7543_v52 = vrot.slane %v7541_v55, 5  ;;  %v8315_v11 = vld [vmem:[#allocation3 + $0x104] sm:$0x1]  ;;  %v17823_v18 = vpop.f32.mrb[156].mxu1 }
 0x4f2   :  { %v8645_v17 = vor.u32 %v8644_v5, %v8641_v14  ;;  %v7552_v29 = vshrl.u32 %v7235_v53, 16  ;;  %v7555_v56 = vshll.u32 %v7235_v53, 16  ;;  %v17808_v54 = vpop.f32.mrb[148].mxu0  ;;  %v17810_v48 = vrot.slane %v8648_v4, 5  ;;  %v8317_v14 = vld [vmem:[#allocation3 + $0x10c] sm:$0x1] }
 0x4f3   :  { %10348 = vmatmul.mubr.bf16.gmra.mrb[244].mxu0 %v12186_v21  ;;  %v7561_v40 = vshll.u32 %v7236_v61, 16  ;;  %v12215_v7 = vrot.slane %v7829_v57, 9  ;;  %v8003_v42 = vrot.slane %v7830_v31, 5  ;;  %v8312_v30 = vld [vmem:[#allocation3 + $0xe8] sm:$0xf]  ;;  %v7544_v38 = vor.u32 %v7543_v52, %v7540_v62  ;;  %v17831_v21 = vpop.f32.mrb[157].mxu1 }
 0x4f4   :  { %10355 = vmatprep.mubr.bf16.mxu0 %v12235_v10  ;;  %v8313_v22 = vld [vmem:[#allocation3 + $0xec] sm:$0x1]  ;;  %v8646_v20 = vrot.slane %v8645_v17, 4  ;;  %v7554_v27 = vrot.slane %v7552_v29, 4  ;;  %v17814_v36 = vadd.f32 %v17766_v63, %v17760_v43  ;;  %v8653_v3 = vshrl.u32 %v8312_v30, 16  ;;  %v17821_v63 = vpop.f32.mrb[149].mxu0 }
 0x4f5   :  { %v8656_v2 = vshll.u32 %v8312_v30, 16  ;;  %v8662_v49 = vshll.u32 %v8313_v22, 16  ;;  %v7557_v0 = vrot.slane %v7555_v56, 5  ;;  %v7545_v60 = vrot.slane %v7544_v38, 4  ;;  %v8316_v43 = vld [vmem:[#allocation3 + $0x108] sm:$0xf] }
 0x4f6   :  { %v8651_v9 = vsel %vm14103_vm2, %v8646_v20, %v17810_v48  ;;  %v7549_v50 = vrot.slane %v7547_v15, 5  ;;  %v7563_v47 = vrot.slane %v7561_v40, 5  ;;  %v8655_v37 = vrot.slane %v8653_v3, 4  ;;  %v17827_v57 = vpop.f32.mrb[150].mxu0  ;;  %v7237_v48 = vld [vmem:[#allocation3 + $0xd8] sm:$0xf] }
 0x4f7   :  { %v8658_v6 = vrot.slane %v8656_v2, 5  ;;  %v7558_v12 = vor.u32 %v7557_v0, %v7554_v27  ;;  %v8004_v51 = vsel %vm14264_vm5, %v12215_v7, %v8003_v42  ;;  %v8664_v45 = vrot.slane %v8662_v49, 5  ;;  %v17835_v40 = vpop.f32.mrb[151].mxu0  ;;  %v13916_v7 = vld [vmem:[#allocation3 + $0xe0] ss:$8 sps:$4 sm:$0xff]   ;;  %v17839_v20 = vpop.f32.mrb[158].mxu1 }
 0x4f8   :  { %v12216_v53 = vrot.slane %v7831_v13, 9  ;;  %v8007_v1 = vrot.slane %v7832_v44, 5  ;;  %v8667_v24 = vshrl.u32 %v8314_v26, 16  ;;  %v7550_v61 = vsel %vm14103_vm2, %v7545_v60, %v7549_v50  ;;  %v7238_v30 = vld [vmem:[#allocation3 + $0xdc] sm:$0x1] }
 0x4f9   :  { %v8659_v35 = vor.u32 %v8658_v6, %v8655_v37  ;;  %v7559_v4 = vrot.slane %v7558_v12, 4  ;;  %v8670_v39 = vshll.u32 %v8314_v26, 16  ;;  %v8681_v55 = vshrl.u32 %v8316_v43, 16  ;;  %v7239_v22 = vld [vmem:[#allocation3 + $0xe0] sm:$0xf]  ;;  %v17853_v37 = vpop.f32.mrb[159].mxu1 }
 0x4fa   :  { %v8008_v34 = vsel %vm14264_vm5, %v12216_v53, %v8007_v1  ;;  %v8669_v5 = vrot.slane %v8667_v24, 4  ;;  %v8684_v31 = vshll.u32 %v8316_v43, 16  ;;  %v8676_v17 = vshll.u32 %v8315_v11, 16  ;;  %v7240_v49 = vld [vmem:[#allocation3 + $0xe4] sm:$0x1] }
 0x4fb   :  { %v8660_v10 = vrot.slane %v8659_v35, 4  ;;  %v7564_v62 = vsel %vm14103_vm2, %v7559_v4, %v7563_v47  ;;  %v8672_v15 = vrot.slane %v8670_v39, 5  ;;  %v8683_v29 = vrot.slane %v8681_v55, 4  ;;  %v7833_v0 = vld [vmem:[#allocation3 + $0xf8] sm:$0xe]  ;;  %v17863_v4 = vpop.f32.mrb[160].mxu1 }
 0x4fc   :  { %v12187_v52 = vcombine.low %v7550_v61, %v7564_v62  ;;  %v8686_v56 = vrot.slane %v8684_v31, 5  ;;  %v12236_v44 = vcombine.low %v8004_v51, %v8008_v34  ;;  %v8690_v26 = vshll.u32 %v8317_v14, 16  ;;  %v7834_v11 = vld [vmem:[#allocation3 + $0xfc] sm:$0x1]  ;;  %v7835_v12 = vld [vmem:[#allocation3 + $0x100] sm:$0xe] }
 0x4fd   :  { %v8665_v13 = vsel %vm14103_vm2, %v8660_v10, %v8664_v45  ;;  %v8673_v42 = vor.u32 %v8672_v15, %v8669_v5  ;;  %v17843_v3 = vadd.f32 %v17776_v8, %v17770_v41  ;;  %v17847_v2 = vadd.f32 %v17792_v46, %v17774_v28  ;;  %v17855_v28 = vpop.f32.mrb[152].mxu0  ;;  %v8318_v61 = vld [vmem:[#allocation3 + $0x110] sm:$0xf]  ;;  %v8320_v55 = vld [vmem:[#allocation3 + $0x118] sm:$0xf] }
 0x4fe   :  { %v12268_v38 = vcombine.low %v8651_v9, %v8665_v13  ;;  %10356 = vmatmul.mubr.bf16.gmra.mrb[248].mxu0 %v12187_v52  ;;  %v8687_v27 = vor.u32 %v8686_v56, %v8683_v29  ;;  %v8678_v50 = vrot.slane %v8676_v17, 5  ;;  %v17851_v47 = vadd.f32 %v17806_v16, %v17804_v33  ;;  %v7836_v33 = vld [vmem:[#allocation3 + $0x104] sm:$0x1]  ;;  %v17859_v16 = vpop.f32.mrb[153].mxu0  ;;  %v8319_v17 = vld [vmem:[#allocation3 + $0x114] sm:$0x1] }
 0x4ff   :  { %10363 = vmatprep.mubr.bf16.mxu0 %v12236_v44  ;;  %v8674_v60 = vrot.slane %v8673_v42, 4  ;;  %v7566_v9 = vshrl.u32 %v7237_v48, 16  ;;  %v8692_v8 = vrot.slane %v8690_v26, 5  ;;  %v7569_v6 = vshll.u32 %v7237_v48, 16  ;;  %v17865_v31 = vpop.f32.mrb[154].mxu0  ;;  %v17867_v52 = vpop.f32.mrb[161].mxu1 }
 0x500   :  { %19378 = vst [vmem:[#allocation23_spill] sm:$0xff] %v17851_v47  ;;  %10524 = vmatprep.mubr.bf16.mxu1 %v12268_v38  ;;  %v8688_v41 = vrot.slane %v8687_v27, 4  ;;  %v7580_v43 = vshrl.u32 %v7239_v22, 16  ;;  %v7583_v45 = vshll.u32 %v7239_v22, 16  ;;  %v7575_v24 = vshll.u32 %v7238_v30, 16  ;;  %v17871_v38 = vpop.f32.mrb[162].mxu1 }
 0x501   :  { %10525 = vmatmul.mubr.bf16.gmra.mrb[0].mxu1 %v13916_v7  ;;  %v8679_v46 = vsel %vm14103_vm2, %v8674_v60, %v8678_v50  ;;  %v7568_v51 = vrot.slane %v7566_v9, 4  ;;  %v7571_v1 = vrot.slane %v7569_v6, 5  ;;  %v7589_v35 = vshll.u32 %v7240_v49, 16  ;;  %v8321_v48 = vld [vmem:[#allocation3 + $0x11c] sm:$0x1]  ;;  %v17869_v7 = vpop.f32.mrb[155].mxu0 }
 0x502   :  { %v8693_v53 = vsel %vm14103_vm2, %v8688_v41, %v8692_v8  ;;  %v7582_v34 = vrot.slane %v7580_v43, 4  ;;  %v7585_v14 = vrot.slane %v7583_v45, 5  ;;  %v12217_v5 = vrot.slane %v7833_v0, 9  ;;  %v13917_v0 = vld [vmem:[#allocation3 + $0x100] ss:$8 sps:$4 sm:$0xff]   ;;  %v17875_v9 = vpop.f32.mrb[163].mxu1 }
 0x503   :  { %v12269_v39 = vcombine.low %v8679_v46, %v8693_v53  ;;  %v7572_v10 = vor.u32 %v7571_v1, %v7568_v51  ;;  %v8011_v62 = vrot.slane %v7834_v11, 5  ;;  %v12218_v15 = vrot.slane %v7835_v12, 9  ;;  %v7241_v12 = vld [vmem:[#allocation3 + $0xf8] sm:$0xf]  ;;  %v7242_v46 = vld [vmem:[#allocation3 + $0xfc] sm:$0x1] }
 0x504   :  { %v7586_v29 = vor.u32 %v7585_v14, %v7582_v34  ;;  %v8015_v56 = vrot.slane %v7836_v33, 5  ;;  %v8695_v13 = vshrl.u32 %v8318_v61, 16  ;;  %v8698_v44 = vshll.u32 %v8318_v61, 16  ;;  %v7243_v61 = vld [vmem:[#allocation3 + $0x100] sm:$0xf] }
 0x505   :  { %10532 = vmatprep.mubr.bf16.mxu1 %v12269_v39  ;;  %v7573_v42 = vrot.slane %v7572_v10, 4  ;;  %v7577_v26 = vrot.slane %v7575_v24, 5  ;;  %v7591_v30 = vrot.slane %v7589_v35, 5  ;;  %v8709_v22 = vshrl.u32 %v8320_v55, 16  ;;  %v7244_v39 = vld [vmem:[#allocation3 + $0x104] sm:$0x1] }
 0x506   :  { %v7587_v27 = vrot.slane %v7586_v29, 4  ;;  %v8012_v49 = vsel %vm14264_vm5, %v12217_v5, %v8011_v62  ;;  %v8697_v60 = vrot.slane %v8695_v13, 4  ;;  %v8700_v50 = vrot.slane %v8698_v44, 5  ;;  %v7837_v34 = vld [vmem:[#allocation3 + $0x108] sm:$0xe] }
 0x507   :  { %v7578_v11 = vsel %vm14103_vm2, %v7573_v42, %v7577_v26  ;;  %v8016_v41 = vsel %vm14264_vm5, %v12218_v15, %v8015_v56  ;;  %v8704_v8 = vshll.u32 %v8319_v17, 16  ;;  %v8711_v6 = vrot.slane %v8709_v22, 4  ;;  %v7839_v15 = vld [vmem:[#allocation3 + $0x110] sm:$0xe]  ;;  %v7840_v56 = vld [vmem:[#allocation3 + $0x114] sm:$0x1] }
 0x508   :  { %v7592_v51 = vsel %vm14103_vm2, %v7587_v27, %v7591_v30  ;;  %v8701_v43 = vor.u32 %v8700_v50, %v8697_v60  ;;  %v8712_v45 = vshll.u32 %v8320_v55, 16  ;;  %v8718_v33 = vshll.u32 %v8321_v48, 16  ;;  %v8323_v27 = vld [vmem:[#allocation3 + $0x124] sm:$0x1] }
 0x509   :  { %10533 = vmatmul.mubr.bf16.gmra.mrb[4].mxu1 %v13917_v0  ;;  %v12188_v53 = vcombine.low %v7578_v11, %v7592_v51  ;;  %v17885_v1 = vadd.f32 %v17821_v63, %v17808_v54  ;;  %v17889_v24 = vadd.f32 %v17831_v21, %v17823_v18  ;;  %v17893_v35 = vadd.f32 %v17835_v40, %v17827_v57  ;;  %v7838_v54 = vld [vmem:[#allocation3 + $0x10c] sm:$0x1]  ;;  %v17899_v63 = vpop.f32.mrb[156].mxu0  ;;  %v8324_v11 = vld [vmem:[#allocation3 + $0x128] sm:$0xf] }
 0x50a   :  { %v12237_v14 = vcombine.low %v8012_v49, %v8016_v41  ;;  %v8702_v5 = vrot.slane %v8701_v43, 4  ;;  %v8714_v55 = vrot.slane %v8712_v45, 5  ;;  %v17897_v10 = vadd.f32 %v17853_v37, %v17839_v20  ;;  %v8322_v20 = vld [vmem:[#allocation3 + $0x120] sm:$0xf]  ;;  %v17903_v41 = vpop.f32.mrb[157].mxu0  ;;  %v17907_v45 = vpop.f32.mrb[164].mxu1 }
 0x50b   :  { %19379 = vst [vmem:[#allocation24_spill] sm:$0xff] %v17889_v24  ;;  %10364 = vmatmul.mubr.bf16.gmra.mrb[252].mxu0 %v12188_v53  ;;  %v8706_v18 = vrot.slane %v8704_v8, 5  ;;  %v7594_v21 = vshrl.u32 %v7241_v12, 16  ;;  %v7597_v62 = vshll.u32 %v7241_v12, 16  ;;  %v8720_v40 = vrot.slane %v8718_v33, 5 }
 0x50c   :  { %19380 = vst [vmem:[#allocation30_spill] sm:$0xff] %v17897_v10  ;;  %10371 = vmatprep.mubr.bf16.mxu0 %v12237_v14  ;;  %v8715_v57 = vor.u32 %v8714_v55, %v8711_v6  ;;  %v7603_v17 = vshll.u32 %v7242_v46, 16  ;;  %v7608_v29 = vshrl.u32 %v7243_v61, 16  ;;  %v7611_v44 = vshll.u32 %v7243_v61, 16  ;;  %v13919_v46 = vld [vmem:[#allocation3 + $0x110] ss:$8 sps:$4 sm:$0xff]  }
 0x50d   :  { %v7596_v48 = vrot.slane %v7594_v21, 4  ;;  %v7599_v13 = vrot.slane %v7597_v62, 5  ;;  %v7617_v42 = vshll.u32 %v7244_v39, 16  ;;  %v8707_v37 = vsel %vm14103_vm2, %v8702_v5, %v8706_v18  ;;  %v8325_v51 = vld [vmem:[#allocation3 + $0x12c] sm:$0x1]  ;;  %v17915_v18 = vpop.f32.mrb[165].mxu1 }
 0x50e   :  { %v8716_v26 = vrot.slane %v8715_v57, 4  ;;  %v7610_v30 = vrot.slane %v7608_v29, 4  ;;  %v12219_v22 = vrot.slane %v7837_v34, 9  ;;  %v7605_v0 = vrot.slane %v7603_v17, 5  ;;  %v17909_v34 = vpop.f32.mrb[158].mxu0 }
 0x50f   :  { %v7600_v49 = vor.u32 %v7599_v13, %v7596_v48  ;;  %v7613_v60 = vrot.slane %v7611_v44, 5  ;;  %v8019_v50 = vrot.slane %v7838_v54, 5  ;;  %v12220_v6 = vrot.slane %v7839_v15, 9  ;;  %v8862_v10 = vld [vmem:[#allocation3 + $0x20] sm:$0xe] }
 0x510   :  { %v8721_v8 = vsel %vm14103_vm2, %v8716_v26, %v8720_v40  ;;  %v8023_v12 = vrot.slane %v7840_v56, 5  ;;  %v8723_v43 = vshrl.u32 %v8322_v20, 16  ;;  %v7619_v39 = vrot.slane %v7617_v42, 5  ;;  %v7245_v56 = vld [vmem:[#allocation3 + $0x108] sm:$0xf]  ;;  %v17929_v26 = vpop.f32.mrb[159].mxu0 }
 0x511   :  { %v12270_v33 = vcombine.low %v8707_v37, %v8721_v8  ;;  %v7601_v53 = vrot.slane %v7600_v49, 4  ;;  %v7614_v61 = vor.u32 %v7613_v60, %v7610_v30  ;;  %v8020_v14 = vsel %vm14264_vm5, %v12219_v22, %v8019_v50  ;;  %v7247_v37 = vld [vmem:[#allocation3 + $0x110] sm:$0xf]  ;;  %v7841_v60 = vld [vmem:[#allocation3 + $0x118] sm:$0xe]  ;;  %v17931_v50 = vpop.f32.mrb[166].mxu1 }
 0x512   :  { %v8024_v5 = vsel %vm14264_vm5, %v12220_v6, %v8023_v12  ;;  %v8725_v55 = vrot.slane %v8723_v43, 4  ;;  %v8726_v54 = vshll.u32 %v8322_v20, 16  ;;  %v8732_v15 = vshll.u32 %v8323_v27, 16  ;;  %v7246_v20 = vld [vmem:[#allocation3 + $0x10c] sm:$0x1]  ;;  %v17943_v12 = vpop.f32.mrb[167].mxu1 }
 0x513   :  { %10540 = vmatprep.mubr.bf16.mxu1 %v12270_v33  ;;  %v7606_v21 = vsel %vm14103_vm2, %v7601_v53, %v7605_v0  ;;  %v7615_v62 = vrot.slane %v7614_v61, 4  ;;  %v8737_v57 = vshrl.u32 %v8324_v11, 16  ;;  %v8740_v17 = vshll.u32 %v8324_v11, 16  ;;  %v7248_v0 = vld [vmem:[#allocation3 + $0x114] sm:$0x1]  ;;  %v17933_v11 = vpop.f32.mrb[160].mxu0 }
 0x514   :  { %10541 = vmatmul.mubr.bf16.gmra.mrb[8].mxu1 %v13919_v46  ;;  %v8728_v40 = vrot.slane %v8726_v54, 5  ;;  %v8746_v29 = vshll.u32 %v8325_v51, 16  ;;  %v17923_v44 = vadd.f32 %v17859_v16, %v17855_v28  ;;  %v17927_v42 = vadd.f32 %v17867_v52, %v17863_v4  ;;  %v7842_v8 = vld [vmem:[#allocation3 + $0x11c] sm:$0x1]  ;;  %v7843_v6 = vld [vmem:[#allocation3 + $0x120] sm:$0xe] }
 0x515   :  { %v7620_v48 = vsel %vm14103_vm2, %v7615_v62, %v7619_v39  ;;  %v8739_v13 = vrot.slane %v8737_v57, 4  ;;  %v12238_v22 = vcombine.low %v8020_v14, %v8024_v5  ;;  %v8742_v49 = vrot.slane %v8740_v17, 5  ;;  %v7844_v53 = vld [vmem:[#allocation3 + $0x124] sm:$0x1]  ;;  %v17945_v61 = vpop.f32.mrb[161].mxu0 }
 0x516   :  { %19381 = vst [vmem:[#allocation25_spill] sm:$0xff] %v17927_v42  ;;  %v12189_v30 = vcombine.low %v7606_v21, %v7620_v48  ;;  %v8729_v27 = vor.u32 %v8728_v40, %v8725_v55  ;;  %v8734_v28 = vrot.slane %v8732_v15, 5  ;;  %v17937_v16 = vadd.f32 %v17869_v7, %v17865_v31  ;;  %v193_v21 = vld [vmem:[#allocation3 + $0x138] sm:$0x1]  ;;  %v17951_v62 = vpop.f32.mrb[162].mxu0 }
 0x517   :  { %v17941_v4 = vadd.f32 %v17875_v9, %v17871_v38  ;;  %v7622_v52 = vshrl.u32 %v7245_v56, 16  ;;  %v8743_v51 = vor.u32 %v8742_v49, %v8739_v13  ;;  %v7625_v43 = vshll.u32 %v7245_v56, 16  ;;  %v17947_v38 = vpop.f32.mrb[168].mxu1  ;;  %v315_v56 = vld [vmem:[#allocation3 + $0x13c] sm:$0x1] }
 0x518   :  { %10372 = vmatmul.mubr.bf16.gmra.mrb[0].mxu0 %v12189_v30  ;;  %v8730_v46 = vrot.slane %v8729_v27, 4  ;;  %v7631_v33 = vshll.u32 %v7246_v20, 16  ;;  %v8748_v31 = vrot.slane %v8746_v29, 5  ;;  %v7636_v39 = vshrl.u32 %v7247_v37, 16  ;;  %v8863_v24 = vld [vmem:[#allocation3 + $0x24] sm:$0x1] }
 0x519   :  { %19382 = vst [vmem:[#allocation31_spill] sm:$0xff] %v17941_v4  ;;  %10379 = vmatprep.mubr.bf16.mxu0 %v12238_v22  ;;  %v7624_v7 = vrot.slane %v7622_v52, 4  ;;  %v7639_v14 = vshll.u32 %v7247_v37, 16  ;;  %v8744_v5 = vrot.slane %v8743_v51, 4  ;;  %v7627_v55 = vrot.slane %v7625_v43, 5  ;;  %v13191_v52 = vpop.f32.mrb[169].mxu1 }
 0x51a   :  { %v8735_v9 = vsel %vm14103_vm2, %v8730_v46, %v8734_v28  ;;  %v7633_v54 = vrot.slane %v7631_v33, 5  ;;  %v7638_v15 = vrot.slane %v7636_v39, 4  ;;  %v7645_v40 = vshll.u32 %v7248_v0, 16  ;;  %v8326_v37 = vld [vmem:[#allocation3 + $0x130] sm:$0xf]  ;;  %v17955_v46 = vpop.f32.mrb[163].mxu0 }
 0x51b   :  { %v7641_v57 = vrot.slane %v7639_v14, 5  ;;  %v12221_v17 = vrot.slane %v7841_v60, 9  ;;  %v8749_v29 = vsel %vm14103_vm2, %v8744_v5, %v8748_v31  ;;  %v7628_v48 = vor.u32 %v7627_v55, %v7624_v7  ;;  %v8327_v28 = vld [vmem:[#allocation3 + $0x134] sm:$0x1]  ;;  %v13922_v60 = vld [vmem:[#allocation3 + $0x120] ss:$8 sps:$4 sm:$0xff]  }
 0x51c   :  { %v8027_v13 = vrot.slane %v7842_v8, 5  ;;  %v12222_v20 = vrot.slane %v7843_v6, 9  ;;  %v12271_v30 = vcombine.low %v8735_v9, %v8749_v29  ;;  %v7647_v27 = vrot.slane %v7645_v40, 5  ;;  %v17963_v6 = vpop.f32.mrb[170].mxu1  ;;  %v7249_v9 = vld [vmem:[#allocation3 + $0x118] sm:$0xf] }
 0x51d   :  { %v7642_v22 = vor.u32 %v7641_v57, %v7638_v15  ;;  %v8031_v49 = vrot.slane %v7844_v53, 5  ;;  %v7629_v51 = vrot.slane %v7628_v48, 4  ;;  %v194_v43 = vsel %vm16056_vm8, 0, %v193_v21  ;;  %v17967_v39 = vpop.f32.mrb[171].mxu1  ;;  %v17975_v5 = vpop.f32.mrb[164].mxu0 }
 0x51e   :  { %v8028_v0 = vsel %vm14264_vm5, %v12221_v17, %v8027_v13  ;;  %v316_v8 = vsel %vm16067_vm10, 0, %v315_v56  ;;  %10548 = vmatprep.mubr.bf16.mxu1 %v12271_v30  ;;  %195 = vst [vmem:[#allocation3 + $0x138] sm:$0x1] %v194_v43  ;;  %v8751_v31 = vshrl.u32 %v8326_v37, 16  ;;  %v8754_v7 = vshll.u32 %v8326_v37, 16  ;;  %v17987_v29 = vpop.f32.mrb[165].mxu0 }
 0x51f   :  { %v7643_v33 = vrot.slane %v7642_v22, 4  ;;  %v8032_v53 = vsel %vm14264_vm5, %v12222_v20, %v8031_v49  ;;  %317 = vst [vmem:[#allocation3 + $0x13c] sm:$0x1] %v316_v8  ;;  %v7634_v23 = vsel %vm14103_vm2, %v7629_v51, %v7633_v54  ;;  %10549 = vmatmul.mubr.bf16.gmra.mrb[12].mxu1 %v13922_v60  ;;  %v8760_v14 = vshll.u32 %v8327_v28, 16  ;;  %v7250_v40 = vld [vmem:[#allocation3 + $0x11c] sm:$0x1] }
 0x520   :  { %v17973_v59 = vadd.f32 %v17903_v41, %v17899_v63  ;;  %v8753_v21 = vrot.slane %v8751_v31, 4  ;;  %v8756_v15 = vrot.slane %v8754_v7, 5  ;;  %v17981_v57 = vadd.f32 %v17915_v18, %v17907_v45  ;;  %v7251_v54 = vld [vmem:[#allocation3 + $0x120] sm:$0xf]  ;;  %v7252_v41 = vld [vmem:[#allocation3 + $0x124] sm:$0x1] }
 0x521   :  { %v7648_v55 = vsel %vm14103_vm2, %v7643_v33, %v7647_v27  ;;  %v12239_v56 = vcombine.low %v8028_v0, %v8032_v53  ;;  %v17985_v63 = vadd.f32 %v17929_v26, %v17909_v34  ;;  %v17989_v48 = vpop.f32.mrb[172].mxu1  ;;  %v17993_v20 = vadd.f32 %v17943_v12, %v17931_v50  ;;  %v7845_v37 = vld [vmem:[#allocation3 + $0x128] sm:$0xe]  ;;  %v17995_v30 = vpop.f32.mrb[166].mxu0  ;;  %v7846_v49 = vld [vmem:[#allocation3 + $0x12c] sm:$0x1] }
 0x522   :  { %19383 = vst [vmem:[#allocation26_spill] sm:$0xff] %v17981_v57  ;;  %v12190_v17 = vcombine.low %v7634_v23, %v7648_v55  ;;  %v8757_v13 = vor.u32 %v8756_v15, %v8753_v21  ;;  %v7650_v45 = vshrl.u32 %v7249_v9, 16  ;;  %v7653_v18 = vshll.u32 %v7249_v9, 16  ;;  %v17997_v22 = vpop.f32.mrb[173].mxu1  ;;  %v17999_v28 = vpop.f32.mrb[167].mxu0 }
 0x523   :  { %19384 = vst [vmem:[#allocation32_spill] sm:$0xff] %v17993_v20  ;;  %v7659_v34 = vshll.u32 %v7250_v40, 16  ;;  %v7664_v26 = vshrl.u32 %v7251_v54, 16  ;;  %v7667_v27 = vshll.u32 %v7251_v54, 16  ;;  %v18001_v51 = vpop.f32.mrb[174].mxu1  ;;  %v18003_v0 = vrot.slane %v8760_v14, 5 }
 0x524   :  { %10380 = vmatmul.mubr.bf16.gmra.mrb[4].mxu0 %v12190_v17  ;;  %v7652_v50 = vrot.slane %v7650_v45, 4  ;;  %v7655_v12 = vrot.slane %v7653_v18, 5  ;;  %v7673_v60 = vshll.u32 %v7252_v41, 16  ;;  %v7847_v43 = vld [vmem:[#allocation3 + $0x130] sm:$0xe]  ;;  %v18005_v33 = vpop.f32.mrb[175].mxu1  ;;  %v18011_v55 = vadd.f32 %v17945_v61, %v17933_v11 }
 0x525   :  { %10387 = vmatprep.mubr.bf16.mxu0 %v12239_v56  ;;  %v7848_v8 = vld [vmem:[#allocation3 + $0x134] sm:$0x1]  ;;  %v18007_v53 = vpop.f32.mrb[168].mxu0  ;;  %v8328_v31 = vld [vmem:[#allocation3 + $0x138] sm:$0xf]  ;;  %v8758_v23 = vrot.slane %v8757_v13, 4  ;;  %v18014_v14 = vadd.f32 %v13191_v52, %v17947_v38 }
 0x526   :  { %v8329_v7 = vld [vmem:[#allocation3 + $0x13c] sm:$0x1]  ;;  %v7666_v9 = vrot.slane %v7664_v26, 4  ;;  %v8765_v21 = vshrl.u32 %v8328_v31, 16  ;;  %v8768_v15 = vshll.u32 %v8328_v31, 16  ;;  %v18016_v54 = vpop.f32.mrb[169].mxu0  ;;  %v7656_v17 = vor.u32 %v7655_v12, %v7652_v50 }
 0x527   :  { %19385 = vst [vmem:[#allocation27_spill] sm:$0xff] %v18014_v14  ;;  %v8774_v40 = vshll.u32 %v8329_v7, 16  ;;  %v7661_v56 = vrot.slane %v7659_v34, 5  ;;  %v7669_v41 = vrot.slane %v7667_v27, 5  ;;  %v12223_v45 = vrot.slane %v7845_v37, 9  ;;  %v18018_v18 = vpop.f32.mrb[176].mxu1 }
 0x528   :  { %v8767_v13 = vrot.slane %v8765_v21, 4  ;;  %v8770_v26 = vrot.slane %v8768_v15, 5  ;;  %v7675_v20 = vrot.slane %v7673_v60, 5  ;;  %v8035_v57 = vrot.slane %v7846_v49, 5  ;;  %v7253_v52 = vld [vmem:[#allocation3 + $0x128] sm:$0xf] }
 0x529   :  { %v7657_v11 = vrot.slane %v7656_v17, 4  ;;  %v7670_v61 = vor.u32 %v7669_v41, %v7666_v9  ;;  %v12224_v4 = vrot.slane %v7847_v43, 9  ;;  %v8039_v38 = vrot.slane %v7848_v8, 5  ;;  %v18020_v14 = vpop.f32.mrb[170].mxu0  ;;  %v7255_v27 = vld [vmem:[#allocation3 + $0x130] sm:$0xf] }
 0x52a   :  { %v8771_v31 = vor.u32 %v8770_v26, %v8767_v13  ;;  %v8776_v7 = vrot.slane %v8774_v40, 5  ;;  %v8036_v34 = vsel %vm14264_vm5, %v12223_v45, %v8035_v57  ;;  %v18026_v37 = vadd.f32 %v17955_v46, %v17951_v62  ;;  %v7254_v43 = vld [vmem:[#allocation3 + $0x12c] sm:$0x1]  ;;  %v7256_v8 = vld [vmem:[#allocation3 + $0x134] sm:$0x1]  ;;  %v18036_v9 = vpop.f32.mrb[177].mxu1 }
 0x52b   :  { %v7662_v49 = vsel %vm14103_vm2, %v7657_v11, %v7661_v56  ;;  %v7671_v50 = vrot.slane %v7670_v61, 4  ;;  %v8040_v12 = vsel %vm14264_vm5, %v12224_v4, %v8039_v38  ;;  %v18034_v60 = vadd.f32 %v17967_v39, %v17963_v6  ;;  %v8858_v21 = vld [vmem:[#allocation3 + $0x10] sm:$0xe]  ;;  %v18041_v15 = vpop.f32.mrb[171].mxu0  ;;  %v18043_v40 = vpop.f32.mrb[178].mxu1 }
 0x52c   :  { %v8763_v62 = vsel %vm14103_vm2, %v8758_v23, %v18003_v0  ;;  %v8772_v46 = vrot.slane %v8771_v31, 4  ;;  %v7678_v57 = vshrl.u32 %v7253_v52, 16  ;;  %v12240_v6 = vcombine.low %v8036_v34, %v8040_v12  ;;  %v8859_v56 = vld [vmem:[#allocation3 + $0x14] sm:$0x1]  ;;  %v18047_v41 = vpop.f32.mrb[179].mxu1 }
 0x52d   :  { %19386 = vst [vmem:[#allocation33_spill] sm:$0xff] %v18034_v60  ;;  %v7676_v4 = vsel %vm14103_vm2, %v7671_v50, %v7675_v20  ;;  %v7681_v39 = vshll.u32 %v7253_v52, 16  ;;  %v7692_v17 = vshrl.u32 %v7255_v27, 16  ;;  %v7695_v13 = vshll.u32 %v7255_v27, 16  ;;  %v8860_v26 = vld [vmem:[#allocation3 + $0x18] sm:$0xe] }
 0x52e   :  { %v8777_v45 = vsel %vm14103_vm2, %v8772_v46, %v8776_v7  ;;  %v12191_v0 = vcombine.low %v7662_v49, %v7676_v4  ;;  %v7680_v23 = vrot.slane %v7678_v57, 4  ;;  %v8861_v11 = vld [vmem:[#allocation3 + $0x1c] sm:$0x1]  ;;  %v13925_v38 = vld [vmem:[#allocation3 + $0x130] ss:$8 sps:$4 sm:$0xff]   ;;  %v7687_v60 = vshll.u32 %v7254_v43, 16 }
 0x52f   :  { %v12272_v61 = vcombine.low %v8763_v62, %v8777_v45  ;;  %v7683_v31 = vrot.slane %v7681_v39, 5  ;;  %v7694_v42 = vrot.slane %v7692_v17, 4  ;;  %v18051_v20 = vpop.f32.mrb[172].mxu0  ;;  %v7697_v52 = vrot.slane %v7695_v13, 5  ;;  %v8864_v43 = vld [vmem:[#allocation3 + $0x28] sm:$0xe] }
 0x530   :  { %10388 = vmatmul.mubr.bf16.gmra.mrb[8].mxu0 %v12191_v0  ;;  %v7701_v34 = vshll.u32 %v7256_v8, 16  ;;  %v12273_v50 = vrot.slane %v8858_v21, 9  ;;  %v8988_v12 = vrot.slane %v8859_v56, 5  ;;  %v12274_v27 = vrot.slane %v8860_v26, 9  ;;  %v8865_v46 = vld [vmem:[#allocation3 + $0x2c] sm:$0x1] }
 0x531   :  { %10556 = vmatprep.mubr.bf16.mxu1 %v12272_v61  ;;  %10395 = vmatprep.mubr.bf16.mxu0 %v12240_v6  ;;  %v7684_v7 = vor.u32 %v7683_v31, %v7680_v23  ;;  %v8992_v49 = vrot.slane %v8861_v11, 5  ;;  %v18055_v62 = vadd.f32 %v17987_v29, %v17975_v5  ;;  %v7698_v57 = vor.u32 %v7697_v52, %v7694_v42  ;;  %v8866_v21 = vld [vmem:[#allocation3 + $0x30] sm:$0xe]  ;;  %v8867_v4 = vld [vmem:[#allocation3 + $0x34] sm:$0x1]  ;;  %v13091_v39 = vpop.f32.mrb[173].mxu0 }
 0x532   :  { %10557 = vmatmul.mubr.bf16.gmra.mrb[16].mxu1 %v13925_v38  ;;  %v18059_v8 = vadd.f32 %v17997_v22, %v17989_v48  ;;  %v13208_v17 = vpop.f32.mrb[180].mxu1  ;;  %v7689_v56 = vrot.slane %v7687_v60, 5  ;;  %v18063_v45 = vadd.f32 %v17999_v28, %v17995_v30  ;;  %v8868_v5 = vld [vmem:[#allocation3 + $0x38] sm:$0xe]  ;;  %v13093_v29 = vpop.f32.mrb[174].mxu0  ;;  %v7703_v13 = vrot.slane %v7701_v34, 5 }
 0x533   :  { %v7685_v6 = vrot.slane %v7684_v7, 4  ;;  %v13209_v0 = vpop.f32.mrb[181].mxu1  ;;  %v7699_v23 = vrot.slane %v7698_v57, 4  ;;  %v8989_v42 = vsel %vm14264_vm5, %v12273_v50, %v8988_v12  ;;  %v18069_v48 = vadd.f32 %v18005_v33, %v18001_v51  ;;  %v8869_v22 = vld [vmem:[#allocation3 + $0x3c] sm:$0x1]  ;;  %v13094_v26 = vpop.f32.mrb[175].mxu0 }
 0x534   :  { %19387 = vst [vmem:[#allocation28_spill] sm:$0xff] %v18059_v8  ;;  %v13211_v11 = vpop.f32.mrb[182].mxu1  ;;  %v8993_v30 = vsel %vm14264_vm5, %v12274_v27, %v8992_v49  ;;  %v12275_v28 = vrot.slane %v8862_v10, 9  ;;  %v8996_v61 = vrot.slane %v8863_v24, 5  ;;  %v18075_v31 = vpop.f32.mrb[176].mxu0  ;;  %v12276_v34 = vrot.slane %v8864_v43, 9 }
 0x535   :  { %19388 = vst [vmem:[#allocation34_spill] sm:$0xff] %v18069_v48  ;;  %v7690_v60 = vsel %vm14103_vm2, %v7685_v6, %v7689_v56  ;;  %v13212_v38 = vpop.f32.mrb[183].mxu1  ;;  %v7704_v52 = vsel %vm14103_vm2, %v7699_v23, %v7703_v13  ;;  %v9000_v51 = vrot.slane %v8865_v46, 5  ;;  %v12277_v33 = vrot.slane %v8866_v21, 9  ;;  %v13097_v50 = vpop.f32.mrb[177].mxu0 }
 0x536   :  { %v12192_v12 = vcombine.low %v7690_v60, %v7704_v52  ;;  %v9004_v7 = vrot.slane %v8867_v4, 5  ;;  %v12278_v57 = vrot.slane %v8868_v5, 9  ;;  %v9008_v48 = vrot.slane %v8869_v22, 5  ;;  %v13214_v10 = vpop.f32.mrb[184].mxu1  ;;  %v13099_v49 = vpop.f32.mrb[178].mxu0 }
 0x537   :  { %v12305_v6 = vcombine.low %v8989_v42, %v8993_v30  ;;  %v18081_v27 = vadd.f32 %v18016_v54, %v18007_v53  ;;  %v18085_v24 = vadd.f32 %v18036_v9, %v18018_v18  ;;  %v18089_v43 = vadd.f32 %v18041_v15, %v18020_v14  ;;  %v13215_v21 = vpop.f32.mrb[185].mxu1  ;;  %v13100_v4 = vpop.f32.mrb[179].mxu0  ;;  %v8870_v53 = vld [vmem:[#allocation3 + $0x40] sm:$0xe]  ;;  %v8871_v54 = vld [vmem:[#allocation3 + $0x44] sm:$0x1] }
 0x538   :  { %10396 = vmatmul.mubr.bf16.gmra.mrb[12].mxu0 %v12192_v12  ;;  %v18093_v46 = vadd.f32 %v18047_v41, %v18043_v40  ;;  %v13217_v56 = vpop.f32.mrb[186].mxu1  ;;  %v18095_v5 = vpop.f32.mrb[180].mxu0  ;;  %v8997_v18 = vsel %vm14264_vm5, %v12275_v28, %v8996_v61  ;;  %v9001_v9 = vsel %vm14264_vm5, %v12276_v34, %v9000_v51  ;;  %v9005_v14 = vsel %vm14264_vm5, %v12277_v33, %v9004_v7  ;;  %v8872_v40 = vld [vmem:[#allocation3 + $0x48] sm:$0xe]  ;;  %v8873_v41 = vld [vmem:[#allocation3 + $0x4c] sm:$0x1] }
 0x539   :  { %19389 = vst [vmem:[#allocation29_spill] sm:$0xff] %v18085_v24  ;;  %13568 = vmatprep.mubr.bf16.mxu0 %v12305_v6  ;;  %v9009_v15 = vsel %vm14264_vm5, %v12278_v57, %v9008_v48  ;;  %v13218_v23 = vpop.f32.mrb[187].mxu1  ;;  %v8874_v13 = vld [vmem:[#allocation3 + $0x60] sm:$0xe]  ;;  %v8875_v42 = vld [vmem:[#allocation3 + $0x64] sm:$0x1]  ;;  %v18108_v28 = vadd.f32 %v13091_v39, %v18051_v20  ;;  %v18110_v61 = vadd.f32 %v13209_v0, %v13208_v17 }
 0x53a   :  { %19390 = vst [vmem:[#allocation43_spill] sm:$0xff] %v18093_v46  ;;  %v18105_v22 = vpop.f32.mrb[181].mxu0  ;;  %v8876_v60 = vld [vmem:[#allocation3 + $0x68] sm:$0xe]  ;;  %v8877_v30 = vld [vmem:[#allocation3 + $0x6c] sm:$0x1]  ;;  %v18112_v52 = vadd.f32 %v13094_v26, %v13093_v29  ;;  %v12306_v33 = vcombine.low %v8997_v18, %v9001_v9  ;;  %v12307_v12 = vcombine.low %v9005_v14, %v9009_v15  ;;  %v18123_v7 = vadd.f32 %v13212_v38, %v13211_v11 }
 0x53b   :  { %19391 = vst [vmem:[#allocation35_spill] sm:$0xff] %v18110_v61  ;;  %v18114_v34 = vpop.f32.mrb[188].mxu1  ;;  %v18116_v51 = vpop.f32.mrb[182].mxu0  ;;  %v18121_v48 = vld [vmem:[%s19176_s6] ss:$0 sm:$0xff]  ;;  %v12279_v39 = vrot.slane %v8870_v53, 9 }
 0x53c   :  { %19392 = vst [vmem:[#allocation44_spill] sm:$0xff] %v18123_v7  ;;  %v13221_v57 = vpop.f32.mrb[189].mxu1  ;;  %v13106_v20 = vpop.f32.mrb[183].mxu0  ;;  %v9012_v17 = vrot.slane %v8871_v54, 5  ;;  %v12280_v0 = vrot.slane %v8872_v40, 9  ;;  %v9016_v29 = vrot.slane %v8873_v41, 5  ;;  %v18133_v11 = vadd.f32 %v17814_v36, %v18121_v48 }
 0x53d   :  { %v18125_v26 = vld [vmem:[#allocation3 + $0x70] sm:$0xe]  ;;  %v18127_v6 = vpop.f32.mrb[190].mxu1  ;;  %v12281_v58 = vrot.slane %v8874_v13, 9  ;;  %v9020_v61 = vrot.slane %v8875_v42, 5  ;;  %v12282_v46 = vrot.slane %v8876_v60, 9  ;;  %v18138_v54 = vadd.f32 %v13097_v50, %v18075_v31 }
 0x53e   :  { %v9024_v24 = vrot.slane %v8877_v30, 5  ;;  %v13224_v8 = vpop.f32.mrb[191].mxu1  ;;  %v18129_v47 = vpop.f32.mrb[184].mxu0  ;;  %v8879_v38 = vld [vmem:[#allocation3 + $0x74] sm:$0x1]  ;;  %v18144_v9 = vadd.f32 %v17847_v2, %v18121_v48  ;;  %v18148_v14 = vadd.f32 %v17885_v1, %v18121_v48  ;;  %v18150_v41 = vadd.f32 %v13215_v21, %v13214_v10 }
 0x53f   :  { %v18135_v53 = vld [vmem:[#allocation3 + $0x78] sm:$0xe]  ;;  %v18140_v18 = vpop.f32.mrb[185].mxu0  ;;  %v8881_v36 = vld [vmem:[#allocation3 + $0x7c] sm:$0x1]  ;;  %v18152_v13 = vadd.f32 %v13100_v4, %v13099_v49  ;;  %v18156_v31 = vadd.f32 %v17893_v35, %v18121_v48  ;;  %v18160_v2 = vadd.f32 %v17923_v44, %v18121_v48  ;;  %v9013_v1 = vsel %vm14264_vm5, %v12279_v39, %v9012_v17  ;;  %v13226_v10 = vpop.f32.mrb[192].mxu1 }
 0x540   :  { %13569 = vmatmul.mubr.bf16.vlgmr.msra.gmra.mrb[16].mxu0 %v12306_v33  ;;  %v8882_v15 = vld [vmem:[#allocation3 + $0x80] sm:$0xe]  ;;  %v8883_v40 = vld [vmem:[#allocation3 + $0x84] sm:$0x1]  ;;  %19393 = vst [vmem:[#allocation36_spill] sm:$0xff] %v18150_v41  ;;  %v9017_v50 = vsel %vm14264_vm5, %v12280_v0, %v9016_v29  ;;  %v13111_v21 = vpop.f32.mrb[186].mxu0  ;;  %v9021_v49 = vsel %vm14264_vm5, %v12281_v58, %v9020_v61  ;;  %v9025_v35 = vsel %vm14264_vm5, %v12282_v46, %v9024_v24 }
 0x541   :  { %13572 = vmatprep.mubr.bf16.mxu0 %v12307_v12  ;;  %v8884_v42 = vld [vmem:[#allocation3 + $0x88] sm:$0xe]  ;;  %v8885_v60 = vld [vmem:[#allocation3 + $0x8c] sm:$0x1]  ;;  %v12283_v4 = vrot.slane %v18125_v26, 9  ;;  %v18171_v44 = vadd.f32 %v13218_v23, %v13217_v56  ;;  %v13227_v30 = vpop.f32.mrb[193].mxu1  ;;  %v18180_v24 = vadd.f32 %v18105_v22, %v18095_v5  ;;  %v18184_v56 = vadd.f32 %v17937_v16, %v18121_v48 }
 0x542   :  { %v13112_v33 = vpop.f32.mrb[187].mxu0  ;;  %v9028_v12 = vrot.slane %v8879_v38, 5  ;;  %v12284_v39 = vrot.slane %v18135_v53, 9  ;;  %v9032_v17 = vrot.slane %v8881_v36, 5  ;;  %v12285_v0 = vrot.slane %v8882_v15, 9  ;;  %v18174_v29 = vpop.f32.mrb[194].mxu1 }
 0x543   :  { %19394 = vst [vmem:[#allocation45_spill] sm:$0xff] %v18171_v44  ;;  %v18176_v41 = vpop.f32.mrb[188].mxu0  ;;  %v9036_v7 = vrot.slane %v8883_v40, 5  ;;  %v12286_v58 = vrot.slane %v8884_v42, 9  ;;  %v9040_v61 = vrot.slane %v8885_v60, 5  ;;  %v13230_v46 = vpop.f32.mrb[195].mxu1  ;;  %v12308_v23 = vcombine.low %v9013_v1, %v9017_v50 }
 0x544   :  { %v18186_v26 = vld [vmem:[#allocation3 + $0x90] sm:$0xe]  ;;  %v18188_v38 = vld [vmem:[#allocation3 + $0x94] sm:$0x1]  ;;  %v18190_v53 = vld [vmem:[#allocation3 + $0x98] sm:$0xe]  ;;  %v18193_v36 = vadd.f32 %v13221_v57, %v18114_v34  ;;  %v18196_v15 = vadd.f32 %v13106_v20, %v18116_v51  ;;  %v18200_v5 = vadd.f32 %v17973_v59, %v18121_v48  ;;  %v18204_v16 = vadd.f32 %v17985_v63, %v18121_v48 }
 0x545   :  { %v18208_v22 = vadd.f32 %v18011_v55, %v18121_v48  ;;  %v12309_v40 = vcombine.low %v9021_v49, %v9025_v35  ;;  %v8889_v1 = vld [vmem:[#allocation3 + $0x9c] sm:$0x1]  ;;  %v8890_v50 = vld [vmem:[#allocation3 + $0xb0] sm:$0xe]  ;;  %v13115_v34 = vpop.f32.mrb[189].mxu0  ;;  %v18210_v57 = vpop.f32.mrb[196].mxu1  ;;  %v18214_v51 = vadd.f32 %v18026_v37, %v18121_v48  ;;  %v18218_v59 = vadd.f32 %v18055_v62, %v18121_v48 }
 0x546   :  { %19395 = vst [vmem:[#allocation37_spill] sm:$0xff] %v18193_v36  ;;  %v9029_v63 = vsel %vm14264_vm5, %v12283_v4, %v9028_v12  ;;  %v8891_v55 = vld [vmem:[#allocation3 + $0xb4] sm:$0x1]  ;;  %v8892_v20 = vld [vmem:[#allocation3 + $0xb8] sm:$0xe]  ;;  %v18223_v42 = vadd.f32 %v13224_v8, %v18127_v6  ;;  %v13117_v60 = vpop.f32.mrb[190].mxu0  ;;  %v9033_v37 = vsel %vm14264_vm5, %v12284_v39, %v9032_v17  ;;  %v9037_v35 = vsel %vm14264_vm5, %v12285_v0, %v9036_v7 }
 0x547   :  { %19396 = vst [vmem:[#allocation46_spill] sm:$0xff] %v18208_v22  ;;  %19397 = vst [vmem:[#allocation38_spill] sm:$0xff] %v18214_v51  ;;  %v13233_v49 = vpop.f32.mrb[197].mxu1  ;;  %v9041_v62 = vsel %vm14264_vm5, %v12286_v58, %v9040_v61  ;;  %v8893_v4 = vld [vmem:[#allocation3 + $0xbc] sm:$0x1]  ;;  %v13118_v12 = vpop.f32.mrb[191].mxu0  ;;  %v18238_v39 = vadd.f32 %v18140_v18, %v18129_v47  ;;  %v18242_v58 = vadd.f32 %v13227_v30, %v13226_v10 }
 0x548   :  { %19398 = vst [vmem:[#allocation47_spill] sm:$0xff] %v18218_v59  ;;  %13573 = vmatmul.mubr.bf16.gmra.mrb[20].mxu0 %v12308_v23  ;;  %19399 = vst [vmem:[#allocation39_spill] sm:$0xff] %v18223_v42  ;;  %v12287_v23 = vrot.slane %v18186_v26, 9  ;;  %v18232_v36 = vpop.f32.mrb[198].mxu1  ;;  %v9044_v8 = vrot.slane %v18188_v38, 5  ;;  %v12288_v6 = vrot.slane %v18190_v53, 9  ;;  %v18244_v61 = vadd.f32 %v13112_v33, %v13111_v21 }
 0x549   :  { %13576 = vmatprep.mubr.bf16.mxu0 %v12309_v40  ;;  %v9048_v40 = vrot.slane %v8889_v1, 5  ;;  %v13236_v17 = vpop.f32.mrb[199].mxu1  ;;  %v12289_v7 = vrot.slane %v8890_v50, 9  ;;  %v9052_v0 = vrot.slane %v8891_v55, 5  ;;  %v18240_v42 = vld [vmem:[#allocation3 + $0xc0] sm:$0xe]  ;;  %v18248_v26 = vadd.f32 %v18063_v45, %v18121_v48 }
 0x54a   :  { %19400 = vst [vmem:[#allocation48_spill] sm:$0xff] %v18242_v58  ;;  %v18252_v38 = vadd.f32 %v18081_v27, %v18121_v48  ;;  %v12290_v53 = vrot.slane %v8892_v20, 9  ;;  %v9056_v47 = vrot.slane %v8893_v4, 5  ;;  %v18254_v18 = vld [vmem:[#allocation3 + $0xc4] sm:$0x1]  ;;  %v13120_v10 = vpop.f32.mrb[192].mxu0  ;;  %v18264_v21 = vadd.f32 %v18089_v43, %v18121_v48 }
 0x54b   :  { %19401 = vst [vmem:[#allocation40_spill] sm:$0xff] %v18248_v26  ;;  %v18256_v1 = vld [vmem:[#allocation3 + $0xc8] sm:$0xe]  ;;  %v18258_v50 = vld [vmem:[#allocation3 + $0xcc] sm:$0x1]  ;;  %v18260_v30 = vpop.f32.mrb[200].mxu1  ;;  %v18268_v45 = vadd.f32 %v18108_v28, %v18121_v48  ;;  %v18272_v27 = vadd.f32 %v18112_v52, %v18121_v48  ;;  %v18279_v20 = vadd.f32 %v13230_v46, %v18174_v29  ;;  %v12310_v44 = vcombine.low %v9029_v63, %v9033_v37 }
 0x54c   :  { %19402 = vst [vmem:[#allocation41_spill] sm:$0xff] %v18252_v38  ;;  %19403 = vst [vmem:[#allocation49_spill] sm:$0xff] %v18264_v21  ;;  %v18274_v33 = vld [vmem:[#allocation3 + $0xd0] sm:$0xe]  ;;  %v18276_v55 = vld [vmem:[#allocation3 + $0xd4] sm:$0x1]  ;;  %v12311_v43 = vcombine.low %v9037_v35, %v9041_v62  ;;  %v18283_v21 = vadd.f32 %v18138_v54, %v18121_v48  ;;  %v18287_v28 = vadd.f32 %v18152_v13, %v18121_v48 }
 0x54d   :  { %19404 = vst [vmem:[#allocation42_spill] sm:$0xff] %v18268_v45  ;;  %19405 = vst [vmem:[#allocation14_spill] sm:$0xff] %v18272_v27  ;;  %v13121_v4 = vpop.f32.mrb[193].mxu0  ;;  %v13239_v58 = vpop.f32.mrb[201].mxu1  ;;  %v8900_v52 = vld [vmem:[#allocation3 + $0xd8] sm:$0xe]  ;;  %v9045_v29 = vsel %vm14264_vm5, %v12287_v23, %v9044_v8  ;;  %v9049_v46 = vsel %vm14264_vm5, %v12288_v6, %v9048_v40  ;;  %v18295_v63 = vsel %vm14264_vm5, %v12289_v7, %v9052_v0 }
 0x54e   :  { %19406 = vst [vmem:[#allocation21_spill] sm:$0xff] %v18279_v20  ;;  %19407 = vst [vmem:[#allocation16_spill] sm:$0xff] %v18283_v21  ;;  %v8901_v27 = vld [vmem:[#allocation3 + $0xdc] sm:$0x1]  ;;  %v13123_v45 = vpop.f32.mrb[194].mxu0  ;;  %v13241_v38 = vpop.f32.mrb[202].mxu1  ;;  %v18300_v13 = vadd.f32 %v13115_v34, %v18176_v41  ;;  %v9057_v20 = vsel %vm14264_vm5, %v12290_v53, %v9056_v47  ;;  %v18306_v40 = vadd.f32 %v13233_v49, %v18210_v57 }
 0x54f   :  { %19408 = vst [vmem:[#allocation17_spill] sm:$0xff] %v18287_v28  ;;  %v18297_v54 = vld [vmem:[#allocation3 + $0xe0] sm:$0xe]  ;;  %v8903_v37 = vld [vmem:[#allocation3 + $0xe4] sm:$0x1]  ;;  %v13124_v35 = vpop.f32.mrb[195].mxu0  ;;  %v18308_v7 = vadd.f32 %v13118_v12, %v13117_v60  ;;  %v18318_v12 = vadd.f32 %v13236_v17, %v18232_v36  ;;  %v18326_v22 = vadd.f32 %v13121_v4, %v13120_v10  ;;  %v18343_v10 = vadd.f32 %v18196_v15, %v18121_v48 }
 0x550   :  { %v13242_v62 = vpop.f32.mrb[203].mxu1  ;;  %13577 = vmatmul.mubr.bf16.gmra.mrb[24].mxu0 %v12310_v44  ;;  %v12291_v23 = vrot.slane %v18240_v42, 9  ;;  %v8904_v8 = vld [vmem:[#allocation3 + $0xe8] sm:$0xe]  ;;  %v8905_v6 = vld [vmem:[#allocation3 + $0xec] sm:$0x1] }
 0x551   :  { %19409 = vst [vmem:[#allocation18_spill] sm:$0xff] %v18306_v40  ;;  %13580 = vmatprep.mubr.bf16.mxu0 %v12311_v43  ;;  %v9060_v0 = vrot.slane %v18254_v18, 5  ;;  %v12292_v41 = vrot.slane %v18256_v1, 9  ;;  %v9064_v34 = vrot.slane %v18258_v50, 5  ;;  %v12293_v44 = vrot.slane %v18274_v33, 9  ;;  %v13244_v42 = vpop.f32.mrb[204].mxu1 }
 0x552   :  { %v18314_v28 = vld [vmem:[#allocation3 + $0x100] sm:$0xe]  ;;  %v13126_v53 = vpop.f32.mrb[196].mxu0  ;;  %v9068_v47 = vrot.slane %v18276_v55, 5  ;;  %v12294_v21 = vrot.slane %v8900_v52, 9  ;;  %v9072_v57 = vrot.slane %v8901_v27, 5  ;;  %v12312_v1 = vcombine.low %v9045_v29, %v9049_v46 }
 0x553   :  { %v8907_v49 = vld [vmem:[#allocation3 + $0x104] sm:$0x1]  ;;  %v8908_v60 = vld [vmem:[#allocation3 + $0x108] sm:$0xe]  ;;  %v13127_v18 = vpop.f32.mrb[197].mxu0  ;;  %v13245_v43 = vpop.f32.mrb[205].mxu1  ;;  %v12313_v50 = vcombine.low %v18295_v63, %v9057_v20  ;;  %v18323_v33 = vadd.f32 %v18180_v24, %v18121_v48  ;;  %v18330_v29 = vsel %vm14264_vm5, %v12291_v23, %v9060_v0  ;;  %v18334_v24 = vsel %vm14264_vm5, %v12292_v41, %v9064_v34 }
 0x554   :  { %v12295_v40 = vrot.slane %v18297_v54, 9  ;;  %v8909_v26 = vld [vmem:[#allocation3 + $0x10c] sm:$0x1]  ;;  %v13129_v55 = vpop.f32.mrb[198].mxu0  ;;  %v13247_v52 = vpop.f32.mrb[206].mxu1  ;;  %v9076_v27 = vrot.slane %v8903_v37, 5  ;;  %v18337_v20 = vadd.f32 %v13239_v58, %v18260_v30  ;;  %v18339_v46 = vadd.f32 %v13124_v35, %v13123_v45 }
 0x555   :  { %v12296_v59 = vrot.slane %v8904_v8, 9  ;;  %v9080_v51 = vrot.slane %v8905_v6, 5  ;;  %v13130_v36 = vpop.f32.mrb[199].mxu0  ;;  %v13248_v17 = vpop.f32.mrb[207].mxu1  ;;  %v18347_v4 = vsel %vm14264_vm5, %v12293_v44, %v9068_v47  ;;  %v18351_v37 = vsel %vm14264_vm5, %v12294_v21, %v9072_v57 }
 0x556   :  { %v12297_v23 = vrot.slane %v18314_v28, 9  ;;  %v9084_v45 = vrot.slane %v8907_v49, 5  ;;  %v12298_v35 = vrot.slane %v8908_v60, 9  ;;  %v9088_v8 = vrot.slane %v8909_v26, 5 }
 0x557   :  { %v18354_v6 = vadd.f32 %v13242_v62, %v13241_v38  ;;  %v12314_v41 = vcombine.low %v18330_v29, %v18334_v24  ;;  %v18360_v34 = vsel %vm14264_vm5, %v12295_v40, %v9076_v27  ;;  %v18364_v21 = vsel %vm14264_vm5, %v12296_v59, %v9080_v51 }
 0x558   :  { %v13250_v54 = vpop.f32.mrb[208].mxu1  ;;  %13581 = vmatmul.mubr.bf16.gmra.mrb[28].mxu0 %v12312_v1  ;;  %v18366_v28 = vadd.f32 %v13127_v18, %v13126_v53  ;;  %v18368_v38 = vadd.f32 %v13245_v43, %v13244_v42  ;;  %v18370_v62 = vadd.f32 %v13130_v36, %v13129_v55  ;;  %v18372_v47 = vadd.f32 %v13248_v17, %v13247_v52  ;;  %v19436_v43 = vld [vmem:[#allocation16_spill] sm:$0xff] }
 0x559   :  { %v13251_v30 = vpop.f32.mrb[209].mxu1  ;;  %13584 = vmatprep.mubr.bf16.mxu0 %v12313_v50  ;;  %v12315_v60 = vcombine.low %v18347_v4, %v18351_v37  ;;  %v18380_v51 = vadd.f32 %v18238_v39, %v18121_v48  ;;  %v18384_v59 = vadd.f32 %v18244_v61, %v18121_v48  ;;  %v18392_v1 = vsel %vm14264_vm5, %v12297_v23, %v9084_v45 }
 0x55a   :  { %v13132_v63 = vpop.f32.mrb[200].mxu0  ;;  %v13253_v15 = vpop.f32.mrb[210].mxu1  ;;  %v18386_v53 = vadd.f32 %v13251_v30, %v13250_v54  ;;  %v18396_v50 = vsel %vm14264_vm5, %v12298_v35, %v9088_v8  ;;  %v10117_v24 = vadd.f32 %v17796_v25, %v18133_v11  ;;  %v18420_v25 = vadd.f32 %v17843_v3, %v18148_v14  ;;  %v19411_v11 = vld [vmem:[#allocation23_spill] sm:$0xff]  ;;  %v19412_v8 = vld [vmem:[#allocation24_spill] sm:$0xff]  ;;  %v19433_v30 = vld [vmem:[#allocation14_spill] sm:$0xff] }
 0x55b   :  { %v13133_v58 = vpop.f32.mrb[201].mxu0  ;;  %v13254_v26 = vpop.f32.mrb[211].mxu1 }
 0x55c   :  { %v13135_v0 = vpop.f32.mrb[202].mxu0  ;;  %v18374_v57 = vadd.f32 %v13133_v58, %v13132_v63  ;;  %v18400_v52 = vadd.f32 %v13254_v26, %v13253_v15  ;;  %v10044_v63 = vadd.f32 %v18300_v13, %v18121_v48  ;;  %v10120_v58 = vadd.f32 %v17800_v19, %v18144_v9 }
 0x55d   :  { %v13136_v44 = vpop.f32.mrb[203].mxu0  ;;  %v18424_v13 = vadd.f32 %v19411_v11, %v18156_v31  ;;  %v10047_v19 = vadd.f32 %v18308_v7, %v18121_v48  ;;  %v19416_v7 = vld [vmem:[#allocation46_spill] sm:$0xff]  ;;  %v8911_v11 = vld [vmem:[#allocation3 + $0x114] sm:$0x1] }
 0x55e   :  { %v18398_v39 = vadd.f32 %v13136_v44, %v13135_v0  ;;  %v18428_v0 = vadd.f32 %v19412_v8, %v18160_v2  ;;  %v19415_v2 = vld [vmem:[#allocation31_spill] sm:$0xff]  ;;  %v8912_v8 = vld [vmem:[#allocation3 + $0x118] sm:$0xe] }
 0x560   :  { %v13384_v40 = vpop.f32.mrb[212].mxu1  ;;  %13585 = vmatmul.mubr.bf16.gmra.mrb[32].mxu0 %v12314_v41 }
 0x561   :  { %v13385_v18 = vpop.f32.mrb[213].mxu1  ;;  %13588 = vmatprep.mubr.bf16.mxu0 %v12315_v60  ;;  %v19427_v60 = vld [vmem:[#allocation49_spill] sm:$0xff] }
 0x562   :  { %v13138_v49 = vpop.f32.mrb[204].mxu0  ;;  %v13387_v61 = vpop.f32.mrb[214].mxu1  ;;  %v18404_v36 = vadd.f32 %v13385_v18, %v13384_v40  ;;  %v19414_v40 = vld [vmem:[#allocation25_spill] sm:$0xff]  ;;  %v18444_v18 = vadd.f32 %v19415_v2, %v18204_v16  ;;  %v8910_v16 = vld [vmem:[#allocation3 + $0x110] sm:$0xe] }
 0x563   :  { %v13139_v42 = vpop.f32.mrb[205].mxu0  ;;  %v13388_v29 = vpop.f32.mrb[215].mxu1 }
 0x564   :  { %v13141_v55 = vpop.f32.mrb[206].mxu0  ;;  %v18402_v27 = vadd.f32 %v13139_v42, %v13138_v49  ;;  %v18412_v4 = vadd.f32 %v13388_v29, %v13387_v61  ;;  %v19413_v49 = vld [vmem:[#allocation30_spill] sm:$0xff]  ;;  %v18440_v42 = vadd.f32 %v19414_v40, %v18200_v5  ;;  %v19419_v29 = vld [vmem:[#allocation32_spill] sm:$0xff]  ;;  %v19420_v5 = vld [vmem:[#allocation47_spill] sm:$0xff] }
 0x565   :  { %v13142_v17 = vpop.f32.mrb[207].mxu0  ;;  %v18436_v3 = vadd.f32 %v19413_v49, %v18184_v56  ;;  %v19422_v49 = vld [vmem:[#allocation40_spill] sm:$0xff]  ;;  %v19423_v40 = vld [vmem:[#allocation33_spill] sm:$0xff] }
 0x566   :  { %v18410_v54 = vadd.f32 %v13142_v17, %v13141_v55  ;;  %19410 = vst [vmem:[#allocation20_spill] sm:$0xff] %v18412_v4  ;;  %v19417_v55 = vld [vmem:[#allocation26_spill] sm:$0xff]  ;;  %v18464_v2 = vadd.f32 %v19423_v40, %v19422_v49  ;;  %v19434_v49 = vld [vmem:[#allocation43_spill] sm:$0xff] }
 0x567   :  { %v18448_v61 = vadd.f32 %v19417_v55, %v19416_v7  ;;  %v19418_v17 = vld [vmem:[#allocation38_spill] sm:$0xff]  ;;  %v19424_v7 = vld [vmem:[#allocation41_spill] sm:$0xff]  ;;  %v19425_v55 = vld [vmem:[#allocation28_spill] sm:$0xff]  ;;  %v18482_v40 = vadd.f32 %v19434_v49, %v19433_v30 }
 0x568   :  { %v13390_v23 = vpop.f32.mrb[216].mxu1  ;;  %v19446_v30 = vld [vmem:[#allocation37_spill] sm:$0xff] }
 0x569   :  { %v13391_v35 = vpop.f32.mrb[217].mxu1  ;;  %19435 = vst [vmem:[#allocation23_spill] sm:$0xff] %v18482_v40  ;;  %v18502_v49 = vadd.f32 %v19446_v30, %v18380_v51 }
 0x56a   :  { %v13272_v37 = vpop.f32.mrb[208].mxu0  ;;  %v18432_v44 = vadd.f32 %v13391_v35, %v13390_v23  ;;  %v13393_v26 = vpop.f32.mrb[218].mxu1 }
 0x56b   :  { %v13273_v45 = vpop.f32.mrb[209].mxu0  ;;  %v13394_v31 = vpop.f32.mrb[219].mxu1  ;;  %19447 = vst [vmem:[#allocation46_spill] sm:$0xff] %v18502_v49 }
 0x56c   :  { %v13274_v9 = vadd.f32 %v13273_v45, %v13272_v37  ;;  %v13275_v15 = vpop.f32.mrb[210].mxu0  ;;  %v18452_v37 = vadd.f32 %v19419_v29, %v19418_v17  ;;  %v18456_v23 = vadd.f32 %v13394_v31, %v13393_v26  ;;  %v19421_v45 = vld [vmem:[#allocation27_spill] sm:$0xff]  ;;  %v18468_v17 = vadd.f32 %v19425_v55, %v19424_v7  ;;  %v19431_v26 = vld [vmem:[#allocation29_spill] sm:$0xff]  ;;  %v8913_v31 = vld [vmem:[#allocation3 + $0x11c] sm:$0x1] }
 0x56d   :  { %v13276_v14 = vpop.f32.mrb[211].mxu0  ;;  %v18460_v35 = vadd.f32 %v19421_v45, %v19420_v5  ;;  %v8914_v29 = vld [vmem:[#allocation3 + $0x120] sm:$0xe]  ;;  %v8915_v5 = vld [vmem:[#allocation3 + $0x124] sm:$0x1]  ;;  %v19437_v7 = vld [vmem:[#allocation35_spill] sm:$0xff] }
 0x56e   :  { %v18454_v56 = vadd.f32 %v13274_v9, %v10117_v24  ;;  %v13277_v41 = vadd.f32 %v13276_v14, %v13275_v15  ;;  %19426 = vst [vmem:[#allocation19_spill] sm:$0xff] %v18468_v17  ;;  %v19428_v24 = vld [vmem:[#allocation34_spill] sm:$0xff]  ;;  %v18486_v55 = vadd.f32 %v19437_v7, %v19436_v43  ;;  %v19439_v17 = vld [vmem:[#allocation17_spill] sm:$0xff]  ;;  %v19448_v43 = vld [vmem:[#allocation39_spill] sm:$0xff] }
 0x56f   :  { %v18472_v9 = vadd.f32 %v19428_v24, %v19427_v60  ;;  %v19430_v15 = vld [vmem:[#allocation42_spill] sm:$0xff]  ;;  %v19440_v60 = vld [vmem:[#allocation44_spill] sm:$0xff]  ;;  %v18506_v7 = vadd.f32 %v19448_v43, %v18384_v59  ;;  %v12301_v59 = vrot.slane %v8914_v29, 9  ;;  %v9100_v43 = vrot.slane %v8915_v5, 5 }
 0x570   :  { %v18476_v14 = vadd.f32 %v19431_v26, %v19430_v15  ;;  %v18478_v45 = vadd.f32 %v13277_v41, %v10120_v58  ;;  %19438 = vst [vmem:[#allocation24_spill] sm:$0xff] %v18486_v55  ;;  %v18490_v24 = vadd.f32 %v19440_v60, %v19439_v17  ;;  %v8917_v15 = vld [vmem:[#allocation3 + $0x12c] sm:$0x1]  ;;  %v13396_v26 = vpop.f32.mrb[220].mxu1  ;;  %v19444_v58 = vld [vmem:[#allocation45_spill] sm:$0xff]  ;;  %v12299_v17 = vrot.slane %v8910_v16, 9 }
 0x571   :  { %19429 = vst [vmem:[#allocation22_spill] sm:$0xff] %v18472_v9  ;;  %v8916_v9 = vld [vmem:[#allocation3 + $0x128] sm:$0xe]  ;;  %v18498_v41 = vadd.f32 %v19444_v58, %v18343_v10  ;;  %19449 = vst [vmem:[#allocation26_spill] sm:$0xff] %v18506_v7  ;;  %v10052_v60 = vadd.f32 %v18326_v22, %v18121_v48  ;;  %v19450_v55 = vld [vmem:[#allocation48_spill] sm:$0xff]  ;;  %v9092_v10 = vrot.slane %v8911_v11, 5  ;;  %v19453_v11 = vcombine.low %v18392_v1, %v18396_v50 }
 0x572   :  { %19432 = vst [vmem:[#allocation15_spill] sm:$0xff] %v18476_v14  ;;  %19441 = vst [vmem:[#allocation30_spill] sm:$0xff] %v18490_v24  ;;  %v19442_v14 = vld [vmem:[#allocation36_spill] sm:$0xff]  ;;  %v13397_v24 = vpop.f32.mrb[221].mxu1  ;;  %v12300_v58 = vrot.slane %v8912_v8, 9  ;;  %v13278_v51 = vpop.f32.mrb[212].mxu0  ;;  %v10055_v8 = vadd.f32 %v18339_v46, %v18121_v48  ;;  %v9101_v1 = vsel %vm14264_vm5, %v12301_v59, %v9100_v43 }
 0x573   :  { %v18494_v4 = vadd.f32 %v19442_v14, %v18323_v33  ;;  %19445 = vst [vmem:[#allocation31_spill] sm:$0xff] %v18498_v41  ;;  %v18511_v33 = vadd.f32 %v19450_v55, %v10044_v63  ;;  %v19451_v14 = vld [vmem:[#allocation21_spill] sm:$0xff]  ;;  %v9096_v41 = vrot.slane %v8913_v31, 5  ;;  %v18516_v30 = vadd.f32 %v13397_v24, %v13396_v26  ;;  %v13399_v49 = vpop.f32.mrb[222].mxu1  ;;  %v13279_v40 = vpop.f32.mrb[213].mxu0 }
 0x574   :  { %v12302_v16 = vrot.slane %v8916_v9, 9  ;;  %v9104_v7 = vrot.slane %v8917_v15, 5  ;;  %v13400_v22 = vpop.f32.mrb[223].mxu1  ;;  %v19452_v63 = vcombine.low %v18360_v34, %v18364_v21  ;;  %v13280_v55 = vadd.f32 %v13279_v40, %v13278_v51  ;;  %v19454_v9 = vld [vmem:[#allocation18_spill] sm:$0xff]  ;;  %v8918_v50 = vld [vmem:[#allocation3 + $0x130] sm:$0xe] }
 0x575   :  { %19443 = vst [vmem:[#allocation25_spill] sm:$0xff] %v18494_v4  ;;  %v18514_v4 = vadd.f32 %v19451_v14, %v10047_v19  ;;  %v13281_v19 = vpop.f32.mrb[214].mxu0  ;;  %v18521_v14 = vadd.f32 %v13400_v22, %v13399_v49  ;;  %v18529_v29 = vadd.f32 %v19454_v9, %v10052_v60  ;;  %v9093_v21 = vsel %vm14264_vm5, %v12299_v17, %v9092_v10  ;;  %v8919_v24 = vld [vmem:[#allocation3 + $0x134] sm:$0x1]  ;;  %v8920_v15 = vld [vmem:[#allocation3 + $0x138] sm:$0xe] }
 0x576   :  { %13589 = vmatmul.mubr.bf16.gmra.mrb[36].mxu0 %v19452_v63  ;;  %v13282_v31 = vpop.f32.mrb[215].mxu0  ;;  %v18532_v5 = vadd.f32 %v13280_v55, %v18420_v25  ;;  %v9097_v40 = vsel %vm14264_vm5, %v12300_v58, %v9096_v41  ;;  %v9105_v46 = vsel %vm14264_vm5, %v12302_v16, %v9104_v7  ;;  %v8921_v26 = vld [vmem:[#allocation3 + $0x13c] sm:$0x1]  ;;  %v18546_v49 = vadd.f32 %v18318_v12, %v10055_v8 }
 0x577   :  { %13592 = vmatprep.mubr.bf16.mxu0 %v19453_v11  ;;  %v13283_v34 = vadd.f32 %v13282_v31, %v13281_v19  ;;  %v12318_v17 = vcombine.low %v9093_v21, %v9097_v40  ;;  %v12319_v60 = vcombine.low %v9101_v1, %v9105_v46  ;;  %v12303_v10 = vrot.slane %v8918_v50, 9 }
 0x578   :  { %v9108_v41 = vrot.slane %v8919_v24, 5  ;;  %v12304_v58 = vrot.slane %v8920_v15, 9  ;;  %v9112_v51 = vrot.slane %v8921_v26, 5  ;;  %v10060_v7 = vadd.f32 %v18366_v28, %v18121_v48 }
 0x579   :  { %v18543_v25 = vadd.f32 %v13283_v34, %v18424_v13  ;;  %v10063_v55 = vadd.f32 %v18370_v62, %v18121_v48  ;;  %v13402_v11 = vpop.f32.mrb[224].mxu1 }
 0x57a   :  { %v13284_v59 = vpop.f32.mrb[216].mxu0  ;;  %v9109_v13 = vsel %vm14264_vm5, %v12303_v10, %v9108_v41  ;;  %v9113_v12 = vsel %vm14264_vm5, %v12304_v58, %v9112_v51  ;;  %v18560_v28 = vadd.f32 %v18337_v20, %v10060_v7  ;;  %v13403_v9 = vpop.f32.mrb[225].mxu1  ;;  %v10068_v20 = vadd.f32 %v18374_v57, %v18121_v48 }
 0x57b   :  { %v13285_v43 = vpop.f32.mrb[217].mxu0  ;;  %v12320_v31 = vcombine.low %v9109_v13, %v9113_v12  ;;  %v18562_v34 = vadd.f32 %v13403_v9, %v13402_v11  ;;  %v13405_v21 = vpop.f32.mrb[226].mxu1  ;;  %v18570_v62 = vadd.f32 %v18354_v6, %v10063_v55  ;;  %v10071_v41 = vadd.f32 %v18398_v39, %v18121_v48 }
 0x57c   :  { %v13286_v16 = vadd.f32 %v13285_v43, %v13284_v59  ;;  %v13287_v22 = vpop.f32.mrb[218].mxu0  ;;  %v13406_v40 = vpop.f32.mrb[227].mxu1  ;;  %v18581_v58 = vadd.f32 %v18368_v38, %v10068_v20  ;;  %v10076_v43 = vadd.f32 %v18402_v27, %v18121_v48  ;;  %v10079_v38 = vadd.f32 %v18410_v54, %v18121_v48 }
 0x57d   :  { %v13288_v63 = vpop.f32.mrb[219].mxu0  ;;  %v18567_v1 = vadd.f32 %v13406_v40, %v13405_v21  ;;  %v18586_v59 = vadd.f32 %v18372_v47, %v10071_v41  ;;  %v18602_v40 = vadd.f32 %v18432_v44, %v18532_v5  ;;  %v18611_v44 = vadd.f32 %v18404_v36, %v18454_v56  ;;  %v19455_v41 = vld [vmem:[#allocation20_spill] sm:$0xff]  ;;  %v19456_v36 = vld [vmem:[#allocation19_spill] sm:$0xff] }
 0x57e   :  { %13593 = vmatmul.mubr.bf16.gmra.mrb[40].mxu0 %v12318_v17  ;;  %v18557_v19 = vadd.f32 %v13286_v16, %v18428_v0  ;;  %v13289_v8 = vadd.f32 %v13288_v63, %v13287_v22  ;;  %v18593_v11 = vadd.f32 %v18386_v53, %v10076_v43  ;;  %v18597_v9 = vadd.f32 %v18400_v52, %v10079_v38 }
 0x57f   :  { %13596 = vmatprep.mubr.bf16.mxu0 %v12319_v60 }
 0x580   :  { %v18565_v32 = vadd.f32 %v13289_v8, %v18436_v3 }
 0x581   :  { %v13408_v0 = vpop.f32.mrb[228].mxu1 }
 0x582   :  { %v13409_v46 = vpop.f32.mrb[229].mxu1  ;;  %v13290_v50 = vpop.f32.mrb[220].mxu0 }
 0x583   :  { %v18574_v24 = vadd.f32 %v13409_v46, %v13408_v0  ;;  %v13411_v15 = vpop.f32.mrb[230].mxu1  ;;  %v13291_v26 = vpop.f32.mrb[221].mxu0 }
 0x584   :  { %v13412_v3 = vpop.f32.mrb[231].mxu1  ;;  %v13292_v17 = vadd.f32 %v13291_v26, %v13290_v50  ;;  %v13293_v60 = vpop.f32.mrb[222].mxu0 }
 0x585   :  { %v18576_v10 = vadd.f32 %v13412_v3, %v13411_v15  ;;  %v13294_v6 = vpop.f32.mrb[223].mxu0 }
 0x586   :  { %13597 = vmatmul.mubr.bf16.gmra.mrb[44].mxu0 %v12320_v31  ;;  %v10302_v57 = vadd.f32 %v13292_v17, %v18440_v42  ;;  %v13295_v51 = vadd.f32 %v13294_v6, %v13293_v60  ;;  %v18616_v17 = vadd.f32 %v18456_v23, %v18543_v25  ;;  %v18620_v6 = vadd.f32 %v19455_v41, %v18478_v45  ;;  %v19457_v23 = vld [vmem:[#allocation22_spill] sm:$0xff] }
 0x587   :  { %v18629_v45 = vadd.f32 %v18516_v30, %v18557_v19 }
 0x588   :  { %v10305_v7 = vadd.f32 %v13295_v51, %v18444_v18  ;;  %v18623_v43 = vadd.f32 %v18562_v34, %v10302_v57  ;;  %v18636_v57 = vadd.f32 %v18521_v14, %v18565_v32  ;;  %v19459_v14 = vld [vmem:[#allocation23_spill] sm:$0xff] }
 0x58a   :  { %v13414_v13 = vpop.f32.mrb[232].mxu1  ;;  %v18632_v34 = vadd.f32 %v18567_v1, %v10305_v7 }
 0x58b   :  { %v13415_v12 = vpop.f32.mrb[233].mxu1 }
 0x58c   :  { %v13416_v16 = vadd.f32 %v13415_v12, %v13414_v13  ;;  %v13417_v22 = vpop.f32.mrb[234].mxu1 }
 0x58d   :  { %v13296_v39 = vpop.f32.mrb[224].mxu0  ;;  %v13418_v63 = vpop.f32.mrb[235].mxu1 }
 0x58e   :  { %v13297_v55 = vpop.f32.mrb[225].mxu0  ;;  %v13419_v42 = vadd.f32 %v13418_v63, %v13417_v22 }
 0x58f   :  { %v13298_v18 = vadd.f32 %v13297_v55, %v13296_v39  ;;  %v13299_v47 = vpop.f32.mrb[226].mxu0 }
 0x590   :  { %v13300_v8 = vpop.f32.mrb[227].mxu0 }
 0x591   :  { %v10310_v31 = vadd.f32 %v13298_v18, %v18448_v61  ;;  %v13301_v27 = vadd.f32 %v13300_v8, %v13299_v47 }
 0x593   :  { %v10313_v21 = vadd.f32 %v13301_v27, %v18452_v37 }
 0x596   :  { %v13420_v48 = vpop.f32.mrb[236].mxu1 }
 0x597   :  { %v13421_v54 = vpop.f32.mrb[237].mxu1 }
 0x598   :  { %v18604_v0 = vadd.f32 %v13421_v54, %v13420_v48  ;;  %v13423_v53 = vpop.f32.mrb[238].mxu1  ;;  %v13302_v20 = vpop.f32.mrb[228].mxu0 }
 0x599   :  { %v13424_v46 = vpop.f32.mrb[239].mxu1  ;;  %v13303_v50 = vpop.f32.mrb[229].mxu0 }
 0x59a   :  { %v18606_v15 = vadd.f32 %v13424_v46, %v13423_v53  ;;  %v13304_v61 = vadd.f32 %v13303_v50, %v13302_v20  ;;  %v13305_v26 = vpop.f32.mrb[230].mxu0 }
 0x59b   :  { %v13306_v52 = vpop.f32.mrb[231].mxu0 }
 0x59c   :  { %v10318_v3 = vadd.f32 %v13304_v61, %v18460_v35  ;;  %v13307_v37 = vadd.f32 %v13306_v52, %v13305_v26  ;;  %v19458_v26 = vld [vmem:[#allocation15_spill] sm:$0xff]  ;;  %v18642_v52 = vadd.f32 %v18574_v24, %v10310_v31  ;;  %v19461_v31 = vld [vmem:[#allocation24_spill] sm:$0xff] }
 0x59e   :  { %v10321_v5 = vadd.f32 %v13307_v37, %v18464_v2  ;;  %v18638_v53 = vadd.f32 %v13416_v16, %v10318_v3 }
 0x5a2   :  { %v13308_v60 = vpop.f32.mrb[232].mxu0 }
 0x5a3   :  { %v13309_v51 = vpop.f32.mrb[233].mxu0 }
 0x5a4   :  { %v13310_v35 = vadd.f32 %v13309_v51, %v13308_v60  ;;  %v13311_v13 = vpop.f32.mrb[234].mxu0  ;;  %v18645_v60 = vadd.f32 %v13419_v42, %v10321_v5  ;;  %v18648_v51 = vadd.f32 %v18576_v10, %v10313_v21  ;;  %v19462_v42 = vld [vmem:[#allocation30_spill] sm:$0xff] }
 0x5a5   :  { %v13312_v12 = vpop.f32.mrb[235].mxu0 }
 0x5a6   :  { %v10326_v56 = vadd.f32 %v13310_v35, %v19456_v36  ;;  %v13426_v22 = vpop.f32.mrb[240].mxu1  ;;  %v13313_v2 = vadd.f32 %v13312_v12, %v13311_v13 }
 0x5a7   :  { %v13427_v39 = vpop.f32.mrb[241].mxu1 }
 0x5a8   :  { %v13428_v63 = vadd.f32 %v13427_v39, %v13426_v22  ;;  %v10329_v25 = vadd.f32 %v13313_v2, %v19457_v23  ;;  %v13429_v38 = vpop.f32.mrb[242].mxu1 }
 0x5a9   :  { %v13430_v55 = vpop.f32.mrb[243].mxu1 }
 0x5aa   :  { %v13431_v18 = vadd.f32 %v13430_v55, %v13429_v38  ;;  %v18655_v55 = vadd.f32 %v18604_v0, %v10326_v56  ;;  %v19467_v56 = vld [vmem:[#allocation31_spill] sm:$0xff] }
 0x5ac   :  { %19463 = vst [vmem:[#allocation32_spill] sm:$0xff] %v18655_v55  ;;  %v12421_v55 = vld [vmem:[%s19170_s0 + $0x84] sm:$0x1] }
 0x5ae   :  { %v13432_v47 = vpop.f32.mrb[244].mxu1 }
 0x5af   :  { %v13433_v8 = vpop.f32.mrb[245].mxu1 }
 0x5b0   :  { %v13314_v27 = vpop.f32.mrb[236].mxu0  ;;  %v13434_v48 = vadd.f32 %v13433_v8, %v13432_v47  ;;  %v13435_v54 = vpop.f32.mrb[246].mxu1 }
 0x5b1   :  { %v13315_v20 = vpop.f32.mrb[237].mxu0  ;;  %v13436_v46 = vpop.f32.mrb[247].mxu1 }
 0x5b2   :  { %v13316_v50 = vadd.f32 %v13315_v20, %v13314_v27  ;;  %v13317_v30 = vpop.f32.mrb[238].mxu0  ;;  %v13437_v19 = vadd.f32 %v13436_v46, %v13435_v54 }
 0x5b3   :  { %v13318_v61 = vpop.f32.mrb[239].mxu0 }
 0x5b4   :  { %v10334_v1 = vadd.f32 %v13316_v50, %v19458_v26  ;;  %v13319_v7 = vadd.f32 %v13318_v61, %v13317_v30  ;;  %v18660_v50 = vadd.f32 %v18606_v15, %v10329_v25  ;;  %v12398_v15 = vld [vmem:[%s19170_s0 + $0x18] sm:$0xf] }
 0x5b6   :  { %v10337_v32 = vadd.f32 %v13319_v7, %v19459_v14  ;;  %v18650_v39 = vadd.f32 %v13428_v63, %v10334_v1  ;;  %19465 = vst [vmem:[#allocation27_spill] sm:$0xff] %v18660_v50  ;;  %v19466_v1 = vld [vmem:[#allocation25_spill] sm:$0xff] }
 0x5b8   :  { %v13438_v37 = vpop.f32.mrb[248].mxu1  ;;  %19460 = vst [vmem:[#allocation38_spill] sm:$0xff] %v18650_v39  ;;  %v18657_v10 = vadd.f32 %v13431_v18, %v10337_v32 }
 0x5b9   :  { %v13439_v41 = vpop.f32.mrb[249].mxu1 }
 0x5ba   :  { %v13440_v16 = vadd.f32 %v13439_v41, %v13438_v37  ;;  %v13441_v3 = vpop.f32.mrb[250].mxu1  ;;  %19464 = vst [vmem:[#allocation47_spill] sm:$0xff] %v18657_v10 }
 0x5bb   :  { %v13320_v35 = vpop.f32.mrb[240].mxu0  ;;  %v13442_v13 = vpop.f32.mrb[251].mxu1 }
 0x5bc   :  { %v13321_v12 = vpop.f32.mrb[241].mxu0  ;;  %v13443_v36 = vadd.f32 %v13442_v13, %v13441_v3 }
 0x5bd   :  { %v13322_v22 = vadd.f32 %v13321_v12, %v13320_v35  ;;  %v13323_v2 = vpop.f32.mrb[242].mxu0 }
 0x5be   :  { %v13324_v24 = vpop.f32.mrb[243].mxu0 }
 0x5bf   :  { %v10342_v23 = vadd.f32 %v13322_v22, %v19461_v31  ;;  %v13325_v38 = vadd.f32 %v13324_v24, %v13323_v2  ;;  %v19472_v2 = vld [vmem:[#allocation46_spill] sm:$0xff] }
 0x5c1   :  { %v10345_v5 = vadd.f32 %v13325_v38, %v19462_v42  ;;  %v18666_v32 = vadd.f32 %v13434_v48, %v10342_v23  ;;  %v10822_v38 = vshll.u32 %v12398_v15, 16  ;;  %v19473_v42 = vld [vmem:[#allocation26_spill] sm:$0xff] }
 0x5c3   :  { %v13444_v47 = vpop.f32.mrb[252].mxu1  ;;  %19469 = vst [vmem:[#allocation33_spill] sm:$0xff] %v18666_v32  ;;  %v18673_v22 = vadd.f32 %v13437_v19, %v10345_v5  ;;  %v12400_v19 = vld [vmem:[%s19170_s0 + $0x20] sm:$0xf] }
 0x5c4   :  { %v13445_v21 = vpop.f32.mrb[253].mxu1 }
 0x5c5   :  { %v13446_v8 = vadd.f32 %v13445_v21, %v13444_v47  ;;  %v13447_v27 = vpop.f32.mrb[254].mxu1  ;;  %19471 = vst [vmem:[#allocation28_spill] sm:$0xff] %v18673_v22 }
 0x5c6   :  { %v13326_v54 = vpop.f32.mrb[244].mxu0  ;;  %v13448_v20 = vpop.f32.mrb[255].mxu1 }
 0x5c7   :  { %v13327_v46 = vpop.f32.mrb[245].mxu0  ;;  %v13449_v63 = vadd.f32 %v13448_v20, %v13447_v27  ;;  %v10824_v20 = vrot.slane %v10822_v38, 5 }
 0x5c8   :  { %v13328_v30 = vadd.f32 %v13327_v46, %v13326_v54  ;;  %v13329_v61 = vpop.f32.mrb[246].mxu0  ;;  %v12394_v54 = vld [vmem:[%s19170_s0 + $0x8] sm:$0xf] }
 0x5c9   :  { %v13330_v26 = vpop.f32.mrb[247].mxu0 }
 0x5ca   :  { %v10350_v7 = vadd.f32 %v13328_v30, %v19466_v1  ;;  %v13331_v0 = vadd.f32 %v13330_v26, %v13329_v61  ;;  %v12399_v30 = vld [vmem:[%s19170_s0 + $0x1c] sm:$0x1]  ;;  %v10791_v61 = vshrl.u32 %v12394_v54, 16  ;;  %v10794_v26 = vshll.u32 %v12394_v54, 16 }
 0x5cb   :  { %v10833_v1 = vshrl.u32 %v12400_v19, 16 }
 0x5cc   :  { %v10353_v14 = vadd.f32 %v13331_v0, %v19467_v56  ;;  %v18664_v18 = vadd.f32 %v13440_v16, %v10350_v7  ;;  %v10836_v0 = vshll.u32 %v12400_v19, 16 }
 0x5ce   :  { %19468 = vst [vmem:[#allocation40_spill] sm:$0xff] %v18664_v18  ;;  %v18668_v37 = vadd.f32 %v13443_v36, %v10353_v14  ;;  %v10819_v36 = vshrl.u32 %v12398_v15, 16  ;;  %v12396_v14 = vld [vmem:[%s19170_s0 + $0x10] sm:$0xf] }
 0x5cf   :  { %v10805_v38 = vshrl.u32 %v12396_v14, 16  ;;  %v10808_v19 = vshll.u32 %v12396_v14, 16 }
 0x5d0   :  { %19470 = vst [vmem:[#allocation41_spill] sm:$0xff] %v18668_v37  ;;  %v10821_v5 = vrot.slane %v10819_v36, 4  ;;  %v10838_v36 = vrot.slane %v10836_v0, 5 }
 0x5d1   :  { %v13332_v41 = vpop.f32.mrb[248].mxu0 }
 0x5d2   :  { %v13333_v3 = vpop.f32.mrb[249].mxu0 }
 0x5d3   :  { %v13334_v35 = vadd.f32 %v13333_v3, %v13332_v41  ;;  %v13335_v13 = vpop.f32.mrb[250].mxu0 }
 0x5d4   :  { %v13450_v25 = vpop.f32.mrb[0].mxu1  ;;  %v13336_v12 = vpop.f32.mrb[251].mxu0 }
 0x5d5   :  { %v10358_v24 = vadd.f32 %v13334_v35, %v19472_v2  ;;  %v13451_v16 = vpop.f32.mrb[1].mxu1  ;;  %v13337_v31 = vadd.f32 %v13336_v12, %v13335_v13  ;;  %v10825_v35 = vor.u32 %v10824_v20, %v10821_v5  ;;  %v12395_v13 = vld [vmem:[%s19170_s0 + $0xc] sm:$0x1]  ;;  %v10793_v12 = vrot.slane %v10791_v61, 4  ;;  %v12406_v5 = vld [vmem:[%s19170_s0 + $0x38] sm:$0xf] }
 0x5d6   :  { %v13452_v48 = vadd.f32 %v13451_v16, %v13450_v25  ;;  %v13453_v23 = vpop.f32.mrb[2].mxu1  ;;  %v10796_v2 = vrot.slane %v10794_v26, 5  ;;  %v10875_v14 = vshrl.u32 %v12406_v5, 16 }
 0x5d7   :  { %v10361_v47 = vadd.f32 %v13337_v31, %v19473_v42  ;;  %v13454_v21 = vpop.f32.mrb[3].mxu1  ;;  %v18683_v46 = vadd.f32 %v13446_v8, %v10358_v24  ;;  %v10828_v8 = vshll.u32 %v12399_v30, 16  ;;  %v10835_v24 = vrot.slane %v10833_v1, 4 }
 0x5d8   :  { %v13455_v27 = vadd.f32 %v13454_v21, %v13453_v23  ;;  %v12401_v23 = vld [vmem:[%s19170_s0 + $0x24] sm:$0x1]  ;;  %v10826_v30 = vrot.slane %v10825_v35, 4 }
 0x5d9   :  { %19474 = vst [vmem:[#allocation49_spill] sm:$0xff] %v18683_v46  ;;  %v18701_v42 = vadd.f32 %v13449_v63, %v10361_v47  ;;  %v10830_v61 = vrot.slane %v10828_v8, 5  ;;  %v12397_v63 = vld [vmem:[%s19170_s0 + $0x14] sm:$0x1]  ;;  %v10797_v47 = vor.u32 %v10796_v2, %v10793_v12  ;;  %v10839_v0 = vor.u32 %v10838_v36, %v10835_v24 }
 0x5da   :  { %v10814_v35 = vshll.u32 %v12397_v63, 16 }
 0x5db   :  { %19475 = vst [vmem:[#allocation34_spill] sm:$0xff] %v18701_v42  ;;  %v10831_v2 = vsel %vm14103_vm2, %v10826_v30, %v10830_v61  ;;  %v10798_v24 = vrot.slane %v10797_v47, 4 }
 0x5dc   :  { %v13456_v7 = vpop.f32.mrb[4].mxu1  ;;  %v18731_v61 = vrot.slane %v10814_v35, 5 }
 0x5dd   :  { %v13457_v56 = vpop.f32.mrb[5].mxu1 }
 0x5de   :  { %v18691_v41 = vadd.f32 %v13457_v56, %v13456_v7  ;;  %v13459_v3 = vpop.f32.mrb[6].mxu1  ;;  %v13338_v15 = vpop.f32.mrb[252].mxu0  ;;  %v10800_v7 = vshll.u32 %v12395_v13, 16  ;;  %v10842_v56 = vshll.u32 %v12401_v23, 16  ;;  %v12402_v13 = vld [vmem:[%s19170_s0 + $0x28] sm:$0xf] }
 0x5df   :  { %v13460_v25 = vpop.f32.mrb[7].mxu1  ;;  %v13339_v16 = vpop.f32.mrb[253].mxu0  ;;  %v10850_v63 = vshll.u32 %v12402_v13, 16 }
 0x5e0   :  { %v18696_v31 = vadd.f32 %v13460_v25, %v13459_v3  ;;  %v13340_v21 = vadd.f32 %v13339_v16, %v13338_v15  ;;  %v13341_v54 = vpop.f32.mrb[254].mxu0  ;;  %v10807_v3 = vrot.slane %v10805_v38, 4  ;;  %v10810_v25 = vrot.slane %v10808_v19, 5 }
 0x5e1   :  { %v13342_v20 = vpop.f32.mrb[255].mxu0  ;;  %v10878_v16 = vshll.u32 %v12406_v5, 16  ;;  %v10802_v8 = vrot.slane %v10800_v7, 5  ;;  %v10840_v38 = vrot.slane %v10839_v0, 4  ;;  %v10877_v19 = vrot.slane %v10875_v14, 4 }
 0x5e2   :  { %v10366_v26 = vadd.f32 %v13340_v21, %v18511_v33  ;;  %v13343_v1 = vadd.f32 %v13342_v20, %v13341_v54  ;;  %v10844_v33 = vrot.slane %v10842_v56, 5  ;;  %v10811_v54 = vor.u32 %v10810_v25, %v10807_v3  ;;  %v12414_v3 = vld [vmem:[%s19170_s0 + $0x68] sm:$0xf] }
 0x5e3   :  { %v10880_v5 = vrot.slane %v10878_v16, 5  ;;  %v18736_v56 = vunpack.c.l.bf16 %v10831_v2  ;;  %v10803_v25 = vsel %vm14103_vm2, %v10798_v24, %v10802_v8  ;;  %v10931_v22 = vshrl.u32 %v12414_v3, 16 }
 0x5e4   :  { %v10369_v15 = vadd.f32 %v13343_v1, %v18514_v4  ;;  %v18711_v42 = vadd.f32 %v13452_v48, %v10366_v26  ;;  %v12407_v4 = vld [vmem:[%s19170_s0 + $0x3c] sm:$0x1]  ;;  %v12408_v48 = vld [vmem:[%s19170_s0 + $0x40] sm:$0xf]  ;;  %v12403_v26 = vld [vmem:[%s19170_s0 + $0x2c] sm:$0x1]  ;;  %v10845_v2 = vsel %vm14103_vm2, %v10840_v38, %v10844_v33 }
 0x5e5   :  { %v10847_v1 = vshrl.u32 %v12402_v13, 16  ;;  %v10889_v47 = vshrl.u32 %v12408_v48, 16  ;;  %v10892_v0 = vshll.u32 %v12408_v48, 16  ;;  %v10881_v13 = vor.u32 %v10880_v5, %v10877_v19  ;;  %v12409_v33 = vld [vmem:[%s19170_s0 + $0x44] sm:$0x1] }
 0x5e6   :  { %19476 = vst [vmem:[#allocation42_spill] sm:$0xff] %v18711_v42  ;;  %v18716_v23 = vadd.f32 %v13455_v27, %v10369_v15  ;;  %v12404_v27 = vld [vmem:[%s19170_s0 + $0x30] sm:$0xf]  ;;  %v10884_v48 = vshll.u32 %v12407_v4, 16  ;;  %v10856_v42 = vshll.u32 %v12403_v26, 16  ;;  %v10934_v37 = vshll.u32 %v12414_v3, 16 }
 0x5e7   :  { %v13462_v21 = vpop.f32.mrb[8].mxu1  ;;  %v10861_v16 = vshrl.u32 %v12404_v27, 16  ;;  %v10864_v35 = vshll.u32 %v12404_v27, 16  ;;  %v10852_v32 = vrot.slane %v10850_v63, 5  ;;  %v10891_v18 = vrot.slane %v10889_v47, 4 }
 0x5e8   :  { %19477 = vst [vmem:[#allocation29_spill] sm:$0xff] %v18716_v23  ;;  %v13463_v36 = vpop.f32.mrb[9].mxu1  ;;  %v10894_v8 = vrot.slane %v10892_v0, 5  ;;  %v18753_v4 = vunpack.c.l.bf16 %v10803_v25  ;;  %v18755_v19 = vunpack.c.l.bf16 %v10845_v2  ;;  %v10882_v5 = vrot.slane %v10881_v13, 4  ;;  %v12416_v47 = vld [vmem:[%s19170_s0 + $0x70] sm:$0xf] }
 0x5e9   :  { %v18729_v20 = vadd.f32 %v13463_v36, %v13462_v21  ;;  %v13465_v30 = vpop.f32.mrb[10].mxu1  ;;  %v18747_v36 = vrot.slane %v10811_v54, 4  ;;  %v10863_v38 = vrot.slane %v10861_v16, 4  ;;  %v10866_v54 = vrot.slane %v10864_v35, 5 }
 0x5ea   :  { %v13466_v7 = vpop.f32.mrb[11].mxu1  ;;  %v10886_v26 = vrot.slane %v10884_v48, 5  ;;  %v10895_v16 = vor.u32 %v10894_v8, %v10891_v18  ;;  %v10948_v13 = vshll.u32 %v12416_v47, 16 }
 0x5eb   :  { %v13344_v14 = vpop.f32.mrb[0].mxu0  ;;  %v18741_v15 = vadd.f32 %v13466_v7, %v13465_v30  ;;  %v10849_v7 = vrot.slane %v10847_v1, 4  ;;  %v12405_v1 = vld [vmem:[%s19170_s0 + $0x34] sm:$0x1]  ;;  %v10817_v3 = vsel %vm14103_vm2, %v18747_v36, %v18731_v61  ;;  %v10867_v35 = vor.u32 %v10866_v54, %v10863_v38 }
 0x5ec   :  { %v13345_v21 = vpop.f32.mrb[1].mxu0  ;;  %v10945_v36 = vshrl.u32 %v12416_v47, 16  ;;  %v10887_v18 = vsel %vm14103_vm2, %v10882_v5, %v10886_v26  ;;  %v12417_v5 = vld [vmem:[%s19170_s0 + $0x74] sm:$0x1] }
 0x5ed   :  { %v13346_v23 = vadd.f32 %v13345_v21, %v13344_v14  ;;  %v13347_v46 = vpop.f32.mrb[2].mxu0  ;;  %v10853_v14 = vor.u32 %v10852_v32, %v10849_v7  ;;  %v10870_v21 = vshll.u32 %v12405_v1, 16  ;;  %v10868_v47 = vrot.slane %v10867_v35, 4 }
 0x5ee   :  { %v13348_v30 = vpop.f32.mrb[3].mxu0 }
 0x5ef   :  { %v10374_v24 = vadd.f32 %v13346_v23, %v18529_v29  ;;  %v13349_v27 = vadd.f32 %v13348_v30, %v13347_v46  ;;  %v10933_v29 = vrot.slane %v10931_v22, 4  ;;  %v10936_v46 = vrot.slane %v10934_v37, 5  ;;  %v12410_v23 = vld [vmem:[%s19170_s0 + $0x58] sm:$0xf]  ;;  %v12415_v22 = vld [vmem:[%s19170_s0 + $0x6c] sm:$0x1] }
 0x5f0   :  { %v10898_v37 = vshll.u32 %v12409_v33, 16  ;;  %v10903_v32 = vshrl.u32 %v12410_v23, 16  ;;  %v10940_v8 = vshll.u32 %v12415_v22, 16  ;;  %v10947_v22 = vrot.slane %v10945_v36, 4  ;;  %v12413_v36 = vld [vmem:[%s19170_s0 + $0x64] sm:$0x1] }
 0x5f1   :  { %v10377_v63 = vadd.f32 %v13349_v27, %v18546_v49  ;;  %v18768_v0 = vadd.f32 %v18691_v41, %v10374_v24  ;;  %v18774_v49 = vrot.slane %v10856_v42, 5  ;;  %v12412_v41 = vld [vmem:[%s19170_s0 + $0x60] sm:$0xf]  ;;  %v10906_v42 = vshll.u32 %v12410_v23, 16  ;;  %v12411_v24 = vld [vmem:[%s19170_s0 + $0x5c] sm:$0x1] }
 0x5f2   :  { %v13468_v25 = vpop.f32.mrb[12].mxu1  ;;  %v10937_v7 = vor.u32 %v10936_v46, %v10933_v29  ;;  %v10900_v33 = vrot.slane %v10898_v37, 5  ;;  %v10917_v38 = vshrl.u32 %v12412_v41, 16  ;;  %v10920_v54 = vshll.u32 %v12412_v41, 16 }
 0x5f3   :  { %19479 = vst [vmem:[#allocation14_spill] sm:$0xff] %v18768_v0  ;;  %v18783_v2 = vadd.f32 %v18696_v31, %v10377_v63  ;;  %v13469_v61 = vpop.f32.mrb[13].mxu1  ;;  %v10854_v31 = vrot.slane %v10853_v14, 4  ;;  %v10896_v23 = vrot.slane %v10895_v16, 4  ;;  %v10905_v29 = vrot.slane %v10903_v32, 4 }
 0x5f4   :  { %v18785_v48 = vadd.f32 %v13469_v61, %v13468_v25  ;;  %v13471_v30 = vpop.f32.mrb[14].mxu1  ;;  %v10872_v25 = vrot.slane %v10870_v21, 5  ;;  %v10908_v46 = vrot.slane %v10906_v42, 5  ;;  %v10950_v61 = vrot.slane %v10948_v13, 5 }
 0x5f5   :  { %19480 = vst [vmem:[#allocation43_spill] sm:$0xff] %v18783_v2  ;;  %v13472_v27 = vpop.f32.mrb[15].mxu1  ;;  %v10938_v37 = vrot.slane %v10937_v7, 4  ;;  %v10942_v0 = vrot.slane %v10940_v8, 5  ;;  %v10912_v41 = vshll.u32 %v12411_v24, 16  ;;  %v18799_v16 = vunpack.c.l.bf16 %v10887_v18 }
 0x5f6   :  { %v18792_v63 = vadd.f32 %v13472_v27, %v13471_v30  ;;  %v18797_v30 = vunpack.c.l.bf16 %v10817_v3  ;;  %v10919_v35 = vrot.slane %v10917_v38, 4  ;;  %v10922_v21 = vrot.slane %v10920_v54, 5  ;;  %v12422_v3 = vld [vmem:[%s19170_s0 + $0x88] sm:$0xf]  ;;  %v12423_v24 = vld [vmem:[%s19170_s0 + $0x8c] sm:$0x1] }
 0x5f7   :  { %v13350_v1 = vpop.f32.mrb[4].mxu0  ;;  %v10859_v32 = vsel %vm14103_vm2, %v10854_v31, %v18774_v49  ;;  %v10954_v42 = vshll.u32 %v12417_v5, 16  ;;  %v10901_v13 = vsel %vm14103_vm2, %v10896_v23, %v10900_v33  ;;  %v12418_v49 = vld [vmem:[%s19170_s0 + $0x78] sm:$0xf]  ;;  %v10943_v7 = vsel %vm14103_vm2, %v10938_v37, %v10942_v0  ;;  %v12424_v31 = vld [vmem:[%s19170_s0 + $0x90] sm:$0xf] }
 0x5f8   :  { %v13351_v26 = vpop.f32.mrb[5].mxu0  ;;  %v18821_v8 = vrot.slane %v10912_v41, 5  ;;  %v10923_v38 = vor.u32 %v10922_v21, %v10919_v35  ;;  %v10926_v54 = vshll.u32 %v12413_v36, 16  ;;  %v10959_v0 = vshrl.u32 %v12418_v49, 16 }
 0x5f9   :  { %v13352_v2 = vadd.f32 %v13351_v26, %v13350_v1  ;;  %v13353_v14 = vpop.f32.mrb[6].mxu0  ;;  %v10987_v1 = vshrl.u32 %v12422_v3, 16  ;;  %v10962_v23 = vshll.u32 %v12418_v49, 16  ;;  %v10996_v26 = vshll.u32 %v12423_v24, 16 }
 0x5fa   :  { %v13354_v50 = vpop.f32.mrb[7].mxu0  ;;  %v18853_v37 = vrot.slane %v10923_v38, 4  ;;  %v18855_v41 = vrot.slane %v10926_v54, 5 }
 0x5fb   :  { %v10382_v27 = vadd.f32 %v13352_v2, %v18560_v28  ;;  %v13355_v10 = vadd.f32 %v13354_v50, %v13353_v14  ;;  %v10873_v28 = vsel %vm14103_vm2, %v10868_v47, %v10872_v25  ;;  %v10909_v50 = vor.u32 %v10908_v46, %v10905_v29 }
 0x5fc   :  { %v10951_v2 = vor.u32 %v10950_v61, %v10947_v22  ;;  %v11001_v29 = vshrl.u32 %v12424_v31, 16  ;;  %v18844_v46 = vunpack.c.l.bf16 %v10859_v32  ;;  %v18846_v22 = vunpack.c.l.bf16 %v10901_v13  ;;  %v12425_v13 = vld [vmem:[%s19170_s0 + $0x94] sm:$0x1] }
 0x5fd   :  { %v10385_v18 = vadd.f32 %v13355_v10, %v18570_v62  ;;  %v18830_v33 = vadd.f32 %v18729_v20, %v10382_v27  ;;  %v10990_v62 = vshll.u32 %v12422_v3, 16  ;;  %v18832_v10 = vrot.slane %v10954_v42, 5  ;;  %v12419_v20 = vld [vmem:[%s19170_s0 + $0x7c] sm:$0x1]  ;;  %v12430_v27 = vld [vmem:[%s19170_s0 + $0xb8] sm:$0xf] }
 0x5fe   :  { %v18837_v25 = vrot.slane %v10909_v50, 4  ;;  %v18839_v5 = vrot.slane %v10951_v2, 4  ;;  %v18848_v61 = vunpack.c.l.bf16 %v10873_v28  ;;  %v11004_v14 = vshll.u32 %v12424_v31, 16 }
 0x5ff   :  { %19481 = vst [vmem:[#allocation16_spill] sm:$0xff] %v18830_v33  ;;  %v18835_v47 = vadd.f32 %v18741_v15, %v10385_v18  ;;  %v12420_v15 = vld [vmem:[%s19170_s0 + $0x80] sm:$0xf]  ;;  %v10989_v35 = vrot.slane %v10987_v1, 4  ;;  %v10992_v21 = vrot.slane %v10990_v62, 5  ;;  %v18860_v32 = vunpack.c.l.bf16 %v10943_v7 }
 0x600   :  { %v10961_v42 = vrot.slane %v10959_v0, 4  ;;  %v10964_v36 = vrot.slane %v10962_v23, 5  ;;  %v10968_v3 = vshll.u32 %v12419_v20, 16  ;;  %v10915_v50 = vsel %vm14103_vm2, %v18837_v25, %v18821_v8  ;;  %v12426_v7 = vld [vmem:[%s19170_s0 + $0xa8] sm:$0xf] }
 0x601   :  { %19482 = vst [vmem:[#allocation35_spill] sm:$0xff] %v18835_v47  ;;  %v10957_v2 = vsel %vm14103_vm2, %v18839_v5, %v18832_v10  ;;  %v18873_v49 = vrot.slane %v10996_v26, 5  ;;  %v11003_v18 = vrot.slane %v11001_v29, 4  ;;  %v11006_v31 = vrot.slane %v11004_v14, 5 }
 0x602   :  { %v10973_v38 = vshrl.u32 %v12420_v15, 16  ;;  %v10976_v54 = vshll.u32 %v12420_v15, 16  ;;  %v11043_v1 = vshrl.u32 %v12430_v27, 16  ;;  %v10929_v10 = vsel %vm14103_vm2, %v18853_v37, %v18855_v41 }
 0x603   :  { %v13356_v28 = vpop.f32.mrb[8].mxu0  ;;  %v10993_v23 = vor.u32 %v10992_v21, %v10989_v35  ;;  %v11046_v25 = vshll.u32 %v12430_v27, 16  ;;  %v10965_v20 = vor.u32 %v10964_v36, %v10961_v42  ;;  %v18882_v29 = vrot.slane %v10968_v3, 5  ;;  %v12432_v42 = vld [vmem:[%s19170_s0 + $0xc0] sm:$0xf] }
 0x604   :  { %v13357_v24 = vpop.f32.mrb[9].mxu0  ;;  %v11010_v47 = vshll.u32 %v12425_v13, 16  ;;  %v11015_v14 = vshrl.u32 %v12426_v7, 16  ;;  %v11018_v39 = vshll.u32 %v12426_v7, 16  ;;  %v11007_v41 = vor.u32 %v11006_v31, %v11003_v18  ;;  %v12431_v18 = vld [vmem:[%s19170_s0 + $0xbc] sm:$0x1] }
 0x605   :  { %v13358_v62 = vadd.f32 %v13357_v24, %v13356_v28  ;;  %v13474_v0 = vpop.f32.mrb[16].mxu1  ;;  %v13359_v8 = vpop.f32.mrb[10].mxu0  ;;  %v10975_v35 = vrot.slane %v10973_v38, 4  ;;  %v10978_v21 = vrot.slane %v10976_v54, 5  ;;  %v11045_v27 = vrot.slane %v11043_v1, 4 }
 0x606   :  { %v13475_v5 = vpop.f32.mrb[17].mxu1  ;;  %v13360_v26 = vpop.f32.mrb[11].mxu0  ;;  %v11048_v3 = vrot.slane %v11046_v25, 5  ;;  %v11017_v7 = vrot.slane %v11015_v14, 4  ;;  %v11020_v31 = vrot.slane %v11018_v39, 5  ;;  %v11057_v38 = vshrl.u32 %v12432_v42, 16 }
 0x607   :  { %v10390_v15 = vadd.f32 %v13358_v62, %v18581_v58  ;;  %v13476_v33 = vadd.f32 %v13475_v5, %v13474_v0  ;;  %v13361_v28 = vadd.f32 %v13360_v26, %v13359_v8  ;;  %v13477_v24 = vpop.f32.mrb[18].mxu1  ;;  %v10994_v62 = vrot.slane %v10993_v23, 4 }
 0x608   :  { %v13478_v37 = vpop.f32.mrb[19].mxu1  ;;  %v10966_v0 = vrot.slane %v10965_v20, 4  ;;  %v10982_v8 = vshll.u32 %v12421_v55, 16  ;;  %v11060_v54 = vshll.u32 %v12432_v42, 16  ;;  %v18901_v5 = vunpack.c.l.bf16 %v10915_v50  ;;  %v12427_v55 = vld [vmem:[%s19170_s0 + $0xac] sm:$0x1] }
 0x609   :  { %v10393_v36 = vadd.f32 %v13361_v28, %v18586_v59  ;;  %v13479_v58 = vadd.f32 %v13478_v37, %v13477_v24  ;;  %v18893_v13 = vadd.f32 %v18785_v48, %v10390_v15  ;;  %v11008_v25 = vrot.slane %v11007_v41, 4 }
 0x60a   :  { %v11012_v48 = vrot.slane %v11010_v47, 5  ;;  %v10979_v26 = vor.u32 %v10978_v21, %v10975_v35  ;;  %v18906_v20 = vunpack.c.l.bf16 %v10957_v2  ;;  %v18908_v14 = vunpack.c.l.bf16 %v10929_v10  ;;  %v12428_v2 = vld [vmem:[%s19170_s0 + $0xb0] sm:$0xf]  ;;  %v12433_v35 = vld [vmem:[%s19170_s0 + $0xc4] sm:$0x1] }
 0x60b   :  { %v18899_v1 = vadd.f32 %v18792_v63, %v10393_v36  ;;  %v13362_v59 = vpop.f32.mrb[12].mxu0  ;;  %v11049_v39 = vor.u32 %v11048_v3, %v11045_v27  ;;  %v11052_v15 = vshll.u32 %v12431_v18, 16  ;;  %v10999_v50 = vsel %vm14103_vm2, %v10994_v62, %v18873_v49  ;;  %v12438_v18 = vld [vmem:[%s19170_s0 + $0xd8] sm:$0xf] }
 0x60c   :  { %v13363_v23 = vpop.f32.mrb[13].mxu0  ;;  %v10971_v47 = vsel %vm14103_vm2, %v10966_v0, %v18882_v29  ;;  %v18916_v24 = vrot.slane %v10982_v8, 5  ;;  %v11021_v37 = vor.u32 %v11020_v31, %v11017_v7  ;;  %v11024_v41 = vshll.u32 %v12427_v55, 16 }
 0x60d   :  { %v13364_v28 = vadd.f32 %v13363_v23, %v13362_v59  ;;  %v13365_v63 = vpop.f32.mrb[14].mxu0  ;;  %v11059_v21 = vrot.slane %v11057_v38, 4  ;;  %v11062_v27 = vrot.slane %v11060_v54, 5  ;;  %v11013_v29 = vsel %vm14103_vm2, %v11008_v25, %v11012_v48 }
 0x60e   :  { %v13366_v10 = vpop.f32.mrb[15].mxu0  ;;  %v10980_v36 = vrot.slane %v10979_v26, 4  ;;  %v11050_v3 = vrot.slane %v11049_v39, 4  ;;  %v11054_v62 = vrot.slane %v11052_v15, 5  ;;  %v11029_v0 = vshrl.u32 %v12428_v2, 16 }
 0x60f   :  { %v10398_v49 = vadd.f32 %v13364_v28, %v18593_v11  ;;  %v13367_v42 = vadd.f32 %v13366_v10, %v13365_v63  ;;  %v11032_v8 = vshll.u32 %v12428_v2, 16  ;;  %v18931_v31 = vunpack.c.l.bf16 %v10999_v50  ;;  %v12429_v26 = vld [vmem:[%s19170_s0 + $0xb4] sm:$0x1]  ;;  %v12439_v2 = vld [vmem:[%s19170_s0 + $0xdc] sm:$0x1] }
 0x610   :  { %v11066_v38 = vshll.u32 %v12433_v35, 16  ;;  %v18935_v11 = vunpack.c.l.bf16 %v10971_v47  ;;  %v11022_v59 = vrot.slane %v11021_v37, 4  ;;  %v11026_v25 = vrot.slane %v11024_v41, 5 }
 0x611   :  { %v10401_v7 = vadd.f32 %v13367_v42, %v18597_v9  ;;  %v18933_v54 = vadd.f32 %v13476_v33, %v10398_v49  ;;  %v11063_v48 = vor.u32 %v11062_v27, %v11059_v21  ;;  %v18940_v23 = vunpack.c.l.bf16 %v11013_v29 }
 0x612   :  { %v10985_v9 = vsel %vm14103_vm2, %v10980_v36, %v18916_v24  ;;  %v11099_v39 = vshrl.u32 %v12438_v18, 16  ;;  %v11055_v63 = vsel %vm14103_vm2, %v11050_v3, %v11054_v62  ;;  %v11031_v50 = vrot.slane %v11029_v0, 4  ;;  %v12440_v62 = vld [vmem:[%s19170_s0 + $0xe0] sm:$0xf] }
 0x613   :  { %v13570_v55 = vpop.f32.mrb[16].mxu0  ;;  %v18945_v15 = vadd.f32 %v13479_v58, %v10401_v7  ;;  %v11034_v47 = vrot.slane %v11032_v8, 5  ;;  %v18954_v41 = vrot.slane %v11066_v38, 5  ;;  %v11038_v24 = vshll.u32 %v12429_v26, 16 }
 0x614   :  { %v10608_v33 = vadd.f32 %v13570_v55, %v18602_v40  ;;  %v10599_v28 = vpop.f32.mrb[17].mxu0  ;;  %v11102_v58 = vshll.u32 %v12438_v18, 16  ;;  %v12434_v40 = vld [vmem:[%s19170_s0 + $0xc8] sm:$0xf]  ;;  %v11027_v49 = vsel %vm14103_vm2, %v11022_v59, %v11026_v25  ;;  %v11064_v42 = vrot.slane %v11063_v48, 4 }
 0x615   :  { %v10600_v10 = vadd.f32 %v10599_v28, %v18611_v44  ;;  %v13571_v37 = vpop.f32.mrb[18].mxu0  ;;  %v11101_v36 = vrot.slane %v11099_v39, 4  ;;  %v11108_v3 = vshll.u32 %v12439_v2, 16  ;;  %v11035_v8 = vor.u32 %v11034_v47, %v11031_v50  ;;  %v12436_v2 = vld [vmem:[%s19170_s0 + $0xd0] sm:$0xf] }
 0x616   :  { %v11304_v35 = vadd.f32 %v18736_v56, %v10608_v33  ;;  %v10611_v21 = vadd.f32 %v13571_v37, %v18616_v17  ;;  %v10602_v27 = vpop.f32.mrb[19].mxu0  ;;  %v11071_v17 = vshrl.u32 %v12434_v40, 16  ;;  %v11104_v38 = vrot.slane %v11102_v58, 5 }
 0x617   :  { %v11302_v44 = vadd.f32 %v18753_v4, %v10600_v10  ;;  %v10603_v29 = vadd.f32 %v10602_v27, %v18620_v6  ;;  %v11074_v59 = vshll.u32 %v12434_v40, 16  ;;  %v18970_v25 = vunpack.c.l.bf16 %v10985_v9  ;;  %v12441_v40 = vld [vmem:[%s19170_s0 + $0xe4] sm:$0x1] }
 0x618   :  { %v11336_v0 = vmax.f32 %v11304_v35, 0.0  ;;  %v11305_v56 = vadd.f32 %v18755_v19, %v10611_v21  ;;  %v11113_v6 = vshrl.u32 %v12440_v62, 16  ;;  %v11116_v48 = vshll.u32 %v12440_v62, 16 }
 0x619   :  { %v11334_v18 = vmax.f32 %v11302_v44, 0.0  ;;  %v11303_v7 = vadd.f32 %v18797_v30, %v10603_v29  ;;  %v18972_v39 = vunpack.c.l.bf16 %v11055_v63  ;;  %v18974_v33 = vunpack.c.l.bf16 %v11027_v49  ;;  %v12435_v30 = vld [vmem:[%s19170_s0 + $0xcc] sm:$0x1] }
 0x61a   :  { %11368 = vst [vmem:[#allocation9 + $0x10] sm:$0xff] %v11336_v0  ;;  %v11337_v4 = vmax.f32 %v11305_v56, 0.0  ;;  %v18976_v19 = vrot.slane %v11038_v24, 5  ;;  %v11069_v50 = vsel %vm14103_vm2, %v11064_v42, %v18954_v41  ;;  %v18985_v47 = vrot.slane %v11035_v8, 4 }
 0x61b   :  { %11366 = vst [vmem:[#allocation9] sm:$0xff] %v11334_v18  ;;  %v11335_v26 = vmax.f32 %v11303_v7, 0.0  ;;  %v13574_v55 = vpop.f32.mrb[20].mxu0  ;;  %v18987_v63 = vrot.slane %v11108_v3, 5  ;;  %v11105_v24 = vor.u32 %v11104_v38, %v11101_v36  ;;  %v11073_v58 = vrot.slane %v11071_v17, 4 }
 0x61c   :  { %11369 = vst [vmem:[#allocation9 + $0x18] sm:$0xff] %v11337_v4  ;;  %v10624_v28 = vadd.f32 %v13574_v55, %v18623_v43  ;;  %v10615_v9 = vpop.f32.mrb[21].mxu0  ;;  %v11076_v43 = vrot.slane %v11074_v59, 5  ;;  %v11115_v27 = vrot.slane %v11113_v6, 4  ;;  %v11118_v49 = vrot.slane %v11116_v48, 5 }
 0x61d   :  { %11367 = vst [vmem:[#allocation9 + $0x8] sm:$0xff] %v11335_v26  ;;  %v10616_v10 = vadd.f32 %v10615_v9, %v18629_v45  ;;  %v13575_v37 = vpop.f32.mrb[22].mxu0  ;;  %v11085_v45 = vshrl.u32 %v12436_v2, 16  ;;  %v11088_v29 = vshll.u32 %v12436_v2, 16  ;;  %v12446_v36 = vld [vmem:[%s19170_s0 + $0x108] sm:$0xf]  ;;  %v19005_v18 = vunpack.c.l.bf16 %v11069_v50 }
 0x61e   :  { %v11308_v41 = vadd.f32 %v18799_v16, %v10624_v28  ;;  %v10627_v35 = vadd.f32 %v13575_v37, %v18632_v34  ;;  %v10618_v21 = vpop.f32.mrb[23].mxu0  ;;  %v11080_v0 = vshll.u32 %v12435_v30, 16  ;;  %v11122_v16 = vshll.u32 %v12441_v40, 16  ;;  %v12447_v9 = vld [vmem:[%s19170_s0 + $0x10c] sm:$0x1] }
 0x61f   :  { %v11306_v42 = vadd.f32 %v18844_v46, %v10616_v10  ;;  %v10619_v44 = vadd.f32 %v10618_v21, %v18636_v57  ;;  %v11106_v8 = vrot.slane %v11105_v24, 4  ;;  %v11077_v17 = vor.u32 %v11076_v43, %v11073_v58  ;;  %v12437_v57 = vld [vmem:[%s19170_s0 + $0xd4] sm:$0x1] }
 0x620   :  { %v11340_v3 = vmax.f32 %v11308_v41, 0.0  ;;  %v11309_v62 = vadd.f32 %v18846_v22, %v10627_v35  ;;  %v11155_v7 = vshrl.u32 %v12446_v36, 16  ;;  %v11158_v38 = vshll.u32 %v12446_v36, 16 }
 0x621   :  { %v11338_v56 = vmax.f32 %v11306_v42, 0.0  ;;  %v11307_v34 = vadd.f32 %v18848_v61, %v10619_v44  ;;  %v11119_v4 = vor.u32 %v11118_v49, %v11115_v27  ;;  %v11087_v6 = vrot.slane %v11085_v45, 4 }
 0x622   :  { %11372 = vst [vmem:[#allocation9 + $0x30] sm:$0xff] %v11340_v3  ;;  %v11341_v46 = vmax.f32 %v11309_v62, 0.0  ;;  %v11090_v48 = vrot.slane %v11088_v29, 5  ;;  %v11041_v55 = vsel %vm14103_vm2, %v18985_v47, %v18976_v19  ;;  %v19015_v30 = vrot.slane %v11080_v0, 5  ;;  %v12442_v19 = vld [vmem:[%s19170_s0 + $0xf8] sm:$0xf] }
 0x623   :  { %11370 = vst [vmem:[#allocation9 + $0x20] sm:$0xff] %v11338_v56  ;;  %v11339_v59 = vmax.f32 %v11307_v34, 0.0  ;;  %v13578_v22 = vpop.f32.mrb[24].mxu0  ;;  %v19017_v28 = vrot.slane %v11122_v16, 5  ;;  %v19026_v10 = vrot.slane %v11077_v17, 4  ;;  %v11094_v37 = vshll.u32 %v12437_v57, 16 }
 0x624   :  { %11373 = vst [vmem:[#allocation9 + $0x38] sm:$0xff] %v11341_v46  ;;  %v10640_v61 = vadd.f32 %v13578_v22, %v18638_v53  ;;  %v10631_v26 = vpop.f32.mrb[25].mxu0  ;;  %v11111_v53 = vsel %vm14103_vm2, %v11106_v8, %v18987_v63  ;;  %v11157_v43 = vrot.slane %v11155_v7, 4  ;;  %v11160_v40 = vrot.slane %v11158_v38, 5  ;;  %v12444_v7 = vld [vmem:[%s19170_s0 + $0x100] sm:$0xf] }
 0x625   :  { %11371 = vst [vmem:[#allocation9 + $0x28] sm:$0xff] %v11339_v59  ;;  %v10632_v50 = vadd.f32 %v10631_v26, %v18642_v52  ;;  %v13579_v2 = vpop.f32.mrb[26].mxu0  ;;  %v12448_v52 = vld [vmem:[%s19170_s0 + $0x110] sm:$0xf]  ;;  %v11120_v35 = vrot.slane %v11119_v4, 4  ;;  %v11091_v21 = vor.u32 %v11090_v48, %v11087_v6  ;;  %v11127_v42 = vshrl.u32 %v12442_v19, 16 }
 0x626   :  { %v11312_v47 = vadd.f32 %v18860_v32, %v10640_v61  ;;  %v10643_v24 = vadd.f32 %v13579_v2, %v18645_v60  ;;  %v10634_v58 = vpop.f32.mrb[27].mxu0  ;;  %v11130_v32 = vshll.u32 %v12442_v19, 16  ;;  %v11164_v45 = vshll.u32 %v12447_v9, 16  ;;  %v19484_v38 = vld [vmem:[#allocation32_spill] sm:$0xff] }
 0x627   :  { %v11310_v63 = vadd.f32 %v18901_v5, %v10632_v50  ;;  %v10635_v41 = vadd.f32 %v10634_v58, %v18648_v51  ;;  %v11169_v29 = vshrl.u32 %v12448_v52, 16  ;;  %v19040_v3 = vunpack.c.l.bf16 %v11041_v55  ;;  %v12443_v48 = vld [vmem:[%s19170_s0 + $0xfc] sm:$0x1]  ;;  %v19485_v55 = vld [vmem:[#allocation47_spill] sm:$0xff] }
 0x628   :  { %v11344_v27 = vmax.f32 %v11312_v47, 0.0  ;;  %v11313_v49 = vadd.f32 %v18906_v20, %v10643_v24  ;;  %v11161_v62 = vor.u32 %v11160_v40, %v11157_v43  ;;  %v11172_v5 = vshll.u32 %v12448_v52, 16  ;;  %v12449_v50 = vld [vmem:[%s19170_s0 + $0x114] sm:$0x1] }
 0x629   :  { %v11342_v44 = vmax.f32 %v11310_v63, 0.0  ;;  %v11311_v60 = vadd.f32 %v18908_v14, %v10635_v41  ;;  %v19042_v16 = vunpack.c.l.bf16 %v11111_v53  ;;  %v11083_v20 = vsel %vm14103_vm2, %v19026_v10, %v19015_v30  ;;  %v19483_v14 = vld [vmem:[#allocation38_spill] sm:$0xff]  ;;  %v19486_v10 = vld [vmem:[#allocation27_spill] sm:$0xff] }
 0x62a   :  { %11376 = vst [vmem:[#allocation9 + $0x50] sm:$0xff] %v11344_v27  ;;  %v11345_v36 = vmax.f32 %v11313_v49, 0.0  ;;  %v11096_v56 = vrot.slane %v11094_v37, 5  ;;  %v11125_v17 = vsel %vm14103_vm2, %v11120_v35, %v19017_v28  ;;  %v11129_v46 = vrot.slane %v11127_v42, 4 }
 0x62b   :  { %11374 = vst [vmem:[#allocation9 + $0x40] sm:$0xff] %v11342_v44  ;;  %v11343_v51 = vmax.f32 %v11311_v60, 0.0  ;;  %v13582_v0 = vpop.f32.mrb[28].mxu0  ;;  %v11132_v57 = vrot.slane %v11130_v32, 5  ;;  %v11092_v4 = vrot.slane %v11091_v21, 4  ;;  %v11166_v6 = vrot.slane %v11164_v45, 5 }
 0x62c   :  { %11377 = vst [vmem:[#allocation9 + $0x58] sm:$0xff] %v11345_v36  ;;  %v10656_v34 = vadd.f32 %v13582_v0, %v19483_v14  ;;  %v10647_v8 = vpop.f32.mrb[29].mxu0  ;;  %v11171_v61 = vrot.slane %v11169_v29, 4  ;;  %v11162_v9 = vrot.slane %v11161_v62, 4  ;;  %v11174_v2 = vrot.slane %v11172_v5, 5  ;;  %v19487_v45 = vld [vmem:[#allocation40_spill] sm:$0xff] }
 0x62d   :  { %11375 = vst [vmem:[#allocation9 + $0x48] sm:$0xff] %v11343_v51  ;;  %v10648_v59 = vadd.f32 %v10647_v8, %v19484_v38  ;;  %v13583_v22 = vpop.f32.mrb[30].mxu0  ;;  %v11141_v19 = vshrl.u32 %v12444_v7, 16  ;;  %v11144_v47 = vshll.u32 %v12444_v7, 16  ;;  %v11133_v43 = vor.u32 %v11132_v57, %v11129_v46  ;;  %v12454_v60 = vld [vmem:[%s19170_s0 + $0x128] sm:$0xf] }
 0x62e   :  { %v11316_v26 = vadd.f32 %v18931_v31, %v10656_v34  ;;  %v10659_v30 = vadd.f32 %v13583_v22, %v19485_v55  ;;  %v10650_v28 = vpop.f32.mrb[31].mxu0  ;;  %v11136_v31 = vshll.u32 %v12443_v48, 16  ;;  %v11097_v63 = vsel %vm14103_vm2, %v11092_v4, %v11096_v56  ;;  %v19488_v0 = vld [vmem:[#allocation33_spill] sm:$0xff]  ;;  %v12456_v4 = vld [vmem:[%s19170_s0 + $0x130] sm:$0xf]  ;;  %v19490_v48 = vld [vmem:[#allocation28_spill] sm:$0xff] }
 0x62f   :  { %v11314_v53 = vadd.f32 %v18935_v11, %v10648_v59  ;;  %v10651_v37 = vadd.f32 %v10650_v28, %v19486_v10  ;;  %v11178_v41 = vshll.u32 %v12449_v50, 16  ;;  %v19070_v21 = vunpack.c.l.bf16 %v11083_v20  ;;  %v19489_v57 = vld [vmem:[#allocation41_spill] sm:$0xff] }
 0x630   :  { %v11348_v24 = vmax.f32 %v11316_v26, 0.0  ;;  %v11317_v58 = vadd.f32 %v18940_v23, %v10659_v30  ;;  %v11167_v11 = vsel %vm14103_vm2, %v11162_v9, %v11166_v6  ;;  %v11175_v27 = vor.u32 %v11174_v2, %v11171_v61  ;;  %v12445_v23 = vld [vmem:[%s19170_s0 + $0x104] sm:$0x1] }
 0x631   :  { %v11346_v40 = vmax.f32 %v11314_v53, 0.0  ;;  %v11315_v52 = vadd.f32 %v18970_v25, %v10651_v37  ;;  %v19077_v25 = vunpack.c.l.bf16 %v11125_v17  ;;  %v11143_v32 = vrot.slane %v11141_v19, 4  ;;  %v12450_v17 = vld [vmem:[%s19170_s0 + $0x118] sm:$0xf] }
 0x632   :  { %11380 = vst [vmem:[#allocation9 + $0x70] sm:$0xff] %v11348_v24  ;;  %v11349_v35 = vmax.f32 %v11317_v58, 0.0  ;;  %v11146_v44 = vrot.slane %v11144_v47, 5  ;;  %v19083_v62 = vunpack.c.l.bf16 %v11097_v63  ;;  %v19085_v5 = vrot.slane %v11133_v43, 4 }
 0x633   :  { %11378 = vst [vmem:[#allocation9 + $0x60] sm:$0xff] %v11346_v40  ;;  %v11347_v49 = vmax.f32 %v11315_v52, 0.0  ;;  %v13586_v42 = vpop.f32.mrb[32].mxu0  ;;  %v19087_v51 = vrot.slane %v11136_v31, 5  ;;  %v19090_v14 = vunpack.c.l.bf16 %v11167_v11  ;;  %v19092_v34 = vrot.slane %v11178_v41, 5  ;;  %v19491_v52 = vld [vmem:[#allocation42_spill] sm:$0xff] }
 0x634   :  { %11381 = vst [vmem:[#allocation9 + $0x78] sm:$0xff] %v11349_v35  ;;  %v10672_v29 = vadd.f32 %v13586_v42, %v19487_v45  ;;  %v10663_v36 = vpop.f32.mrb[33].mxu0  ;;  %v11150_v8 = vshll.u32 %v12445_v23, 16  ;;  %v19099_v59 = vrot.slane %v11175_v27, 4  ;;  %v11211_v22 = vshrl.u32 %v12454_v60, 16  ;;  %v19492_v23 = vld [vmem:[#allocation49_spill] sm:$0xff] }
 0x635   :  { %11379 = vst [vmem:[#allocation9 + $0x68] sm:$0xff] %v11347_v49  ;;  %v10664_v20 = vadd.f32 %v10663_v36, %v19488_v0  ;;  %v13587_v56 = vpop.f32.mrb[34].mxu0  ;;  %v11147_v26 = vor.u32 %v11146_v44, %v11143_v32  ;;  %v11214_v55 = vshll.u32 %v12454_v60, 16  ;;  %v11183_v9 = vshrl.u32 %v12450_v17, 16  ;;  %v12455_v35 = vld [vmem:[%s19170_s0 + $0x12c] sm:$0x1] }
 0x636   :  { %v11320_v46 = vadd.f32 %v18972_v39, %v10672_v29  ;;  %v10675_v7 = vadd.f32 %v13587_v56, %v19489_v57  ;;  %v10666_v38 = vpop.f32.mrb[35].mxu0  ;;  %v12452_v39 = vld [vmem:[%s19170_s0 + $0x120] sm:$0xf]  ;;  %v11186_v50 = vshll.u32 %v12450_v17, 16  ;;  %v11225_v10 = vshrl.u32 %v12456_v4, 16 }
 0x637   :  { %v11318_v6 = vadd.f32 %v18974_v33, %v10664_v20  ;;  %v10667_v61 = vadd.f32 %v10666_v38, %v19490_v48  ;;  %v11228_v37 = vshll.u32 %v12456_v4, 16  ;;  %v11139_v19 = vsel %vm14103_vm2, %v19085_v5, %v19087_v51  ;;  %v12451_v44 = vld [vmem:[%s19170_s0 + $0x11c] sm:$0x1]  ;;  %v19493_v36 = vld [vmem:[#allocation29_spill] sm:$0xff]  ;;  %v12457_v0 = vld [vmem:[%s19170_s0 + $0x134] sm:$0x1] }
 0x638   :  { %v11352_v30 = vmax.f32 %v11320_v46, 0.0  ;;  %v11321_v28 = vadd.f32 %v19005_v18, %v10675_v7  ;;  %v11197_v47 = vshrl.u32 %v12452_v39, 16  ;;  %v11200_v24 = vshll.u32 %v12452_v39, 16  ;;  %v12453_v7 = vld [vmem:[%s19170_s0 + $0x124] sm:$0x1]  ;;  %s14010_s0 = smov [#allocation9]  }
 0x639   :  { %v11350_v2 = vmax.f32 %v11318_v6, 0.0  ;;  %v11319_v53 = vadd.f32 %v19040_v3, %v10667_v61  ;;  %v11152_v18 = vrot.slane %v11150_v8, 5  ;;  %v11213_v31 = vrot.slane %v11211_v22, 4  ;;  %v19494_v8 = vld [vmem:[#allocation34_spill] sm:$0xff]  ;;  %s11403_s9 = sshll.u32 %s14010_s0, 4  ;;  %s11404_s9 = int_to_ptr.vmem [resolvable:$true] %s11403_s9 }
 0x63a   :  { %11384 = vst [vmem:[#allocation9 + $0x90] sm:$0xff] %v11352_v30  ;;  %v11353_v33 = vmax.f32 %v11321_v28, 0.0  ;;  %v11216_v40 = vrot.slane %v11214_v55, 5  ;;  %v11181_v41 = vsel %vm14103_vm2, %v19099_v59, %v19092_v34  ;;  %v11185_v11 = vrot.slane %v11183_v9, 4  ;;  %s13976_s10 = scalar_lea.vmem %s11404_s9, 4096  ;;  %p13981_p3 = scmp.lt.s32.totalorder %s11404_s9, %s11404_s9 }
 0x63b   :  { %11382 = vst [vmem:[#allocation9 + $0x80] sm:$0xff] %v11350_v2  ;;  %v11351_v58 = vmax.f32 %v11319_v53, 0.0  ;;  %v11188_v27 = vrot.slane %v11186_v50, 5  ;;  %v11148_v32 = vrot.slane %v11147_v26, 4  ;;  %v11227_v60 = vrot.slane %v11225_v10, 4  ;;  %v19495_v2 = vld [vmem:[#allocation16_spill] sm:$0xff]  ;;  %p13977_p2 = scmp.ne.s32.totalorder %s11404_s9, %s13976_s10  ;;  %p13982_p4 = scmp.lt.s32.totalorder %s13976_s10, %s13976_s10 }
 0x63c   :  { %11385 = vst [vmem:[#allocation9 + $0x98] sm:$0xff] %v11353_v33  ;;  %v11230_v45 = vrot.slane %v11228_v37, 5  ;;  %v11199_v20 = vrot.slane %v11197_v47, 4  ;;  %v11202_v56 = vrot.slane %v11200_v24, 5  ;;  %v11217_v46 = vor.u32 %v11216_v40, %v11213_v31  ;;  %v19496_v47 = vld [vmem:[#allocation14_spill] sm:$0xff] }
 0x63d   :  { %11383 = vst [vmem:[#allocation9 + $0x88] sm:$0xff] %v11351_v58  ;;  %v11220_v57 = vshll.u32 %v12455_v35, 16  ;;  %v11189_v59 = vor.u32 %v11188_v27, %v11185_v11  ;;  %v11192_v22 = vshll.u32 %v12451_v44, 16  ;;  %v11234_v61 = vshll.u32 %v12457_v0, 16  ;;  %v19498_v27 = vld [vmem:[#allocation43_spill] sm:$0xff]  ;;  %p13983_p5 = por %p13982_p4, %p13981_p3 }
 0x63e   :  { %v11231_v48 = vor.u32 %v11230_v45, %v11227_v60  ;;  %v11153_v26 = vsel %vm14103_vm2, %v11148_v32, %v11152_v18  ;;  %v11203_v55 = vor.u32 %v11202_v56, %v11199_v20  ;;  %v11206_v39 = vshll.u32 %v12453_v7, 16 }
 0x63f   :  { %v11294_v9 = vunpack.c.l.bf16 %v11139_v19  ;;  %v11218_v50 = vrot.slane %v11217_v46, 4  ;;  %v11190_v37 = vrot.slane %v11189_v59, 4  ;;  %v11194_v33 = vrot.slane %v11192_v22, 5  ;;  %p13984_p6 = pnand %p13983_p5, %p13977_p2 }
 0x640   :  { %v11232_v18 = vrot.slane %v11231_v48, 4  ;;  %v11236_v31 = vrot.slane %v11234_v61, 5  ;;  %v11208_v35 = vrot.slane %v11206_v39, 5 }
 0x641   :  { %v11195_v32 = vsel %vm14103_vm2, %v11190_v37, %v11194_v33 }
 0x642   :  { %v11298_v0 = vunpack.c.l.bf16 %v11195_v32 }
 0x649   :  { %v13590_v43 = vpop.f32.mrb[36].mxu0 }
 0x64a   :  { %v10688_v3 = vadd.f32 %v13590_v43, %v19491_v52  ;;  %v10679_v63 = vpop.f32.mrb[37].mxu0  ;;  %v11295_v43 = vunpack.c.l.bf16 %v11153_v26  ;;  %v19497_v52 = vld [vmem:[#allocation35_spill] sm:$0xff] }
 0x64b   :  { %v10680_v49 = vadd.f32 %v10679_v63, %v19492_v23  ;;  %v13591_v42 = vpop.f32.mrb[38].mxu0  ;;  %v11204_v63 = vrot.slane %v11203_v55, 4 }
 0x64c   :  { %v11324_v29 = vadd.f32 %v19042_v16, %v10688_v3  ;;  %v10691_v5 = vadd.f32 %v13591_v42, %v19493_v36  ;;  %v10682_v51 = vpop.f32.mrb[39].mxu0 }
 0x64d   :  { %v11322_v34 = vadd.f32 %v19070_v21, %v10680_v49  ;;  %v10683_v17 = vadd.f32 %v10682_v51, %v19494_v8  ;;  %v11209_v36 = vsel %vm14103_vm2, %v11204_v63, %v11208_v35 }
 0x64e   :  { %v11356_v16 = vmax.f32 %v11324_v29, 0.0  ;;  %v11325_v38 = vadd.f32 %v19077_v25, %v10691_v5  ;;  %v11222_v25 = vrot.slane %v11220_v57, 5  ;;  %v11299_v46 = vunpack.c.l.bf16 %v11209_v36 }
 0x64f   :  { %v11354_v4 = vmax.f32 %v11322_v34, 0.0  ;;  %v11323_v6 = vadd.f32 %v19083_v62, %v10683_v17  ;;  %v11297_v62 = vunpack.c.l.bf16 %v11181_v41 }
 0x650   :  { %11388 = vst [vmem:[#allocation9 + $0xb0] sm:$0xff] %v11356_v16  ;;  %v11357_v21 = vmax.f32 %v11325_v38, 0.0  ;;  %v11223_v41 = vsel %vm14103_vm2, %v11218_v50, %v11222_v25 }
 0x651   :  { %11386 = vst [vmem:[#allocation9 + $0xa0] sm:$0xff] %v11354_v4  ;;  %v11355_v30 = vmax.f32 %v11323_v6, 0.0  ;;  %v13594_v28 = vpop.f32.mrb[40].mxu0  ;;  %v11300_v29 = vunpack.c.l.bf16 %v11223_v41 }
 0x652   :  { %11389 = vst [vmem:[#allocation9 + $0xb8] sm:$0xff] %v11357_v21  ;;  %v10704_v53 = vadd.f32 %v13594_v28, %v19495_v2  ;;  %v10695_v10 = vpop.f32.mrb[41].mxu0 }
 0x653   :  { %11387 = vst [vmem:[#allocation9 + $0xa8] sm:$0xff] %v11355_v30  ;;  %v10696_v24 = vadd.f32 %v10695_v10, %v19496_v47  ;;  %v13595_v58 = vpop.f32.mrb[42].mxu0 }
 0x654   :  { %v11328_v40 = vadd.f32 %v19090_v14, %v10704_v53  ;;  %v10707_v19 = vadd.f32 %v13595_v58, %v19497_v52  ;;  %v10698_v3 = vpop.f32.mrb[43].mxu0  ;;  %v11237_v14 = vsel %vm14103_vm2, %v11232_v18, %v11236_v31 }
 0x655   :  { %v11326_v11 = vadd.f32 %v11294_v9, %v10696_v24  ;;  %v10699_v23 = vadd.f32 %v10698_v3, %v19498_v27  ;;  %v11301_v34 = vunpack.c.l.bf16 %v11237_v14 }
 0x656   :  { %v11360_v49 = vmax.f32 %v11328_v40, 0.0  ;;  %v11329_v42 = vadd.f32 %v11297_v62, %v10707_v19 }
 0x657   :  { %v11358_v44 = vmax.f32 %v11326_v11, 0.0  ;;  %v11327_v60 = vadd.f32 %v11295_v43, %v10699_v23 }
 0x658   :  { %11392 = vst [vmem:[#allocation9 + $0xd0] sm:$0xff] %v11360_v49  ;;  %v11361_v45 = vmax.f32 %v11329_v42, 0.0 }
 0x659   :  { %11390 = vst [vmem:[#allocation9 + $0xc0] sm:$0xff] %v11358_v44  ;;  %v11359_v5 = vmax.f32 %v11327_v60, 0.0  ;;  %v13598_v51 = vpop.f32.mrb[44].mxu0 }
 0x65a   :  { %11393 = vst [vmem:[#allocation9 + $0xd8] sm:$0xff] %v11361_v45  ;;  %v10720_v20 = vadd.f32 %v13598_v51, %v18933_v54  ;;  %v10711_v56 = vpop.f32.mrb[45].mxu0 }
 0x65b   :  { %11391 = vst [vmem:[#allocation9 + $0xc8] sm:$0xff] %v11359_v5  ;;  %v10712_v8 = vadd.f32 %v10711_v56, %v18893_v13  ;;  %v13599_v17 = vpop.f32.mrb[46].mxu0 }
 0x65c   :  { %v11332_v57 = vadd.f32 %v11300_v29, %v10720_v20  ;;  %v10723_v7 = vadd.f32 %v13599_v17, %v18945_v15  ;;  %v10714_v16 = vpop.f32.mrb[47].mxu0 }
 0x65d   :  { %v11330_v12 = vadd.f32 %v11298_v0, %v10712_v8  ;;  %v10715_v38 = vadd.f32 %v10714_v16, %v18899_v1 }
 0x65e   :  { %v11364_v59 = vmax.f32 %v11332_v57, 0.0  ;;  %v11333_v22 = vadd.f32 %v11301_v34, %v10723_v7 }
 0x65f   :  { %v11362_v4 = vmax.f32 %v11330_v12, 0.0  ;;  %v11331_v54 = vadd.f32 %v11299_v46, %v10715_v38 }
 0x660   :  { %11396 = vst [vmem:[#allocation9 + $0xf0] sm:$0xff] %v11364_v59  ;;  %v11365_v6 = vmax.f32 %v11333_v22, 0.0 }
 0x661   :  { %11394 = vst [vmem:[#allocation9 + $0xe0] sm:$0xff] %v11362_v4  ;;  %v11363_v48 = vmax.f32 %v11331_v54, 0.0 }
 0x662   :  { %11397 = vst [vmem:[#allocation9 + $0xf8] sm:$0xff] %v11365_v6 }
 0x663   :  { %11395 = vst [vmem:[#allocation9 + $0xe8] sm:$0xff] %v11363_v48 }
 0x664   :  { %13987 = shalt.err (!%p13984_p6)
}
 0x665   :  { %s13988_s13 = scalar_lea.hbm %s19177_s7, 4096 }
 0x666   :  { %p13989_p7 = scmp.ne.s32.totalorder %s19177_s7, %s13988_s13  ;;  %p13992_p8 = scmp.lt.u32.totalorder %s13988_s13, %s19177_s7 }
 0x668   :  { %p13994_p9 = pnand %p13992_p8, %p13989_p7 }
 0x66a   :  { %13997 = shalt.err (!%p13994_p9)
}
 0x66b   :  { %s14011_s18 = smov 128   ;;  %s14012_s19 = smov 8  }
 0x66c   :  { %11409 = dma.vmem_to_hbm [thread:$0]  %s11404_s9, 4096, %s19177_s7, [#allocation6], %s14011_s18, %s14011_s18, %s14012_s19  }
 0x66d   :  { %14002 = dma.done.wait [#allocation6], 4096  }
 0x66e   :  { %14003 = vsyncadd [#allocation6], 4294963200 }
 0x66f   :  { %11413 = vsyncpa [#allocation5], 1 }
 0x670   :  { %11414 = vsyncpa [#allocation8], 1 }
 0x671   :  { %11415 = vsyncpa [#allocation6], 1 }

</bundles_post_ra>
